<compile_context>
chip_gen: v5e
topology: v5e:2x2
jax: 0.10.0
libtpu: 0.0.40
codegen_flags: <defaults>
</compile_context>

<pallas_src>
import functools

import numpy as np

import jax
import jax.numpy as jnp
from jax import lax
from jax.experimental import pallas as pl
from jax.experimental.pallas import tpu as pltpu

NC = 3
NDF = 28

TILE_ROWS = 512                   # folded GEMM rows per grid step (~0.5-2 MiB of patches)
VMEM_LIMIT = 32 * 1024 * 1024     # raise scoped VMEM (v5e default 16 MiB); safe on v5e/v6e/v7x

# (cin_pad, cout_pad, fold) per conv layer; fold*cout_pad is the lane-dense store width.
_L1 = dict(cin_pad=4,   cout_pad=32,  fold=4)    # K=64   -> folded GEMM (M/4, 256) @ (256, 128)
_L2 = dict(cin_pad=32,  cout_pad=64,  fold=2)    # K=512  -> folded GEMM (M/2, 1024) @ (1024, 128)
_L3 = dict(cin_pad=64,  cout_pad=128, fold=1)    # K=1024
_L4 = dict(cin_pad=128, cout_pad=512, fold=1)    # K=2048
_L5 = dict(cin_pad=512, cout_pad=32)             # tail: K=4608, heads packed into (32, 128)

# Older jax releases named this TPUCompilerParams; fallback keeps the script portable.
_CompilerParams = getattr(pltpu, "CompilerParams", None) or getattr(pltpu, "TPUCompilerParams")


def _compiler_params():
    return _CompilerParams(dimension_semantics=("parallel",), vmem_limit_bytes=VMEM_LIMIT)


# ----------------------------------------------------------------------------
# Pallas kernels
# ----------------------------------------------------------------------------
def _conv_gemm_kernel(p_ref, w_ref, b_ref, o_ref, *, neg_slope):
    """o = leaky_relu(folded_patches_tile @ W_blockdiag + bn_shift); lane-dense output tile."""
    acc = jnp.dot(p_ref[...], w_ref[...], preferred_element_type=jnp.float32)
    y = acc + b_ref[...]                       # folded BN shift (zeros when no BN)
    y = jnp.where(y > 0, y, neg_slope * y)     # LeakyReLU(0.2)
    o_ref[...] = y.astype(o_ref.dtype)


def _pick_tile_rows(mf):
    """Folded rows per grid step: >=2 steps when possible (v7x megacore), sublane-aligned,
    capped at TILE_ROWS (pipelining / VMEM sweet spot)."""
    if mf <= 16:
        return mf                              # single tiny block (full dim, exempt from 8-row rule)
    half = (mf + 1) // 2                       # aim for at least 2 grid steps
    half = ((half + 7) // 8) * 8               # sublane-align the block row count
    return min(TILE_ROWS, half)


def conv_gemm(pf, wbd, shift_row, *, neg_slope=0.2):
    """Fused conv GEMM + BN shift + LeakyReLU, gridded over folded M rows."""
    mf, kf = pf.shape
    kf_w, cf = wbd.shape
    assert kf == kf_w and cf % 128 == 0
    tm = _pick_tile_rows(mf)
    return pl.pallas_call(
        functools.partial(_conv_gemm_kernel, neg_slope=neg_slope),
        out_shape=jax.ShapeDtypeStruct((mf, cf), jnp.bfloat16),
        grid=(pl.cdiv(mf, tm),),               # remainder blocks handled by Pallas edge masking
        in_specs=[
            pl.BlockSpec((tm, kf), lambda i: (i, 0)),   # M-tile of folded patches (pipelined)
            pl.BlockSpec((kf, cf), lambda i: (0, 0)),   # weight: constant block -> fetched once
            pl.BlockSpec((1, cf), lambda i: (0, 0)),    # folded BN-shift row
        ],
        out_specs=pl.BlockSpec((tm, cf), lambda i: (i, 0)),
        compiler_params=_compiler_params(),
    )(pf, wbd, shift_row)


def _tail_kernel(p_ref, w5_ref, wh_ref, bh_ref, o_ref):
    """Fused layer5 conv GEMM + linear_dis/linear_aux + sigmoid/softmax.

    Output lanes (dense 128): [sigmoid(dis) | softmax(aux) x10 | zeros x117].
    """
    x = jnp.dot(p_ref[...], w5_ref[...], preferred_element_type=jnp.float32)        # (tb, 32)
    logits = jnp.dot(x.astype(jnp.bfloat16), wh_ref[...],
                     preferred_element_type=jnp.float32) + bh_ref[...]              # (tb, 128)
    lane = lax.broadcasted_iota(jnp.int32, logits.shape, 1)
    is_dis = lane == 0
    is_aux = (lane >= 1) & (lane < 11)
    sig = 1.0 / (1.0 + jnp.exp(-logits))                 # exact -> stays inside [0, 1]
    masked = jnp.where(is_aux, logits, -1e30)
    m = jnp.max(masked, axis=-1, keepdims=True)
    e = jnp.where(is_aux, jnp.exp(masked - m), 0.0)
    sm = e / jnp.sum(e, axis=-1, keepdims=True)          # exact -> rows sum to 1
    o_ref[...] = jnp.where(is_dis, sig, jnp.where(is_aux, sm, 0.0))


def tail(patches5, w5, whead, bhead):
    b, k = patches5.shape
    tb = b if b <= 256 else 256
    return pl.pallas_call(
        _tail_kernel,
        out_shape=jax.ShapeDtypeStruct((b, 128), jnp.float32),
        grid=(pl.cdiv(b, tb),),
        in_specs=[
            pl.BlockSpec((tb, k), lambda i: (i, 0)),
            pl.BlockSpec(w5.shape, lambda i: (0, 0)),
            pl.BlockSpec(whead.shape, lambda i: (0, 0)),
            pl.BlockSpec(bhead.shape, lambda i: (0, 0)),
        ],
        out_specs=pl.BlockSpec((tb, 128), lambda i: (i, 0)),
        compiler_params=_compiler_params(),
    )(patches5, w5, whead, bhead)


# ----------------------------------------------------------------------------
# JAX glue: patch extraction + one-time weight packing
# ----------------------------------------------------------------------------
def extract_patches(x_nhwc, kh, kw, stride, pad):
    """im2col as one XLA op; returns (M, kh*kw*C) plus output dims."""
    n = x_nhwc.shape[0]
    patches = lax.conv_general_dilated_patches(
        x_nhwc, filter_shape=(kh, kw), window_strides=(stride, stride),
        padding=((pad, pad), (pad, pad)),
        dimension_numbers=("NHWC", "HWIO", "NHWC"))
    _, oh, ow, kc = patches.shape
    return patches.reshape(n * oh * ow, kc), (n, oh, ow)


@functools.lru_cache(maxsize=None)
def _patch_feature_order(kh, kw, cin):
    """Numerically probe conv_general_dilated_patches' feature ordering (runs once, at pack
    time).  order[j] == (dh*kw + dw)*cin + c for output feature j; weights are permuted to
    match, so an ordering mismatch can never silently scramble the convs."""
    probe = jnp.arange(kh * kw * cin, dtype=jnp.float32).reshape(1, kh, kw, cin)
    p = lax.conv_general_dilated_patches(
        probe, filter_shape=(kh, kw), window_strides=(1, 1), padding="VALID",
        dimension_numbers=("NHWC", "HWIO", "NHWC"))
    order = np.asarray(jax.device_get(p)).reshape(kh * kw * cin).round().astype(np.int64)
    assert sorted(order.tolist()) == list(range(kh * kw * cin)), "unexpected patch ordering"
    return tuple(int(v) for v in order)


def _prep_conv_weight(w_oihw, cin_pad, cout_pad, scale=None, fold=1):
    """torch (Cout,Cin,KH,KW) -> bf16 block-diagonal GEMM weight (fold*K, fold*cout_pad).

    BN scale folded into the columns; rows permuted to the im2col feature order; `fold`
    consecutive output pixels share one lane-dense output row via the block-diagonal.
    """
    cout, cin, kh, kw = w_oihw.shape
    w = jnp.transpose(w_oihw, (1, 2, 3, 0)).astype(jnp.float32)           # (Cin, KH, KW, Cout)
    if scale is not None:
        w = w * scale                                                     # fold BN scale
    w = jnp.pad(w, ((0, cin_pad - cin), (0, 0), (0, 0), (0, cout_pad - cout)))
    w_rows = jnp.transpose(w, (1, 2, 0, 3)).reshape(kh * kw * cin_pad, cout_pad)   # (dh,dw,c) rows
    order = np.asarray(_patch_feature_order(kh, kw, cin_pad), dtype=np.int64)
    w2d = w_rows[order]                                                   # rows in patch order
    if fold > 1:
        w2d = jnp.kron(jnp.eye(fold, dtype=w2d.dtype), w2d)               # block-diagonal expand
    return w2d.astype(jnp.bfloat16)


def _prep_shift_row(shift, cout_pad, fold=1):
    s = jnp.pad(shift.astype(jnp.float32), (0, cout_pad - shift.shape[0]))
    return jnp.tile(s, (fold,)).reshape(1, fold * cout_pad)


def _bn_fold(gamma, beta, eps=1e-5):
    # TODO(synk): eval-mode BatchNorm with fresh running stats (mean=0, var=1); trained
    #             running statistics / training-mode batch statistics are not modeled.
    return gamma / jnp.sqrt(1.0 + eps), beta


def prepare_weights(p):
    """One-time packing of every weight (hoisted out of forward)."""
    s2, b2 = _bn_fold(p["g2"], p["b2"])
    s3, b3 = _bn_fold(p["g3"], p["b3"])
    s4, b4 = _bn_fold(p["g4"], p["b4"])

    whead = jnp.zeros((_L5["cout_pad"], 128), jnp.float32)
    whead = whead.at[:NDF, 0:1].set(jnp.transpose(p["wd"]).astype(jnp.float32))
    whead = whead.at[:NDF, 1:11].set(jnp.transpose(p["wa"]).astype(jnp.float32))
    bhead = jnp.zeros((1, 128), jnp.float32)
    bhead = bhead.at[0, 0].set(p["bd"][0]).at[0, 1:11].set(p["ba"])

    return {
        "w1": _prep_conv_weight(p["w1"], _L1["cin_pad"], _L1["cout_pad"], None, _L1["fold"]),
        "s1": jnp.zeros((1, _L1["fold"] * _L1["cout_pad"]), jnp.float32),
        "w2": _prep_conv_weight(p["w2"], _L2["cin_pad"], _L2["cout_pad"], s2, _L2["fold"]),
        "s2": _prep_shift_row(b2, _L2["cout_pad"], _L2["fold"]),
        "w3": _prep_conv_weight(p["w3"], _L3["cin_pad"], _L3["cout_pad"], s3, _L3["fold"]),
        "s3": _prep_shift_row(b3, _L3["cout_pad"], _L3["fold"]),
        "w4": _prep_conv_weight(p["w4"], _L4["cin_pad"], _L4["cout_pad"], s4, _L4["fold"]),
        "s4": _prep_shift_row(b4, _L4["cout_pad"], _L4["fold"]),
        "w5": _prep_conv_weight(p["w5"], _L5["cin_pad"], _L5["cout_pad"]),
        "whead": whead.astype(jnp.bfloat16),
        "bhead": bhead,
    }


# ----------------------------------------------------------------------------
# Forward pass (eval-mode semantics of the PyTorch module)
# ----------------------------------------------------------------------------
def conv_block(x_nhwc, wbd, shift_row, *, fold):
    patches, (n, oh, ow) = extract_patches(x_nhwc, 4, 4, 2, 1)
    m, k = patches.shape
    assert m % fold == 0, "fold must divide N*OH*OW"
    out = conv_gemm(patches.reshape(m // fold, fold * k), wbd, shift_row)   # layout-preserving fold
    cout = wbd.shape[1] // fold
    return out.reshape(n, oh, ow, cout)                                     # layout-preserving


def forward(x_nchw, w):
    """D.forward: 4 conv blocks + fused (layer5 + heads) tail.  Dropout = identity at inference."""
    x = jnp.transpose(x_nchw, (0, 2, 3, 1)).astype(jnp.float32)
    x = jnp.pad(x, ((0, 0), (0, 0), (0, 0), (0, _L1["cin_pad"] - NC))).astype(jnp.bfloat16)

    x = conv_block(x, w["w1"], w["s1"], fold=_L1["fold"])   # Conv(3->28,4,2,1)    + LeakyReLU
    x = conv_block(x, w["w2"], w["s2"], fold=_L2["fold"])   # Conv(28->56,4,2,1)   + BN + LeakyReLU
    x = conv_block(x, w["w3"], w["s3"], fold=_L3["fold"])   # Conv(56->112,4,2,1)  + BN + LeakyReLU
    x = conv_block(x, w["w4"], w["s4"], fold=_L4["fold"])   # Conv(112->448,4,2,1) + BN + LeakyReLU

    patches5, _ = extract_patches(x, 3, 3, 2, 1)            # (B, 9*512) at 1x1 spatial
    out = tail(patches5, w["w5"], w["whead"], w["bhead"])   # (B, 128) lane-dense
    return out[:, 0:1], out[:, 1:11]                        # sigmoid(linear_dis), softmax(linear_aux)


def init_params(key):
    nc, ndf = NC, NDF
    ks = jax.random.split(key, 12)

    def w(k, shape, fan_in):
        return jax.random.normal(k, shape, jnp.float32) / jnp.sqrt(fan_in)

    return {
        "w1": w(ks[0], (ndf, nc, 4, 4), nc * 16),
        "w2": w(ks[1], (ndf * 2, ndf, 4, 4), ndf * 16),
        "w3": w(ks[2], (ndf * 4, ndf * 2, 4, 4), ndf * 2 * 16),
        "w4": w(ks[3], (ndf * 16, ndf * 4, 4, 4), ndf * 4 * 16),
        "w5": w(ks[4], (ndf, ndf * 16, 3, 3), ndf * 16 * 9),
        "g2": 1.0 + 0.1 * jax.random.normal(ks[5], (ndf * 2,), jnp.float32),
        "b2": 0.1 * jax.random.normal(ks[6], (ndf * 2,), jnp.float32),
        "g3": 1.0 + 0.1 * jax.random.normal(ks[7], (ndf * 4,), jnp.float32),
        "b3": 0.1 * jax.random.normal(ks[8], (ndf * 4,), jnp.float32),
        "g4": 1.0 + 0.1 * jax.random.normal(ks[9], (ndf * 16,), jnp.float32),
        "b4": 0.1 * jax.random.normal(ks[10], (ndf * 16,), jnp.float32),
        "wd": w(ks[11], (1, ndf), ndf),
        "bd": jnp.zeros((1,), jnp.float32),
        "wa": w(jax.random.fold_in(key, 99), (10, ndf), ndf),
        "ba": jnp.zeros((10,), jnp.float32),
    }


if __name__ == "__main__":
    key = jax.random.PRNGKey(0)
    kx, kp = jax.random.split(key)
    # 32x32 input so that after 5 stride-2 convs the spatial size is 1x1, matching x.view(-1, ndf).
    x = jax.random.normal(kx, (2, 3, 32, 32), jnp.float32)
    params = init_params(kp)

    packed = prepare_weights(params)      # one-time weight packing (hoisted out of forward)
    fwd = jax.jit(forward)
    real_or_fake, digit = fwd(x, packed)
    jax.block_until_ready((real_or_fake, digit))

    assert real_or_fake.shape == (2, 1) and digit.shape == (2, 10)
    assert bool(jnp.all((real_or_fake >= 0.0) & (real_or_fake <= 1.0)))
    assert bool(jnp.allclose(jnp.sum(digit, axis=-1), 1.0, atol=1e-4))
    print("KERNEL_OK")
</pallas_src>

<mosaic_0001>
module attributes {stable_mosaic.version = 11 : i64} {
  func.func @_conv_gemm_kernel(%arg0: i32, %arg1: memref<64x256xbf16, #tpu.memory_space<vmem>>, %arg2: memref<256x128xbf16, #tpu.memory_space<vmem>>, %arg3: memref<1x128xf32, #tpu.memory_space<vmem>>, %arg4: memref<64x128xbf16, #tpu.memory_space<vmem>>) attributes {dimension_semantics = [#tpu.dimension_semantics<parallel>], iteration_bounds = array<i64: 2>, scalar_prefetch = 0 : i64, scratch_operands = 0 : i64, tpu.core_type = #tpu.core_type<tc>, window_params = [{transform_indices = @transform_0, window_bounds = array<i64: 64, 256>}, {pipeline_mode = #tpu.pipeline_mode<synchronous>, transform_indices = @transform_1, window_bounds = array<i64: 256, 128>}, {pipeline_mode = #tpu.pipeline_mode<synchronous>, transform_indices = @transform_2, window_bounds = array<i64: 1, 128>}, {transform_indices = @transform_3, window_bounds = array<i64: 64, 128>}]} {
    %c0 = arith.constant 0 : index
    %c0_0 = arith.constant 0 : index
    %0 = vector.load %arg1[%c0, %c0_0] : memref<64x256xbf16, #tpu.memory_space<vmem>>, vector<64x256xbf16>
    %c0_1 = arith.constant 0 : index
    %c0_2 = arith.constant 0 : index
    %1 = vector.load %arg2[%c0_1, %c0_2] : memref<256x128xbf16, #tpu.memory_space<vmem>>, vector<256x128xbf16>
    %cst = arith.constant dense<0.000000e+00> : vector<64x128xf32>
    %2 = tpu.matmul %0, %1, %cst {dimension_numbers = #tpu.dot_dimension_numbers<[1], [0], [0], [1], [0, 0, 1, 1], [], []>} : vector<64x256xbf16>, vector<256x128xbf16>, vector<64x128xf32> -> vector<64x128xf32>
    %c0_3 = arith.constant 0 : index
    %c0_4 = arith.constant 0 : index
    %3 = vector.load %arg3[%c0_3, %c0_4] : memref<1x128xf32, #tpu.memory_space<vmem>>, vector<1x128xf32>
    %4 = vector.broadcast %3 : vector<1x128xf32> to vector<64x128xf32>
    %5 = arith.addf %2, %4 : vector<64x128xf32>
    %cst_5 = arith.constant 0.000000e+00 : f32
    %6 = vector.broadcast %cst_5 : f32 to vector<64x128xf32>
    %7 = arith.cmpf ogt, %5, %6 : vector<64x128xf32>
    %cst_6 = arith.constant 2.000000e-01 : f32
    %8 = vector.broadcast %cst_6 : f32 to vector<64x128xf32>
    %9 = arith.mulf %8, %5 : vector<64x128xf32>
    %10 = arith.select %7, %5, %9 : vector<64x128xi1>, vector<64x128xf32>
    %11 = arith.truncf %10 : vector<64x128xf32> to vector<64x128xbf16>
    %c0_7 = arith.constant 0 : index
    %c0_8 = arith.constant 0 : index
    %12 = vector.load %arg4[%c0_7, %c0_8] : memref<64x128xbf16, #tpu.memory_space<vmem>>, vector<64x128xbf16>
    tpu.vector_store %arg4[%c0_7, %c0_8], %11 {strides = array<i32>} : memref<64x128xbf16, #tpu.memory_space<vmem>>, vector<64x128xbf16>,
    return
  }
  func.func @transform_0(%arg0: i32) -> (i32, i32) {
    %c0_i32 = arith.constant 0 : i32
    %c0_i32_0 = arith.constant 0 : i32
    return %arg0, %c0_i32 : i32, i32
  }
  func.func @transform_1(%arg0: i32) -> (i32, i32) {
    %c0_i32 = arith.constant 0 : i32
    %c0_i32_0 = arith.constant 0 : i32
    %c0_i32_1 = arith.constant 0 : i32
    return %c0_i32, %c0_i32_0 : i32, i32
  }
  func.func @transform_2(%arg0: i32) -> (i32, i32) {
    %c0_i32 = arith.constant 0 : i32
    %c0_i32_0 = arith.constant 0 : i32
    %c0_i32_1 = arith.constant 0 : i32
    return %c0_i32, %c0_i32_0 : i32, i32
  }
  func.func @transform_3(%arg0: i32) -> (i32, i32) {
    %c0_i32 = arith.constant 0 : i32
    %c0_i32_0 = arith.constant 0 : i32
    return %arg0, %c0_i32 : i32, i32
  }
}

module attributes {stable_mosaic.version = 11 : i64} {
  func.func @_conv_gemm_kernel(%arg0: i32, %arg1: memref<32x1024xbf16, #tpu.memory_space<vmem>>, %arg2: memref<1024x128xbf16, #tpu.memory_space<vmem>>, %arg3: memref<1x128xf32, #tpu.memory_space<vmem>>, %arg4: memref<32x128xbf16, #tpu.memory_space<vmem>>) attributes {dimension_semantics = [#tpu.dimension_semantics<parallel>], iteration_bounds = array<i64: 2>, scalar_prefetch = 0 : i64, scratch_operands = 0 : i64, tpu.core_type = #tpu.core_type<tc>, window_params = [{transform_indices = @transform_0, window_bounds = array<i64: 32, 1024>}, {pipeline_mode = #tpu.pipeline_mode<synchronous>, transform_indices = @transform_1, window_bounds = array<i64: 1024, 128>}, {pipeline_mode = #tpu.pipeline_mode<synchronous>, transform_indices = @transform_2, window_bounds = array<i64: 1, 128>}, {transform_indices = @transform_3, window_bounds = array<i64: 32, 128>}]} {
    %c0 = arith.constant 0 : index
    %c0_0 = arith.constant 0 : index
    %0 = vector.load %arg1[%c0, %c0_0] : memref<32x1024xbf16, #tpu.memory_space<vmem>>, vector<32x1024xbf16>
    %c0_1 = arith.constant 0 : index
    %c0_2 = arith.constant 0 : index
    %1 = vector.load %arg2[%c0_1, %c0_2] : memref<1024x128xbf16, #tpu.memory_space<vmem>>, vector<1024x128xbf16>
    %cst = arith.constant dense<0.000000e+00> : vector<32x128xf32>
    %2 = tpu.matmul %0, %1, %cst {dimension_numbers = #tpu.dot_dimension_numbers<[1], [0], [0], [1], [0, 0, 1, 1], [], []>} : vector<32x1024xbf16>, vector<1024x128xbf16>, vector<32x128xf32> -> vector<32x128xf32>
    %c0_3 = arith.constant 0 : index
    %c0_4 = arith.constant 0 : index
    %3 = vector.load %arg3[%c0_3, %c0_4] : memref<1x128xf32, #tpu.memory_space<vmem>>, vector<1x128xf32>
    %4 = vector.broadcast %3 : vector<1x128xf32> to vector<32x128xf32>
    %5 = arith.addf %2, %4 : vector<32x128xf32>
    %cst_5 = arith.constant 0.000000e+00 : f32
    %6 = vector.broadcast %cst_5 : f32 to vector<32x128xf32>
    %7 = arith.cmpf ogt, %5, %6 : vector<32x128xf32>
    %cst_6 = arith.constant 2.000000e-01 : f32
    %8 = vector.broadcast %cst_6 : f32 to vector<32x128xf32>
    %9 = arith.mulf %8, %5 : vector<32x128xf32>
    %10 = arith.select %7, %5, %9 : vector<32x128xi1>, vector<32x128xf32>
    %11 = arith.truncf %10 : vector<32x128xf32> to vector<32x128xbf16>
    %c0_7 = arith.constant 0 : index
    %c0_8 = arith.constant 0 : index
    %12 = vector.load %arg4[%c0_7, %c0_8] : memref<32x128xbf16, #tpu.memory_space<vmem>>, vector<32x128xbf16>
    tpu.vector_store %arg4[%c0_7, %c0_8], %11 {strides = array<i32>} : memref<32x128xbf16, #tpu.memory_space<vmem>>, vector<32x128xbf16>,
    return
  }
  func.func @transform_0(%arg0: i32) -> (i32, i32) {
    %c0_i32 = arith.constant 0 : i32
    %c0_i32_0 = arith.constant 0 : i32
    return %arg0, %c0_i32 : i32, i32
  }
  func.func @transform_1(%arg0: i32) -> (i32, i32) {
    %c0_i32 = arith.constant 0 : i32
    %c0_i32_0 = arith.constant 0 : i32
    %c0_i32_1 = arith.constant 0 : i32
    return %c0_i32, %c0_i32_0 : i32, i32
  }
  func.func @transform_2(%arg0: i32) -> (i32, i32) {
    %c0_i32 = arith.constant 0 : i32
    %c0_i32_0 = arith.constant 0 : i32
    %c0_i32_1 = arith.constant 0 : i32
    return %c0_i32, %c0_i32_0 : i32, i32
  }
  func.func @transform_3(%arg0: i32) -> (i32, i32) {
    %c0_i32 = arith.constant 0 : i32
    %c0_i32_0 = arith.constant 0 : i32
    return %arg0, %c0_i32 : i32, i32
  }
}

module attributes {stable_mosaic.version = 11 : i64} {
  func.func @_conv_gemm_kernel(%arg0: i32, %arg1: memref<16x1024xbf16, #tpu.memory_space<vmem>>, %arg2: memref<1024x128xbf16, #tpu.memory_space<vmem>>, %arg3: memref<1x128xf32, #tpu.memory_space<vmem>>, %arg4: memref<16x128xbf16, #tpu.memory_space<vmem>>) attributes {dimension_semantics = [#tpu.dimension_semantics<parallel>], iteration_bounds = array<i64: 2>, scalar_prefetch = 0 : i64, scratch_operands = 0 : i64, tpu.core_type = #tpu.core_type<tc>, window_params = [{transform_indices = @transform_0, window_bounds = array<i64: 16, 1024>}, {pipeline_mode = #tpu.pipeline_mode<synchronous>, transform_indices = @transform_1, window_bounds = array<i64: 1024, 128>}, {pipeline_mode = #tpu.pipeline_mode<synchronous>, transform_indices = @transform_2, window_bounds = array<i64: 1, 128>}, {transform_indices = @transform_3, window_bounds = array<i64: 16, 128>}]} {
    %c0 = arith.constant 0 : index
    %c0_0 = arith.constant 0 : index
    %0 = vector.load %arg1[%c0, %c0_0] : memref<16x1024xbf16, #tpu.memory_space<vmem>>, vector<16x1024xbf16>
    %c0_1 = arith.constant 0 : index
    %c0_2 = arith.constant 0 : index
    %1 = vector.load %arg2[%c0_1, %c0_2] : memref<1024x128xbf16, #tpu.memory_space<vmem>>, vector<1024x128xbf16>
    %cst = arith.constant dense<0.000000e+00> : vector<16x128xf32>
    %2 = tpu.matmul %0, %1, %cst {dimension_numbers = #tpu.dot_dimension_numbers<[1], [0], [0], [1], [0, 0, 1, 1], [], []>} : vector<16x1024xbf16>, vector<1024x128xbf16>, vector<16x128xf32> -> vector<16x128xf32>
    %c0_3 = arith.constant 0 : index
    %c0_4 = arith.constant 0 : index
    %3 = vector.load %arg3[%c0_3, %c0_4] : memref<1x128xf32, #tpu.memory_space<vmem>>, vector<1x128xf32>
    %4 = vector.broadcast %3 : vector<1x128xf32> to vector<16x128xf32>
    %5 = arith.addf %2, %4 : vector<16x128xf32>
    %cst_5 = arith.constant 0.000000e+00 : f32
    %6 = vector.broadcast %cst_5 : f32 to vector<16x128xf32>
    %7 = arith.cmpf ogt, %5, %6 : vector<16x128xf32>
    %cst_6 = arith.constant 2.000000e-01 : f32
    %8 = vector.broadcast %cst_6 : f32 to vector<16x128xf32>
    %9 = arith.mulf %8, %5 : vector<16x128xf32>
    %10 = arith.select %7, %5, %9 : vector<16x128xi1>, vector<16x128xf32>
    %11 = arith.truncf %10 : vector<16x128xf32> to vector<16x128xbf16>
    %c0_7 = arith.constant 0 : index
    %c0_8 = arith.constant 0 : index
    %12 = vector.load %arg4[%c0_7, %c0_8] : memref<16x128xbf16, #tpu.memory_space<vmem>>, vector<16x128xbf16>
    tpu.vector_store %arg4[%c0_7, %c0_8], %11 {strides = array<i32>} : memref<16x128xbf16, #tpu.memory_space<vmem>>, vector<16x128xbf16>,
    return
  }
  func.func @transform_0(%arg0: i32) -> (i32, i32) {
    %c0_i32 = arith.constant 0 : i32
    %c0_i32_0 = arith.constant 0 : i32
    return %arg0, %c0_i32 : i32, i32
  }
  func.func @transform_1(%arg0: i32) -> (i32, i32) {
    %c0_i32 = arith.constant 0 : i32
    %c0_i32_0 = arith.constant 0 : i32
    %c0_i32_1 = arith.constant 0 : i32
    return %c0_i32, %c0_i32_0 : i32, i32
  }
  func.func @transform_2(%arg0: i32) -> (i32, i32) {
    %c0_i32 = arith.constant 0 : i32
    %c0_i32_0 = arith.constant 0 : i32
    %c0_i32_1 = arith.constant 0 : i32
    return %c0_i32, %c0_i32_0 : i32, i32
  }
  func.func @transform_3(%arg0: i32) -> (i32, i32) {
    %c0_i32 = arith.constant 0 : i32
    %c0_i32_0 = arith.constant 0 : i32
    return %arg0, %c0_i32 : i32, i32
  }
}

module attributes {stable_mosaic.version = 11 : i64} {
  func.func @_conv_gemm_kernel(%arg0: i32, %arg1: memref<8x2048xbf16, #tpu.memory_space<vmem>>, %arg2: memref<2048x512xbf16, #tpu.memory_space<vmem>>, %arg3: memref<1x512xf32, #tpu.memory_space<vmem>>, %arg4: memref<8x512xbf16, #tpu.memory_space<vmem>>) attributes {dimension_semantics = [#tpu.dimension_semantics<parallel>], iteration_bounds = array<i64: 1>, scalar_prefetch = 0 : i64, scratch_operands = 0 : i64, tpu.core_type = #tpu.core_type<tc>, window_params = [{transform_indices = @transform_0, window_bounds = array<i64: 8, 2048>}, {pipeline_mode = #tpu.pipeline_mode<synchronous>, transform_indices = @transform_1, window_bounds = array<i64: 2048, 512>}, {pipeline_mode = #tpu.pipeline_mode<synchronous>, transform_indices = @transform_2, window_bounds = array<i64: 1, 512>}, {transform_indices = @transform_3, window_bounds = array<i64: 8, 512>}]} {
    %c0 = arith.constant 0 : index
    %c0_0 = arith.constant 0 : index
    %0 = vector.load %arg1[%c0, %c0_0] : memref<8x2048xbf16, #tpu.memory_space<vmem>>, vector<8x2048xbf16>
    %c0_1 = arith.constant 0 : index
    %c0_2 = arith.constant 0 : index
    %1 = vector.load %arg2[%c0_1, %c0_2] : memref<2048x512xbf16, #tpu.memory_space<vmem>>, vector<2048x512xbf16>
    %cst = arith.constant dense<0.000000e+00> : vector<8x512xf32>
    %2 = tpu.matmul %0, %1, %cst {dimension_numbers = #tpu.dot_dimension_numbers<[1], [0], [0], [1], [0, 0, 1, 1], [], []>} : vector<8x2048xbf16>, vector<2048x512xbf16>, vector<8x512xf32> -> vector<8x512xf32>
    %c0_3 = arith.constant 0 : index
    %c0_4 = arith.constant 0 : index
    %3 = vector.load %arg3[%c0_3, %c0_4] : memref<1x512xf32, #tpu.memory_space<vmem>>, vector<1x512xf32>
    %4 = vector.broadcast %3 : vector<1x512xf32> to vector<8x512xf32>
    %5 = arith.addf %2, %4 : vector<8x512xf32>
    %cst_5 = arith.constant 0.000000e+00 : f32
    %6 = vector.broadcast %cst_5 : f32 to vector<8x512xf32>
    %7 = arith.cmpf ogt, %5, %6 : vector<8x512xf32>
    %cst_6 = arith.constant 2.000000e-01 : f32
    %8 = vector.broadcast %cst_6 : f32 to vector<8x512xf32>
    %9 = arith.mulf %8, %5 : vector<8x512xf32>
    %10 = arith.select %7, %5, %9 : vector<8x512xi1>, vector<8x512xf32>
    %11 = arith.truncf %10 : vector<8x512xf32> to vector<8x512xbf16>
    %c0_7 = arith.constant 0 : index
    %c0_8 = arith.constant 0 : index
    %12 = vector.load %arg4[%c0_7, %c0_8] : memref<8x512xbf16, #tpu.memory_space<vmem>>, vector<8x512xbf16>
    tpu.vector_store %arg4[%c0_7, %c0_8], %11 {strides = array<i32>} : memref<8x512xbf16, #tpu.memory_space<vmem>>, vector<8x512xbf16>,
    return
  }
  func.func @transform_0(%arg0: i32) -> (i32, i32) {
    %c0_i32 = arith.constant 0 : i32
    %c0_i32_0 = arith.constant 0 : i32
    return %arg0, %c0_i32 : i32, i32
  }
  func.func @transform_1(%arg0: i32) -> (i32, i32) {
    %c0_i32 = arith.constant 0 : i32
    %c0_i32_0 = arith.constant 0 : i32
    %c0_i32_1 = arith.constant 0 : i32
    return %c0_i32, %c0_i32_0 : i32, i32
  }
  func.func @transform_2(%arg0: i32) -> (i32, i32) {
    %c0_i32 = arith.constant 0 : i32
    %c0_i32_0 = arith.constant 0 : i32
    %c0_i32_1 = arith.constant 0 : i32
    return %c0_i32, %c0_i32_0 : i32, i32
  }
  func.func @transform_3(%arg0: i32) -> (i32, i32) {
    %c0_i32 = arith.constant 0 : i32
    %c0_i32_0 = arith.constant 0 : i32
    return %arg0, %c0_i32 : i32, i32
  }
}

module attributes {stable_mosaic.version = 11 : i64} {
  func.func @_tail_kernel(%arg0: i32, %arg1: memref<2x4608xbf16, #tpu.memory_space<vmem>>, %arg2: memref<4608x32xbf16, #tpu.memory_space<vmem>>, %arg3: memref<32x128xbf16, #tpu.memory_space<vmem>>, %arg4: memref<1x128xf32, #tpu.memory_space<vmem>>, %arg5: memref<2x128xf32, #tpu.memory_space<vmem>>) attributes {dimension_semantics = [#tpu.dimension_semantics<parallel>], iteration_bounds = array<i64: 1>, scalar_prefetch = 0 : i64, scratch_operands = 0 : i64, tpu.core_type = #tpu.core_type<tc>, window_params = [{transform_indices = @transform_0, window_bounds = array<i64: 2, 4608>}, {pipeline_mode = #tpu.pipeline_mode<synchronous>, transform_indices = @transform_1, window_bounds = array<i64: 4608, 32>}, {pipeline_mode = #tpu.pipeline_mode<synchronous>, transform_indices = @transform_2, window_bounds = array<i64: 32, 128>}, {pipeline_mode = #tpu.pipeline_mode<synchronous>, transform_indices = @transform_3, window_bounds = array<i64: 1, 128>}, {transform_indices = @transform_4, window_bounds = array<i64: 2, 128>}]} {
    %c0 = arith.constant 0 : index
    %c0_0 = arith.constant 0 : index
    %0 = vector.load %arg1[%c0, %c0_0] : memref<2x4608xbf16, #tpu.memory_space<vmem>>, vector<2x4608xbf16>
    %c0_1 = arith.constant 0 : index
    %c0_2 = arith.constant 0 : index
    %1 = vector.load %arg2[%c0_1, %c0_2] : memref<4608x32xbf16, #tpu.memory_space<vmem>>, vector<4608x32xbf16>
    %cst = arith.constant dense<0.000000e+00> : vector<2x32xf32>
    %2 = tpu.matmul %0, %1, %cst {dimension_numbers = #tpu.dot_dimension_numbers<[1], [0], [0], [1], [0, 0, 1, 1], [], []>} : vector<2x4608xbf16>, vector<4608x32xbf16>, vector<2x32xf32> -> vector<2x32xf32>
    %3 = arith.truncf %2 : vector<2x32xf32> to vector<2x32xbf16>
    %c0_3 = arith.constant 0 : index
    %c0_4 = arith.constant 0 : index
    %4 = vector.load %arg3[%c0_3, %c0_4] : memref<32x128xbf16, #tpu.memory_space<vmem>>, vector<32x128xbf16>
    %cst_5 = arith.constant dense<0.000000e+00> : vector<2x128xf32>
    %5 = tpu.matmul %3, %4, %cst_5 {dimension_numbers = #tpu.dot_dimension_numbers<[1], [0], [0], [1], [0, 0, 1, 1], [], []>} : vector<2x32xbf16>, vector<32x128xbf16>, vector<2x128xf32> -> vector<2x128xf32>
    %c0_6 = arith.constant 0 : index
    %c0_7 = arith.constant 0 : index
    %6 = vector.load %arg4[%c0_6, %c0_7] : memref<1x128xf32, #tpu.memory_space<vmem>>, vector<1x128xf32>
    %7 = vector.broadcast %6 : vector<1x128xf32> to vector<2x128xf32>
    %8 = arith.addf %5, %7 : vector<2x128xf32>
    %9 = tpu.iota {dimensions = array<i32: 1>} : vector<2x128xi32>
    %c0_i32 = arith.constant 0 : i32
    %10 = vector.broadcast %c0_i32 : i32 to vector<2x128xi32>
    %11 = arith.cmpi eq, %9, %10 : vector<2x128xi32>
    %c1_i32 = arith.constant 1 : i32
    %12 = vector.broadcast %c1_i32 : i32 to vector<2x128xi32>
    %13 = arith.cmpi sge, %9, %12 : vector<2x128xi32>
    %c11_i32 = arith.constant 11 : i32
    %14 = vector.broadcast %c11_i32 : i32 to vector<2x128xi32>
    %15 = arith.cmpi slt, %9, %14 : vector<2x128xi32>
    %16 = arith.andi %13, %15 : vector<2x128xi1>
    %cst_8 = arith.constant 0.000000e+00 : f32
    %17 = vector.broadcast %cst_8 : f32 to vector<2x128xf32>
    %18 = arith.subf %17, %8 : vector<2x128xf32>
    %19 = math.exp %18 : vector<2x128xf32>
    %cst_9 = arith.constant 1.000000e+00 : f32
    %20 = vector.broadcast %cst_9 : f32 to vector<2x128xf32>
    %21 = arith.addf %20, %19 : vector<2x128xf32>
    %cst_10 = arith.constant 1.000000e+00 : f32
    %22 = vector.broadcast %cst_10 : f32 to vector<2x128xf32>
    %23 = arith.divf %22, %21 : vector<2x128xf32>
    %cst_11 = arith.constant -1.000000e+30 : f32
    %24 = vector.broadcast %cst_11 : f32 to vector<2x128xf32>
    %25 = arith.select %16, %8, %24 : vector<2x128xi1>, vector<2x128xf32>
    %cst_12 = arith.constant dense<0xFF800000> : vector<2xf32>
    %26 = vector.multi_reduction <maximumf>, %25, %cst_12 [1] : vector<2x128xf32> to vector<2xf32>
    %27 = vector.shape_cast %26 : vector<2xf32> to vector<2x1xf32>
    %28 = vector.broadcast %27 : vector<2x1xf32> to vector<2x128xf32>
    %29 = arith.subf %25, %28 : vector<2x128xf32>
    %30 = math.exp %29 : vector<2x128xf32>
    %cst_13 = arith.constant 0.000000e+00 : f32
    %31 = vector.broadcast %cst_13 : f32 to vector<2x128xf32>
    %32 = arith.select %16, %30, %31 : vector<2x128xi1>, vector<2x128xf32>
    %cst_14 = arith.constant dense<0.000000e+00> : vector<2xf32>
    %33 = vector.multi_reduction <add>, %32, %cst_14 [1] : vector<2x128xf32> to vector<2xf32>
    %34 = vector.shape_cast %33 : vector<2xf32> to vector<2x1xf32>
    %35 = vector.broadcast %34 : vector<2x1xf32> to vector<2x128xf32>
    %36 = arith.divf %32, %35 : vector<2x128xf32>
    %cst_15 = arith.constant 0.000000e+00 : f32
    %37 = vector.broadcast %cst_15 : f32 to vector<2x128xf32>
    %38 = arith.select %16, %36, %37 : vector<2x128xi1>, vector<2x128xf32>
    %39 = arith.select %11, %23, %38 : vector<2x128xi1>, vector<2x128xf32>
    %c0_16 = arith.constant 0 : index
    %c0_17 = arith.constant 0 : index
    %40 = vector.load %arg5[%c0_16, %c0_17] : memref<2x128xf32, #tpu.memory_space<vmem>>, vector<2x128xf32>
    tpu.vector_store %arg5[%c0_16, %c0_17], %39 {strides = array<i32>} : memref<2x128xf32, #tpu.memory_space<vmem>>, vector<2x128xf32>,
    return
  }
  func.func @transform_0(%arg0: i32) -> (i32, i32) {
    %c0_i32 = arith.constant 0 : i32
    %c0_i32_0 = arith.constant 0 : i32
    return %arg0, %c0_i32 : i32, i32
  }
  func.func @transform_1(%arg0: i32) -> (i32, i32) {
    %c0_i32 = arith.constant 0 : i32
    %c0_i32_0 = arith.constant 0 : i32
    %c0_i32_1 = arith.constant 0 : i32
    return %c0_i32, %c0_i32_0 : i32, i32
  }
  func.func @transform_2(%arg0: i32) -> (i32, i32) {
    %c0_i32 = arith.constant 0 : i32
    %c0_i32_0 = arith.constant 0 : i32
    %c0_i32_1 = arith.constant 0 : i32
    return %c0_i32, %c0_i32_0 : i32, i32
  }
  func.func @transform_3(%arg0: i32) -> (i32, i32) {
    %c0_i32 = arith.constant 0 : i32
    %c0_i32_0 = arith.constant 0 : i32
    %c0_i32_1 = arith.constant 0 : i32
    return %c0_i32, %c0_i32_0 : i32, i32
  }
  func.func @transform_4(%arg0: i32) -> (i32, i32) {
    %c0_i32 = arith.constant 0 : i32
    %c0_i32_0 = arith.constant 0 : i32
    return %arg0, %c0_i32 : i32, i32
  }
}

</mosaic_0001>

<bundles_post_ra>
// kernel: forward.5
= control target key start
LH: loop header
LB: loop body
LE: loop exit
PB: predicated region body
PF: predicated region fallthrough
CT: control target
= control target key end

     0   :  { %s720_s12 = smov 0   ;;  %s816_s0 = inlined_call_operand.vmem [shape: bf16[128,256], index: 0, kind: input, shape index: {}]   ;;  %s817_s1 = inlined_call_operand.vmem [shape: bf16[256,128], index: 1, kind: input, shape index: {}]   ;;  %s818_s2 = inlined_call_operand.vmem [shape: f32[1,128], index: 2, kind: input, shape index: {}]   ;;  %s819_s3 = inlined_call_operand.vmem [shape: bf16[128,128], index: 3, kind: output, shape index: {}]  }
   0x1 LB: > { %s511_s13 = sadd.s32 4294967295, %s698_s12   ;;  %p515_p0 = scmp.ge.s32.totalorder %s698_s12, 1  ;;  %s698_s12 = sphi %s720_s12, %s13_s12  }
   0x2   : > { %p139_p1 = scmp.lt.s32.totalorder %s698_s12, 3 }
   0x4   : > { %p140_p2 = pnand %p515_p0, %p139_p1 }
   0x5   : > { %s516_s26 = sshll.u32 (!%p140_p2), %s511_s13, 3 }
   0x6   : > { %143 = sbr.rel (%p140_p2) target bundleno = 209 (0xd1), region = 32  ;;  %p165_p3 = scmp.lt.s32.totalorder (!%p140_p2), %s516_s26, 15 }
   0xb   : > { %v635_v0 = vld [vmem:[%s817_s1 + $0x38] sm:$0xff]  ;;  %v634_v2 = vld [vmem:[%s817_s1 + $0x30] sm:$0xff]  ;;  %v633_v4 = vld [vmem:[%s817_s1 + $0x28] sm:$0xff]  ;;  %s821_s26 = smov (!%p165_p3, %s516_s26), 15 }
   0xc   : > { %v643_v1 = vld [vmem:[%s817_s1 + $0x78] sm:$0xff]  ;;  %357 = vmatpush.bf16.msra.mxu0 %v635_v0  ;;  %667 = vmatpush.bf16.msra.mxu2 %v635_v0  ;;  %v642_v3 = vld [vmem:[%s817_s1 + $0x70] sm:$0xff]  ;;  %v641_v5 = vld [vmem:[%s817_s1 + $0x68] sm:$0xff]  ;;  %s619_s13 = sshll.u32 %s821_s26, 3  ;;  %s520_s28 = sshll.u32 %s821_s26, 2 }
   0xd   : > { %386 = vmatpush.bf16.msra.mxu1 %v643_v1  ;;  %675 = vmatpush.bf16.msra.mxu3 %v643_v1  ;;  %v632_v6 = vld [vmem:[%s817_s1 + $0x20] sm:$0xff]  ;;  %v631_v8 = vld [vmem:[%s817_s1 + $0x18] sm:$0xff]  ;;  %v630_v10 = vld [vmem:[%s817_s1 + $0x10] sm:$0xff]  ;;  %s773_s18 = scalar_lea.vmem %s816_s0, %s619_s13  ;;  %s807_s4 = scalar_lea.vmem %s819_s3, %s520_s28 }
   0xe   : > { %v640_v7 = vld [vmem:[%s817_s1 + $0x60] sm:$0xff]  ;;  %v639_v9 = vld [vmem:[%s817_s1 + $0x58] sm:$0xff]  ;;  %v638_v11 = vld [vmem:[%s817_s1 + $0x50] sm:$0xff] }
   0xf   : > { %v629_v12 = vld [vmem:[%s817_s1 + $0x8] sm:$0xff]  ;;  %v628_v14 = vld [vmem:[%s817_s1] sm:$0xff]  ;;  %v531_v28 = vld [vmem:[%s773_s18 + $0x10] sm:$0xf] }
  0x10   : > { %358 = vmatpush.bf16.msra.mxu0 %v634_v2  ;;  %668 = vmatpush.bf16.msra.mxu2 %v634_v2  ;;  %v637_v13 = vld [vmem:[%s817_s1 + $0x48] sm:$0xff]  ;;  %v636_v15 = vld [vmem:[%s817_s1 + $0x40] sm:$0xff]  ;;  %v623_v29 = vld [vmem:[%s773_s18 + $0x14] sm:$0xf0] }
  0x11   : > { %387 = vmatpush.bf16.msra.mxu1 %v642_v3  ;;  %676 = vmatpush.bf16.msra.mxu3 %v642_v3  ;;  %v523_v16 = vld [vmem:[%s773_s18] sm:$0xf]  ;;  %v621_v17 = vld [vmem:[%s773_s18 + $0x4] sm:$0xf0]  ;;  %v620_v20 = vld [vmem:[%s773_s18 + $0x4] sm:$0xf]  ;;  %v532_v36 = vor.u32 %v623_v29, %v531_v28 }
  0x12   : > { %v539_v18 = vld [vmem:[%s773_s18 + $0x20] sm:$0xf]  ;;  %v625_v19 = vld [vmem:[%s773_s18 + $0x24] sm:$0xf0]  ;;  %v525_v21 = vld [vmem:[%s773_s18 + $0x8] sm:$0xf0]  ;;  %v524_v24 = vor.u32 %v621_v17, %v523_v16 }
  0x13   : > { %v624_v22 = vld [vmem:[%s773_s18 + $0x24] sm:$0xf]  ;;  %v541_v23 = vld [vmem:[%s773_s18 + $0x28] sm:$0xf0]  ;;  %v540_v25 = vor.u32 %v625_v19, %v539_v18  ;;  %v528_v26 = vor.u32 %v620_v20, %v525_v21  ;;  %v547_v30 = vld [vmem:[%s773_s18 + $0x30] sm:$0xf] }
  0x14   : > { %359 = vmatpush.bf16.msra.mxu0 %v633_v4  ;;  %669 = vmatpush.bf16.msra.mxu2 %v633_v4  ;;  %v544_v27 = vor.u32 %v624_v22, %v541_v23  ;;  %v627_v31 = vld [vmem:[%s773_s18 + $0x34] sm:$0xf0]  ;;  %v622_v32 = vld [vmem:[%s773_s18 + $0x14] sm:$0xf]  ;;  %v533_v33 = vld [vmem:[%s773_s18 + $0x18] sm:$0xf0] }
  0x15   : > { %388 = vmatpush.bf16.msra.mxu1 %v641_v5  ;;  %677 = vmatpush.bf16.msra.mxu3 %v641_v5  ;;  %v626_v34 = vld [vmem:[%s773_s18 + $0x34] sm:$0xf]  ;;  %v549_v35 = vld [vmem:[%s773_s18 + $0x38] sm:$0xf0]  ;;  %v548_v37 = vor.u32 %v627_v31, %v547_v30  ;;  %v536_v38 = vor.u32 %v622_v32, %v533_v33  ;;  %v691_v40 = vld [vmem:[%s818_s2] ss:$0 sm:$0xff] }
  0x16   : > { %v552_v39 = vor.u32 %v626_v34, %v549_v35 }
  0x18   : > { %360 = vmatpush.bf16.msra.mxu0 %v632_v6  ;;  %670 = vmatpush.bf16.msra.mxu2 %v632_v6 }
  0x19   : > { %389 = vmatpush.bf16.msra.mxu1 %v640_v7  ;;  %678 = vmatpush.bf16.msra.mxu3 %v640_v7 }
  0x1c   : > { %361 = vmatpush.bf16.msra.mxu0 %v631_v8  ;;  %671 = vmatpush.bf16.msra.mxu2 %v631_v8 }
  0x1d   : > { %390 = vmatpush.bf16.msra.mxu1 %v639_v9  ;;  %679 = vmatpush.bf16.msra.mxu3 %v639_v9 }
  0x20   : > { %362 = vmatpush.bf16.msra.mxu0 %v630_v10  ;;  %672 = vmatpush.bf16.msra.mxu2 %v630_v10 }
  0x21   : > { %391 = vmatpush.bf16.msra.mxu1 %v638_v11  ;;  %680 = vmatpush.bf16.msra.mxu3 %v638_v11 }
  0x24   : > { %363 = vmatpush.bf16.msra.mxu0 %v629_v12  ;;  %673 = vmatpush.bf16.msra.mxu2 %v629_v12 }
  0x25   : > { %392 = vmatpush.bf16.msra.mxu1 %v637_v13  ;;  %681 = vmatpush.bf16.msra.mxu3 %v637_v13 }
  0x28   : > { %364 = vmatpush.bf16.msra.mxu0 %v628_v14  ;;  %674 = vmatpush.bf16.msra.mxu2 %v628_v14 }
  0x29   : > { %393 = vmatpush.bf16.msra.mxu1 %v636_v15  ;;  %682 = vmatpush.bf16.msra.mxu3 %v636_v15 }
  0x2b   : > { %365 = vmatmul.bf16.vlgmr.msra.gmra.mxu0 %v524_v24  ;;  %375 = vmatmul.bf16.vlgmr.msra.gmra.mxu2 %v540_v25 }
  0x2c   : > { %394 = vmatmul.bf16.vlgmr.msra.gmra.mxu1 %v528_v26  ;;  %404 = vmatmul.bf16.vlgmr.msra.gmra.mxu3 %v544_v27 }
  0x3b   : > { %370 = vmatmul.bf16.gmra.mxu0 %v532_v36  ;;  %380 = vmatmul.bf16.gmra.mxu2 %v548_v37 }
  0x3c   : > { %399 = vmatmul.bf16.gmra.mxu1 %v536_v38  ;;  %409 = vmatmul.bf16.gmra.mxu3 %v552_v39 }
  0xa8   : > { %v366_v41 = vpop.f32.mrf.mxu0 }
  0xa9   : > { %v395_v42 = vpop.f32.mrf.mxu1  ;;  %v367_v43 = vadd.f32 %v691_v40, %v366_v41 }
  0xab   : > { %v396_v45 = vadd.f32 %v395_v42, %v367_v43 }
  0xad   : > { %v423_v51 = vmul.f32 0.2, %v396_v45  ;;  %vm415_vm0 = vcmp.gt.f32.partialorder %v396_v45, 0.0 }
  0xae   : > { %v376_v44 = vpop.f32.mrf.mxu2 }
  0xaf   : > { %v405_v46 = vpop.f32.mrf.mxu3  ;;  %v377_v48 = vadd.f32 %v691_v40, %v376_v44  ;;  %v431_v56 = vsel %vm415_vm0, %v396_v45, %v423_v51 }
  0xb0   : > { %v368_v47 = vpop.f32.mrf.mxu0 }
  0xb1   : > { %v369_v49 = vadd.f32 %v691_v40, %v368_v47  ;;  %v397_v50 = vpop.f32.mrf.mxu1  ;;  %v406_v53 = vadd.f32 %v405_v46, %v377_v48 }
  0xb3   : > { %v398_v52 = vadd.f32 %v397_v50, %v369_v49  ;;  %v427_v62 = vmul.f32 0.2, %v406_v53  ;;  %vm419_vm2 = vcmp.gt.f32.partialorder %v406_v53, 0.0 }
  0xb5   : > { %vm416_vm1 = vcmp.gt.f32.partialorder %v398_v52, 0.0  ;;  %v424_v54 = vmul.f32 0.2, %v398_v52  ;;  %v435_v3 = vsel %vm419_vm2, %v406_v53, %v427_v62 }
  0xb6   : > { %v378_v55 = vpop.f32.mrf.mxu2 }
  0xb7   : > { %v432_v57 = vsel %vm416_vm1, %v398_v52, %v424_v54  ;;  %v379_v58 = vadd.f32 %v691_v40, %v378_v55  ;;  %v407_v59 = vpop.f32.mrf.mxu3 }
  0xb8   : > { %v647_v60 = vpack.c.bf16 %v432_v57, %v431_v56  ;;  %v371_v61 = vpop.f32.mrf.mxu0 }
  0xb9   : > { %v408_v63 = vadd.f32 %v407_v59, %v379_v58  ;;  %v400_v0 = vpop.f32.mrf.mxu1  ;;  %v372_v2 = vadd.f32 %v691_v40, %v371_v61 }
  0xba   : > { %648 = vst [vmem:[%s807_s4] sm:$0xff] %v647_v60  }
  0xbb   : > { %vm420_vm3 = vcmp.gt.f32.partialorder %v408_v63, 0.0  ;;  %v428_v1 = vmul.f32 0.2, %v408_v63  ;;  %v401_v7 = vadd.f32 %v400_v0, %v372_v2 }
  0xbd   : > { %v436_v4 = vsel %vm420_vm3, %v408_v63, %v428_v1  ;;  %v425_v13 = vmul.f32 0.2, %v401_v7  ;;  %vm417_vm4 = vcmp.gt.f32.partialorder %v401_v7, 0.0 }
  0xbe   : > { %v657_v5 = vpack.c.bf16 %v436_v4, %v435_v3  ;;  %v381_v6 = vpop.f32.mrf.mxu2 }
  0xbf   : > { %v410_v8 = vpop.f32.mrf.mxu3  ;;  %v382_v10 = vadd.f32 %v691_v40, %v381_v6  ;;  %v433_v18 = vsel %vm417_vm4, %v401_v7, %v425_v13 }
  0xc0   : > { %665 = vst [vmem:[%s807_s4 + $0x10] sm:$0xff] %v657_v5   ;;  %v373_v9 = vpop.f32.mrf.mxu0 }
  0xc1   : > { %v374_v11 = vadd.f32 %v691_v40, %v373_v9  ;;  %v402_v12 = vpop.f32.mrf.mxu1  ;;  %v411_v15 = vadd.f32 %v410_v8, %v382_v10 }
  0xc3   : > { %v403_v14 = vadd.f32 %v402_v12, %v374_v11  ;;  %v429_v23 = vmul.f32 0.2, %v411_v15  ;;  %vm421_vm6 = vcmp.gt.f32.partialorder %v411_v15, 0.0 }
  0xc5   : > { %vm418_vm5 = vcmp.gt.f32.partialorder %v403_v14, 0.0  ;;  %v426_v16 = vmul.f32 0.2, %v403_v14  ;;  %v437_v26 = vsel %vm421_vm6, %v411_v15, %v429_v23 }
  0xc6   : > { %v383_v17 = vpop.f32.mrf.mxu2 }
  0xc7   : > { %v434_v19 = vsel %vm418_vm5, %v403_v14, %v426_v16  ;;  %v384_v20 = vadd.f32 %v691_v40, %v383_v17  ;;  %v412_v22 = vpop.f32.mrf.mxu3 }
  0xc8   : > { %v652_v21 = vpack.c.bf16 %v434_v19, %v433_v18 }
  0xc9   : > { %v413_v24 = vadd.f32 %v412_v22, %v384_v20 }
  0xca   : > { %664 = vst [vmem:[%s807_s4 + $0x8] sm:$0xff] %v652_v21  }
  0xcb   : > { %vm422_vm7 = vcmp.gt.f32.partialorder %v413_v24, 0.0  ;;  %v430_v25 = vmul.f32 0.2, %v413_v24 }
  0xcd   : > { %v438_v27 = vsel %vm422_vm7, %v413_v24, %v430_v25 }
  0xce   : > { %v662_v28 = vpack.c.bf16 %v438_v27, %v437_v26 }
  0xd0   : > { %666 = vst [vmem:[%s807_s4 + $0x18] sm:$0xff] %v662_v28  }
  0xd1 PF: > { %s13_s12 = sadd.s32 1, %s698_s12  }
  0xd2   : > { %p10_p4 = scmp.ge.s32.totalorder %s13_s12, 4  }
  0xd4   :  { %12 = sbr.rel (!%p10_p4) target bundleno = 1 (0x1), region = 62 }

// kernel: forward.6
= control target key start
LH: loop header
LB: loop body
LE: loop exit
PB: predicated region body
PF: predicated region fallthrough
CT: control target
= control target key end

     0   :  { %s1478_s12 = smov 0   ;;  %s1728_s0 = inlined_call_operand.vmem [shape: bf16[64,1024], index: 0, kind: input, shape index: {}]   ;;  %s1729_s1 = inlined_call_operand.vmem [shape: bf16[1024,128], index: 1, kind: input, shape index: {}]   ;;  %s1730_s2 = inlined_call_operand.vmem [shape: f32[1,128], index: 2, kind: input, shape index: {}]   ;;  %s1731_s3 = inlined_call_operand.vmem [shape: bf16[64,128], index: 3, kind: output, shape index: {}]  }
   0x1 LB: > { %s1017_s13 = sadd.s32 4294967295, %s1456_s12   ;;  %p1021_p0 = scmp.ge.s32.totalorder %s1456_s12, 1  ;;  %s1456_s12 = sphi %s1478_s12, %s13_s12  }
   0x2   : > { %p139_p1 = scmp.lt.s32.totalorder %s1456_s12, 3 }
   0x4   : > { %p140_p2 = pnand %p1021_p0, %p139_p1 }
   0x5   : > { %s1022_s11 = sshll.u32 (!%p140_p2), %s1017_s13, 2 }
   0x6   : > { %143 = sbr.rel (%p140_p2) target bundleno = 243 (0xf3), region = 32  ;;  %p165_p3 = scmp.lt.s32.totalorder (!%p140_p2), %s1022_s11, 7 }
   0xb   : > { %v1373_v0 = vld [vmem:[%s1729_s1 + $0x38] sm:$0xff]  ;;  %v1372_v4 = vld [vmem:[%s1729_s1 + $0x30] sm:$0xff]  ;;  %v1371_v8 = vld [vmem:[%s1729_s1 + $0x28] sm:$0xff]  ;;  %s1733_s11 = smov (!%p165_p3, %s1022_s11), 7 }
   0xc   : > { %v1381_v1 = vld [vmem:[%s1729_s1 + $0x78] sm:$0xff]  ;;  %789 = vmatpush.bf16.msra.mxu0 %v1373_v0  ;;  %v1380_v5 = vld [vmem:[%s1729_s1 + $0x70] sm:$0xff]  ;;  %v1379_v9 = vld [vmem:[%s1729_s1 + $0x68] sm:$0xff]  ;;  %s1349_s10 = sshll.u32 %s1733_s11, 5  ;;  %s1026_s25 = sshll.u32 %s1733_s11, 2 }
   0xd   : > { %v1389_v2 = vld [vmem:[%s1729_s1 + $0xb8] sm:$0xff]  ;;  %808 = vmatpush.bf16.msra.mxu1 %v1381_v1  ;;  %v1388_v6 = vld [vmem:[%s1729_s1 + $0xb0] sm:$0xff]  ;;  %v1387_v10 = vld [vmem:[%s1729_s1 + $0xa8] sm:$0xff]  ;;  %s1570_s20 = scalar_lea.vmem %s1728_s0, %s1349_s10  ;;  %s175_s28 = scalar_lea.vmem %s1731_s3, %s1026_s25 }
   0xe   : > { %v1397_v3 = vld [vmem:[%s1729_s1 + $0xf8] sm:$0xff]  ;;  %827 = vmatpush.bf16.msra.mxu2 %v1389_v2  ;;  %v1396_v7 = vld [vmem:[%s1729_s1 + $0xf0] sm:$0xff]  ;;  %v1395_v11 = vld [vmem:[%s1729_s1 + $0xe8] sm:$0xff] }
   0xf   : > { %846 = vmatpush.bf16.msra.mxu3 %v1397_v3  ;;  %v1370_v12 = vld [vmem:[%s1729_s1 + $0x20] sm:$0xff]  ;;  %v1369_v16 = vld [vmem:[%s1729_s1 + $0x18] sm:$0xff]  ;;  %v1368_v20 = vld [vmem:[%s1729_s1 + $0x10] sm:$0xff] }
  0x10   : > { %790 = vmatpush.bf16.msra.mxu0 %v1372_v4  ;;  %v1378_v13 = vld [vmem:[%s1729_s1 + $0x60] sm:$0xff]  ;;  %v1377_v17 = vld [vmem:[%s1729_s1 + $0x58] sm:$0xff]  ;;  %v1376_v21 = vld [vmem:[%s1729_s1 + $0x50] sm:$0xff] }
  0x11   : > { %809 = vmatpush.bf16.msra.mxu1 %v1380_v5  ;;  %v1386_v14 = vld [vmem:[%s1729_s1 + $0xa0] sm:$0xff]  ;;  %v1385_v18 = vld [vmem:[%s1729_s1 + $0x98] sm:$0xff]  ;;  %v1384_v22 = vld [vmem:[%s1729_s1 + $0x90] sm:$0xff] }
  0x12   : > { %828 = vmatpush.bf16.msra.mxu2 %v1388_v6  ;;  %v1394_v15 = vld [vmem:[%s1729_s1 + $0xe0] sm:$0xff]  ;;  %v1393_v19 = vld [vmem:[%s1729_s1 + $0xd8] sm:$0xff]  ;;  %v1392_v23 = vld [vmem:[%s1729_s1 + $0xd0] sm:$0xff] }
  0x13   : > { %847 = vmatpush.bf16.msra.mxu3 %v1396_v7  ;;  %v1367_v24 = vld [vmem:[%s1729_s1 + $0x8] sm:$0xff]  ;;  %v1366_v28 = vld [vmem:[%s1729_s1] sm:$0xff]  ;;  %v1421_v40 = vld [vmem:[%s1729_s1 + $0x1b8] sm:$0xff] }
  0x14   : > { %791 = vmatpush.bf16.msra.mxu0 %v1371_v8  ;;  %v1375_v25 = vld [vmem:[%s1729_s1 + $0x48] sm:$0xff]  ;;  %v1374_v29 = vld [vmem:[%s1729_s1 + $0x40] sm:$0xff]  ;;  %v1405_v41 = vld [vmem:[%s1729_s1 + $0x138] sm:$0xff] }
  0x15   : > { %810 = vmatpush.bf16.msra.mxu1 %v1379_v9  ;;  %v1383_v26 = vld [vmem:[%s1729_s1 + $0x88] sm:$0xff]  ;;  %v1382_v30 = vld [vmem:[%s1729_s1 + $0x80] sm:$0xff]  ;;  %v1413_v46 = vld [vmem:[%s1729_s1 + $0x178] sm:$0xff] }
  0x16   : > { %829 = vmatpush.bf16.msra.mxu2 %v1387_v10  ;;  %v1391_v27 = vld [vmem:[%s1729_s1 + $0xc8] sm:$0xff]  ;;  %v1390_v31 = vld [vmem:[%s1729_s1 + $0xc0] sm:$0xff]  ;;  %v1429_v47 = vld [vmem:[%s1729_s1 + $0x1f8] sm:$0xff] }
  0x17   : > { %848 = vmatpush.bf16.msra.mxu3 %v1395_v11  ;;  %v1029_v32 = vld [vmem:[%s1570_s20] sm:$0xf]  ;;  %v1350_v34 = vld [vmem:[%s1570_s20 + $0x4] sm:$0xf]  ;;  %v1037_v36 = vld [vmem:[%s1570_s20 + $0x8] sm:$0xf] }
  0x18   : > { %792 = vmatpush.bf16.msra.mxu0 %v1370_v12  ;;  %v1354_v33 = vld [vmem:[%s1570_s20 + $0x1c] sm:$0xf0]  ;;  %v1031_v35 = vld [vmem:[%s1570_s20 + $0x20] sm:$0xf0]  ;;  %v1355_v37 = vld [vmem:[%s1570_s20 + $0x24] sm:$0xf0] }
  0x19   : > { %811 = vmatpush.bf16.msra.mxu1 %v1378_v13  ;;  %v1351_v38 = vld [vmem:[%s1570_s20 + $0xc] sm:$0xf]  ;;  %v1030_v42 = vor.u32 %v1354_v33, %v1029_v32  ;;  %v1034_v43 = vor.u32 %v1350_v34, %v1031_v35  ;;  %v1038_v44 = vor.u32 %v1355_v37, %v1037_v36  ;;  %v1420_v48 = vld [vmem:[%s1729_s1 + $0x1b0] sm:$0xff]  ;;  %v1418_v56 = vld [vmem:[%s1729_s1 + $0x1a0] sm:$0xff] }
  0x1a   : > { %830 = vmatpush.bf16.msra.mxu2 %v1386_v14  ;;  %v1039_v39 = vld [vmem:[%s1570_s20 + $0x28] sm:$0xf0]  ;;  %v1404_v49 = vld [vmem:[%s1729_s1 + $0x130] sm:$0xff]  ;;  %v1402_v57 = vld [vmem:[%s1729_s1 + $0x120] sm:$0xff] }
  0x1b   : > { %849 = vmatpush.bf16.msra.mxu3 %v1394_v15  ;;  %v1042_v45 = vor.u32 %v1351_v38, %v1039_v39  ;;  %v1412_v50 = vld [vmem:[%s1729_s1 + $0x170] sm:$0xff]  ;;  %v1419_v52 = vld [vmem:[%s1729_s1 + $0x1a8] sm:$0xff]  ;;  %v1410_v58 = vld [vmem:[%s1729_s1 + $0x160] sm:$0xff] }
  0x1c   : > { %793 = vmatpush.bf16.msra.mxu0 %v1369_v16  ;;  %v1428_v51 = vld [vmem:[%s1729_s1 + $0x1f0] sm:$0xff]  ;;  %v1403_v53 = vld [vmem:[%s1729_s1 + $0x128] sm:$0xff]  ;;  %v1426_v59 = vld [vmem:[%s1729_s1 + $0x1e0] sm:$0xff] }
  0x1d   : > { %812 = vmatpush.bf16.msra.mxu1 %v1377_v17  ;;  %v1411_v54 = vld [vmem:[%s1729_s1 + $0x168] sm:$0xff]  ;;  %v1061_v60 = vld [vmem:[%s1570_s20 + $0x40] sm:$0xf]  ;;  %v1358_v62 = vld [vmem:[%s1570_s20 + $0x44] sm:$0xf] }
  0x1e   : > { %831 = vmatpush.bf16.msra.mxu2 %v1385_v18  ;;  %v1427_v55 = vld [vmem:[%s1729_s1 + $0x1e8] sm:$0xff]  ;;  %v1362_v61 = vld [vmem:[%s1570_s20 + $0x5c] sm:$0xf0]  ;;  %v1063_v63 = vld [vmem:[%s1570_s20 + $0x60] sm:$0xf0] }
  0x1f   : > { %850 = vmatpush.bf16.msra.mxu3 %v1393_v19  ;;  %v1069_v0 = vld [vmem:[%s1570_s20 + $0x48] sm:$0xf]  ;;  %v1359_v2 = vld [vmem:[%s1570_s20 + $0x4c] sm:$0xf]  ;;  %v1417_v4 = vld [vmem:[%s1729_s1 + $0x198] sm:$0xff]  ;;  %v1062_v6 = vor.u32 %v1362_v61, %v1061_v60  ;;  %v1066_v7 = vor.u32 %v1358_v62, %v1063_v63 }
  0x20   : > { %794 = vmatpush.bf16.msra.mxu0 %v1368_v20  ;;  %v1363_v1 = vld [vmem:[%s1570_s20 + $0x64] sm:$0xf0]  ;;  %v1071_v3 = vld [vmem:[%s1570_s20 + $0x68] sm:$0xf0]  ;;  %v1401_v5 = vld [vmem:[%s1729_s1 + $0x118] sm:$0xff] }
  0x21   : > { %813 = vmatpush.bf16.msra.mxu1 %v1376_v21  ;;  %v1070_v8 = vor.u32 %v1363_v1, %v1069_v0  ;;  %v1074_v9 = vor.u32 %v1359_v2, %v1071_v3  ;;  %v1409_v10 = vld [vmem:[%s1729_s1 + $0x158] sm:$0xff]  ;;  %v1416_v12 = vld [vmem:[%s1729_s1 + $0x190] sm:$0xff]  ;;  %v1415_v16 = vld [vmem:[%s1729_s1 + $0x188] sm:$0xff] }
  0x22   : > { %832 = vmatpush.bf16.msra.mxu2 %v1384_v22  ;;  %v1425_v11 = vld [vmem:[%s1729_s1 + $0x1d8] sm:$0xff]  ;;  %v1400_v13 = vld [vmem:[%s1729_s1 + $0x110] sm:$0xff]  ;;  %v1399_v17 = vld [vmem:[%s1729_s1 + $0x108] sm:$0xff] }
  0x23   : > { %851 = vmatpush.bf16.msra.mxu3 %v1392_v23  ;;  %v1408_v14 = vld [vmem:[%s1729_s1 + $0x150] sm:$0xff]  ;;  %v1407_v18 = vld [vmem:[%s1729_s1 + $0x148] sm:$0xff]  ;;  %v1414_v20 = vld [vmem:[%s1729_s1 + $0x180] sm:$0xff] }
  0x24   : > { %795 = vmatpush.bf16.msra.mxu0 %v1367_v24  ;;  %v1424_v15 = vld [vmem:[%s1729_s1 + $0x1d0] sm:$0xff]  ;;  %v1423_v19 = vld [vmem:[%s1729_s1 + $0x1c8] sm:$0xff]  ;;  %v1398_v21 = vld [vmem:[%s1729_s1 + $0x100] sm:$0xff] }
  0x25   : > { %814 = vmatpush.bf16.msra.mxu1 %v1375_v25  ;;  %v1406_v22 = vld [vmem:[%s1729_s1 + $0x140] sm:$0xff]  ;;  %v1045_v24 = vld [vmem:[%s1570_s20 + $0x10] sm:$0xf]  ;;  %v1360_v38 = vld [vmem:[%s1570_s20 + $0x54] sm:$0xf] }
  0x26   : > { %833 = vmatpush.bf16.msra.mxu2 %v1383_v26  ;;  %v1422_v23 = vld [vmem:[%s1729_s1 + $0x1c0] sm:$0xff]  ;;  %v1356_v25 = vld [vmem:[%s1570_s20 + $0x2c] sm:$0xf0]  ;;  %v1352_v26 = vld [vmem:[%s1570_s20 + $0x14] sm:$0xf] }
  0x27   : > { %852 = vmatpush.bf16.msra.mxu3 %v1391_v27  ;;  %v1047_v27 = vld [vmem:[%s1570_s20 + $0x30] sm:$0xf0]  ;;  %v1046_v32 = vor.u32 %v1356_v25, %v1045_v24  ;;  %v1077_v36 = vld [vmem:[%s1570_s20 + $0x50] sm:$0xf] }
  0x28   : > { %796 = vmatpush.bf16.msra.mxu0 %v1366_v28  ;;  %v1053_v28 = vld [vmem:[%s1570_s20 + $0x18] sm:$0xf]  ;;  %v1050_v33 = vor.u32 %v1352_v26, %v1047_v27  ;;  %v1364_v37 = vld [vmem:[%s1570_s20 + $0x6c] sm:$0xf0]  ;;  %v1079_v39 = vld [vmem:[%s1570_s20 + $0x70] sm:$0xf0] }
  0x29   : > { %815 = vmatpush.bf16.msra.mxu1 %v1374_v29  ;;  %v1357_v29 = vld [vmem:[%s1570_s20 + $0x34] sm:$0xf0] }
  0x2a   : > { %834 = vmatpush.bf16.msra.mxu2 %v1382_v30  ;;  %v1353_v30 = vld [vmem:[%s1570_s20 + $0x1c] sm:$0xf]  ;;  %v1054_v34 = vor.u32 %v1357_v29, %v1053_v28 }
  0x2b   : > { %853 = vmatpush.bf16.msra.mxu3 %v1390_v31  ;;  %797 = vmatmul.bf16.vlgmr.msra.gmra.mxu0 %v1030_v42  ;;  %v1055_v31 = vld [vmem:[%s1570_s20 + $0x38] sm:$0xf0] }
  0x2c   : > { %865 = vmatpush.bf16.msrb.mxu0 %v1405_v41  ;;  %816 = vmatmul.bf16.vlgmr.msra.gmra.mxu1 %v1034_v43  ;;  %v1058_v35 = vor.u32 %v1353_v30, %v1055_v31  ;;  %v1365_v41 = vld [vmem:[%s1570_s20 + $0x74] sm:$0xf0]  ;;  %v1361_v42 = vld [vmem:[%s1570_s20 + $0x5c] sm:$0xf] }
  0x2d   : > { %835 = vmatmul.bf16.vlgmr.msra.gmra.mxu2 %v1038_v44  ;;  %884 = vmatpush.bf16.msrb.mxu1 %v1413_v46  ;;  %v1087_v43 = vld [vmem:[%s1570_s20 + $0x78] sm:$0xf0]  ;;  %v1078_v44 = vor.u32 %v1364_v37, %v1077_v36 }
  0x2e   : > { %903 = vmatpush.bf16.msrb.mxu2 %v1421_v40  ;;  %854 = vmatmul.bf16.vlgmr.msra.gmra.mxu3 %v1042_v45  ;;  %v1085_v40 = vld [vmem:[%s1570_s20 + $0x58] sm:$0xf]  ;;  %v1082_v45 = vor.u32 %v1360_v38, %v1079_v39 }
  0x2f   : > { %922 = vmatpush.bf16.msrb.mxu3 %v1429_v47  ;;  %v1086_v46 = vor.u32 %v1365_v41, %v1085_v40  ;;  %v1090_v47 = vor.u32 %v1361_v42, %v1087_v43 }
  0x30   : > { %866 = vmatpush.bf16.msrb.mxu0 %v1404_v49 }
  0x31   : > { %885 = vmatpush.bf16.msrb.mxu1 %v1412_v50 }
  0x32   : > { %904 = vmatpush.bf16.msrb.mxu2 %v1420_v48 }
  0x33   : > { %923 = vmatpush.bf16.msrb.mxu3 %v1428_v51 }
  0x34   : > { %867 = vmatpush.bf16.msrb.mxu0 %v1403_v53 }
  0x35   : > { %886 = vmatpush.bf16.msrb.mxu1 %v1411_v54 }
  0x36   : > { %905 = vmatpush.bf16.msrb.mxu2 %v1419_v52 }
  0x37   : > { %924 = vmatpush.bf16.msrb.mxu3 %v1427_v55 }
  0x38   : > { %868 = vmatpush.bf16.msrb.mxu0 %v1402_v57 }
  0x39   : > { %887 = vmatpush.bf16.msrb.mxu1 %v1410_v58  ;;  %v1449_v58 = vld [vmem:[%s1730_s2] ss:$0 sm:$0xff] }
  0x3a   : > { %906 = vmatpush.bf16.msrb.mxu2 %v1418_v56 }
  0x3b   : > { %925 = vmatpush.bf16.msrb.mxu3 %v1426_v59  ;;  %802 = vmatmul.bf16.gmra.mxu0 %v1062_v6 }
  0x3c   : > { %869 = vmatpush.bf16.msrb.mxu0 %v1401_v5  ;;  %821 = vmatmul.bf16.gmra.mxu1 %v1066_v7 }
  0x3d   : > { %840 = vmatmul.bf16.gmra.mxu2 %v1070_v8  ;;  %888 = vmatpush.bf16.msrb.mxu1 %v1409_v10 }
  0x3e   : > { %907 = vmatpush.bf16.msrb.mxu2 %v1417_v4  ;;  %859 = vmatmul.bf16.gmra.mxu3 %v1074_v9 }
  0x3f   : > { %926 = vmatpush.bf16.msrb.mxu3 %v1425_v11 }
  0x40   : > { %870 = vmatpush.bf16.msrb.mxu0 %v1400_v13 }
  0x41   : > { %889 = vmatpush.bf16.msrb.mxu1 %v1408_v14 }
  0x42   : > { %908 = vmatpush.bf16.msrb.mxu2 %v1416_v12 }
  0x43   : > { %927 = vmatpush.bf16.msrb.mxu3 %v1424_v15 }
  0x44   : > { %871 = vmatpush.bf16.msrb.mxu0 %v1399_v17 }
  0x45   : > { %890 = vmatpush.bf16.msrb.mxu1 %v1407_v18 }
  0x46   : > { %909 = vmatpush.bf16.msrb.mxu2 %v1415_v16 }
  0x47   : > { %928 = vmatpush.bf16.msrb.mxu3 %v1423_v19 }
  0x48   : > { %872 = vmatpush.bf16.msrb.mxu0 %v1398_v21 }
  0x49   : > { %891 = vmatpush.bf16.msrb.mxu1 %v1406_v22 }
  0x4a   : > { %910 = vmatpush.bf16.msrb.mxu2 %v1414_v20 }
  0x4b   : > { %929 = vmatpush.bf16.msrb.mxu3 %v1422_v23  ;;  %873 = vmatmul.bf16.vlgmr.msrb.gmra.mxu0 %v1046_v32 }
  0x4c   : > { %892 = vmatmul.bf16.vlgmr.msrb.gmra.mxu1 %v1050_v33 }
  0x4d   : > { %911 = vmatmul.bf16.vlgmr.msrb.gmra.mxu2 %v1054_v34 }
  0x4e   : > { %930 = vmatmul.bf16.vlgmr.msrb.gmra.mxu3 %v1058_v35 }
  0x5b   : > { %878 = vmatmul.bf16.gmra.mxu0 %v1078_v44 }
  0x5c   : > { %897 = vmatmul.bf16.gmra.mxu1 %v1082_v45 }
  0x5d   : > { %916 = vmatmul.bf16.gmra.mxu2 %v1086_v46 }
  0x5e   : > { %935 = vmatmul.bf16.gmra.mxu3 %v1090_v47 }
  0xa8   : > { %v798_v48 = vpop.f32.mrf.mxu0 }
  0xa9   : > { %v817_v49 = vpop.f32.mrf.mxu1  ;;  %v799_v59 = vadd.f32 %v1449_v58, %v798_v48 }
  0xab   : > { %v818_v0 = vadd.f32 %v817_v49, %v799_v59 }
  0xb0   : > { %v836_v50 = vpop.f32.mrf.mxu2  ;;  %v800_v52 = vpop.f32.mrf.mxu0 }
  0xb1   : > { %v855_v51 = vpop.f32.mrf.mxu3  ;;  %v819_v53 = vpop.f32.mrf.mxu1  ;;  %v837_v1 = vadd.f32 %v836_v50, %v818_v0  ;;  %v801_v2 = vadd.f32 %v1449_v58, %v800_v52 }
  0xb3   : > { %v856_v7 = vadd.f32 %v855_v51, %v837_v1  ;;  %v820_v8 = vadd.f32 %v819_v53, %v801_v2 }
  0xb8   : > { %v838_v54 = vpop.f32.mrf.mxu2  ;;  %v803_v56 = vpop.f32.mrf.mxu0 }
  0xb9   : > { %v857_v55 = vpop.f32.mrf.mxu3  ;;  %v822_v57 = vpop.f32.mrf.mxu1  ;;  %v839_v9 = vadd.f32 %v838_v54, %v820_v8  ;;  %v804_v11 = vadd.f32 %v1449_v58, %v803_v56 }
  0xbb   : > { %v858_v13 = vadd.f32 %v857_v55, %v839_v9  ;;  %v823_v18 = vadd.f32 %v822_v57, %v804_v11 }
  0xc0   : > { %v841_v60 = vpop.f32.mrf.mxu2  ;;  %v805_v62 = vpop.f32.mrf.mxu0 }
  0xc1   : > { %v860_v61 = vpop.f32.mrf.mxu3  ;;  %v824_v63 = vpop.f32.mrf.mxu1  ;;  %v842_v21 = vadd.f32 %v841_v60, %v823_v18  ;;  %v806_v22 = vadd.f32 %v1449_v58, %v805_v62 }
  0xc3   : > { %v861_v29 = vadd.f32 %v860_v61, %v842_v21  ;;  %v825_v30 = vadd.f32 %v824_v63, %v806_v22 }
  0xc8   : > { %v843_v3 = vpop.f32.mrf.mxu2  ;;  %v874_v5 = vpop.f32.mrf.mxu0 }
  0xc9   : > { %v862_v4 = vpop.f32.mrf.mxu3  ;;  %v893_v6 = vpop.f32.mrf.mxu1  ;;  %v875_v10 = vadd.f32 %v874_v5, %v856_v7  ;;  %v844_v34 = vadd.f32 %v843_v3, %v825_v30 }
  0xcb   : > { %v894_v14 = vadd.f32 %v893_v6, %v875_v10  ;;  %v863_v41 = vadd.f32 %v862_v4, %v844_v34 }
  0xd0   : > { %v912_v12 = vpop.f32.mrf.mxu2  ;;  %v876_v16 = vpop.f32.mrf.mxu0 }
  0xd1   : > { %v931_v15 = vpop.f32.mrf.mxu3  ;;  %v895_v17 = vpop.f32.mrf.mxu1  ;;  %v913_v19 = vadd.f32 %v912_v12, %v894_v14  ;;  %v877_v20 = vadd.f32 %v876_v16, %v858_v13 }
  0xd3   : > { %v932_v23 = vadd.f32 %v931_v15, %v913_v19  ;;  %v896_v24 = vadd.f32 %v895_v17, %v877_v20 }
  0xd5   : > { %v945_v31 = vmul.f32 0.2, %v932_v23  ;;  %vm941_vm0 = vcmp.gt.f32.partialorder %v932_v23, 0.0 }
  0xd7   : > { %v949_v37 = vsel %vm941_vm0, %v932_v23, %v945_v31 }
  0xd8   : > { %v914_v25 = vpop.f32.mrf.mxu2  ;;  %v879_v28 = vpop.f32.mrf.mxu0 }
  0xd9   : > { %v915_v26 = vadd.f32 %v914_v25, %v896_v24  ;;  %v933_v27 = vpop.f32.mrf.mxu3  ;;  %v898_v33 = vpop.f32.mrf.mxu1  ;;  %v880_v36 = vadd.f32 %v879_v28, %v861_v29 }
  0xdb   : > { %v934_v32 = vadd.f32 %v933_v27, %v915_v26  ;;  %v899_v42 = vadd.f32 %v898_v33, %v880_v36 }
  0xdd   : > { %vm942_vm1 = vcmp.gt.f32.partialorder %v934_v32, 0.0  ;;  %v946_v35 = vmul.f32 0.2, %v934_v32 }
  0xdf   : > { %v950_v38 = vsel %vm942_vm1, %v934_v32, %v946_v35 }
  0xe0   : > { %v1433_v39 = vpack.c.bf16 %v950_v38, %v949_v37  ;;  %v917_v40 = vpop.f32.mrf.mxu2  ;;  %v881_v44 = vpop.f32.mrf.mxu0 }
  0xe1   : > { %v936_v43 = vpop.f32.mrf.mxu3  ;;  %v918_v45 = vadd.f32 %v917_v40, %v899_v42  ;;  %v882_v46 = vadd.f32 %v881_v44, %v863_v41  ;;  %v900_v47 = vpop.f32.mrf.mxu1 }
  0xe2   : > { %1434 = vst [vmem:[%s175_s28] sm:$0xff] %v1433_v39  }
  0xe3   : > { %v937_v48 = vadd.f32 %v936_v43, %v918_v45  ;;  %v901_v49 = vadd.f32 %v900_v47, %v882_v46 }
  0xe5   : > { %v947_v53 = vmul.f32 0.2, %v937_v48  ;;  %vm943_vm2 = vcmp.gt.f32.partialorder %v937_v48, 0.0 }
  0xe7   : > { %v951_v56 = vsel %vm943_vm2, %v937_v48, %v947_v53 }
  0xe8   : > { %v919_v50 = vpop.f32.mrf.mxu2 }
  0xe9   : > { %v920_v51 = vadd.f32 %v919_v50, %v901_v49  ;;  %v938_v52 = vpop.f32.mrf.mxu3 }
  0xeb   : > { %v939_v54 = vadd.f32 %v938_v52, %v920_v51 }
  0xed   : > { %vm944_vm3 = vcmp.gt.f32.partialorder %v939_v54, 0.0  ;;  %v948_v55 = vmul.f32 0.2, %v939_v54 }
  0xef   : > { %v952_v57 = vsel %vm944_vm3, %v939_v54, %v948_v55 }
  0xf0   : > { %v1438_v58 = vpack.c.bf16 %v952_v57, %v951_v56 }
  0xf2   : > { %1440 = vst [vmem:[%s175_s28 + $0x8] sm:$0xff] %v1438_v58  }
  0xf3 PF: > { %s13_s12 = sadd.s32 1, %s1456_s12  }
  0xf4   : > { %p10_p4 = scmp.ge.s32.totalorder %s13_s12, 4  }
  0xf6   :  { %12 = sbr.rel (!%p10_p4) target bundleno = 1 (0x1), region = 62 }

// kernel: forward.7
= control target key start
LH: loop header
LB: loop body
LE: loop exit
PB: predicated region body
PF: predicated region fallthrough
CT: control target
= control target key end

     0   :  { %s1334_s12 = smov 0   ;;  %s1568_s0 = inlined_call_operand.vmem [shape: bf16[32,1024], index: 0, kind: input, shape index: {}]   ;;  %s1569_s1 = inlined_call_operand.vmem [shape: bf16[1024,128], index: 1, kind: input, shape index: {}]   ;;  %s1570_s2 = inlined_call_operand.vmem [shape: f32[1,128], index: 2, kind: input, shape index: {}]   ;;  %s1571_s3 = inlined_call_operand.vmem [shape: bf16[32,128], index: 3, kind: output, shape index: {}]  }
   0x1 LB: > { %s919_s13 = sadd.s32 4294967295, %s1312_s12   ;;  %p923_p0 = scmp.ge.s32.totalorder %s1312_s12, 1  ;;  %s1312_s12 = sphi %s1334_s12, %s13_s12  }
   0x2   : > { %p139_p1 = scmp.lt.s32.totalorder %s1312_s12, 3 }
   0x4   : > { %p140_p2 = pnand %p923_p0, %p139_p1 }
   0x5   : > { %s924_s11 = sshll.u32 (!%p140_p2), %s919_s13, 1 }
   0x6   : > { %143 = sbr.rel (%p140_p2) target bundleno = 227 (0xe3), region = 32  ;;  %p165_p3 = scmp.lt.s32.totalorder (!%p140_p2), %s924_s11, 3 }
   0xb   : > { %v1235_v0 = vld [vmem:[%s1569_s1 + $0x38] sm:$0xff]  ;;  %v1234_v4 = vld [vmem:[%s1569_s1 + $0x30] sm:$0xff]  ;;  %v1233_v8 = vld [vmem:[%s1569_s1 + $0x28] sm:$0xff]  ;;  %s1573_s11 = smov (!%p165_p3, %s924_s11), 3 }
   0xc   : > { %v1243_v1 = vld [vmem:[%s1569_s1 + $0x78] sm:$0xff]  ;;  %741 = vmatpush.bf16.msra.mxu0 %v1235_v0  ;;  %v1242_v5 = vld [vmem:[%s1569_s1 + $0x70] sm:$0xff]  ;;  %v1241_v9 = vld [vmem:[%s1569_s1 + $0x68] sm:$0xff]  ;;  %s1219_s10 = sshll.u32 %s1573_s11, 5 }
   0xd   : > { %v1251_v2 = vld [vmem:[%s1569_s1 + $0xb8] sm:$0xff]  ;;  %755 = vmatpush.bf16.msra.mxu1 %v1243_v1  ;;  %v1250_v6 = vld [vmem:[%s1569_s1 + $0xb0] sm:$0xff]  ;;  %v1249_v10 = vld [vmem:[%s1569_s1 + $0xa8] sm:$0xff]  ;;  %s1432_s23 = scalar_lea.vmem %s1568_s0, %s1219_s10 }
   0xe   : > { %v1259_v3 = vld [vmem:[%s1569_s1 + $0xf8] sm:$0xff]  ;;  %769 = vmatpush.bf16.msra.mxu2 %v1251_v2  ;;  %v1258_v7 = vld [vmem:[%s1569_s1 + $0xf0] sm:$0xff]  ;;  %v1257_v11 = vld [vmem:[%s1569_s1 + $0xe8] sm:$0xff] }
   0xf   : > { %783 = vmatpush.bf16.msra.mxu3 %v1259_v3  ;;  %v1232_v12 = vld [vmem:[%s1569_s1 + $0x20] sm:$0xff]  ;;  %v1231_v16 = vld [vmem:[%s1569_s1 + $0x18] sm:$0xff]  ;;  %v1230_v20 = vld [vmem:[%s1569_s1 + $0x10] sm:$0xff] }
  0x10   : > { %742 = vmatpush.bf16.msra.mxu0 %v1234_v4  ;;  %v1240_v13 = vld [vmem:[%s1569_s1 + $0x60] sm:$0xff]  ;;  %v1239_v17 = vld [vmem:[%s1569_s1 + $0x58] sm:$0xff]  ;;  %v1238_v21 = vld [vmem:[%s1569_s1 + $0x50] sm:$0xff] }
  0x11   : > { %756 = vmatpush.bf16.msra.mxu1 %v1242_v5  ;;  %v1248_v14 = vld [vmem:[%s1569_s1 + $0xa0] sm:$0xff]  ;;  %v1247_v18 = vld [vmem:[%s1569_s1 + $0x98] sm:$0xff]  ;;  %v1246_v22 = vld [vmem:[%s1569_s1 + $0x90] sm:$0xff] }
  0x12   : > { %770 = vmatpush.bf16.msra.mxu2 %v1250_v6  ;;  %v1256_v15 = vld [vmem:[%s1569_s1 + $0xe0] sm:$0xff]  ;;  %v1255_v19 = vld [vmem:[%s1569_s1 + $0xd8] sm:$0xff]  ;;  %v1254_v23 = vld [vmem:[%s1569_s1 + $0xd0] sm:$0xff] }
  0x13   : > { %784 = vmatpush.bf16.msra.mxu3 %v1258_v7  ;;  %v1229_v24 = vld [vmem:[%s1569_s1 + $0x8] sm:$0xff]  ;;  %v1228_v28 = vld [vmem:[%s1569_s1] sm:$0xff]  ;;  %v1267_v32 = vld [vmem:[%s1569_s1 + $0x138] sm:$0xff] }
  0x14   : > { %743 = vmatpush.bf16.msra.mxu0 %v1233_v8  ;;  %v1237_v25 = vld [vmem:[%s1569_s1 + $0x48] sm:$0xff]  ;;  %v1236_v29 = vld [vmem:[%s1569_s1 + $0x40] sm:$0xff]  ;;  %v1275_v33 = vld [vmem:[%s1569_s1 + $0x178] sm:$0xff] }
  0x15   : > { %757 = vmatpush.bf16.msra.mxu1 %v1241_v9  ;;  %v1245_v26 = vld [vmem:[%s1569_s1 + $0x88] sm:$0xff]  ;;  %v1244_v30 = vld [vmem:[%s1569_s1 + $0x80] sm:$0xff]  ;;  %v1283_v42 = vld [vmem:[%s1569_s1 + $0x1b8] sm:$0xff] }
  0x16   : > { %771 = vmatpush.bf16.msra.mxu2 %v1249_v10  ;;  %v1253_v27 = vld [vmem:[%s1569_s1 + $0xc8] sm:$0xff]  ;;  %v1252_v31 = vld [vmem:[%s1569_s1 + $0xc0] sm:$0xff]  ;;  %v1291_v43 = vld [vmem:[%s1569_s1 + $0x1f8] sm:$0xff] }
  0x17   : > { %785 = vmatpush.bf16.msra.mxu3 %v1257_v11  ;;  %v939_v34 = vld [vmem:[%s1432_s23 + $0x8] sm:$0xf]  ;;  %v931_v36 = vld [vmem:[%s1432_s23] sm:$0xf]  ;;  %v1221_v38 = vld [vmem:[%s1432_s23 + $0xc] sm:$0xf] }
  0x18   : > { %744 = vmatpush.bf16.msra.mxu0 %v1232_v12  ;;  %v1225_v35 = vld [vmem:[%s1432_s23 + $0x24] sm:$0xf0]  ;;  %v1224_v37 = vld [vmem:[%s1432_s23 + $0x1c] sm:$0xf0]  ;;  %v941_v39 = vld [vmem:[%s1432_s23 + $0x28] sm:$0xf0] }
  0x19   : > { %758 = vmatpush.bf16.msra.mxu1 %v1240_v13  ;;  %v1220_v40 = vld [vmem:[%s1432_s23 + $0x4] sm:$0xf]  ;;  %v940_v44 = vor.u32 %v1225_v35, %v939_v34  ;;  %v932_v45 = vor.u32 %v1224_v37, %v931_v36  ;;  %v944_v46 = vor.u32 %v1221_v38, %v941_v39  ;;  %v1266_v48 = vld [vmem:[%s1569_s1 + $0x130] sm:$0xff]  ;;  %v1265_v52 = vld [vmem:[%s1569_s1 + $0x128] sm:$0xff] }
  0x1a   : > { %772 = vmatpush.bf16.msra.mxu2 %v1248_v14  ;;  %v933_v41 = vld [vmem:[%s1432_s23 + $0x20] sm:$0xf0]  ;;  %v1274_v49 = vld [vmem:[%s1569_s1 + $0x170] sm:$0xff]  ;;  %v1273_v53 = vld [vmem:[%s1569_s1 + $0x168] sm:$0xff] }
  0x1b   : > { %786 = vmatpush.bf16.msra.mxu3 %v1256_v15  ;;  %v936_v47 = vor.u32 %v1220_v40, %v933_v41  ;;  %v1282_v50 = vld [vmem:[%s1569_s1 + $0x1b0] sm:$0xff]  ;;  %v1281_v54 = vld [vmem:[%s1569_s1 + $0x1a8] sm:$0xff]  ;;  %v1264_v56 = vld [vmem:[%s1569_s1 + $0x120] sm:$0xff] }
  0x1c   : > { %745 = vmatpush.bf16.msra.mxu0 %v1231_v16  ;;  %v1290_v51 = vld [vmem:[%s1569_s1 + $0x1f0] sm:$0xff]  ;;  %v1289_v55 = vld [vmem:[%s1569_s1 + $0x1e8] sm:$0xff]  ;;  %v1272_v57 = vld [vmem:[%s1569_s1 + $0x160] sm:$0xff] }
  0x1d   : > { %759 = vmatpush.bf16.msra.mxu1 %v1239_v17  ;;  %v1280_v58 = vld [vmem:[%s1569_s1 + $0x1a0] sm:$0xff]  ;;  %v1263_v60 = vld [vmem:[%s1569_s1 + $0x118] sm:$0xff]  ;;  %v1262_v0 = vld [vmem:[%s1569_s1 + $0x110] sm:$0xff] }
  0x1e   : > { %773 = vmatpush.bf16.msra.mxu2 %v1247_v18  ;;  %v1288_v59 = vld [vmem:[%s1569_s1 + $0x1e0] sm:$0xff]  ;;  %v1271_v61 = vld [vmem:[%s1569_s1 + $0x158] sm:$0xff]  ;;  %v1270_v1 = vld [vmem:[%s1569_s1 + $0x150] sm:$0xff] }
  0x1f   : > { %787 = vmatpush.bf16.msra.mxu3 %v1255_v19  ;;  %v1279_v62 = vld [vmem:[%s1569_s1 + $0x198] sm:$0xff]  ;;  %v1278_v2 = vld [vmem:[%s1569_s1 + $0x190] sm:$0xff]  ;;  %v1261_v4 = vld [vmem:[%s1569_s1 + $0x108] sm:$0xff] }
  0x20   : > { %746 = vmatpush.bf16.msra.mxu0 %v1230_v20  ;;  %v1287_v63 = vld [vmem:[%s1569_s1 + $0x1d8] sm:$0xff]  ;;  %v1286_v3 = vld [vmem:[%s1569_s1 + $0x1d0] sm:$0xff]  ;;  %v1269_v5 = vld [vmem:[%s1569_s1 + $0x148] sm:$0xff] }
  0x21   : > { %760 = vmatpush.bf16.msra.mxu1 %v1238_v21  ;;  %v1277_v6 = vld [vmem:[%s1569_s1 + $0x188] sm:$0xff]  ;;  %v1260_v8 = vld [vmem:[%s1569_s1 + $0x100] sm:$0xff]  ;;  %v947_v12 = vld [vmem:[%s1432_s23 + $0x10] sm:$0xf] }
  0x22   : > { %774 = vmatpush.bf16.msra.mxu2 %v1246_v22  ;;  %v1285_v7 = vld [vmem:[%s1569_s1 + $0x1c8] sm:$0xff]  ;;  %v1268_v9 = vld [vmem:[%s1569_s1 + $0x140] sm:$0xff]  ;;  %v1226_v13 = vld [vmem:[%s1432_s23 + $0x2c] sm:$0xf0] }
  0x23   : > { %788 = vmatpush.bf16.msra.mxu3 %v1254_v23  ;;  %v1276_v10 = vld [vmem:[%s1569_s1 + $0x180] sm:$0xff]  ;;  %v1222_v14 = vld [vmem:[%s1432_s23 + $0x14] sm:$0xf]  ;;  %v955_v16 = vld [vmem:[%s1432_s23 + $0x18] sm:$0xf]  ;;  %v948_v20 = vor.u32 %v1226_v13, %v947_v12 }
  0x24   : > { %747 = vmatpush.bf16.msra.mxu0 %v1229_v24  ;;  %v1284_v11 = vld [vmem:[%s1569_s1 + $0x1c0] sm:$0xff]  ;;  %v949_v15 = vld [vmem:[%s1432_s23 + $0x30] sm:$0xf0]  ;;  %v1227_v17 = vld [vmem:[%s1432_s23 + $0x34] sm:$0xf0] }
  0x25   : > { %761 = vmatpush.bf16.msra.mxu1 %v1237_v25  ;;  %v1223_v18 = vld [vmem:[%s1432_s23 + $0x1c] sm:$0xf]  ;;  %v952_v21 = vor.u32 %v1222_v14, %v949_v15  ;;  %v956_v22 = vor.u32 %v1227_v17, %v955_v16 }
  0x26   : > { %775 = vmatpush.bf16.msra.mxu2 %v1245_v26  ;;  %v957_v19 = vld [vmem:[%s1432_s23 + $0x38] sm:$0xf0]  ;;  %v1305_v26 = vld [vmem:[%s1570_s2] ss:$0 sm:$0xff]  ;;  %s928_s23 = sshll.u32 %s1573_s11, 2 }
  0x27   : > { %789 = vmatpush.bf16.msra.mxu3 %v1253_v27  ;;  %v960_v23 = vor.u32 %v1223_v18, %v957_v19  ;;  %s175_s28 = scalar_lea.vmem %s1571_s3, %s928_s23 }
  0x28   : > { %748 = vmatpush.bf16.msra.mxu0 %v1228_v28 }
  0x29   : > { %762 = vmatpush.bf16.msra.mxu1 %v1236_v29 }
  0x2a   : > { %776 = vmatpush.bf16.msra.mxu2 %v1244_v30 }
  0x2b   : > { %790 = vmatpush.bf16.msra.mxu3 %v1252_v31  ;;  %749 = vmatmul.bf16.vlgmr.msra.gmra.mxu0 %v932_v45 }
  0x2c   : > { %797 = vmatpush.bf16.msrb.mxu0 %v1267_v32  ;;  %763 = vmatmul.bf16.vlgmr.msra.gmra.mxu1 %v936_v47 }
  0x2d   : > { %811 = vmatpush.bf16.msrb.mxu1 %v1275_v33  ;;  %777 = vmatmul.bf16.vlgmr.msra.gmra.mxu2 %v940_v44 }
  0x2e   : > { %825 = vmatpush.bf16.msrb.mxu2 %v1283_v42  ;;  %791 = vmatmul.bf16.vlgmr.msra.gmra.mxu3 %v944_v46 }
  0x2f   : > { %839 = vmatpush.bf16.msrb.mxu3 %v1291_v43 }
  0x30   : > { %798 = vmatpush.bf16.msrb.mxu0 %v1266_v48 }
  0x31   : > { %812 = vmatpush.bf16.msrb.mxu1 %v1274_v49 }
  0x32   : > { %826 = vmatpush.bf16.msrb.mxu2 %v1282_v50 }
  0x33   : > { %840 = vmatpush.bf16.msrb.mxu3 %v1290_v51 }
  0x34   : > { %799 = vmatpush.bf16.msrb.mxu0 %v1265_v52 }
  0x35   : > { %813 = vmatpush.bf16.msrb.mxu1 %v1273_v53 }
  0x36   : > { %827 = vmatpush.bf16.msrb.mxu2 %v1281_v54 }
  0x37   : > { %841 = vmatpush.bf16.msrb.mxu3 %v1289_v55 }
  0x38   : > { %800 = vmatpush.bf16.msrb.mxu0 %v1264_v56 }
  0x39   : > { %814 = vmatpush.bf16.msrb.mxu1 %v1272_v57 }
  0x3a   : > { %828 = vmatpush.bf16.msrb.mxu2 %v1280_v58 }
  0x3b   : > { %842 = vmatpush.bf16.msrb.mxu3 %v1288_v59 }
  0x3c   : > { %801 = vmatpush.bf16.msrb.mxu0 %v1263_v60 }
  0x3d   : > { %815 = vmatpush.bf16.msrb.mxu1 %v1271_v61 }
  0x3e   : > { %829 = vmatpush.bf16.msrb.mxu2 %v1279_v62 }
  0x3f   : > { %843 = vmatpush.bf16.msrb.mxu3 %v1287_v63 }
  0x40   : > { %802 = vmatpush.bf16.msrb.mxu0 %v1262_v0 }
  0x41   : > { %816 = vmatpush.bf16.msrb.mxu1 %v1270_v1 }
  0x42   : > { %830 = vmatpush.bf16.msrb.mxu2 %v1278_v2 }
  0x43   : > { %844 = vmatpush.bf16.msrb.mxu3 %v1286_v3 }
  0x44   : > { %803 = vmatpush.bf16.msrb.mxu0 %v1261_v4 }
  0x45   : > { %817 = vmatpush.bf16.msrb.mxu1 %v1269_v5 }
  0x46   : > { %831 = vmatpush.bf16.msrb.mxu2 %v1277_v6 }
  0x47   : > { %845 = vmatpush.bf16.msrb.mxu3 %v1285_v7 }
  0x48   : > { %804 = vmatpush.bf16.msrb.mxu0 %v1260_v8 }
  0x49   : > { %818 = vmatpush.bf16.msrb.mxu1 %v1268_v9 }
  0x4a   : > { %832 = vmatpush.bf16.msrb.mxu2 %v1276_v10 }
  0x4b   : > { %846 = vmatpush.bf16.msrb.mxu3 %v1284_v11  ;;  %805 = vmatmul.bf16.vlgmr.msrb.gmra.mxu0 %v948_v20 }
  0x4c   : > { %819 = vmatmul.bf16.vlgmr.msrb.gmra.mxu1 %v952_v21 }
  0x4d   : > { %833 = vmatmul.bf16.vlgmr.msrb.gmra.mxu2 %v956_v22 }
  0x4e   : > { %847 = vmatmul.bf16.vlgmr.msrb.gmra.mxu3 %v960_v23 }
  0xa8   : > { %v750_v24 = vpop.f32.mrf.mxu0 }
  0xa9   : > { %v764_v25 = vpop.f32.mrf.mxu1  ;;  %v751_v29 = vadd.f32 %v1305_v26, %v750_v24 }
  0xab   : > { %v765_v31 = vadd.f32 %v764_v25, %v751_v29 }
  0xb0   : > { %v778_v27 = vpop.f32.mrf.mxu2  ;;  %v752_v30 = vpop.f32.mrf.mxu0 }
  0xb1   : > { %v792_v28 = vpop.f32.mrf.mxu3  ;;  %v766_v32 = vpop.f32.mrf.mxu1  ;;  %v753_v33 = vadd.f32 %v1305_v26, %v752_v30  ;;  %v779_v34 = vadd.f32 %v778_v27, %v765_v31 }
  0xb3   : > { %v767_v37 = vadd.f32 %v766_v32, %v753_v33  ;;  %v793_v39 = vadd.f32 %v792_v28, %v779_v34 }
  0xb8   : > { %v780_v35 = vpop.f32.mrf.mxu2 }
  0xb9   : > { %v794_v36 = vpop.f32.mrf.mxu3  ;;  %v781_v41 = vadd.f32 %v780_v35, %v767_v37 }
  0xbb   : > { %v795_v45 = vadd.f32 %v794_v36, %v781_v41 }
  0xc8   : > { %v806_v38 = vpop.f32.mrf.mxu0 }
  0xc9   : > { %v820_v40 = vpop.f32.mrf.mxu1  ;;  %v807_v42 = vadd.f32 %v806_v38, %v793_v39 }
  0xcb   : > { %v821_v46 = vadd.f32 %v820_v40, %v807_v42 }
  0xd0   : > { %v834_v43 = vpop.f32.mrf.mxu2  ;;  %v808_v47 = vpop.f32.mrf.mxu0 }
  0xd1   : > { %v848_v44 = vpop.f32.mrf.mxu3  ;;  %v835_v48 = vadd.f32 %v834_v43, %v821_v46  ;;  %v809_v49 = vadd.f32 %v808_v47, %v795_v45  ;;  %v822_v50 = vpop.f32.mrf.mxu1 }
  0xd3   : > { %v849_v51 = vadd.f32 %v848_v44, %v835_v48  ;;  %v823_v52 = vadd.f32 %v822_v50, %v809_v49 }
  0xd5   : > { %v855_v56 = vmul.f32 0.2, %v849_v51  ;;  %vm853_vm0 = vcmp.gt.f32.partialorder %v849_v51, 0.0 }
  0xd7   : > { %v857_v59 = vsel %vm853_vm0, %v849_v51, %v855_v56 }
  0xd8   : > { %v836_v53 = vpop.f32.mrf.mxu2 }
  0xd9   : > { %v837_v54 = vadd.f32 %v836_v53, %v823_v52  ;;  %v850_v55 = vpop.f32.mrf.mxu3 }
  0xdb   : > { %v851_v57 = vadd.f32 %v850_v55, %v837_v54 }
  0xdd   : > { %vm854_vm1 = vcmp.gt.f32.partialorder %v851_v57, 0.0  ;;  %v856_v58 = vmul.f32 0.2, %v851_v57 }
  0xdf   : > { %v858_v60 = vsel %vm854_vm1, %v851_v57, %v856_v58 }
  0xe0   : > { %v1295_v61 = vpack.c.bf16 %v858_v60, %v857_v59 }
  0xe2   : > { %1296 = vst [vmem:[%s175_s28] sm:$0xff] %v1295_v61  }
  0xe3 PF: > { %s13_s12 = sadd.s32 1, %s1312_s12  }
  0xe4   : > { %p10_p4 = scmp.ge.s32.totalorder %s13_s12, 4  }
  0xe6   :  { %12 = sbr.rel (!%p10_p4) target bundleno = 1 (0x1), region = 62 }

// kernel: forward.8
= control target key start
LH: loop header
LB: loop body
LE: loop exit
PB: predicated region body
PF: predicated region fallthrough
CT: control target
= control target key end

     0   :  { %s9854_s1 = inlined_call_operand.vmem [shape: bf16[2048,512], index: 1, kind: input, shape index: {}]   ;;  %s9855_s0 = inlined_call_operand.vmem [shape: bf16[8,2048], index: 0, kind: input, shape index: {}]   ;;  %s9856_s2 = inlined_call_operand.vmem [shape: f32[1,512], index: 2, kind: input, shape index: {}]   ;;  %s9857_s3 = inlined_call_operand.vmem [shape: bf16[8,512], index: 3, kind: output, shape index: {}]  }
   0x1   :  { %v4126_v0 = vld [vmem:[%s9854_s1 + $0xe0] sm:$0xf]  ;;  %v6090_v1 = vld [vmem:[%s9854_s1 + $0xec] sm:$0xf0] }
   0x2   :  { %v4254_v2 = vld [vmem:[%s9854_s1 + $0x1e0] sm:$0xf]  ;;  %v4127_v3 = vor.u32 %v6090_v1, %v4126_v0  ;;  %v6122_v4 = vld [vmem:[%s9854_s1 + $0x1ec] sm:$0xf0] }
   0x3   :  { %v4382_v5 = vld [vmem:[%s9854_s1 + $0x2e0] sm:$0xf]  ;;  %v6154_v6 = vld [vmem:[%s9854_s1 + $0x2ec] sm:$0xf0]  ;;  %v4255_v7 = vor.u32 %v6122_v4, %v4254_v2 }
   0x4   :  { %v4383_v8 = vor.u32 %v6154_v6, %v4382_v5  ;;  %v4510_v9 = vld [vmem:[%s9854_s1 + $0x3e0] sm:$0xf]  ;;  %v6186_v10 = vld [vmem:[%s9854_s1 + $0x3ec] sm:$0xf0]  ;;  %3160 = vmatpush.bf16.msra.mxu0 %v4127_v3 }
   0x5   :  { %v4110_v11 = vld [vmem:[%s9854_s1 + $0xc0] sm:$0xf]  ;;  %v4511_v12 = vor.u32 %v6186_v10, %v4510_v9  ;;  %v6086_v13 = vld [vmem:[%s9854_s1 + $0xcc] sm:$0xf0]  ;;  %3173 = vmatpush.bf16.msra.mxu1 %v4255_v7 }
   0x6   :  { %v4238_v14 = vld [vmem:[%s9854_s1 + $0x1c0] sm:$0xf]  ;;  %v6118_v15 = vld [vmem:[%s9854_s1 + $0x1cc] sm:$0xf0]  ;;  %3186 = vmatpush.bf16.msra.mxu2 %v4383_v8  ;;  %v4111_v16 = vor.u32 %v6086_v13, %v4110_v11 }
   0x7   :  { %v4239_v17 = vor.u32 %v6118_v15, %v4238_v14  ;;  %v4366_v18 = vld [vmem:[%s9854_s1 + $0x2c0] sm:$0xf]  ;;  %v6150_v19 = vld [vmem:[%s9854_s1 + $0x2cc] sm:$0xf0]  ;;  %3199 = vmatpush.bf16.msra.mxu3 %v4511_v12 }
   0x8   :  { %v4494_v20 = vld [vmem:[%s9854_s1 + $0x3c0] sm:$0xf]  ;;  %v4367_v21 = vor.u32 %v6150_v19, %v4366_v18  ;;  %v6182_v22 = vld [vmem:[%s9854_s1 + $0x3cc] sm:$0xf0]  ;;  %3161 = vmatpush.bf16.msra.mxu0 %v4111_v16 }
   0x9   :  { %v4094_v23 = vld [vmem:[%s9854_s1 + $0xa0] sm:$0xf]  ;;  %v6082_v24 = vld [vmem:[%s9854_s1 + $0xac] sm:$0xf0]  ;;  %v4495_v25 = vor.u32 %v6182_v22, %v4494_v20  ;;  %3174 = vmatpush.bf16.msra.mxu1 %v4239_v17 }
   0xa   :  { %v4222_v26 = vld [vmem:[%s9854_s1 + $0x1a0] sm:$0xf]  ;;  %v6114_v27 = vld [vmem:[%s9854_s1 + $0x1ac] sm:$0xf0]  ;;  %v4095_v29 = vor.u32 %v6082_v24, %v4094_v23  ;;  %3187 = vmatpush.bf16.msra.mxu2 %v4367_v21 }
   0xb   :  { %v4350_v28 = vld [vmem:[%s9854_s1 + $0x2a0] sm:$0xf]  ;;  %v6146_v30 = vld [vmem:[%s9854_s1 + $0x2ac] sm:$0xf0]  ;;  %v4223_v33 = vor.u32 %v6114_v27, %v4222_v26  ;;  %3200 = vmatpush.bf16.msra.mxu3 %v4495_v25 }
   0xc   :  { %v4478_v31 = vld [vmem:[%s9854_s1 + $0x3a0] sm:$0xf]  ;;  %v6178_v32 = vld [vmem:[%s9854_s1 + $0x3ac] sm:$0xf0]  ;;  %v4351_v34 = vor.u32 %v6146_v30, %v4350_v28  ;;  %3162 = vmatpush.bf16.msra.mxu0 %v4095_v29 }
   0xd   :  { %v4078_v35 = vld [vmem:[%s9854_s1 + $0x80] sm:$0xf]  ;;  %v6078_v36 = vld [vmem:[%s9854_s1 + $0x8c] sm:$0xf0]  ;;  %v4479_v38 = vor.u32 %v6178_v32, %v4478_v31  ;;  %3175 = vmatpush.bf16.msra.mxu1 %v4223_v33 }
   0xe   :  { %v4206_v37 = vld [vmem:[%s9854_s1 + $0x180] sm:$0xf]  ;;  %v6110_v39 = vld [vmem:[%s9854_s1 + $0x18c] sm:$0xf0]  ;;  %v4079_v44 = vor.u32 %v6078_v36, %v4078_v35  ;;  %3188 = vmatpush.bf16.msra.mxu2 %v4351_v34 }
   0xf   :  { %v4334_v40 = vld [vmem:[%s9854_s1 + $0x280] sm:$0xf]  ;;  %v6142_v41 = vld [vmem:[%s9854_s1 + $0x28c] sm:$0xf0]  ;;  %v4207_v45 = vor.u32 %v6110_v39, %v4206_v37  ;;  %3201 = vmatpush.bf16.msra.mxu3 %v4479_v38 }
  0x10   :  { %v4462_v42 = vld [vmem:[%s9854_s1 + $0x380] sm:$0xf]  ;;  %v6174_v43 = vld [vmem:[%s9854_s1 + $0x38c] sm:$0xf0]  ;;  %v4335_v46 = vor.u32 %v6142_v41, %v4334_v40  ;;  %3163 = vmatpush.bf16.msra.mxu0 %v4079_v44 }
  0x11   :  { %v4062_v47 = vld [vmem:[%s9854_s1 + $0x60] sm:$0xf]  ;;  %v6074_v48 = vld [vmem:[%s9854_s1 + $0x6c] sm:$0xf0]  ;;  %v4463_v50 = vor.u32 %v6174_v43, %v4462_v42  ;;  %3176 = vmatpush.bf16.msra.mxu1 %v4207_v45 }
  0x12   :  { %v4190_v49 = vld [vmem:[%s9854_s1 + $0x160] sm:$0xf]  ;;  %v6106_v51 = vld [vmem:[%s9854_s1 + $0x16c] sm:$0xf0]  ;;  %v4063_v56 = vor.u32 %v6074_v48, %v4062_v47  ;;  %3189 = vmatpush.bf16.msra.mxu2 %v4335_v46 }
  0x13   :  { %v4318_v52 = vld [vmem:[%s9854_s1 + $0x260] sm:$0xf]  ;;  %v6138_v53 = vld [vmem:[%s9854_s1 + $0x26c] sm:$0xf0]  ;;  %v4191_v57 = vor.u32 %v6106_v51, %v4190_v49  ;;  %3202 = vmatpush.bf16.msra.mxu3 %v4463_v50 }
  0x14   :  { %v4446_v54 = vld [vmem:[%s9854_s1 + $0x360] sm:$0xf]  ;;  %v6170_v55 = vld [vmem:[%s9854_s1 + $0x36c] sm:$0xf0]  ;;  %v4319_v58 = vor.u32 %v6138_v53, %v4318_v52  ;;  %3164 = vmatpush.bf16.msra.mxu0 %v4063_v56 }
  0x15   :  { %v4046_v59 = vld [vmem:[%s9854_s1 + $0x40] sm:$0xf]  ;;  %v6070_v60 = vld [vmem:[%s9854_s1 + $0x4c] sm:$0xf0]  ;;  %v4447_v62 = vor.u32 %v6170_v55, %v4446_v54  ;;  %3177 = vmatpush.bf16.msra.mxu1 %v4191_v57 }
  0x16   :  { %v4174_v61 = vld [vmem:[%s9854_s1 + $0x140] sm:$0xf]  ;;  %v6102_v63 = vld [vmem:[%s9854_s1 + $0x14c] sm:$0xf0]  ;;  %v4047_v4 = vor.u32 %v6070_v60, %v4046_v59  ;;  %3190 = vmatpush.bf16.msra.mxu2 %v4319_v58 }
  0x17   :  { %v4302_v0 = vld [vmem:[%s9854_s1 + $0x240] sm:$0xf]  ;;  %v6134_v1 = vld [vmem:[%s9854_s1 + $0x24c] sm:$0xf0]  ;;  %v4175_v5 = vor.u32 %v6102_v63, %v4174_v61  ;;  %3203 = vmatpush.bf16.msra.mxu3 %v4447_v62 }
  0x18   :  { %v4430_v2 = vld [vmem:[%s9854_s1 + $0x340] sm:$0xf]  ;;  %v6166_v3 = vld [vmem:[%s9854_s1 + $0x34c] sm:$0xf0]  ;;  %v4303_v6 = vor.u32 %v6134_v1, %v4302_v0  ;;  %3165 = vmatpush.bf16.msra.mxu0 %v4047_v4 }
  0x19   :  { %v4030_v7 = vld [vmem:[%s9854_s1 + $0x20] sm:$0xf]  ;;  %v6066_v8 = vld [vmem:[%s9854_s1 + $0x2c] sm:$0xf0]  ;;  %v4431_v10 = vor.u32 %v6166_v3, %v4430_v2  ;;  %3178 = vmatpush.bf16.msra.mxu1 %v4175_v5  ;;  %v15_v2 = vld [vmem:[%s9855_s0 + $0x8] sm:$0xff] }
  0x1a   :  { %v4158_v9 = vld [vmem:[%s9854_s1 + $0x120] sm:$0xf]  ;;  %v6098_v11 = vld [vmem:[%s9854_s1 + $0x12c] sm:$0xf0]  ;;  %v4031_v16 = vor.u32 %v6066_v8, %v4030_v7  ;;  %3191 = vmatpush.bf16.msra.mxu2 %v4303_v6  ;;  %v554_v8 = vunpack.c.l.b16 %v15_v2 }
  0x1b   :  { %v4286_v12 = vld [vmem:[%s9854_s1 + $0x220] sm:$0xf]  ;;  %v6130_v13 = vld [vmem:[%s9854_s1 + $0x22c] sm:$0xf0]  ;;  %v4159_v19 = vor.u32 %v6098_v11, %v4158_v9  ;;  %3204 = vmatpush.bf16.msra.mxu3 %v4431_v10  ;;  %v555_v10 = vunpack.c.h.b16 %v15_v2 }
  0x1c   :  { %v4414_v14 = vld [vmem:[%s9854_s1 + $0x320] sm:$0xf]  ;;  %v6162_v15 = vld [vmem:[%s9854_s1 + $0x32c] sm:$0xf0]  ;;  %v4287_v20 = vor.u32 %v6130_v13, %v4286_v12  ;;  %3166 = vmatpush.bf16.msra.mxu0 %v4031_v16 }
  0x1d   :  { %v4014_v17 = vld [vmem:[%s9854_s1] sm:$0xf]  ;;  %v6062_v18 = vld [vmem:[%s9854_s1 + $0xc] sm:$0xf0]  ;;  %v4415_v24 = vor.u32 %v6162_v15, %v4414_v14  ;;  %3179 = vmatpush.bf16.msra.mxu1 %v4159_v19 }
  0x1e   :  { %v4142_v21 = vld [vmem:[%s9854_s1 + $0x100] sm:$0xf]  ;;  %v6094_v22 = vld [vmem:[%s9854_s1 + $0x10c] sm:$0xf0]  ;;  %v4015_v31 = vor.u32 %v6062_v18, %v4014_v17  ;;  %3192 = vmatpush.bf16.msra.mxu2 %v4287_v20  ;;  %v6888_v18 = vpack.c.b16 %v554_v8, %v554_v8  ;;  %v6892_v20 = vpack.c.b16 %v555_v10, %v555_v10 }
  0x1f   :  { %v4270_v23 = vld [vmem:[%s9854_s1 + $0x200] sm:$0xf]  ;;  %v6126_v25 = vld [vmem:[%s9854_s1 + $0x20c] sm:$0xf0]  ;;  %v4143_v35 = vor.u32 %v6094_v22, %v4142_v21  ;;  %3205 = vmatpush.bf16.msra.mxu3 %v4415_v24 }
  0x20   :  { %v4398_v26 = vld [vmem:[%s9854_s1 + $0x300] sm:$0xf]  ;;  %v6158_v27 = vld [vmem:[%s9854_s1 + $0x30c] sm:$0xf0]  ;;  %v4271_v36 = vor.u32 %v6126_v25, %v4270_v23  ;;  %3167 = vmatpush.bf16.msra.mxu0 %v4015_v31 }
  0x21   :  { %v4638_v28 = vld [vmem:[%s9854_s1 + $0x4e0] sm:$0xf]  ;;  %v6218_v29 = vld [vmem:[%s9854_s1 + $0x4ec] sm:$0xf0]  ;;  %v4399_v39 = vor.u32 %v6158_v27, %v4398_v26  ;;  %3180 = vmatpush.bf16.msra.mxu1 %v4143_v35 }
  0x22   :  { %v4766_v30 = vld [vmem:[%s9854_s1 + $0x5e0] sm:$0xf]  ;;  %v6250_v32 = vld [vmem:[%s9854_s1 + $0x5ec] sm:$0xf0]  ;;  %v4639_v40 = vor.u32 %v6218_v29, %v4638_v28  ;;  %3193 = vmatpush.bf16.msra.mxu2 %v4271_v36 }
  0x23   :  { %v4894_v33 = vld [vmem:[%s9854_s1 + $0x6e0] sm:$0xf]  ;;  %v6282_v34 = vld [vmem:[%s9854_s1 + $0x6ec] sm:$0xf0]  ;;  %v4767_v41 = vor.u32 %v6250_v32, %v4766_v30  ;;  %3206 = vmatpush.bf16.msra.mxu3 %v4399_v39 }
  0x24   :  { %v5022_v37 = vld [vmem:[%s9854_s1 + $0x7e0] sm:$0xf]  ;;  %v6314_v38 = vld [vmem:[%s9854_s1 + $0x7ec] sm:$0xf0]  ;;  %v4895_v42 = vor.u32 %v6282_v34, %v4894_v33  ;;  %3212 = vmatpush.bf16.msrb.mxu0 %v4639_v40 }
  0x25   :  { %v4622_v43 = vld [vmem:[%s9854_s1 + $0x4c0] sm:$0xf]  ;;  %v6214_v44 = vld [vmem:[%s9854_s1 + $0x4cc] sm:$0xf0]  ;;  %v5023_v46 = vor.u32 %v6314_v38, %v5022_v37  ;;  %3225 = vmatpush.bf16.msrb.mxu1 %v4767_v41  ;;  %3194 = vmatmul.bf16.vlgmr.msra.gmra.mxu2 %v6888_v18 }
  0x26   :  { %v4750_v45 = vld [vmem:[%s9854_s1 + $0x5c0] sm:$0xf]  ;;  %v6246_v47 = vld [vmem:[%s9854_s1 + $0x5cc] sm:$0xf0]  ;;  %v4623_v52 = vor.u32 %v6214_v44, %v4622_v43  ;;  %3238 = vmatpush.bf16.msrb.mxu2 %v4895_v42  ;;  %3207 = vmatmul.bf16.vlgmr.msra.gmra.mxu3 %v6892_v20 }
  0x27   :  { %v4878_v48 = vld [vmem:[%s9854_s1 + $0x6c0] sm:$0xf]  ;;  %v6278_v49 = vld [vmem:[%s9854_s1 + $0x6cc] sm:$0xf0]  ;;  %v4751_v54 = vor.u32 %v6246_v47, %v4750_v45  ;;  %3251 = vmatpush.bf16.msrb.mxu3 %v5023_v46 }
  0x28   :  { %v5006_v50 = vld [vmem:[%s9854_s1 + $0x7c0] sm:$0xf]  ;;  %v6310_v51 = vld [vmem:[%s9854_s1 + $0x7cc] sm:$0xf0]  ;;  %v4879_v55 = vor.u32 %v6278_v49, %v4878_v48  ;;  %3213 = vmatpush.bf16.msrb.mxu0 %v4623_v52 }
  0x29   :  { %v4606_v53 = vld [vmem:[%s9854_s1 + $0x4a0] sm:$0xf]  ;;  %v6210_v56 = vld [vmem:[%s9854_s1 + $0x4ac] sm:$0xf0]  ;;  %v5007_v59 = vor.u32 %v6310_v51, %v5006_v50  ;;  %3226 = vmatpush.bf16.msrb.mxu1 %v4751_v54 }
  0x2a   :  { %v4734_v57 = vld [vmem:[%s9854_s1 + $0x5a0] sm:$0xf]  ;;  %v6242_v58 = vld [vmem:[%s9854_s1 + $0x5ac] sm:$0xf0]  ;;  %v4607_v0 = vor.u32 %v6210_v56, %v4606_v53  ;;  %3239 = vmatpush.bf16.msrb.mxu2 %v4879_v55 }
  0x2b   :  { %v4862_v60 = vld [vmem:[%s9854_s1 + $0x6a0] sm:$0xf]  ;;  %v6274_v61 = vld [vmem:[%s9854_s1 + $0x6ac] sm:$0xf0]  ;;  %v4735_v1 = vor.u32 %v6242_v58, %v4734_v57  ;;  %3252 = vmatpush.bf16.msrb.mxu3 %v5007_v59 }
  0x2c   :  { %v4990_v62 = vld [vmem:[%s9854_s1 + $0x7a0] sm:$0xf]  ;;  %v6306_v63 = vld [vmem:[%s9854_s1 + $0x7ac] sm:$0xf0]  ;;  %v4863_v4 = vor.u32 %v6274_v61, %v4862_v60  ;;  %3214 = vmatpush.bf16.msrb.mxu0 %v4607_v0 }
  0x2d   :  { %v14_v3 = vld [vmem:[%s9855_s0] sm:$0xff]  ;;  %v6206_v6 = vld [vmem:[%s9854_s1 + $0x48c] sm:$0xf0]  ;;  %v4991_v11 = vor.u32 %v6306_v63, %v4990_v62  ;;  %3227 = vmatpush.bf16.msrb.mxu1 %v4735_v1 }
  0x2e   :  { %v4590_v5 = vld [vmem:[%s9854_s1 + $0x480] sm:$0xf]  ;;  %v552_v9 = vunpack.c.l.b16 %v14_v3  ;;  %v6238_v12 = vld [vmem:[%s9854_s1 + $0x58c] sm:$0xf0]  ;;  %v553_v15 = vunpack.c.h.b16 %v14_v3  ;;  %3240 = vmatpush.bf16.msrb.mxu2 %v4863_v4  ;;  %v17_v3 = vld [vmem:[%s9855_s0 + $0x18] sm:$0xff] }
  0x2f   :  { %v4718_v7 = vld [vmem:[%s9854_s1 + $0x580] sm:$0xf]  ;;  %v6270_v14 = vld [vmem:[%s9854_s1 + $0x68c] sm:$0xf0]  ;;  %v4591_v21 = vor.u32 %v6206_v6, %v4590_v5  ;;  %3253 = vmatpush.bf16.msrb.mxu3 %v4991_v11 }
  0x30   :  { %v4846_v13 = vld [vmem:[%s9854_s1 + $0x680] sm:$0xf]  ;;  %v6302_v17 = vld [vmem:[%s9854_s1 + $0x78c] sm:$0xf0]  ;;  %v6890_v19 = vpack.c.b16 %v552_v9, %v552_v9  ;;  %v6894_v22 = vpack.c.b16 %v553_v15, %v553_v15  ;;  %v4719_v23 = vor.u32 %v6238_v12, %v4718_v7  ;;  %v558_v15 = vunpack.c.l.b16 %v17_v3 }
  0x31   :  { %v4974_v16 = vld [vmem:[%s9854_s1 + $0x780] sm:$0xf]  ;;  %v4847_v24 = vor.u32 %v6270_v14, %v4846_v13  ;;  %v6202_v26 = vld [vmem:[%s9854_s1 + $0x46c] sm:$0xf0]  ;;  %3215 = vmatpush.bf16.msrb.mxu0 %v4591_v21 }
  0x32   :  { %v4574_v25 = vld [vmem:[%s9854_s1 + $0x460] sm:$0xf]  ;;  %v4975_v28 = vor.u32 %v6302_v17, %v4974_v16  ;;  %v6234_v29 = vld [vmem:[%s9854_s1 + $0x56c] sm:$0xf0]  ;;  %3168 = vmatmul.bf16.vlgmr.msra.gmra.mxu0 %v6890_v19  ;;  %3181 = vmatmul.bf16.vlgmr.msra.gmra.mxu1 %v6894_v22 }
  0x33   :  { %v4702_v27 = vld [vmem:[%s9854_s1 + $0x560] sm:$0xf]  ;;  %v6266_v31 = vld [vmem:[%s9854_s1 + $0x66c] sm:$0xf0]  ;;  %v4575_v34 = vor.u32 %v6202_v26, %v4574_v25  ;;  %3228 = vmatpush.bf16.msrb.mxu1 %v4719_v23  ;;  %3241 = vmatpush.bf16.msrb.mxu2 %v4847_v24  ;;  %v559_v25 = vunpack.c.h.b16 %v17_v3 }
  0x34   :  { %v4830_v30 = vld [vmem:[%s9854_s1 + $0x660] sm:$0xf]  ;;  %v6298_v33 = vld [vmem:[%s9854_s1 + $0x76c] sm:$0xf0]  ;;  %v4703_v35 = vor.u32 %v6234_v29, %v4702_v27  ;;  %3254 = vmatpush.bf16.msrb.mxu3 %v4975_v28 }
  0x35   :  { %v4958_v32 = vld [vmem:[%s9854_s1 + $0x760] sm:$0xf]  ;;  %v4831_v36 = vor.u32 %v6266_v31, %v4830_v30  ;;  %v6198_v38 = vld [vmem:[%s9854_s1 + $0x44c] sm:$0xf0]  ;;  %3216 = vmatpush.bf16.msrb.mxu0 %v4575_v34 }
  0x36   :  { %v4558_v37 = vld [vmem:[%s9854_s1 + $0x440] sm:$0xf]  ;;  %v4959_v40 = vor.u32 %v6298_v33, %v4958_v32  ;;  %v6230_v41 = vld [vmem:[%s9854_s1 + $0x54c] sm:$0xf0] }
  0x37   :  { %v4686_v39 = vld [vmem:[%s9854_s1 + $0x540] sm:$0xf]  ;;  %v6262_v43 = vld [vmem:[%s9854_s1 + $0x64c] sm:$0xf0]  ;;  %v4559_v46 = vor.u32 %v6198_v38, %v4558_v37  ;;  %3229 = vmatpush.bf16.msrb.mxu1 %v4703_v35  ;;  %3242 = vmatpush.bf16.msrb.mxu2 %v4831_v36  ;;  %v7044_v38 = vpack.c.b16 %v558_v15, %v558_v15 }
  0x38   :  { %v4814_v42 = vld [vmem:[%s9854_s1 + $0x640] sm:$0xf]  ;;  %v6294_v45 = vld [vmem:[%s9854_s1 + $0x74c] sm:$0xf0]  ;;  %v4687_v47 = vor.u32 %v6230_v41, %v4686_v39  ;;  %3255 = vmatpush.bf16.msrb.mxu3 %v4959_v40 }
  0x39   :  { %v4942_v44 = vld [vmem:[%s9854_s1 + $0x740] sm:$0xf]  ;;  %v4815_v48 = vor.u32 %v6262_v43, %v4814_v42  ;;  %v6194_v50 = vld [vmem:[%s9854_s1 + $0x42c] sm:$0xf0]  ;;  %3217 = vmatpush.bf16.msrb.mxu0 %v4559_v46  ;;  %v7054_v42 = vpack.c.b16 %v559_v25, %v559_v25 }
  0x3a   :  { %v4542_v49 = vld [vmem:[%s9854_s1 + $0x420] sm:$0xf]  ;;  %v4943_v52 = vor.u32 %v6294_v45, %v4942_v44  ;;  %v6226_v53 = vld [vmem:[%s9854_s1 + $0x52c] sm:$0xf0] }
  0x3b   :  { %v4670_v51 = vld [vmem:[%s9854_s1 + $0x520] sm:$0xf]  ;;  %v6258_v55 = vld [vmem:[%s9854_s1 + $0x62c] sm:$0xf0]  ;;  %v4543_v59 = vor.u32 %v6194_v50, %v4542_v49  ;;  %3230 = vmatpush.bf16.msrb.mxu1 %v4687_v47  ;;  %3243 = vmatpush.bf16.msrb.mxu2 %v4815_v48 }
  0x3c   :  { %v4798_v54 = vld [vmem:[%s9854_s1 + $0x620] sm:$0xf]  ;;  %v6290_v57 = vld [vmem:[%s9854_s1 + $0x72c] sm:$0xf0]  ;;  %v4671_v63 = vor.u32 %v6226_v53, %v4670_v51  ;;  %3256 = vmatpush.bf16.msrb.mxu3 %v4943_v52 }
  0x3d   :  { %v4926_v56 = vld [vmem:[%s9854_s1 + $0x720] sm:$0xf]  ;;  %v6190_v60 = vld [vmem:[%s9854_s1 + $0x40c] sm:$0xf0]  ;;  %v4799_v0 = vor.u32 %v6258_v55, %v4798_v54  ;;  %3218 = vmatpush.bf16.msrb.mxu0 %v4543_v59 }
  0x3e   :  { %v4526_v58 = vld [vmem:[%s9854_s1 + $0x400] sm:$0xf]  ;;  %v6222_v62 = vld [vmem:[%s9854_s1 + $0x50c] sm:$0xf0]  ;;  %v4927_v4 = vor.u32 %v6290_v57, %v4926_v56 }
  0x3f   :  { %v4654_v61 = vld [vmem:[%s9854_s1 + $0x500] sm:$0xf]  ;;  %v6254_v2 = vld [vmem:[%s9854_s1 + $0x60c] sm:$0xf0]  ;;  %v4527_v11 = vor.u32 %v6190_v60, %v4526_v58  ;;  %3231 = vmatpush.bf16.msrb.mxu1 %v4671_v63  ;;  %3244 = vmatpush.bf16.msrb.mxu2 %v4799_v0 }
  0x40   :  { %v4782_v1 = vld [vmem:[%s9854_s1 + $0x600] sm:$0xf]  ;;  %v6286_v6 = vld [vmem:[%s9854_s1 + $0x70c] sm:$0xf0]  ;;  %v4655_v16 = vor.u32 %v6222_v62, %v4654_v61  ;;  %3257 = vmatpush.bf16.msrb.mxu3 %v4927_v4 }
  0x41   :  { %v4910_v5 = vld [vmem:[%s9854_s1 + $0x700] sm:$0xf]  ;;  %v16_v7 = vld [vmem:[%s9855_s0 + $0x10] sm:$0xff]  ;;  %v4783_v17 = vor.u32 %v6254_v2, %v4782_v1  ;;  %3219 = vmatpush.bf16.msrb.mxu0 %v4527_v11 }
  0x42   :  { %v5150_v8 = vld [vmem:[%s9854_s1 + $0x8e0] sm:$0xf]  ;;  %v6346_v9 = vld [vmem:[%s9854_s1 + $0x8ec] sm:$0xf0]  ;;  %v556_v24 = vunpack.c.l.b16 %v16_v7  ;;  %v4911_v26 = vor.u32 %v6286_v6, %v4910_v5  ;;  %v557_v28 = vunpack.c.h.b16 %v16_v7 }
  0x43   :  { %v5278_v10 = vld [vmem:[%s9854_s1 + $0x9e0] sm:$0xf]  ;;  %v6378_v12 = vld [vmem:[%s9854_s1 + $0x9ec] sm:$0xf0]  ;;  %v5151_v27 = vor.u32 %v6346_v9, %v5150_v8  ;;  %3232 = vmatpush.bf16.msrb.mxu1 %v4655_v16  ;;  %3245 = vmatpush.bf16.msrb.mxu2 %v4783_v17 }
  0x44   :  { %v5406_v13 = vld [vmem:[%s9854_s1 + $0xae0] sm:$0xf]  ;;  %v6410_v14 = vld [vmem:[%s9854_s1 + $0xaec] sm:$0xf0]  ;;  %v5279_v29 = vor.u32 %v6378_v12, %v5278_v10  ;;  %v7052_v41 = vpack.c.b16 %v556_v24, %v556_v24  ;;  %3258 = vmatpush.bf16.msrb.mxu3 %v4911_v26  ;;  %v7056_v44 = vpack.c.b16 %v557_v28, %v557_v28 }
  0x45   :  { %v5534_v21 = vld [vmem:[%s9854_s1 + $0xbe0] sm:$0xf]  ;;  %v6442_v23 = vld [vmem:[%s9854_s1 + $0xbec] sm:$0xf0]  ;;  %v5407_v30 = vor.u32 %v6410_v14, %v5406_v13  ;;  %3264 = vmatpush.bf16.msra.mxu0 %v5151_v27 }
  0x46   :  { %v5134_v31 = vld [vmem:[%s9854_s1 + $0x8c0] sm:$0xf]  ;;  %v6342_v32 = vld [vmem:[%s9854_s1 + $0x8cc] sm:$0xf0]  ;;  %v5535_v34 = vor.u32 %v6442_v23, %v5534_v21  ;;  %3246 = vmatmul.bf16.vlgmr.msrb.gmra.mxu2 %v7044_v38  ;;  %3220 = vmatmul.bf16.vlgmr.msrb.gmra.mxu0 %v7052_v41 }
  0x47   :  { %v5262_v33 = vld [vmem:[%s9854_s1 + $0x9c0] sm:$0xf]  ;;  %v6374_v35 = vld [vmem:[%s9854_s1 + $0x9cc] sm:$0xf0]  ;;  %v5135_v43 = vor.u32 %v6342_v32, %v5134_v31  ;;  %3277 = vmatpush.bf16.msra.mxu1 %v5279_v29  ;;  %3290 = vmatpush.bf16.msra.mxu2 %v5407_v30 }
  0x48   :  { %v5390_v36 = vld [vmem:[%s9854_s1 + $0xac0] sm:$0xf]  ;;  %v6406_v37 = vld [vmem:[%s9854_s1 + $0xacc] sm:$0xf0]  ;;  %v5263_v45 = vor.u32 %v6374_v35, %v5262_v33  ;;  %3303 = vmatpush.bf16.msra.mxu3 %v5535_v34  ;;  %3233 = vmatmul.bf16.vlgmr.msrb.gmra.mxu1 %v7056_v44 }
  0x49   :  { %v5518_v39 = vld [vmem:[%s9854_s1 + $0xbc0] sm:$0xf]  ;;  %v6438_v40 = vld [vmem:[%s9854_s1 + $0xbcc] sm:$0xf0]  ;;  %v5391_v46 = vor.u32 %v6406_v37, %v5390_v36  ;;  %3259 = vmatmul.bf16.vlgmr.msrb.gmra.mxu3 %v7054_v42  ;;  %3265 = vmatpush.bf16.msra.mxu0 %v5135_v43 }
  0x4a   :  { %v5118_v47 = vld [vmem:[%s9854_s1 + $0x8a0] sm:$0xf]  ;;  %v6338_v48 = vld [vmem:[%s9854_s1 + $0x8ac] sm:$0xf0]  ;;  %v5519_v50 = vor.u32 %v6438_v40, %v5518_v39 }
  0x4b   :  { %v5246_v49 = vld [vmem:[%s9854_s1 + $0x9a0] sm:$0xf]  ;;  %v6370_v51 = vld [vmem:[%s9854_s1 + $0x9ac] sm:$0xf0]  ;;  %v5119_v56 = vor.u32 %v6338_v48, %v5118_v47  ;;  %3278 = vmatpush.bf16.msra.mxu1 %v5263_v45  ;;  %3291 = vmatpush.bf16.msra.mxu2 %v5391_v46 }
  0x4c   :  { %v5374_v52 = vld [vmem:[%s9854_s1 + $0xaa0] sm:$0xf]  ;;  %v6402_v53 = vld [vmem:[%s9854_s1 + $0xaac] sm:$0xf0]  ;;  %v5247_v57 = vor.u32 %v6370_v51, %v5246_v49  ;;  %3304 = vmatpush.bf16.msra.mxu3 %v5519_v50 }
  0x4d   :  { %v5502_v54 = vld [vmem:[%s9854_s1 + $0xba0] sm:$0xf]  ;;  %v6434_v55 = vld [vmem:[%s9854_s1 + $0xbac] sm:$0xf0]  ;;  %v5375_v58 = vor.u32 %v6402_v53, %v5374_v52  ;;  %3266 = vmatpush.bf16.msra.mxu0 %v5119_v56 }
  0x4e   :  { %v5102_v59 = vld [vmem:[%s9854_s1 + $0x880] sm:$0xf]  ;;  %v6334_v60 = vld [vmem:[%s9854_s1 + $0x88c] sm:$0xf0]  ;;  %v5503_v62 = vor.u32 %v6434_v55, %v5502_v54 }
  0x4f   :  { %v5230_v61 = vld [vmem:[%s9854_s1 + $0x980] sm:$0xf]  ;;  %v6366_v63 = vld [vmem:[%s9854_s1 + $0x98c] sm:$0xf0]  ;;  %v5103_v4 = vor.u32 %v6334_v60, %v5102_v59  ;;  %3279 = vmatpush.bf16.msra.mxu1 %v5247_v57  ;;  %3292 = vmatpush.bf16.msra.mxu2 %v5375_v58 }
  0x50   :  { %v5358_v0 = vld [vmem:[%s9854_s1 + $0xa80] sm:$0xf]  ;;  %v6398_v1 = vld [vmem:[%s9854_s1 + $0xa8c] sm:$0xf0]  ;;  %v5231_v5 = vor.u32 %v6366_v63, %v5230_v61  ;;  %3305 = vmatpush.bf16.msra.mxu3 %v5503_v62  ;;  %v19_v61 = vld [vmem:[%s9855_s0 + $0x28] sm:$0xff] }
  0x51   :  { %v5486_v2 = vld [vmem:[%s9854_s1 + $0xb80] sm:$0xf]  ;;  %v6430_v3 = vld [vmem:[%s9854_s1 + $0xb8c] sm:$0xf0]  ;;  %v5359_v6 = vor.u32 %v6398_v1, %v5358_v0  ;;  %3267 = vmatpush.bf16.msra.mxu0 %v5103_v4 }
  0x52   :  { %v5086_v7 = vld [vmem:[%s9854_s1 + $0x860] sm:$0xf]  ;;  %v6330_v8 = vld [vmem:[%s9854_s1 + $0x86c] sm:$0xf0]  ;;  %v5487_v10 = vor.u32 %v6430_v3, %v5486_v2 }
  0x53   :  { %v5214_v9 = vld [vmem:[%s9854_s1 + $0x960] sm:$0xf]  ;;  %v6362_v11 = vld [vmem:[%s9854_s1 + $0x96c] sm:$0xf0]  ;;  %v5087_v16 = vor.u32 %v6330_v8, %v5086_v7  ;;  %3280 = vmatpush.bf16.msra.mxu1 %v5231_v5  ;;  %3293 = vmatpush.bf16.msra.mxu2 %v5359_v6 }
  0x54   :  { %v5342_v12 = vld [vmem:[%s9854_s1 + $0xa60] sm:$0xf]  ;;  %v6394_v13 = vld [vmem:[%s9854_s1 + $0xa6c] sm:$0xf0]  ;;  %v5215_v17 = vor.u32 %v6362_v11, %v5214_v9  ;;  %3306 = vmatpush.bf16.msra.mxu3 %v5487_v10  ;;  %v562_v10 = vunpack.c.l.b16 %v19_v61 }
  0x55   :  { %v5470_v14 = vld [vmem:[%s9854_s1 + $0xb60] sm:$0xf]  ;;  %v6426_v15 = vld [vmem:[%s9854_s1 + $0xb6c] sm:$0xf0]  ;;  %v5343_v21 = vor.u32 %v6394_v13, %v5342_v12  ;;  %3268 = vmatpush.bf16.msra.mxu0 %v5087_v16 }
  0x56   :  { %v5070_v23 = vld [vmem:[%s9854_s1 + $0x840] sm:$0xf]  ;;  %v6326_v24 = vld [vmem:[%s9854_s1 + $0x84c] sm:$0xf0]  ;;  %v5471_v26 = vor.u32 %v6426_v15, %v5470_v14  ;;  %v563_v14 = vunpack.c.h.b16 %v19_v61 }
  0x57   :  { %v5198_v25 = vld [vmem:[%s9854_s1 + $0x940] sm:$0xf]  ;;  %v6358_v27 = vld [vmem:[%s9854_s1 + $0x94c] sm:$0xf0]  ;;  %v5071_v32 = vor.u32 %v6326_v24, %v5070_v23  ;;  %3281 = vmatpush.bf16.msra.mxu1 %v5215_v17  ;;  %3294 = vmatpush.bf16.msra.mxu2 %v5343_v21 }
  0x58   :  { %v5326_v28 = vld [vmem:[%s9854_s1 + $0xa40] sm:$0xf]  ;;  %v6390_v29 = vld [vmem:[%s9854_s1 + $0xa4c] sm:$0xf0]  ;;  %v5199_v33 = vor.u32 %v6358_v27, %v5198_v25  ;;  %3307 = vmatpush.bf16.msra.mxu3 %v5471_v26 }
  0x59   :  { %v5454_v30 = vld [vmem:[%s9854_s1 + $0xb40] sm:$0xf]  ;;  %v6422_v31 = vld [vmem:[%s9854_s1 + $0xb4c] sm:$0xf0]  ;;  %v5327_v34 = vor.u32 %v6390_v29, %v5326_v28  ;;  %3269 = vmatpush.bf16.msra.mxu0 %v5071_v32  ;;  %v7256_v29 = vpack.c.b16 %v562_v10, %v562_v10 }
  0x5a   :  { %v5054_v35 = vld [vmem:[%s9854_s1 + $0x820] sm:$0xf]  ;;  %v6322_v36 = vld [vmem:[%s9854_s1 + $0x82c] sm:$0xf0]  ;;  %v5455_v39 = vor.u32 %v6422_v31, %v5454_v30 }
  0x5b   :  { %v5182_v37 = vld [vmem:[%s9854_s1 + $0x920] sm:$0xf]  ;;  %v6354_v40 = vld [vmem:[%s9854_s1 + $0x92c] sm:$0xf0]  ;;  %v5055_v49 = vor.u32 %v6322_v36, %v5054_v35  ;;  %3282 = vmatpush.bf16.msra.mxu1 %v5199_v33  ;;  %3295 = vmatpush.bf16.msra.mxu2 %v5327_v34  ;;  %v7266_v33 = vpack.c.b16 %v563_v14, %v563_v14 }
  0x5c   :  { %v5310_v43 = vld [vmem:[%s9854_s1 + $0xa20] sm:$0xf]  ;;  %v6386_v45 = vld [vmem:[%s9854_s1 + $0xa2c] sm:$0xf0]  ;;  %v5183_v53 = vor.u32 %v6354_v40, %v5182_v37  ;;  %3308 = vmatpush.bf16.msra.mxu3 %v5455_v39 }
  0x5d   :  { %v5438_v46 = vld [vmem:[%s9854_s1 + $0xb20] sm:$0xf]  ;;  %v6418_v47 = vld [vmem:[%s9854_s1 + $0xb2c] sm:$0xf0]  ;;  %v5311_v54 = vor.u32 %v6386_v45, %v5310_v43  ;;  %3270 = vmatpush.bf16.msra.mxu0 %v5055_v49 }
  0x5e   :  { %v5038_v48 = vld [vmem:[%s9854_s1 + $0x800] sm:$0xf]  ;;  %v6318_v50 = vld [vmem:[%s9854_s1 + $0x80c] sm:$0xf0]  ;;  %v5439_v58 = vor.u32 %v6418_v47, %v5438_v46 }
  0x5f   :  { %v5166_v51 = vld [vmem:[%s9854_s1 + $0x900] sm:$0xf]  ;;  %v6350_v52 = vld [vmem:[%s9854_s1 + $0x90c] sm:$0xf0]  ;;  %v5039_v1 = vor.u32 %v6318_v50, %v5038_v48  ;;  %3283 = vmatpush.bf16.msra.mxu1 %v5183_v53  ;;  %3296 = vmatpush.bf16.msra.mxu2 %v5311_v54 }
  0x60   :  { %v5294_v55 = vld [vmem:[%s9854_s1 + $0xa00] sm:$0xf]  ;;  %v6382_v56 = vld [vmem:[%s9854_s1 + $0xa0c] sm:$0xf0]  ;;  %v5167_v6 = vor.u32 %v6350_v52, %v5166_v51  ;;  %3309 = vmatpush.bf16.msra.mxu3 %v5439_v58 }
  0x61   :  { %v18_v57 = vld [vmem:[%s9855_s0 + $0x20] sm:$0xff]  ;;  %v6414_v60 = vld [vmem:[%s9854_s1 + $0xb0c] sm:$0xf0]  ;;  %v5295_v7 = vor.u32 %v6382_v56, %v5294_v55  ;;  %3271 = vmatpush.bf16.msra.mxu0 %v5039_v1 }
  0x62   :  { %v5422_v59 = vld [vmem:[%s9854_s1 + $0xb00] sm:$0xf]  ;;  %v6474_v63 = vld [vmem:[%s9854_s1 + $0xcec] sm:$0xf0]  ;;  %v560_v5 = vunpack.c.l.b16 %v18_v57  ;;  %v561_v11 = vunpack.c.h.b16 %v18_v57 }
  0x63   :  { %v5662_v62 = vld [vmem:[%s9854_s1 + $0xce0] sm:$0xf]  ;;  %v6506_v2 = vld [vmem:[%s9854_s1 + $0xdec] sm:$0xf0]  ;;  %v5423_v12 = vor.u32 %v6414_v60, %v5422_v59  ;;  %3284 = vmatpush.bf16.msra.mxu1 %v5167_v6  ;;  %3297 = vmatpush.bf16.msra.mxu2 %v5295_v7 }
  0x64   :  { %v5790_v0 = vld [vmem:[%s9854_s1 + $0xde0] sm:$0xf]  ;;  %v6538_v4 = vld [vmem:[%s9854_s1 + $0xeec] sm:$0xf0]  ;;  %v5663_v13 = vor.u32 %v6474_v63, %v5662_v62  ;;  %v7245_v25 = vpack.c.b16 %v560_v5, %v560_v5  ;;  %v7258_v30 = vpack.c.b16 %v561_v11, %v561_v11 }
  0x65   :  { %v5918_v3 = vld [vmem:[%s9854_s1 + $0xee0] sm:$0xf]  ;;  %v6570_v9 = vld [vmem:[%s9854_s1 + $0xfec] sm:$0xf0]  ;;  %v5791_v15 = vor.u32 %v6506_v2, %v5790_v0  ;;  %3310 = vmatpush.bf16.msra.mxu3 %v5423_v12 }
  0x66   :  { %v6046_v8 = vld [vmem:[%s9854_s1 + $0xfe0] sm:$0xf]  ;;  %v5919_v16 = vor.u32 %v6538_v4, %v5918_v3  ;;  %v6470_v21 = vld [vmem:[%s9854_s1 + $0xccc] sm:$0xf0]  ;;  %3316 = vmatpush.bf16.msrb.mxu0 %v5663_v13  ;;  %3298 = vmatmul.bf16.vlgmr.msra.gmra.mxu2 %v7256_v29 }
  0x67   :  { %v5646_v17 = vld [vmem:[%s9854_s1 + $0xcc0] sm:$0xf]  ;;  %v6047_v24 = vor.u32 %v6570_v9, %v6046_v8  ;;  %v6502_v26 = vld [vmem:[%s9854_s1 + $0xdcc] sm:$0xf0]  ;;  %3329 = vmatpush.bf16.msrb.mxu1 %v5791_v15  ;;  %3272 = vmatmul.bf16.vlgmr.msra.gmra.mxu0 %v7245_v25 }
  0x68   :  { %v5774_v23 = vld [vmem:[%s9854_s1 + $0xdc0] sm:$0xf]  ;;  %v6534_v28 = vld [vmem:[%s9854_s1 + $0xecc] sm:$0xf0]  ;;  %v5647_v34 = vor.u32 %v6470_v21, %v5646_v17  ;;  %3342 = vmatpush.bf16.msrb.mxu2 %v5919_v16  ;;  %3285 = vmatmul.bf16.vlgmr.msra.gmra.mxu1 %v7258_v30 }
  0x69   :  { %v5902_v27 = vld [vmem:[%s9854_s1 + $0xec0] sm:$0xf]  ;;  %v6566_v32 = vld [vmem:[%s9854_s1 + $0xfcc] sm:$0xf0]  ;;  %v5775_v35 = vor.u32 %v6502_v26, %v5774_v23  ;;  %3355 = vmatpush.bf16.msrb.mxu3 %v6047_v24 }
  0x6a   :  { %v6030_v31 = vld [vmem:[%s9854_s1 + $0xfc0] sm:$0xf]  ;;  %v5903_v36 = vor.u32 %v6534_v28, %v5902_v27  ;;  %v6466_v39 = vld [vmem:[%s9854_s1 + $0xcac] sm:$0xf0]  ;;  %3311 = vmatmul.bf16.vlgmr.msra.gmra.mxu3 %v7266_v33  ;;  %3317 = vmatpush.bf16.msrb.mxu0 %v5647_v34 }
  0x6b   :  { %v5630_v37 = vld [vmem:[%s9854_s1 + $0xca0] sm:$0xf]  ;;  %v6031_v43 = vor.u32 %v6566_v32, %v6030_v31  ;;  %v6498_v45 = vld [vmem:[%s9854_s1 + $0xdac] sm:$0xf0]  ;;  %3330 = vmatpush.bf16.msrb.mxu1 %v5775_v35 }
  0x6c   :  { %v5758_v40 = vld [vmem:[%s9854_s1 + $0xda0] sm:$0xf]  ;;  %v6530_v47 = vld [vmem:[%s9854_s1 + $0xeac] sm:$0xf0]  ;;  %v5631_v50 = vor.u32 %v6466_v39, %v5630_v37  ;;  %3343 = vmatpush.bf16.msrb.mxu2 %v5903_v36 }
  0x6d   :  { %v5886_v46 = vld [vmem:[%s9854_s1 + $0xea0] sm:$0xf]  ;;  %v6562_v49 = vld [vmem:[%s9854_s1 + $0xfac] sm:$0xf0]  ;;  %v5759_v51 = vor.u32 %v6498_v45, %v5758_v40  ;;  %3356 = vmatpush.bf16.msrb.mxu3 %v6031_v43 }
  0x6e   :  { %v6014_v48 = vld [vmem:[%s9854_s1 + $0xfa0] sm:$0xf]  ;;  %v5887_v52 = vor.u32 %v6530_v47, %v5886_v46  ;;  %v6462_v54 = vld [vmem:[%s9854_s1 + $0xc8c] sm:$0xf0]  ;;  %3318 = vmatpush.bf16.msrb.mxu0 %v5631_v50 }
  0x6f   :  { %v5614_v53 = vld [vmem:[%s9854_s1 + $0xc80] sm:$0xf]  ;;  %v6015_v56 = vor.u32 %v6562_v49, %v6014_v48  ;;  %v6494_v57 = vld [vmem:[%s9854_s1 + $0xd8c] sm:$0xf0]  ;;  %3331 = vmatpush.bf16.msrb.mxu1 %v5759_v51 }
  0x70   :  { %v5742_v55 = vld [vmem:[%s9854_s1 + $0xd80] sm:$0xf]  ;;  %v6526_v59 = vld [vmem:[%s9854_s1 + $0xe8c] sm:$0xf0]  ;;  %v5615_v62 = vor.u32 %v6462_v54, %v5614_v53  ;;  %3344 = vmatpush.bf16.msrb.mxu2 %v5887_v52 }
  0x71   :  { %v5870_v58 = vld [vmem:[%s9854_s1 + $0xe80] sm:$0xf]  ;;  %v6558_v61 = vld [vmem:[%s9854_s1 + $0xf8c] sm:$0xf0]  ;;  %v5743_v63 = vor.u32 %v6494_v57, %v5742_v55  ;;  %3357 = vmatpush.bf16.msrb.mxu3 %v6015_v56 }
  0x72   :  { %v5998_v60 = vld [vmem:[%s9854_s1 + $0xf80] sm:$0xf]  ;;  %v5871_v0 = vor.u32 %v6526_v59, %v5870_v58  ;;  %v6458_v2 = vld [vmem:[%s9854_s1 + $0xc6c] sm:$0xf0]  ;;  %3319 = vmatpush.bf16.msrb.mxu0 %v5615_v62  ;;  %v21_v59 = vld [vmem:[%s9855_s0 + $0x38] sm:$0xff] }
  0x73   :  { %v5598_v1 = vld [vmem:[%s9854_s1 + $0xc60] sm:$0xf]  ;;  %v5999_v4 = vor.u32 %v6558_v61, %v5998_v60  ;;  %v6490_v5 = vld [vmem:[%s9854_s1 + $0xd6c] sm:$0xf0]  ;;  %3332 = vmatpush.bf16.msrb.mxu1 %v5743_v63  ;;  %v6088_v60 = vld [vmem:[%s9854_s1 + $0xe4] sm:$0xf] }
  0x74   :  { %v5726_v3 = vld [vmem:[%s9854_s1 + $0xd60] sm:$0xf]  ;;  %v6522_v7 = vld [vmem:[%s9854_s1 + $0xe6c] sm:$0xf0]  ;;  %v5599_v10 = vor.u32 %v6458_v2, %v5598_v1  ;;  %3345 = vmatpush.bf16.msrb.mxu2 %v5871_v0  ;;  %v4128_v61 = vld [vmem:[%s9854_s1 + $0xf0] sm:$0xf0] }
  0x75   :  { %v5854_v6 = vld [vmem:[%s9854_s1 + $0xe60] sm:$0xf]  ;;  %v6554_v9 = vld [vmem:[%s9854_s1 + $0xf6c] sm:$0xf0]  ;;  %v5727_v11 = vor.u32 %v6490_v5, %v5726_v3  ;;  %3358 = vmatpush.bf16.msrb.mxu3 %v5999_v4  ;;  %v6120_v62 = vld [vmem:[%s9854_s1 + $0x1e4] sm:$0xf] }
  0x76   :  { %v5982_v8 = vld [vmem:[%s9854_s1 + $0xf60] sm:$0xf]  ;;  %v5855_v12 = vor.u32 %v6522_v7, %v5854_v6  ;;  %v6454_v14 = vld [vmem:[%s9854_s1 + $0xc4c] sm:$0xf0]  ;;  %3320 = vmatpush.bf16.msrb.mxu0 %v5599_v10  ;;  %v4256_v0 = vld [vmem:[%s9854_s1 + $0x1f0] sm:$0xf0] }
  0x77   :  { %v5582_v13 = vld [vmem:[%s9854_s1 + $0xc40] sm:$0xf]  ;;  %v5983_v16 = vor.u32 %v6554_v9, %v5982_v8  ;;  %v6486_v17 = vld [vmem:[%s9854_s1 + $0xd4c] sm:$0xf0]  ;;  %3333 = vmatpush.bf16.msrb.mxu1 %v5727_v11  ;;  %v6152_v1 = vld [vmem:[%s9854_s1 + $0x2e4] sm:$0xf]  ;;  %v566_v8 = vunpack.c.l.b16 %v21_v59  ;;  %v4131_v11 = vor.u32 %v6088_v60, %v4128_v61 }
  0x78   :  { %v5710_v15 = vld [vmem:[%s9854_s1 + $0xd40] sm:$0xf]  ;;  %v6518_v23 = vld [vmem:[%s9854_s1 + $0xe4c] sm:$0xf0]  ;;  %v5583_v27 = vor.u32 %v6454_v14, %v5582_v13  ;;  %3346 = vmatpush.bf16.msrb.mxu2 %v5855_v12  ;;  %v4384_v2 = vld [vmem:[%s9854_s1 + $0x2f0] sm:$0xf0]  ;;  %v567_v12 = vunpack.c.h.b16 %v21_v59  ;;  %v4259_v13 = vor.u32 %v6120_v62, %v4256_v0 }
  0x79   :  { %v5838_v21 = vld [vmem:[%s9854_s1 + $0xe40] sm:$0xf]  ;;  %v6550_v26 = vld [vmem:[%s9854_s1 + $0xf4c] sm:$0xf0]  ;;  %v5711_v28 = vor.u32 %v6486_v17, %v5710_v15  ;;  %3359 = vmatpush.bf16.msrb.mxu3 %v5983_v16  ;;  %v6184_v6 = vld [vmem:[%s9854_s1 + $0x3e4] sm:$0xf]  ;;  %v4387_v14 = vor.u32 %v6152_v1, %v4384_v2 }
  0x7a   :  { %v5966_v24 = vld [vmem:[%s9854_s1 + $0xf40] sm:$0xf]  ;;  %v5839_v31 = vor.u32 %v6518_v23, %v5838_v21  ;;  %v6450_v34 = vld [vmem:[%s9854_s1 + $0xc2c] sm:$0xf0]  ;;  %3321 = vmatpush.bf16.msrb.mxu0 %v5583_v27  ;;  %v4512_v7 = vld [vmem:[%s9854_s1 + $0x3f0] sm:$0xf0] }
  0x7b   :  { %v5566_v32 = vld [vmem:[%s9854_s1 + $0xc20] sm:$0xf]  ;;  %v5967_v36 = vor.u32 %v6550_v26, %v5966_v24  ;;  %v6482_v37 = vld [vmem:[%s9854_s1 + $0xd2c] sm:$0xf0]  ;;  %3334 = vmatpush.bf16.msrb.mxu1 %v5711_v28  ;;  %v6084_v15 = vld [vmem:[%s9854_s1 + $0xc4] sm:$0xf]  ;;  %v4515_v21 = vor.u32 %v6184_v6, %v4512_v7  ;;  %v7466_v28 = vpack.c.b16 %v566_v8, %v566_v8 }
  0x7c   :  { %v5694_v35 = vld [vmem:[%s9854_s1 + $0xd20] sm:$0xf]  ;;  %v6514_v40 = vld [vmem:[%s9854_s1 + $0xe2c] sm:$0xf0]  ;;  %v5567_v47 = vor.u32 %v6450_v34, %v5566_v32  ;;  %3347 = vmatpush.bf16.msrb.mxu2 %v5839_v31  ;;  %v4112_v16 = vld [vmem:[%s9854_s1 + $0xd0] sm:$0xf0] }
  0x7d   :  { %v5822_v39 = vld [vmem:[%s9854_s1 + $0xe20] sm:$0xf]  ;;  %v6546_v45 = vld [vmem:[%s9854_s1 + $0xf2c] sm:$0xf0]  ;;  %v5695_v51 = vor.u32 %v6482_v37, %v5694_v35  ;;  %3360 = vmatpush.bf16.msrb.mxu3 %v5967_v36  ;;  %v6116_v17 = vld [vmem:[%s9854_s1 + $0x1c4] sm:$0xf]  ;;  %v7476_v35 = vpack.c.b16 %v567_v12, %v567_v12  ;;  %v4115_v36 = vor.u32 %v6084_v15, %v4112_v16 }
  0x7e   :  { %v5950_v43 = vld [vmem:[%s9854_s1 + $0xf20] sm:$0xf]  ;;  %v6446_v48 = vld [vmem:[%s9854_s1 + $0xc0c] sm:$0xf0]  ;;  %v5823_v52 = vor.u32 %v6514_v40, %v5822_v39  ;;  %3322 = vmatpush.bf16.msrb.mxu0 %v5567_v47  ;;  %v4240_v24 = vld [vmem:[%s9854_s1 + $0x1d0] sm:$0xf0] }
  0x7f   :  { %v5550_v46 = vld [vmem:[%s9854_s1 + $0xc00] sm:$0xf]  ;;  %v6478_v50 = vld [vmem:[%s9854_s1 + $0xd0c] sm:$0xf0]  ;;  %v5951_v56 = vor.u32 %v6546_v45, %v5950_v43  ;;  %3335 = vmatpush.bf16.msrb.mxu1 %v5695_v51  ;;  %v6148_v26 = vld [vmem:[%s9854_s1 + $0x2c4] sm:$0xf]  ;;  %v4243_v37 = vor.u32 %v6116_v17, %v4240_v24 }
  0x80   :  { %v5678_v49 = vld [vmem:[%s9854_s1 + $0xd00] sm:$0xf]  ;;  %v6510_v54 = vld [vmem:[%s9854_s1 + $0xe0c] sm:$0xf0]  ;;  %v5551_v63 = vor.u32 %v6446_v48, %v5550_v46  ;;  %3348 = vmatpush.bf16.msrb.mxu2 %v5823_v52  ;;  %v4368_v27 = vld [vmem:[%s9854_s1 + $0x2d0] sm:$0xf0] }
  0x81   :  { %v5806_v53 = vld [vmem:[%s9854_s1 + $0xe00] sm:$0xf]  ;;  %v20_v55 = vld [vmem:[%s9855_s0 + $0x30] sm:$0xff]  ;;  %v5679_v4 = vor.u32 %v6478_v50, %v5678_v49  ;;  %3361 = vmatpush.bf16.msrb.mxu3 %v5951_v56  ;;  %v6180_v32 = vld [vmem:[%s9854_s1 + $0x3c4] sm:$0xf]  ;;  %v4371_v39 = vor.u32 %v6148_v26, %v4368_v27 }
  0x82   :  { %v5934_v57 = vld [vmem:[%s9854_s1 + $0xf00] sm:$0xf]  ;;  %v6542_v58 = vld [vmem:[%s9854_s1 + $0xf0c] sm:$0xf0]  ;;  %v564_v3 = vunpack.c.l.b16 %v20_v55  ;;  %v5807_v5 = vor.u32 %v6510_v54, %v5806_v53  ;;  %v565_v9 = vunpack.c.h.b16 %v20_v55  ;;  %3323 = vmatpush.bf16.msrb.mxu0 %v5551_v63  ;;  %v4496_v34 = vld [vmem:[%s9854_s1 + $0x3d0] sm:$0xf0] }
  0x83   :  { %v5935_v10 = vor.u32 %v6542_v58, %v5934_v57  ;;  %3336 = vmatpush.bf16.msrb.mxu1 %v5679_v4  ;;  %v6080_v40 = vld [vmem:[%s9854_s1 + $0xa4] sm:$0xf]  ;;  %v4096_v43 = vld [vmem:[%s9854_s1 + $0xb0] sm:$0xf0]  ;;  %v4499_v46 = vor.u32 %v6180_v32, %v4496_v34 }
  0x84   :  { %v7455_v23 = vpack.c.b16 %v564_v3, %v564_v3  ;;  %3349 = vmatpush.bf16.msrb.mxu2 %v5807_v5  ;;  %v7468_v31 = vpack.c.b16 %v565_v9, %v565_v9  ;;  %v6112_v45 = vld [vmem:[%s9854_s1 + $0x1a4] sm:$0xf]  ;;  %v4224_v47 = vld [vmem:[%s9854_s1 + $0x1b0] sm:$0xf0]  ;;  %v4099_v52 = vor.u32 %v6080_v40, %v4096_v43 }
  0x85   :  { %3362 = vmatpush.bf16.msrb.mxu3 %v5935_v10  ;;  %v6144_v48 = vld [vmem:[%s9854_s1 + $0x2a4] sm:$0xf]  ;;  %v4352_v49 = vld [vmem:[%s9854_s1 + $0x2b0] sm:$0xf0]  ;;  %v4227_v53 = vor.u32 %v6112_v45, %v4224_v47 }
  0x86   :  { %3368 = vmatpush.bf16.msra.mxu0 %v4131_v11  ;;  %3337 = vmatmul.bf16.vlgmr.msrb.gmra.mxu1 %v7468_v31  ;;  %v6176_v50 = vld [vmem:[%s9854_s1 + $0x3a4] sm:$0xf]  ;;  %v4480_v51 = vld [vmem:[%s9854_s1 + $0x3b0] sm:$0xf0]  ;;  %v4355_v54 = vor.u32 %v6144_v48, %v4352_v49 }
  0x87   :  { %3381 = vmatpush.bf16.msra.mxu1 %v4259_v13  ;;  %3324 = vmatmul.bf16.vlgmr.msrb.gmra.mxu0 %v7455_v23  ;;  %v6076_v55 = vld [vmem:[%s9854_s1 + $0x84] sm:$0xf]  ;;  %v4080_v56 = vld [vmem:[%s9854_s1 + $0x90] sm:$0xf0]  ;;  %v4483_v58 = vor.u32 %v6176_v50, %v4480_v51 }
  0x88   :  { %3394 = vmatpush.bf16.msra.mxu2 %v4387_v14  ;;  %3363 = vmatmul.bf16.vlgmr.msrb.gmra.mxu3 %v7476_v35  ;;  %v6108_v57 = vld [vmem:[%s9854_s1 + $0x184] sm:$0xf]  ;;  %v4208_v59 = vld [vmem:[%s9854_s1 + $0x190] sm:$0xf0]  ;;  %v4083_v0 = vor.u32 %v6076_v55, %v4080_v56 }
  0x89   :  { %3407 = vmatpush.bf16.msra.mxu3 %v4515_v21  ;;  %3350 = vmatmul.bf16.vlgmr.msrb.gmra.mxu2 %v7466_v28  ;;  %v6140_v60 = vld [vmem:[%s9854_s1 + $0x284] sm:$0xf]  ;;  %v4336_v61 = vld [vmem:[%s9854_s1 + $0x290] sm:$0xf0]  ;;  %v4211_v1 = vor.u32 %v6108_v57, %v4208_v59 }
  0x8a   :  { %3369 = vmatpush.bf16.msra.mxu0 %v4115_v36  ;;  %v6172_v62 = vld [vmem:[%s9854_s1 + $0x384] sm:$0xf]  ;;  %v4464_v63 = vld [vmem:[%s9854_s1 + $0x390] sm:$0xf0]  ;;  %v4339_v2 = vor.u32 %v6140_v60, %v4336_v61 }
  0x8b   :  { %3382 = vmatpush.bf16.msra.mxu1 %v4243_v37  ;;  %v6072_v3 = vld [vmem:[%s9854_s1 + $0x64] sm:$0xf]  ;;  %v4064_v4 = vld [vmem:[%s9854_s1 + $0x70] sm:$0xf0]  ;;  %v4467_v6 = vor.u32 %v6172_v62, %v4464_v63 }
  0x8c   :  { %3395 = vmatpush.bf16.msra.mxu2 %v4371_v39  ;;  %v6104_v5 = vld [vmem:[%s9854_s1 + $0x164] sm:$0xf]  ;;  %v4192_v7 = vld [vmem:[%s9854_s1 + $0x170] sm:$0xf0]  ;;  %v4067_v12 = vor.u32 %v6072_v3, %v4064_v4 }
  0x8d   :  { %3408 = vmatpush.bf16.msra.mxu3 %v4499_v46  ;;  %v6136_v8 = vld [vmem:[%s9854_s1 + $0x264] sm:$0xf]  ;;  %v4320_v9 = vld [vmem:[%s9854_s1 + $0x270] sm:$0xf0]  ;;  %v4195_v13 = vor.u32 %v6104_v5, %v4192_v7 }
  0x8e   :  { %3370 = vmatpush.bf16.msra.mxu0 %v4099_v52  ;;  %v6168_v10 = vld [vmem:[%s9854_s1 + $0x364] sm:$0xf]  ;;  %v4448_v11 = vld [vmem:[%s9854_s1 + $0x370] sm:$0xf0]  ;;  %v4323_v14 = vor.u32 %v6136_v8, %v4320_v9 }
  0x8f   :  { %3383 = vmatpush.bf16.msra.mxu1 %v4227_v53  ;;  %v6068_v15 = vld [vmem:[%s9854_s1 + $0x44] sm:$0xf]  ;;  %v4048_v16 = vld [vmem:[%s9854_s1 + $0x50] sm:$0xf0]  ;;  %v4451_v21 = vor.u32 %v6168_v10, %v4448_v11 }
  0x90   :  { %3396 = vmatpush.bf16.msra.mxu2 %v4355_v54  ;;  %v6100_v17 = vld [vmem:[%s9854_s1 + $0x144] sm:$0xf]  ;;  %v4176_v24 = vld [vmem:[%s9854_s1 + $0x150] sm:$0xf0]  ;;  %v4051_v36 = vor.u32 %v6068_v15, %v4048_v16 }
  0x91   :  { %3409 = vmatpush.bf16.msra.mxu3 %v4483_v58  ;;  %v6132_v26 = vld [vmem:[%s9854_s1 + $0x244] sm:$0xf]  ;;  %v4304_v27 = vld [vmem:[%s9854_s1 + $0x250] sm:$0xf0]  ;;  %v4179_v37 = vor.u32 %v6100_v17, %v4176_v24 }
  0x92   :  { %3371 = vmatpush.bf16.msra.mxu0 %v4083_v0  ;;  %v6164_v32 = vld [vmem:[%s9854_s1 + $0x344] sm:$0xf]  ;;  %v4432_v34 = vld [vmem:[%s9854_s1 + $0x350] sm:$0xf0]  ;;  %v4307_v39 = vor.u32 %v6132_v26, %v4304_v27 }
  0x93   :  { %3384 = vmatpush.bf16.msra.mxu1 %v4211_v1  ;;  %v6064_v40 = vld [vmem:[%s9854_s1 + $0x24] sm:$0xf]  ;;  %v4032_v43 = vld [vmem:[%s9854_s1 + $0x30] sm:$0xf0]  ;;  %v4435_v46 = vor.u32 %v6164_v32, %v4432_v34 }
  0x94   :  { %3397 = vmatpush.bf16.msra.mxu2 %v4339_v2  ;;  %v6096_v45 = vld [vmem:[%s9854_s1 + $0x124] sm:$0xf]  ;;  %v4160_v47 = vld [vmem:[%s9854_s1 + $0x130] sm:$0xf0]  ;;  %v4035_v52 = vor.u32 %v6064_v40, %v4032_v43 }
  0x95   :  { %3410 = vmatpush.bf16.msra.mxu3 %v4467_v6  ;;  %v6128_v48 = vld [vmem:[%s9854_s1 + $0x224] sm:$0xf]  ;;  %v4288_v49 = vld [vmem:[%s9854_s1 + $0x230] sm:$0xf0]  ;;  %v4163_v55 = vor.u32 %v6096_v45, %v4160_v47 }
  0x96   :  { %3372 = vmatpush.bf16.msra.mxu0 %v4067_v12  ;;  %v6160_v50 = vld [vmem:[%s9854_s1 + $0x324] sm:$0xf]  ;;  %v4416_v51 = vld [vmem:[%s9854_s1 + $0x330] sm:$0xf0]  ;;  %v4291_v56 = vor.u32 %v6128_v48, %v4288_v49 }
  0x97   :  { %3385 = vmatpush.bf16.msra.mxu1 %v4195_v13  ;;  %v6060_v53 = vld [vmem:[%s9854_s1 + $0x4] sm:$0xf]  ;;  %v4016_v54 = vld [vmem:[%s9854_s1 + $0x10] sm:$0xf0]  ;;  %v4419_v60 = vor.u32 %v6160_v50, %v4416_v51 }
  0x98   :  { %3398 = vmatpush.bf16.msra.mxu2 %v4323_v14  ;;  %v6092_v57 = vld [vmem:[%s9854_s1 + $0x104] sm:$0xf]  ;;  %v4144_v58 = vld [vmem:[%s9854_s1 + $0x110] sm:$0xf0]  ;;  %v4019_v3 = vor.u32 %v6060_v53, %v4016_v54 }
  0x99   :  { %3411 = vmatpush.bf16.msra.mxu3 %v4451_v21  ;;  %v6124_v59 = vld [vmem:[%s9854_s1 + $0x204] sm:$0xf]  ;;  %v4272_v61 = vld [vmem:[%s9854_s1 + $0x210] sm:$0xf0]  ;;  %v4147_v7 = vor.u32 %v6092_v57, %v4144_v58 }
  0x9a   :  { %3373 = vmatpush.bf16.msra.mxu0 %v4051_v36  ;;  %v6156_v62 = vld [vmem:[%s9854_s1 + $0x304] sm:$0xf]  ;;  %v4400_v63 = vld [vmem:[%s9854_s1 + $0x310] sm:$0xf0]  ;;  %v4275_v8 = vor.u32 %v6124_v59, %v4272_v61 }
  0x9b   :  { %3386 = vmatpush.bf16.msra.mxu1 %v4179_v37  ;;  %v6216_v0 = vld [vmem:[%s9854_s1 + $0x4e4] sm:$0xf]  ;;  %v4640_v1 = vld [vmem:[%s9854_s1 + $0x4f0] sm:$0xf0]  ;;  %v4403_v11 = vor.u32 %v6156_v62, %v4400_v63 }
  0x9c   :  { %3399 = vmatpush.bf16.msra.mxu2 %v4307_v39  ;;  %v6248_v2 = vld [vmem:[%s9854_s1 + $0x5e4] sm:$0xf]  ;;  %v4768_v4 = vld [vmem:[%s9854_s1 + $0x5f0] sm:$0xf0]  ;;  %v4643_v12 = vor.u32 %v6216_v0, %v4640_v1 }
  0x9d   :  { %3412 = vmatpush.bf16.msra.mxu3 %v4435_v46  ;;  %v6280_v5 = vld [vmem:[%s9854_s1 + $0x6e4] sm:$0xf]  ;;  %v4896_v6 = vld [vmem:[%s9854_s1 + $0x6f0] sm:$0xf0]  ;;  %v4771_v13 = vor.u32 %v6248_v2, %v4768_v4 }
  0x9e   :  { %3374 = vmatpush.bf16.msra.mxu0 %v4035_v52  ;;  %v6312_v9 = vld [vmem:[%s9854_s1 + $0x7e4] sm:$0xf]  ;;  %v5024_v10 = vld [vmem:[%s9854_s1 + $0x7f0] sm:$0xf0]  ;;  %v4899_v14 = vor.u32 %v6280_v5, %v4896_v6 }
  0x9f   :  { %3387 = vmatpush.bf16.msra.mxu1 %v4163_v55  ;;  %v6212_v15 = vld [vmem:[%s9854_s1 + $0x4c4] sm:$0xf]  ;;  %v4624_v16 = vld [vmem:[%s9854_s1 + $0x4d0] sm:$0xf0]  ;;  %v5027_v21 = vor.u32 %v6312_v9, %v5024_v10  ;;  %v534_v10 = vld [vmem:[%s9856_s2] sm:$0xf] }
  0xa0   :  { %3400 = vmatpush.bf16.msra.mxu2 %v4291_v56  ;;  %v6244_v17 = vld [vmem:[%s9854_s1 + $0x5c4] sm:$0xf]  ;;  %v4752_v24 = vld [vmem:[%s9854_s1 + $0x5d0] sm:$0xf0]  ;;  %v4627_v36 = vor.u32 %v6212_v15, %v4624_v16 }
  0xa1   :  { %3413 = vmatpush.bf16.msra.mxu3 %v4419_v60  ;;  %v6276_v26 = vld [vmem:[%s9854_s1 + $0x6c4] sm:$0xf]  ;;  %v4880_v27 = vld [vmem:[%s9854_s1 + $0x6d0] sm:$0xf0]  ;;  %v4755_v37 = vor.u32 %v6244_v17, %v4752_v24  ;;  %v536_v24 = vperm.slane %v534_v10, 0 }
  0xa2   :  { %3375 = vmatpush.bf16.msra.mxu0 %v4019_v3  ;;  %v6308_v32 = vld [vmem:[%s9854_s1 + $0x7c4] sm:$0xf]  ;;  %v5008_v34 = vld [vmem:[%s9854_s1 + $0x7d0] sm:$0xf0]  ;;  %v4883_v39 = vor.u32 %v6276_v26, %v4880_v27 }
  0xa3   :  { %3388 = vmatpush.bf16.msra.mxu1 %v4147_v7  ;;  %v6208_v40 = vld [vmem:[%s9854_s1 + $0x4a4] sm:$0xf]  ;;  %v4608_v43 = vld [vmem:[%s9854_s1 + $0x4b0] sm:$0xf0]  ;;  %v5011_v46 = vor.u32 %v6308_v32, %v5008_v34 }
  0xa4   :  { %3401 = vmatpush.bf16.msra.mxu2 %v4275_v8  ;;  %v6240_v45 = vld [vmem:[%s9854_s1 + $0x5a4] sm:$0xf]  ;;  %v4736_v47 = vld [vmem:[%s9854_s1 + $0x5b0] sm:$0xf0]  ;;  %v4611_v52 = vor.u32 %v6208_v40, %v4608_v43 }
  0xa5   :  { %3414 = vmatpush.bf16.msra.mxu3 %v4403_v11  ;;  %v6272_v48 = vld [vmem:[%s9854_s1 + $0x6a4] sm:$0xf]  ;;  %v4864_v49 = vld [vmem:[%s9854_s1 + $0x6b0] sm:$0xf0]  ;;  %3376 = vmatmul.bf16.vlgmr.msra.gmra.mxu0 %v6890_v19  ;;  %v4739_v53 = vor.u32 %v6240_v45, %v4736_v47 }
  0xa6   :  { %3420 = vmatpush.bf16.msrb.mxu0 %v4643_v12  ;;  %v6304_v50 = vld [vmem:[%s9854_s1 + $0x7a4] sm:$0xf]  ;;  %v4992_v51 = vld [vmem:[%s9854_s1 + $0x7b0] sm:$0xf0]  ;;  %3389 = vmatmul.bf16.vlgmr.msra.gmra.mxu1 %v6894_v22  ;;  %v4867_v54 = vor.u32 %v6272_v48, %v4864_v49 }
  0xa7   :  { %3433 = vmatpush.bf16.msrb.mxu1 %v4771_v13  ;;  %3402 = vmatmul.bf16.vlgmr.msra.gmra.mxu2 %v6888_v18  ;;  %v6204_v55 = vld [vmem:[%s9854_s1 + $0x484] sm:$0xf]  ;;  %v4592_v56 = vld [vmem:[%s9854_s1 + $0x490] sm:$0xf0]  ;;  %v4995_v58 = vor.u32 %v6304_v50, %v4992_v51 }
  0xa8   :  { %3446 = vmatpush.bf16.msrb.mxu2 %v4899_v14  ;;  %3415 = vmatmul.bf16.vlgmr.msra.gmra.mxu3 %v6892_v20  ;;  %v6236_v57 = vld [vmem:[%s9854_s1 + $0x584] sm:$0xf]  ;;  %v4720_v59 = vld [vmem:[%s9854_s1 + $0x590] sm:$0xf0]  ;;  %v4595_v0 = vor.u32 %v6204_v55, %v4592_v56 }
  0xa9   :  { %3459 = vmatpush.bf16.msrb.mxu3 %v5027_v21  ;;  %v6268_v60 = vld [vmem:[%s9854_s1 + $0x684] sm:$0xf]  ;;  %v4848_v61 = vld [vmem:[%s9854_s1 + $0x690] sm:$0xf0]  ;;  %v4723_v2 = vor.u32 %v6236_v57, %v4720_v59 }
  0xaa   :  { %3421 = vmatpush.bf16.msrb.mxu0 %v4627_v36  ;;  %v6300_v62 = vld [vmem:[%s9854_s1 + $0x784] sm:$0xf]  ;;  %v4976_v63 = vld [vmem:[%s9854_s1 + $0x790] sm:$0xf0]  ;;  %v4851_v3 = vor.u32 %v6268_v60, %v4848_v61 }
  0xab   :  { %3434 = vmatpush.bf16.msrb.mxu1 %v4755_v37  ;;  %v6200_v1 = vld [vmem:[%s9854_s1 + $0x464] sm:$0xf]  ;;  %v4576_v4 = vld [vmem:[%s9854_s1 + $0x470] sm:$0xf0]  ;;  %v4979_v7 = vor.u32 %v6300_v62, %v4976_v63 }
  0xac   :  { %3447 = vmatpush.bf16.msrb.mxu2 %v4883_v39  ;;  %v6232_v5 = vld [vmem:[%s9854_s1 + $0x564] sm:$0xf]  ;;  %v4704_v6 = vld [vmem:[%s9854_s1 + $0x570] sm:$0xf0]  ;;  %v4579_v13 = vor.u32 %v6200_v1, %v4576_v4 }
  0xad   :  { %3460 = vmatpush.bf16.msrb.mxu3 %v5011_v46  ;;  %v6264_v8 = vld [vmem:[%s9854_s1 + $0x664] sm:$0xf]  ;;  %v4832_v9 = vld [vmem:[%s9854_s1 + $0x670] sm:$0xf0]  ;;  %v4707_v15 = vor.u32 %v6232_v5, %v4704_v6 }
  0xae   :  { %3422 = vmatpush.bf16.msrb.mxu0 %v4611_v52  ;;  %v6296_v11 = vld [vmem:[%s9854_s1 + $0x764] sm:$0xf]  ;;  %v4960_v12 = vld [vmem:[%s9854_s1 + $0x770] sm:$0xf0]  ;;  %v4835_v16 = vor.u32 %v6264_v8, %v4832_v9  ;;  %v3208_v8 = vpop.f32.mrf.mxu3 }
  0xaf   :  { %3435 = vmatpush.bf16.msrb.mxu1 %v4739_v53  ;;  %v6196_v14 = vld [vmem:[%s9854_s1 + $0x444] sm:$0xf]  ;;  %v4560_v17 = vld [vmem:[%s9854_s1 + $0x450] sm:$0xf0]  ;;  %v4963_v26 = vor.u32 %v6296_v11, %v4960_v12  ;;  %v3169_v40 = vpop.f32.mrf.mxu0  ;;  %v3182_v50 = vpop.f32.mrf.mxu1 }
  0xb0   :  { %3448 = vmatpush.bf16.msrb.mxu2 %v4867_v54  ;;  %v6228_v21 = vld [vmem:[%s9854_s1 + $0x544] sm:$0xf]  ;;  %v4688_v27 = vld [vmem:[%s9854_s1 + $0x550] sm:$0xf0]  ;;  %v4563_v39 = vor.u32 %v6196_v14, %v4560_v17  ;;  %v3170_v49 = vadd.f32 %v3169_v40, %v536_v24 }
  0xb1   :  { %3461 = vmatpush.bf16.msrb.mxu3 %v4995_v58  ;;  %v6260_v32 = vld [vmem:[%s9854_s1 + $0x644] sm:$0xf]  ;;  %v4816_v34 = vld [vmem:[%s9854_s1 + $0x650] sm:$0xf0]  ;;  %v4691_v43 = vor.u32 %v6228_v21, %v4688_v27 }
  0xb2   :  { %3423 = vmatpush.bf16.msrb.mxu0 %v4595_v0  ;;  %v6292_v36 = vld [vmem:[%s9854_s1 + $0x744] sm:$0xf]  ;;  %v4944_v37 = vld [vmem:[%s9854_s1 + $0x750] sm:$0xf0]  ;;  %v4819_v45 = vor.u32 %v6260_v32, %v4816_v34  ;;  %v3183_v57 = vadd.f32 %v3182_v50, %v3170_v49 }
  0xb3   :  { %3436 = vmatpush.bf16.msrb.mxu1 %v4723_v2  ;;  %v6192_v46 = vld [vmem:[%s9854_s1 + $0x424] sm:$0xf]  ;;  %v4544_v47 = vld [vmem:[%s9854_s1 + $0x430] sm:$0xf0]  ;;  %v4947_v51 = vor.u32 %v6292_v36, %v4944_v37  ;;  %v3195_v2 = vpop.f32.mrf.mxu2 }
  0xb4   :  { %3449 = vmatpush.bf16.msrb.mxu2 %v4851_v3  ;;  %v6224_v48 = vld [vmem:[%s9854_s1 + $0x524] sm:$0xf]  ;;  %v4672_v52 = vld [vmem:[%s9854_s1 + $0x530] sm:$0xf0]  ;;  %v4547_v58 = vor.u32 %v6192_v46, %v4544_v47 }
  0xb5   :  { %3462 = vmatpush.bf16.msrb.mxu3 %v4979_v7  ;;  %v6256_v53 = vld [vmem:[%s9854_s1 + $0x624] sm:$0xf]  ;;  %v4800_v54 = vld [vmem:[%s9854_s1 + $0x630] sm:$0xf0]  ;;  %v4675_v61 = vor.u32 %v6224_v48, %v4672_v52  ;;  %v3196_v7 = vadd.f32 %v3195_v2, %v3183_v57 }
  0xb6   :  { %3424 = vmatpush.bf16.msrb.mxu0 %v4579_v13  ;;  %v6288_v55 = vld [vmem:[%s9854_s1 + $0x724] sm:$0xf]  ;;  %v4928_v56 = vld [vmem:[%s9854_s1 + $0x730] sm:$0xf0]  ;;  %v4803_v62 = vor.u32 %v6256_v53, %v4800_v54  ;;  %v3210_v54 = vpop.f32.mrf.mxu3 }
  0xb7   :  { %3437 = vmatpush.bf16.msrb.mxu1 %v4707_v15  ;;  %v6188_v59 = vld [vmem:[%s9854_s1 + $0x404] sm:$0xf]  ;;  %v4528_v60 = vld [vmem:[%s9854_s1 + $0x410] sm:$0xf0]  ;;  %v4931_v3 = vor.u32 %v6288_v55, %v4928_v56  ;;  %v3171_v17 = vpop.f32.mrf.mxu0  ;;  %v3184_v32 = vpop.f32.mrf.mxu1 }
  0xb8   :  { %3450 = vmatpush.bf16.msrb.mxu2 %v4835_v16  ;;  %v6220_v63 = vld [vmem:[%s9854_s1 + $0x504] sm:$0xf]  ;;  %v4656_v0 = vld [vmem:[%s9854_s1 + $0x510] sm:$0xf0]  ;;  %v4531_v12 = vor.u32 %v6188_v59, %v4528_v60  ;;  %v7843_v16 = vadd.f32 %v3208_v8, %v3196_v7 }
  0xb9   :  { %3463 = vmatpush.bf16.msrb.mxu3 %v4963_v26  ;;  %v6252_v1 = vld [vmem:[%s9854_s1 + $0x604] sm:$0xf]  ;;  %v4784_v4 = vld [vmem:[%s9854_s1 + $0x610] sm:$0xf0]  ;;  %v4659_v21 = vor.u32 %v6220_v63, %v4656_v0 }
  0xba   :  { %3425 = vmatpush.bf16.msrb.mxu0 %v4563_v39  ;;  %v6284_v5 = vld [vmem:[%s9854_s1 + $0x704] sm:$0xf]  ;;  %v4912_v6 = vld [vmem:[%s9854_s1 + $0x710] sm:$0xf0]  ;;  %v4787_v24 = vor.u32 %v6252_v1, %v4784_v4 }
  0xbb   :  { %3438 = vmatpush.bf16.msrb.mxu1 %v4691_v43  ;;  %v6344_v9 = vld [vmem:[%s9854_s1 + $0x8e4] sm:$0xf]  ;;  %v5152_v10 = vld [vmem:[%s9854_s1 + $0x8f0] sm:$0xf0]  ;;  %v4915_v34 = vor.u32 %v6284_v5, %v4912_v6  ;;  %v3197_v52 = vpop.f32.mrf.mxu2 }
  0xbc   :  { %3451 = vmatpush.bf16.msrb.mxu2 %v4819_v45  ;;  %v6376_v11 = vld [vmem:[%s9854_s1 + $0x9e4] sm:$0xf]  ;;  %v5280_v13 = vld [vmem:[%s9854_s1 + $0x9f0] sm:$0xf0]  ;;  %v5155_v36 = vor.u32 %v6344_v9, %v5152_v10 }
  0xbd   :  { %3464 = vmatpush.bf16.msrb.mxu3 %v4947_v51  ;;  %v6408_v14 = vld [vmem:[%s9854_s1 + $0xae4] sm:$0xf]  ;;  %v5408_v15 = vld [vmem:[%s9854_s1 + $0xaf0] sm:$0xf0]  ;;  %v5283_v37 = vor.u32 %v6376_v11, %v5280_v13 }
  0xbe   :  { %3426 = vmatpush.bf16.msrb.mxu0 %v4547_v58  ;;  %v6440_v26 = vld [vmem:[%s9854_s1 + $0xbe4] sm:$0xf]  ;;  %v5536_v27 = vld [vmem:[%s9854_s1 + $0xbf0] sm:$0xf0]  ;;  %v5411_v39 = vor.u32 %v6408_v14, %v5408_v15 }
  0xbf   :  { %3439 = vmatpush.bf16.msrb.mxu1 %v4675_v61  ;;  %v6340_v40 = vld [vmem:[%s9854_s1 + $0x8c4] sm:$0xf]  ;;  %v5136_v43 = vld [vmem:[%s9854_s1 + $0x8d0] sm:$0xf0]  ;;  %v5539_v46 = vor.u32 %v6440_v26, %v5536_v27 }
  0xc0   :  { %3452 = vmatpush.bf16.msrb.mxu2 %v4803_v62  ;;  %v6372_v45 = vld [vmem:[%s9854_s1 + $0x9c4] sm:$0xf]  ;;  %v5264_v47 = vld [vmem:[%s9854_s1 + $0x9d0] sm:$0xf0]  ;;  %v5139_v53 = vor.u32 %v6340_v40, %v5136_v43 }
  0xc1   :  { %3465 = vmatpush.bf16.msrb.mxu3 %v4931_v3  ;;  %v6404_v48 = vld [vmem:[%s9854_s1 + $0xac4] sm:$0xf]  ;;  %v5392_v49 = vld [vmem:[%s9854_s1 + $0xad0] sm:$0xf0]  ;;  %v5267_v55 = vor.u32 %v6372_v45, %v5264_v47 }
  0xc2   :  { %3427 = vmatpush.bf16.msrb.mxu0 %v4531_v12  ;;  %v6436_v50 = vld [vmem:[%s9854_s1 + $0xbc4] sm:$0xf]  ;;  %v5520_v51 = vld [vmem:[%s9854_s1 + $0xbd0] sm:$0xf0]  ;;  %v5395_v56 = vor.u32 %v6404_v48, %v5392_v49 }
  0xc3   :  { %3440 = vmatpush.bf16.msrb.mxu1 %v4659_v21  ;;  %v6336_v57 = vld [vmem:[%s9854_s1 + $0x8a4] sm:$0xf]  ;;  %v5120_v58 = vld [vmem:[%s9854_s1 + $0x8b0] sm:$0xf0]  ;;  %v5523_v60 = vor.u32 %v6436_v50, %v5520_v51  ;;  %v3221_v15 = vpop.f32.mrf.mxu0 }
  0xc4   :  { %3453 = vmatpush.bf16.msrb.mxu2 %v4787_v24  ;;  %v6368_v59 = vld [vmem:[%s9854_s1 + $0x9a4] sm:$0xf]  ;;  %v5248_v61 = vld [vmem:[%s9854_s1 + $0x9b0] sm:$0xf0]  ;;  %v5123_v2 = vor.u32 %v6336_v57, %v5120_v58  ;;  %v3222_v32 = vadd.f32 %v3221_v15, %v7843_v16 }
  0xc5   :  { %3466 = vmatpush.bf16.msrb.mxu3 %v4915_v34  ;;  %v6400_v62 = vld [vmem:[%s9854_s1 + $0xaa4] sm:$0xf]  ;;  %v5376_v63 = vld [vmem:[%s9854_s1 + $0xab0] sm:$0xf0]  ;;  %3428 = vmatmul.bf16.vlgmr.msrb.gmra.mxu0 %v7052_v41  ;;  %v5251_v3 = vor.u32 %v6368_v59, %v5248_v61  ;;  %v3234_v34 = vpop.f32.mrf.mxu1 }
  0xc6   :  { %3472 = vmatpush.bf16.msra.mxu0 %v5155_v36  ;;  %v6432_v0 = vld [vmem:[%s9854_s1 + $0xba4] sm:$0xf]  ;;  %v5504_v1 = vld [vmem:[%s9854_s1 + $0xbb0] sm:$0xf0]  ;;  %3441 = vmatmul.bf16.vlgmr.msrb.gmra.mxu1 %v7056_v44  ;;  %v5379_v4 = vor.u32 %v6400_v62, %v5376_v63  ;;  %v3235_v45 = vadd.f32 %v3234_v34, %v3222_v32 }
  0xc7   :  { %3485 = vmatpush.bf16.msra.mxu1 %v5283_v37  ;;  %3454 = vmatmul.bf16.vlgmr.msrb.gmra.mxu2 %v7044_v38  ;;  %v6332_v5 = vld [vmem:[%s9854_s1 + $0x884] sm:$0xf]  ;;  %v5104_v6 = vld [vmem:[%s9854_s1 + $0x890] sm:$0xf0]  ;;  %v5507_v8 = vor.u32 %v6432_v0, %v5504_v1 }
  0xc8   :  { %3498 = vmatpush.bf16.msra.mxu2 %v5411_v39  ;;  %3467 = vmatmul.bf16.vlgmr.msrb.gmra.mxu3 %v7054_v42  ;;  %v6364_v7 = vld [vmem:[%s9854_s1 + $0x984] sm:$0xf]  ;;  %v5232_v9 = vld [vmem:[%s9854_s1 + $0x990] sm:$0xf0]  ;;  %v5107_v14 = vor.u32 %v6332_v5, %v5104_v6 }
  0xc9   :  { %3511 = vmatpush.bf16.msra.mxu3 %v5539_v46  ;;  %v6396_v10 = vld [vmem:[%s9854_s1 + $0xa84] sm:$0xf]  ;;  %v5360_v11 = vld [vmem:[%s9854_s1 + $0xa90] sm:$0xf0]  ;;  %v5235_v17 = vor.u32 %v6364_v7, %v5232_v9  ;;  %v3247_v52 = vpop.f32.mrf.mxu2 }
  0xca   :  { %3473 = vmatpush.bf16.msra.mxu0 %v5139_v53  ;;  %v6428_v12 = vld [vmem:[%s9854_s1 + $0xb84] sm:$0xf]  ;;  %v5488_v13 = vld [vmem:[%s9854_s1 + $0xb90] sm:$0xf0]  ;;  %v5363_v21 = vor.u32 %v6396_v10, %v5360_v11  ;;  %v3248_v57 = vadd.f32 %v3247_v52, %v3235_v45 }
  0xcb   :  { %3486 = vmatpush.bf16.msra.mxu1 %v5267_v55  ;;  %v6328_v24 = vld [vmem:[%s9854_s1 + $0x864] sm:$0xf]  ;;  %v5088_v26 = vld [vmem:[%s9854_s1 + $0x870] sm:$0xf0]  ;;  %v5491_v36 = vor.u32 %v6428_v12, %v5488_v13  ;;  %v3223_v63 = vpop.f32.mrf.mxu0 }
  0xcc   :  { %3499 = vmatpush.bf16.msra.mxu2 %v5395_v56  ;;  %v6360_v27 = vld [vmem:[%s9854_s1 + $0x964] sm:$0xf]  ;;  %v5216_v37 = vld [vmem:[%s9854_s1 + $0x970] sm:$0xf0]  ;;  %v5091_v46 = vor.u32 %v6328_v24, %v5088_v26  ;;  %v3260_v58 = vpop.f32.mrf.mxu3 }
  0xcd   :  { %3512 = vmatpush.bf16.msra.mxu3 %v5523_v60  ;;  %v6392_v39 = vld [vmem:[%s9854_s1 + $0xa64] sm:$0xf]  ;;  %v5344_v40 = vld [vmem:[%s9854_s1 + $0xa70] sm:$0xf0]  ;;  %v5219_v47 = vor.u32 %v6360_v27, %v5216_v37  ;;  %v7976_v62 = vadd.f32 %v3260_v58, %v3248_v57  ;;  %v3236_v5 = vpop.f32.mrf.mxu1 }
  0xce   :  { %3474 = vmatpush.bf16.msra.mxu0 %v5123_v2  ;;  %v6424_v43 = vld [vmem:[%s9854_s1 + $0xb64] sm:$0xf]  ;;  %v5472_v16 = vld [vmem:[%s9854_s1 + $0xb70] sm:$0xf0]  ;;  %v5347_v48 = vor.u32 %v6392_v39, %v5344_v40 }
  0xcf   :  { %3487 = vmatpush.bf16.msra.mxu1 %v5251_v3  ;;  %v6324_v49 = vld [vmem:[%s9854_s1 + $0x844] sm:$0xf]  ;;  %v5072_v50 = vld [vmem:[%s9854_s1 + $0x850] sm:$0xf0]  ;;  %v5475_v53 = vor.u32 %v6424_v43, %v5472_v16 }
  0xd0   :  { %3500 = vmatpush.bf16.msra.mxu2 %v5379_v4  ;;  %v6356_v51 = vld [vmem:[%s9854_s1 + $0x944] sm:$0xf]  ;;  %v5200_v54 = vld [vmem:[%s9854_s1 + $0x950] sm:$0xf0]  ;;  %v5075_v61 = vor.u32 %v6324_v49, %v5072_v50 }
  0xd1   :  { %3513 = vmatpush.bf16.msra.mxu3 %v5507_v8  ;;  %v6388_v55 = vld [vmem:[%s9854_s1 + $0xa44] sm:$0xf]  ;;  %v5328_v56 = vld [vmem:[%s9854_s1 + $0xa50] sm:$0xf0]  ;;  %v5203_v0 = vor.u32 %v6356_v51, %v5200_v54  ;;  %v3249_v27 = vpop.f32.mrf.mxu2 }
  0xd2   :  { %3475 = vmatpush.bf16.msra.mxu0 %v5107_v14  ;;  %v6420_v59 = vld [vmem:[%s9854_s1 + $0xb44] sm:$0xf]  ;;  %v5456_v60 = vld [vmem:[%s9854_s1 + $0xb50] sm:$0xf0]  ;;  %v5331_v1 = vor.u32 %v6388_v55, %v5328_v56 }
  0xd3   :  { %3488 = vmatpush.bf16.msra.mxu1 %v5235_v17  ;;  %v6320_v2 = vld [vmem:[%s9854_s1 + $0x824] sm:$0xf]  ;;  %v5056_v3 = vld [vmem:[%s9854_s1 + $0x830] sm:$0xf0]  ;;  %v5459_v6 = vor.u32 %v6420_v59, %v5456_v60 }
  0xd4   :  { %3501 = vmatpush.bf16.msra.mxu2 %v5363_v21  ;;  %v6352_v4 = vld [vmem:[%s9854_s1 + $0x924] sm:$0xf]  ;;  %v5184_v7 = vld [vmem:[%s9854_s1 + $0x930] sm:$0xf0]  ;;  %v5059_v12 = vor.u32 %v6320_v2, %v5056_v3  ;;  %v3262_v39 = vpop.f32.mrf.mxu3 }
  0xd5   :  { %3514 = vmatpush.bf16.msra.mxu3 %v5491_v36  ;;  %v6384_v8 = vld [vmem:[%s9854_s1 + $0xa24] sm:$0xf]  ;;  %v5312_v9 = vld [vmem:[%s9854_s1 + $0xa30] sm:$0xf0]  ;;  %v5187_v15 = vor.u32 %v6352_v4, %v5184_v7 }
  0xd6   :  { %3476 = vmatpush.bf16.msra.mxu0 %v5091_v46  ;;  %v6416_v10 = vld [vmem:[%s9854_s1 + $0xb24] sm:$0xf]  ;;  %v5440_v11 = vld [vmem:[%s9854_s1 + $0xb30] sm:$0xf0]  ;;  %v5315_v17 = vor.u32 %v6384_v8, %v5312_v9 }
  0xd7   :  { %3489 = vmatpush.bf16.msra.mxu1 %v5219_v47  ;;  %v6316_v13 = vld [vmem:[%s9854_s1 + $0x804] sm:$0xf]  ;;  %v5040_v14 = vld [vmem:[%s9854_s1 + $0x810] sm:$0xf0]  ;;  %v5443_v32 = vor.u32 %v6416_v10, %v5440_v11 }
  0xd8   :  { %3502 = vmatpush.bf16.msra.mxu2 %v5347_v48  ;;  %v6348_v21 = vld [vmem:[%s9854_s1 + $0x904] sm:$0xf]  ;;  %v5168_v24 = vld [vmem:[%s9854_s1 + $0x910] sm:$0xf0]  ;;  %v5043_v45 = vor.u32 %v6316_v13, %v5040_v14 }
  0xd9   :  { %3515 = vmatpush.bf16.msra.mxu3 %v5475_v53  ;;  %v6380_v26 = vld [vmem:[%s9854_s1 + $0xa04] sm:$0xf]  ;;  %v5296_v34 = vld [vmem:[%s9854_s1 + $0xa10] sm:$0xf0]  ;;  %v5171_v49 = vor.u32 %v6348_v21, %v5168_v24 }
  0xda   :  { %3477 = vmatpush.bf16.msra.mxu0 %v5075_v61  ;;  %v6412_v36 = vld [vmem:[%s9854_s1 + $0xb04] sm:$0xf]  ;;  %v5424_v37 = vld [vmem:[%s9854_s1 + $0xb10] sm:$0xf0]  ;;  %v5299_v50 = vor.u32 %v6380_v26, %v5296_v34 }
  0xdb   :  { %3490 = vmatpush.bf16.msra.mxu1 %v5203_v0  ;;  %v6472_v40 = vld [vmem:[%s9854_s1 + $0xce4] sm:$0xf]  ;;  %v5664_v43 = vld [vmem:[%s9854_s1 + $0xcf0] sm:$0xf0]  ;;  %v5427_v53 = vor.u32 %v6412_v36, %v5424_v37 }
  0xdc   :  { %3503 = vmatpush.bf16.msra.mxu2 %v5331_v1  ;;  %v6504_v16 = vld [vmem:[%s9854_s1 + $0xde4] sm:$0xf]  ;;  %v5792_v46 = vld [vmem:[%s9854_s1 + $0xdf0] sm:$0xf0]  ;;  %v5667_v54 = vor.u32 %v6472_v40, %v5664_v43 }
  0xdd   :  { %3516 = vmatpush.bf16.msra.mxu3 %v5459_v6  ;;  %v6536_v47 = vld [vmem:[%s9854_s1 + $0xee4] sm:$0xf]  ;;  %v5920_v48 = vld [vmem:[%s9854_s1 + $0xef0] sm:$0xf0]  ;;  %v5795_v55 = vor.u32 %v6504_v16, %v5792_v46 }
  0xde   :  { %3478 = vmatpush.bf16.msra.mxu0 %v5059_v12  ;;  %v6568_v51 = vld [vmem:[%s9854_s1 + $0xfe4] sm:$0xf]  ;;  %v6048_v52 = vld [vmem:[%s9854_s1 + $0xff0] sm:$0xf0]  ;;  %v5923_v56 = vor.u32 %v6536_v47, %v5920_v48 }
  0xdf   :  { %3491 = vmatpush.bf16.msra.mxu1 %v5187_v15  ;;  %v6468_v57 = vld [vmem:[%s9854_s1 + $0xcc4] sm:$0xf]  ;;  %v5648_v58 = vld [vmem:[%s9854_s1 + $0xcd0] sm:$0xf0]  ;;  %v6051_v60 = vor.u32 %v6568_v51, %v6048_v52 }
  0xe0   :  { %3504 = vmatpush.bf16.msra.mxu2 %v5315_v17  ;;  %v6500_v59 = vld [vmem:[%s9854_s1 + $0xdc4] sm:$0xf]  ;;  %v5776_v61 = vld [vmem:[%s9854_s1 + $0xdd0] sm:$0xf0]  ;;  %v5651_v3 = vor.u32 %v6468_v57, %v5648_v58 }
  0xe1   :  { %3517 = vmatpush.bf16.msra.mxu3 %v5443_v32  ;;  %v6532_v63 = vld [vmem:[%s9854_s1 + $0xec4] sm:$0xf]  ;;  %v5904_v0 = vld [vmem:[%s9854_s1 + $0xed0] sm:$0xf0]  ;;  %v5779_v4 = vor.u32 %v6500_v59, %v5776_v61 }
  0xe2   :  { %3479 = vmatpush.bf16.msra.mxu0 %v5043_v45  ;;  %v6564_v1 = vld [vmem:[%s9854_s1 + $0xfc4] sm:$0xf]  ;;  %v6032_v2 = vld [vmem:[%s9854_s1 + $0xfd0] sm:$0xf0]  ;;  %v5907_v5 = vor.u32 %v6532_v63, %v5904_v0 }
  0xe3   :  { %3492 = vmatpush.bf16.msra.mxu1 %v5171_v49  ;;  %v6464_v6 = vld [vmem:[%s9854_s1 + $0xca4] sm:$0xf]  ;;  %v5632_v7 = vld [vmem:[%s9854_s1 + $0xcb0] sm:$0xf0]  ;;  %v6035_v9 = vor.u32 %v6564_v1, %v6032_v2 }
  0xe4   :  { %3505 = vmatpush.bf16.msra.mxu2 %v5299_v50  ;;  %v6496_v8 = vld [vmem:[%s9854_s1 + $0xda4] sm:$0xf]  ;;  %v5760_v10 = vld [vmem:[%s9854_s1 + $0xdb0] sm:$0xf0]  ;;  %v5635_v15 = vor.u32 %v6464_v6, %v5632_v7  ;;  %v3273_v39 = vpop.f32.mrf.mxu0 }
  0xe5   :  { %3518 = vmatpush.bf16.msra.mxu3 %v5427_v53  ;;  %3480 = vmatmul.bf16.vlgmr.msra.gmra.mxu0 %v7245_v25  ;;  %v6528_v11 = vld [vmem:[%s9854_s1 + $0xea4] sm:$0xf]  ;;  %v5888_v12 = vld [vmem:[%s9854_s1 + $0xeb0] sm:$0xf0]  ;;  %v5763_v17 = vor.u32 %v6496_v8, %v5760_v10  ;;  %v3274_v16 = vadd.f32 %v3273_v39, %v7976_v62  ;;  %v3286_v46 = vpop.f32.mrf.mxu1 }
  0xe6   :  { %3524 = vmatpush.bf16.msrb.mxu0 %v5667_v54  ;;  %3493 = vmatmul.bf16.vlgmr.msra.gmra.mxu1 %v7258_v30  ;;  %v6560_v13 = vld [vmem:[%s9854_s1 + $0xfa4] sm:$0xf]  ;;  %v6016_v14 = vld [vmem:[%s9854_s1 + $0xfb0] sm:$0xf0]  ;;  %v5891_v21 = vor.u32 %v6528_v11, %v5888_v12 }
  0xe7   :  { %3537 = vmatpush.bf16.msrb.mxu1 %v5795_v55  ;;  %3506 = vmatmul.bf16.vlgmr.msra.gmra.mxu2 %v7256_v29  ;;  %v6460_v24 = vld [vmem:[%s9854_s1 + $0xc84] sm:$0xf]  ;;  %v5616_v26 = vld [vmem:[%s9854_s1 + $0xc90] sm:$0xf0]  ;;  %v6019_v32 = vor.u32 %v6560_v13, %v6016_v14  ;;  %v3287_v52 = vadd.f32 %v3286_v46, %v3274_v16 }
  0xe8   :  { %3550 = vmatpush.bf16.msrb.mxu2 %v5923_v56  ;;  %3519 = vmatmul.bf16.vlgmr.msra.gmra.mxu3 %v7266_v33  ;;  %v6492_v27 = vld [vmem:[%s9854_s1 + $0xd84] sm:$0xf]  ;;  %v5744_v34 = vld [vmem:[%s9854_s1 + $0xd90] sm:$0xf0]  ;;  %v5619_v45 = vor.u32 %v6460_v24, %v5616_v26 }
  0xe9   :  { %3563 = vmatpush.bf16.msrb.mxu3 %v6051_v60  ;;  %v6524_v36 = vld [vmem:[%s9854_s1 + $0xe84] sm:$0xf]  ;;  %v5872_v37 = vld [vmem:[%s9854_s1 + $0xe90] sm:$0xf0]  ;;  %v5747_v47 = vor.u32 %v6492_v27, %v5744_v34  ;;  %v3299_v2 = vpop.f32.mrf.mxu2 }
  0xea   :  { %3525 = vmatpush.bf16.msrb.mxu0 %v5651_v3  ;;  %v6556_v40 = vld [vmem:[%s9854_s1 + $0xf84] sm:$0xf]  ;;  %v6000_v43 = vld [vmem:[%s9854_s1 + $0xf90] sm:$0xf0]  ;;  %v5875_v48 = vor.u32 %v6524_v36, %v5872_v37  ;;  %v3300_v6 = vadd.f32 %v3299_v2, %v3287_v52 }
  0xeb   :  { %3538 = vmatpush.bf16.msrb.mxu1 %v5779_v4  ;;  %v6456_v49 = vld [vmem:[%s9854_s1 + $0xc64] sm:$0xf]  ;;  %v5600_v50 = vld [vmem:[%s9854_s1 + $0xc70] sm:$0xf0]  ;;  %v6003_v62 = vor.u32 %v6556_v40, %v6000_v43 }
  0xec   :  { %3551 = vmatpush.bf16.msrb.mxu2 %v5907_v5  ;;  %v6488_v51 = vld [vmem:[%s9854_s1 + $0xd64] sm:$0xf]  ;;  %v5728_v53 = vld [vmem:[%s9854_s1 + $0xd70] sm:$0xf0]  ;;  %v5603_v58 = vor.u32 %v6456_v49, %v5600_v50  ;;  %v3275_v10 = vpop.f32.mrf.mxu0 }
  0xed   :  { %3564 = vmatpush.bf16.msrb.mxu3 %v6035_v9  ;;  %v6520_v54 = vld [vmem:[%s9854_s1 + $0xe64] sm:$0xf]  ;;  %v5856_v55 = vld [vmem:[%s9854_s1 + $0xe70] sm:$0xf0]  ;;  %v5731_v59 = vor.u32 %v6488_v51, %v5728_v53  ;;  %v3312_v7 = vpop.f32.mrf.mxu3  ;;  %v3288_v12 = vpop.f32.mrf.mxu1  ;;  %v4134_v53 = vld [vmem:[%s9854_s1 + $0xe8] sm:$0xf] }
  0xee   :  { %3526 = vmatpush.bf16.msrb.mxu0 %v5635_v15  ;;  %v6552_v56 = vld [vmem:[%s9854_s1 + $0xf64] sm:$0xf]  ;;  %v5984_v57 = vld [vmem:[%s9854_s1 + $0xf70] sm:$0xf0]  ;;  %v5859_v60 = vor.u32 %v6520_v54, %v5856_v55  ;;  %v8175_v13 = vadd.f32 %v3312_v7, %v3300_v6  ;;  %v6091_v54 = vld [vmem:[%s9854_s1 + $0xf4] sm:$0xf0] }
  0xef   :  { %3539 = vmatpush.bf16.msrb.mxu1 %v5763_v17  ;;  %v6452_v61 = vld [vmem:[%s9854_s1 + $0xc44] sm:$0xf]  ;;  %v5584_v63 = vld [vmem:[%s9854_s1 + $0xc50] sm:$0xf0]  ;;  %v5987_v1 = vor.u32 %v6552_v56, %v5984_v57  ;;  %v4262_v55 = vld [vmem:[%s9854_s1 + $0x1e8] sm:$0xf] }
  0xf0   :  { %3552 = vmatpush.bf16.msrb.mxu2 %v5891_v21  ;;  %v6484_v0 = vld [vmem:[%s9854_s1 + $0xd44] sm:$0xf]  ;;  %v5712_v3 = vld [vmem:[%s9854_s1 + $0xd50] sm:$0xf0]  ;;  %v5587_v11 = vor.u32 %v6452_v61, %v5584_v63  ;;  %v4118_v6 = vld [vmem:[%s9854_s1 + $0xc8] sm:$0xf] }
  0xf1   :  { %3565 = vmatpush.bf16.msrb.mxu3 %v6019_v32  ;;  %v6516_v4 = vld [vmem:[%s9854_s1 + $0xe44] sm:$0xf]  ;;  %v5840_v5 = vld [vmem:[%s9854_s1 + $0xe50] sm:$0xf0]  ;;  %v5715_v14 = vor.u32 %v6484_v0, %v5712_v3  ;;  %v3301_v52 = vpop.f32.mrf.mxu2  ;;  %v4518_v0 = vld [vmem:[%s9854_s1 + $0x3e8] sm:$0xf]  ;;  %v4135_v3 = vor.u32 %v6091_v54, %v4134_v53 }
  0xf2   :  { %3527 = vmatpush.bf16.msrb.mxu0 %v5619_v45  ;;  %v6548_v8 = vld [vmem:[%s9854_s1 + $0xf44] sm:$0xf]  ;;  %v5968_v9 = vld [vmem:[%s9854_s1 + $0xf50] sm:$0xf0]  ;;  %v5843_v15 = vor.u32 %v6516_v4, %v5840_v5  ;;  %v6087_v7 = vld [vmem:[%s9854_s1 + $0xd4] sm:$0xf0] }
  0xf3   :  { %3540 = vmatpush.bf16.msrb.mxu1 %v5747_v47  ;;  %v6448_v17 = vld [vmem:[%s9854_s1 + $0xc24] sm:$0xf]  ;;  %v5568_v21 = vld [vmem:[%s9854_s1 + $0xc30] sm:$0xf0]  ;;  %v5971_v26 = vor.u32 %v6548_v8, %v5968_v9  ;;  %v4246_v8 = vld [vmem:[%s9854_s1 + $0x1c8] sm:$0xf] }
  0xf4   :  { %3553 = vmatpush.bf16.msrb.mxu2 %v5875_v48  ;;  %v6480_v24 = vld [vmem:[%s9854_s1 + $0xd24] sm:$0xf]  ;;  %v5696_v27 = vld [vmem:[%s9854_s1 + $0xd30] sm:$0xf0]  ;;  %v5571_v39 = vor.u32 %v6448_v17, %v5568_v21  ;;  %v6119_v10 = vld [vmem:[%s9854_s1 + $0x1d4] sm:$0xf0]  ;;  %v4119_v17 = vor.u32 %v6087_v7, %v4118_v6 }
  0xf5   :  { %3566 = vmatpush.bf16.msrb.mxu3 %v6003_v62  ;;  %v6512_v32 = vld [vmem:[%s9854_s1 + $0xe24] sm:$0xf]  ;;  %v5824_v34 = vld [vmem:[%s9854_s1 + $0xe30] sm:$0xf0]  ;;  %v5699_v16 = vor.u32 %v6480_v24, %v5696_v27  ;;  %v3314_v56 = vpop.f32.mrf.mxu3  ;;  %v6151_v12 = vld [vmem:[%s9854_s1 + $0x2d4] sm:$0xf0]  ;;  %v4247_v21 = vor.u32 %v6119_v10, %v4246_v8 }
  0xf6   :  { %3528 = vmatpush.bf16.msrb.mxu0 %v5603_v58  ;;  %v6544_v36 = vld [vmem:[%s9854_s1 + $0xf24] sm:$0xf]  ;;  %v5952_v37 = vld [vmem:[%s9854_s1 + $0xf30] sm:$0xf0]  ;;  %v5827_v45 = vor.u32 %v6512_v32, %v5824_v34  ;;  %v6123_v58 = vld [vmem:[%s9854_s1 + $0x1f4] sm:$0xf0] }
  0xf7   :  { %3541 = vmatpush.bf16.msrb.mxu1 %v5731_v59  ;;  %v6444_v40 = vld [vmem:[%s9854_s1 + $0xc04] sm:$0xf]  ;;  %v5552_v43 = vld [vmem:[%s9854_s1 + $0xc10] sm:$0xf0]  ;;  %v5955_v49 = vor.u32 %v6544_v36, %v5952_v37  ;;  %v4390_v59 = vld [vmem:[%s9854_s1 + $0x2e8] sm:$0xf]  ;;  %v4263_v4 = vor.u32 %v6123_v58, %v4262_v55 }
  0xf8   :  { %3554 = vmatpush.bf16.msrb.mxu2 %v5859_v60  ;;  %v6476_v46 = vld [vmem:[%s9854_s1 + $0xd04] sm:$0xf]  ;;  %v5680_v47 = vld [vmem:[%s9854_s1 + $0xd10] sm:$0xf0]  ;;  %v5555_v57 = vor.u32 %v6444_v40, %v5552_v43  ;;  %v6155_v60 = vld [vmem:[%s9854_s1 + $0x2f4] sm:$0xf0] }
  0xf9   :  { %3567 = vmatpush.bf16.msrb.mxu3 %v5987_v1  ;;  %v6508_v48 = vld [vmem:[%s9854_s1 + $0xe04] sm:$0xf]  ;;  %v5808_v50 = vld [vmem:[%s9854_s1 + $0xe10] sm:$0xf0]  ;;  %v5683_v61 = vor.u32 %v6476_v46, %v5680_v47  ;;  %v6187_v1 = vld [vmem:[%s9854_s1 + $0x3f4] sm:$0xf0]  ;;  %v4391_v5 = vor.u32 %v6155_v60, %v4390_v59 }
  0xfa   :  { %3529 = vmatpush.bf16.msrb.mxu0 %v5587_v11  ;;  %v6540_v51 = vld [vmem:[%s9854_s1 + $0xf04] sm:$0xf]  ;;  %v5936_v62 = vld [vmem:[%s9854_s1 + $0xf10] sm:$0xf0]  ;;  %v5811_v63 = vor.u32 %v6508_v48, %v5808_v50  ;;  %v4519_v9 = vor.u32 %v6187_v1, %v4518_v0  ;;  %v4374_v11 = vld [vmem:[%s9854_s1 + $0x2c8] sm:$0xf] }
  0xfb   :  { %3542 = vmatpush.bf16.msrb.mxu1 %v5715_v14  ;;  %v5939_v2 = vor.u32 %v6540_v51, %v5936_v62  ;;  %v4502_v14 = vld [vmem:[%s9854_s1 + $0x3c8] sm:$0xf]  ;;  %v4375_v24 = vor.u32 %v6151_v12, %v4374_v11  ;;  %v6083_v27 = vld [vmem:[%s9854_s1 + $0xb4] sm:$0xf0] }
  0xfc   :  { %3555 = vmatpush.bf16.msrb.mxu2 %v5843_v15  ;;  %v6183_v15 = vld [vmem:[%s9854_s1 + $0x3d4] sm:$0xf0]  ;;  %v4230_v32 = vld [vmem:[%s9854_s1 + $0x1a8] sm:$0xf] }
  0xfd   :  { %3568 = vmatpush.bf16.msrb.mxu3 %v5971_v26  ;;  %v4102_v26 = vld [vmem:[%s9854_s1 + $0xa8] sm:$0xf]  ;;  %v4503_v34 = vor.u32 %v6183_v15, %v4502_v14  ;;  %v6115_v36 = vld [vmem:[%s9854_s1 + $0x1b4] sm:$0xf0] }
  0xfe   :  { %3530 = vmatpush.bf16.msrb.mxu0 %v5571_v39  ;;  %v4358_v37 = vld [vmem:[%s9854_s1 + $0x2a8] sm:$0xf]  ;;  %v6147_v39 = vld [vmem:[%s9854_s1 + $0x2b4] sm:$0xf0] }
  0xff   :  { %3543 = vmatpush.bf16.msrb.mxu1 %v5699_v16  ;;  %v4486_v40 = vld [vmem:[%s9854_s1 + $0x3a8] sm:$0xf]  ;;  %v6179_v43 = vld [vmem:[%s9854_s1 + $0x3b4] sm:$0xf0]  ;;  %v4103_v16 = vor.u32 %v6083_v27, %v4102_v26  ;;  %v4359_v46 = vor.u32 %v6147_v39, %v4358_v37 }
 0x100   :  { %3556 = vmatpush.bf16.msrb.mxu2 %v5827_v45  ;;  %v4231_v45 = vor.u32 %v6115_v36, %v4230_v32  ;;  %v4086_v47 = vld [vmem:[%s9854_s1 + $0x88] sm:$0xf]  ;;  %v6079_v48 = vld [vmem:[%s9854_s1 + $0x94] sm:$0xf0]  ;;  %v4487_v50 = vor.u32 %v6179_v43, %v4486_v40 }
 0x101   :  { %3569 = vmatpush.bf16.msrb.mxu3 %v5955_v49  ;;  %v4214_v49 = vld [vmem:[%s9854_s1 + $0x188] sm:$0xf]  ;;  %v6111_v51 = vld [vmem:[%s9854_s1 + $0x194] sm:$0xf0] }
 0x102   :  { %3531 = vmatpush.bf16.msrb.mxu0 %v5555_v57  ;;  %v4342_v62 = vld [vmem:[%s9854_s1 + $0x288] sm:$0xf]  ;;  %v6143_v52 = vld [vmem:[%s9854_s1 + $0x294] sm:$0xf0]  ;;  %v4087_v57 = vor.u32 %v6079_v48, %v4086_v47  ;;  %v4215_v59 = vor.u32 %v6111_v51, %v4214_v49 }
 0x103   :  { %3544 = vmatpush.bf16.msrb.mxu1 %v5683_v61  ;;  %v4470_v54 = vld [vmem:[%s9854_s1 + $0x388] sm:$0xf]  ;;  %v6175_v55 = vld [vmem:[%s9854_s1 + $0x394] sm:$0xf0]  ;;  %v3338_v58 = vpop.f32.mrf.mxu1  ;;  %v4343_v60 = vor.u32 %v6143_v52, %v4342_v62 }
 0x104   :  { %3557 = vmatpush.bf16.msrb.mxu2 %v5811_v63  ;;  %v3325_v53 = vpop.f32.mrf.mxu0  ;;  %v4070_v61 = vld [vmem:[%s9854_s1 + $0x68] sm:$0xf]  ;;  %v6075_v63 = vld [vmem:[%s9854_s1 + $0x74] sm:$0xf0] }
 0x105   :  { %3570 = vmatpush.bf16.msrb.mxu3 %v5939_v2  ;;  %3532 = vmatmul.bf16.vlgmr.msrb.gmra.mxu0 %v7455_v23  ;;  %v3326_v56 = vadd.f32 %v3325_v53, %v8175_v13  ;;  %v4198_v0 = vld [vmem:[%s9854_s1 + $0x168] sm:$0xf]  ;;  %v4471_v13 = vor.u32 %v6175_v55, %v4470_v54  ;;  %v6107_v2 = vld [vmem:[%s9854_s1 + $0x174] sm:$0xf0]  ;;  %v4071_v7 = vor.u32 %v6075_v63, %v4070_v61 }
 0x106   :  { %3576 = vmatpush.bf16.msra.mxu0 %v4135_v3  ;;  %3545 = vmatmul.bf16.vlgmr.msrb.gmra.mxu1 %v7468_v31  ;;  %v4326_v3 = vld [vmem:[%s9854_s1 + $0x268] sm:$0xf]  ;;  %v6171_v6 = vld [vmem:[%s9854_s1 + $0x374] sm:$0xf0]  ;;  %v4199_v8 = vor.u32 %v6107_v2, %v4198_v0 }
 0x107   :  { %3589 = vmatpush.bf16.msra.mxu1 %v4263_v4  ;;  %3558 = vmatmul.bf16.vlgmr.msrb.gmra.mxu2 %v7466_v28  ;;  %v3339_v1 = vadd.f32 %v3338_v58, %v3326_v56  ;;  %v6139_v4 = vld [vmem:[%s9854_s1 + $0x274] sm:$0xf0]  ;;  %v4054_v10 = vld [vmem:[%s9854_s1 + $0x48] sm:$0xf] }
 0x108   :  { %3602 = vmatpush.bf16.msra.mxu2 %v4391_v5  ;;  %3571 = vmatmul.bf16.vlgmr.msrb.gmra.mxu3 %v7476_v35  ;;  %v4454_v5 = vld [vmem:[%s9854_s1 + $0x368] sm:$0xf]  ;;  %v6071_v11 = vld [vmem:[%s9854_s1 + $0x54] sm:$0xf0] }
 0x109   :  { %3615 = vmatpush.bf16.msra.mxu3 %v4519_v9  ;;  %v4327_v9 = vor.u32 %v6139_v4, %v4326_v3  ;;  %v4182_v12 = vld [vmem:[%s9854_s1 + $0x148] sm:$0xf]  ;;  %v4455_v14 = vor.u32 %v6171_v6, %v4454_v5  ;;  %v4055_v37 = vor.u32 %v6071_v11, %v4054_v10  ;;  %v6099_v49 = vld [vmem:[%s9854_s1 + $0x134] sm:$0xf0] }
 0x10a   :  { %3577 = vmatpush.bf16.msra.mxu0 %v4119_v17  ;;  %v6103_v17 = vld [vmem:[%s9854_s1 + $0x154] sm:$0xf0]  ;;  %v4438_v32 = vld [vmem:[%s9854_s1 + $0x348] sm:$0xf] }
 0x10b   :  { %3590 = vmatpush.bf16.msra.mxu1 %v4247_v21  ;;  %v4310_v21 = vld [vmem:[%s9854_s1 + $0x248] sm:$0xf]  ;;  %v3364_v27 = vpop.f32.mrf.mxu3  ;;  %v3340_v39 = vpop.f32.mrf.mxu1  ;;  %v4183_v43 = vor.u32 %v6103_v17, %v4182_v12  ;;  %v6131_v51 = vld [vmem:[%s9854_s1 + $0x234] sm:$0xf0] }
 0x10c   :  { %3603 = vmatpush.bf16.msra.mxu2 %v4375_v24  ;;  %v3351_v15 = vpop.f32.mrf.mxu2  ;;  %v6135_v24 = vld [vmem:[%s9854_s1 + $0x254] sm:$0xf0]  ;;  %v3327_v36 = vpop.f32.mrf.mxu0  ;;  %v4166_v47 = vld [vmem:[%s9854_s1 + $0x128] sm:$0xf] }
 0x10d   :  { %3616 = vmatpush.bf16.msra.mxu3 %v4503_v34  ;;  %v3352_v26 = vadd.f32 %v3351_v15, %v3339_v1  ;;  %v6167_v34 = vld [vmem:[%s9854_s1 + $0x354] sm:$0xf0]  ;;  %v4422_v62 = vld [vmem:[%s9854_s1 + $0x328] sm:$0xf]  ;;  %v4167_v56 = vor.u32 %v6099_v49, %v4166_v47 }
 0x10e   :  { %3578 = vmatpush.bf16.msra.mxu0 %v4103_v16  ;;  %v4311_v16 = vor.u32 %v6135_v24, %v4310_v21  ;;  %v4439_v48 = vor.u32 %v6167_v34, %v4438_v32  ;;  %v6163_v52 = vld [vmem:[%s9854_s1 + $0x334] sm:$0xf0]  ;;  %v4022_v54 = vld [vmem:[%s9854_s1 + $0x8] sm:$0xf] }
 0x10f   :  { %3591 = vmatpush.bf16.msra.mxu1 %v4231_v45  ;;  %v8374_v40 = vadd.f32 %v3364_v27, %v3352_v26  ;;  %v4038_v45 = vld [vmem:[%s9854_s1 + $0x28] sm:$0xf]  ;;  %v6063_v55 = vld [vmem:[%s9854_s1 + $0x14] sm:$0xf0]  ;;  %v4423_v61 = vor.u32 %v6163_v52, %v4422_v62 }
 0x110   :  { %3604 = vmatpush.bf16.msra.mxu2 %v4359_v46  ;;  %v6067_v46 = vld [vmem:[%s9854_s1 + $0x34] sm:$0xf0]  ;;  %v4150_v58 = vld [vmem:[%s9854_s1 + $0x108] sm:$0xf]  ;;  %v4023_v6 = vor.u32 %v6063_v55, %v4022_v54 }
 0x111   :  { %3617 = vmatpush.bf16.msra.mxu3 %v4487_v50  ;;  %v4294_v50 = vld [vmem:[%s9854_s1 + $0x228] sm:$0xf]  ;;  %v4039_v53 = vor.u32 %v6067_v46, %v4038_v45  ;;  %v6127_v63 = vld [vmem:[%s9854_s1 + $0x214] sm:$0xf0]  ;;  %vm3992_vm0 = vcmp.gt.f32.partialorder %v8374_v40, 0.0 }
 0x112   :  { %3579 = vmatpush.bf16.msra.mxu0 %v4087_v57  ;;  %v4295_v57 = vor.u32 %v6131_v51, %v4294_v50  ;;  %v4406_v0 = vld [vmem:[%s9854_s1 + $0x308] sm:$0xf]  ;;  %v6219_v3 = vld [vmem:[%s9854_s1 + $0x4f4] sm:$0xf0] }
 0x113   :  { %3592 = vmatpush.bf16.msra.mxu1 %v4215_v59  ;;  %v6095_v59 = vld [vmem:[%s9854_s1 + $0x114] sm:$0xf0]  ;;  %v4646_v2 = vld [vmem:[%s9854_s1 + $0x4e8] sm:$0xf]  ;;  %v3366_v5 = vpop.f32.mrf.mxu3 }
 0x114   :  { %3605 = vmatpush.bf16.msra.mxu2 %v4343_v60  ;;  %v4278_v60 = vld [vmem:[%s9854_s1 + $0x208] sm:$0xf]  ;;  %v3353_v1 = vpop.f32.mrf.mxu2  ;;  %v4151_v10 = vor.u32 %v6095_v59, %v4150_v58  ;;  %v4647_v17 = vor.u32 %v6219_v3, %v4646_v2  ;;  %v6215_v27 = vld [vmem:[%s9854_s1 + $0x4d4] sm:$0xf0] }
 0x115   :  { %3618 = vmatpush.bf16.msra.mxu3 %v4471_v13  ;;  %v6159_v13 = vld [vmem:[%s9854_s1 + $0x314] sm:$0xf0]  ;;  %v4774_v4 = vld [vmem:[%s9854_s1 + $0x5e8] sm:$0xf]  ;;  %v4279_v11 = vor.u32 %v6127_v63, %v4278_v60  ;;  %v6572_v63 = vld [vmem:[%s9856_s2] sm:$0xf] }
 0x116   :  { %3580 = vmatpush.bf16.msra.mxu0 %v4071_v7  ;;  %v6251_v7 = vld [vmem:[%s9854_s1 + $0x5f4] sm:$0xf0]  ;;  %v5030_v12 = vld [vmem:[%s9854_s1 + $0x7e8] sm:$0xf]  ;;  %v4407_v15 = vor.u32 %v6159_v13, %v4406_v0  ;;  %v537_v0 = vperm.slane %v6572_v63, 1 }
 0x117   :  { %3593 = vmatpush.bf16.msra.mxu1 %v4199_v8  ;;  %v4902_v8 = vld [vmem:[%s9854_s1 + $0x6e8] sm:$0xf]  ;;  %v4775_v21 = vor.u32 %v6251_v7, %v4774_v4  ;;  %v6247_v36 = vld [vmem:[%s9854_s1 + $0x5d4] sm:$0xf0] }
 0x118   :  { %3606 = vmatpush.bf16.msra.mxu2 %v4327_v9  ;;  %v6283_v9 = vld [vmem:[%s9854_s1 + $0x6f4] sm:$0xf0]  ;;  %v4630_v26 = vld [vmem:[%s9854_s1 + $0x4c8] sm:$0xf] }
 0x119   :  { %3619 = vmatpush.bf16.msra.mxu3 %v4455_v14  ;;  %v6315_v14 = vld [vmem:[%s9854_s1 + $0x7f4] sm:$0xf0]  ;;  %v4903_v24 = vor.u32 %v6283_v9, %v4902_v8  ;;  %v4758_v32 = vld [vmem:[%s9854_s1 + $0x5c8] sm:$0xf]  ;;  %v4631_v45 = vor.u32 %v6215_v27, %v4630_v26 }
 0x11a   :  { %3581 = vmatpush.bf16.msra.mxu0 %v4055_v37  ;;  %v5031_v34 = vor.u32 %v6315_v14, %v5030_v12  ;;  %v4886_v37 = vld [vmem:[%s9854_s1 + $0x6c8] sm:$0xf]  ;;  %v6279_v39 = vld [vmem:[%s9854_s1 + $0x6d4] sm:$0xf0]  ;;  %v4759_v46 = vor.u32 %v6247_v36, %v4758_v32 }
 0x11b   :  { %3594 = vmatpush.bf16.msra.mxu1 %v4183_v43  ;;  %v5014_v43 = vld [vmem:[%s9854_s1 + $0x7c8] sm:$0xf]  ;;  %v4887_v47 = vor.u32 %v6279_v39, %v4886_v37  ;;  %v6211_v49 = vld [vmem:[%s9854_s1 + $0x4b4] sm:$0xf0] }
 0x11c   :  { %3607 = vmatpush.bf16.msra.mxu2 %v4311_v16  ;;  %v6311_v16 = vld [vmem:[%s9854_s1 + $0x7d4] sm:$0xf0]  ;;  %v4742_v50 = vld [vmem:[%s9854_s1 + $0x5a8] sm:$0xf] }
 0x11d   :  { %3620 = vmatpush.bf16.msra.mxu3 %v4439_v48  ;;  %v4614_v48 = vld [vmem:[%s9854_s1 + $0x4a8] sm:$0xf]  ;;  %v5015_v51 = vor.u32 %v6311_v16, %v5014_v43  ;;  %v6243_v62 = vld [vmem:[%s9854_s1 + $0x5b4] sm:$0xf0] }
 0x11e   :  { %3582 = vmatpush.bf16.msra.mxu0 %v4039_v53  ;;  %v4870_v52 = vld [vmem:[%s9854_s1 + $0x6a8] sm:$0xf]  ;;  %v6275_v53 = vld [vmem:[%s9854_s1 + $0x6b4] sm:$0xf0]  ;;  %v4743_v58 = vor.u32 %v6243_v62, %v4742_v50 }
 0x11f   :  { %3595 = vmatpush.bf16.msra.mxu1 %v4167_v56  ;;  %v4998_v54 = vld [vmem:[%s9854_s1 + $0x7a8] sm:$0xf]  ;;  %v6307_v55 = vld [vmem:[%s9854_s1 + $0x7b4] sm:$0xf0]  ;;  %v4615_v56 = vor.u32 %v6211_v49, %v4614_v48  ;;  %v4871_v59 = vor.u32 %v6275_v53, %v4870_v52 }
 0x120   :  { %3608 = vmatpush.bf16.msra.mxu2 %v4295_v57  ;;  %v4598_v57 = vld [vmem:[%s9854_s1 + $0x488] sm:$0xf]  ;;  %v6207_v60 = vld [vmem:[%s9854_s1 + $0x494] sm:$0xf0]  ;;  %v4999_v13 = vor.u32 %v6307_v55, %v4998_v54 }
 0x121   :  { %3621 = vmatpush.bf16.msra.mxu3 %v4423_v61  ;;  %v4726_v61 = vld [vmem:[%s9854_s1 + $0x588] sm:$0xf]  ;;  %v6239_v1 = vld [vmem:[%s9854_s1 + $0x594] sm:$0xf0] }
 0x122   :  { %3583 = vmatpush.bf16.msra.mxu0 %v4023_v6  ;;  %v4854_v2 = vld [vmem:[%s9854_s1 + $0x688] sm:$0xf]  ;;  %v6271_v3 = vld [vmem:[%s9854_s1 + $0x694] sm:$0xf0]  ;;  %v4599_v6 = vor.u32 %v6207_v60, %v4598_v57  ;;  %v3377_v7 = vpop.f32.mrf.mxu0  ;;  %v4727_v8 = vor.u32 %v6239_v1, %v4726_v61 }
 0x123   :  { %3596 = vmatpush.bf16.msra.mxu1 %v4151_v10  ;;  %v4982_v4 = vld [vmem:[%s9854_s1 + $0x788] sm:$0xf]  ;;  %v6303_v5 = vld [vmem:[%s9854_s1 + $0x794] sm:$0xf0]  ;;  %v4855_v9 = vor.u32 %v6271_v3, %v4854_v2  ;;  %v3378_v14 = vadd.f32 %v3377_v7, %v537_v0 }
 0x124   :  { %3609 = vmatpush.bf16.msra.mxu2 %v4279_v11  ;;  %v4582_v10 = vld [vmem:[%s9854_s1 + $0x468] sm:$0xf]  ;;  %v6203_v11 = vld [vmem:[%s9854_s1 + $0x474] sm:$0xf0] }
 0x125   :  { %3622 = vmatpush.bf16.msra.mxu3 %v4407_v15  ;;  %3584 = vmatmul.bf16.vlgmr.msra.gmra.mxu0 %v6890_v19  ;;  %v4710_v12 = vld [vmem:[%s9854_s1 + $0x568] sm:$0xf]  ;;  %v3390_v15 = vpop.f32.mrf.mxu1  ;;  %v6267_v26 = vld [vmem:[%s9854_s1 + $0x674] sm:$0xf0]  ;;  %v4583_v36 = vor.u32 %v6203_v11, %v4582_v10 }
 0x126   :  { %3628 = vmatpush.bf16.msrb.mxu0 %v4647_v17  ;;  %3597 = vmatmul.bf16.vlgmr.msra.gmra.mxu1 %v6894_v22  ;;  %v4983_v17 = vor.u32 %v6303_v5, %v4982_v4  ;;  %v4966_v27 = vld [vmem:[%s9854_s1 + $0x768] sm:$0xf]  ;;  %v6299_v32 = vld [vmem:[%s9854_s1 + $0x774] sm:$0xf0] }
 0x127   :  { %3641 = vmatpush.bf16.msrb.mxu1 %v4775_v21  ;;  %3610 = vmatmul.bf16.vlgmr.msra.gmra.mxu2 %v6888_v18  ;;  %v6235_v21 = vld [vmem:[%s9854_s1 + $0x574] sm:$0xf0]  ;;  %v4566_v43 = vld [vmem:[%s9854_s1 + $0x448] sm:$0xf] }
 0x128   :  { %3654 = vmatpush.bf16.msrb.mxu2 %v4903_v24  ;;  %3623 = vmatmul.bf16.vlgmr.msra.gmra.mxu3 %v6892_v20  ;;  %v4838_v24 = vld [vmem:[%s9854_s1 + $0x668] sm:$0xf]  ;;  %v4711_v37 = vor.u32 %v6235_v21, %v4710_v12  ;;  %v6199_v16 = vld [vmem:[%s9854_s1 + $0x454] sm:$0xf0] }
 0x129   :  { %3667 = vmatpush.bf16.msrb.mxu3 %v5031_v34  ;;  %v3391_v34 = vadd.f32 %v3390_v15, %v3378_v14  ;;  %v4839_v39 = vor.u32 %v6267_v26, %v4838_v24  ;;  %v6231_v48 = vld [vmem:[%s9854_s1 + $0x554] sm:$0xf0]  ;;  %v4822_v49 = vld [vmem:[%s9854_s1 + $0x648] sm:$0xf]  ;;  %v4567_v54 = vor.u32 %v6199_v16, %v4566_v43 }
 0x12a   :  { %3629 = vmatpush.bf16.msrb.mxu0 %v4631_v45  ;;  %v4694_v45 = vld [vmem:[%s9854_s1 + $0x548] sm:$0xf]  ;;  %v6263_v50 = vld [vmem:[%s9854_s1 + $0x654] sm:$0xf0] }
 0x12b   :  { %3642 = vmatpush.bf16.msrb.mxu1 %v4759_v46  ;;  %v3403_v46 = vpop.f32.mrf.mxu2  ;;  %v3416_v62 = vpop.f32.mrf.mxu3  ;;  %v4950_v52 = vld [vmem:[%s9854_s1 + $0x748] sm:$0xf]  ;;  %v6295_v53 = vld [vmem:[%s9854_s1 + $0x754] sm:$0xf0]  ;;  %v4695_v57 = vor.u32 %v6231_v48, %v4694_v45 }
 0x12c   :  { %3655 = vmatpush.bf16.msrb.mxu2 %v4887_v47  ;;  %v4967_v47 = vor.u32 %v6299_v32, %v4966_v27  ;;  %v6195_v60 = vld [vmem:[%s9854_s1 + $0x434] sm:$0xf0]  ;;  %v4678_v61 = vld [vmem:[%s9854_s1 + $0x528] sm:$0xf]  ;;  %v4951_v0 = vor.u32 %v6295_v53, %v4950_v52 }
 0x12d   :  { %3668 = vmatpush.bf16.msrb.mxu3 %v5015_v51  ;;  %v3404_v51 = vadd.f32 %v3403_v46, %v3391_v34  ;;  %v3392_v63 = vpop.f32.mrf.mxu1  ;;  %v4806_v1 = vld [vmem:[%s9854_s1 + $0x628] sm:$0xf]  ;;  %v6259_v2 = vld [vmem:[%s9854_s1 + $0x634] sm:$0xf0] }
 0x12e   :  { %3630 = vmatpush.bf16.msrb.mxu0 %v4615_v56  ;;  %v3379_v56 = vpop.f32.mrf.mxu0  ;;  %v4934_v3 = vld [vmem:[%s9854_s1 + $0x728] sm:$0xf]  ;;  %v6291_v4 = vld [vmem:[%s9854_s1 + $0x734] sm:$0xf0] }
 0x12f   :  { %3643 = vmatpush.bf16.msrb.mxu1 %v4743_v58  ;;  %v8575_v55 = vadd.f32 %v3416_v62, %v3404_v51  ;;  %v4823_v58 = vor.u32 %v6263_v50, %v4822_v49  ;;  %v6191_v7 = vld [vmem:[%s9854_s1 + $0x414] sm:$0xf0]  ;;  %v4662_v10 = vld [vmem:[%s9854_s1 + $0x508] sm:$0xf]  ;;  %v4935_v15 = vor.u32 %v6291_v4, %v4934_v3 }
 0x130   :  { %3656 = vmatpush.bf16.msrb.mxu2 %v4871_v59  ;;  %v4550_v59 = vld [vmem:[%s9854_s1 + $0x428] sm:$0xf]  ;;  %v6223_v11 = vld [vmem:[%s9854_s1 + $0x514] sm:$0xf0] }
 0x131   :  { %3669 = vmatpush.bf16.msrb.mxu3 %v4999_v13  ;;  %v6227_v13 = vld [vmem:[%s9854_s1 + $0x534] sm:$0xf0]  ;;  %v4551_v5 = vor.u32 %v6195_v60, %v4550_v59  ;;  %v4790_v12 = vld [vmem:[%s9854_s1 + $0x608] sm:$0xf]  ;;  %v4663_v16 = vor.u32 %v6223_v11, %v4662_v10 }
 0x132   :  { %3631 = vmatpush.bf16.msrb.mxu0 %v4599_v6  ;;  %v4534_v6 = vld [vmem:[%s9854_s1 + $0x408] sm:$0xf]  ;;  %v6287_v24 = vld [vmem:[%s9854_s1 + $0x714] sm:$0xf0] }
 0x133   :  { %3644 = vmatpush.bf16.msrb.mxu1 %v4727_v8  ;;  %v4679_v8 = vor.u32 %v6227_v13, %v4678_v61  ;;  %v3405_v14 = vpop.f32.mrf.mxu2  ;;  %v4918_v21 = vld [vmem:[%s9854_s1 + $0x708] sm:$0xf]  ;;  %v3418_v26 = vpop.f32.mrf.mxu3  ;;  %v6347_v32 = vld [vmem:[%s9854_s1 + $0x8f4] sm:$0xf0] }
 0x134   :  { %3657 = vmatpush.bf16.msrb.mxu2 %v4855_v9  ;;  %v4807_v9 = vor.u32 %v6259_v2, %v4806_v1  ;;  %v5158_v27 = vld [vmem:[%s9854_s1 + $0x8e8] sm:$0xf]  ;;  %v6411_v43 = vld [vmem:[%s9854_s1 + $0xaf4] sm:$0xf0]  ;;  %v4919_v48 = vor.u32 %v6287_v24, %v4918_v21 }
 0x135   :  { %3670 = vmatpush.bf16.msrb.mxu3 %v4983_v17  ;;  %v6255_v17 = vld [vmem:[%s9854_s1 + $0x614] sm:$0xf0]  ;;  %v5286_v34 = vld [vmem:[%s9854_s1 + $0x9e8] sm:$0xf]  ;;  %v5159_v49 = vor.u32 %v6347_v32, %v5158_v27 }
 0x136   :  { %3632 = vmatpush.bf16.msrb.mxu0 %v4583_v36  ;;  %v4535_v36 = vor.u32 %v6191_v7, %v4534_v6  ;;  %v4791_v45 = vor.u32 %v6255_v17, %v4790_v12  ;;  %v5542_v46 = vld [vmem:[%s9854_s1 + $0xbe8] sm:$0xf]  ;;  %v6343_v52 = vld [vmem:[%s9854_s1 + $0x8d4] sm:$0xf0] }
 0x137   :  { %3645 = vmatpush.bf16.msrb.mxu1 %v4711_v37  ;;  %v6379_v37 = vld [vmem:[%s9854_s1 + $0x9f4] sm:$0xf0]  ;;  %v5142_v62 = vld [vmem:[%s9854_s1 + $0x8c8] sm:$0xf] }
 0x138   :  { %3658 = vmatpush.bf16.msrb.mxu2 %v4839_v39  ;;  %v5414_v39 = vld [vmem:[%s9854_s1 + $0xae8] sm:$0xf]  ;;  %v5287_v50 = vor.u32 %v6379_v37, %v5286_v34  ;;  %v6375_v56 = vld [vmem:[%s9854_s1 + $0x9d4] sm:$0xf0]  ;;  %v5143_v61 = vor.u32 %v6343_v52, %v5142_v62 }
 0x139   :  { %3671 = vmatpush.bf16.msrb.mxu3 %v4967_v47  ;;  %v6443_v47 = vld [vmem:[%s9854_s1 + $0xbf4] sm:$0xf0]  ;;  %v5415_v51 = vor.u32 %v6411_v43, %v5414_v39  ;;  %v5270_v53 = vld [vmem:[%s9854_s1 + $0x9c8] sm:$0xf] }
 0x13a   :  { %3633 = vmatpush.bf16.msrb.mxu0 %v4567_v54  ;;  %v5543_v54 = vor.u32 %v6443_v47, %v5542_v46  ;;  %v5526_v59 = vld [vmem:[%s9854_s1 + $0xbc8] sm:$0xf]  ;;  %v6439_v60 = vld [vmem:[%s9854_s1 + $0xbd4] sm:$0xf0]  ;;  %v5271_v63 = vor.u32 %v6375_v56, %v5270_v53 }
 0x13b   :  { %3646 = vmatpush.bf16.msrb.mxu1 %v4695_v57  ;;  %v5398_v57 = vld [vmem:[%s9854_s1 + $0xac8] sm:$0xf]  ;;  %v6339_v1 = vld [vmem:[%s9854_s1 + $0x8b4] sm:$0xf0]  ;;  %v5527_v3 = vor.u32 %v6439_v60, %v5526_v59 }
 0x13c   :  { %3659 = vmatpush.bf16.msrb.mxu2 %v4823_v58  ;;  %v6407_v58 = vld [vmem:[%s9854_s1 + $0xad4] sm:$0xf0]  ;;  %v5126_v13 = vld [vmem:[%s9854_s1 + $0x8a8] sm:$0xf] }
 0x13d   :  { %3672 = vmatpush.bf16.msrb.mxu3 %v4951_v0  ;;  %v5399_v0 = vor.u32 %v6407_v58, %v5398_v57  ;;  %v5254_v2 = vld [vmem:[%s9854_s1 + $0x9a8] sm:$0xf]  ;;  %v6371_v4 = vld [vmem:[%s9854_s1 + $0x9b4] sm:$0xf0] }
 0x13e   :  { %3634 = vmatpush.bf16.msrb.mxu0 %v4551_v5  ;;  %v5382_v5 = vld [vmem:[%s9854_s1 + $0xaa8] sm:$0xf]  ;;  %v6403_v6 = vld [vmem:[%s9854_s1 + $0xab4] sm:$0xf0]  ;;  %v5255_v10 = vor.u32 %v6371_v4, %v5254_v2 }
 0x13f   :  { %3647 = vmatpush.bf16.msrb.mxu1 %v4679_v8  ;;  %v5510_v7 = vld [vmem:[%s9854_s1 + $0xba8] sm:$0xf]  ;;  %v6435_v8 = vld [vmem:[%s9854_s1 + $0xbb4] sm:$0xf0]  ;;  %v5383_v11 = vor.u32 %v6403_v6, %v5382_v5 }
 0x140   :  { %3660 = vmatpush.bf16.msrb.mxu2 %v4807_v9  ;;  %v5127_v9 = vor.u32 %v6339_v1, %v5126_v13  ;;  %v5110_v12 = vld [vmem:[%s9854_s1 + $0x888] sm:$0xf]  ;;  %v6335_v14 = vld [vmem:[%s9854_s1 + $0x894] sm:$0xf0]  ;;  %v5511_v17 = vor.u32 %v6435_v8, %v5510_v7 }
 0x141   :  { %3673 = vmatpush.bf16.msrb.mxu3 %v4935_v15  ;;  %v5238_v15 = vld [vmem:[%s9854_s1 + $0x988] sm:$0xf]  ;;  %v6367_v21 = vld [vmem:[%s9854_s1 + $0x994] sm:$0xf0]  ;;  %v5111_v34 = vor.u32 %v6335_v14, %v5110_v12 }
 0x142   :  { %3635 = vmatpush.bf16.msrb.mxu0 %v4535_v36  ;;  %v5366_v24 = vld [vmem:[%s9854_s1 + $0xa88] sm:$0xf]  ;;  %v6399_v26 = vld [vmem:[%s9854_s1 + $0xa94] sm:$0xf0]  ;;  %v8725_v36 = vpop.f32.mrf.mxu0  ;;  %v5239_v37 = vor.u32 %v6367_v21, %v5238_v15 }
 0x143   :  { %3648 = vmatpush.bf16.msrb.mxu1 %v4663_v16  ;;  %v5494_v27 = vld [vmem:[%s9854_s1 + $0xb88] sm:$0xf]  ;;  %v6431_v32 = vld [vmem:[%s9854_s1 + $0xb94] sm:$0xf0]  ;;  %v5367_v39 = vor.u32 %v6399_v26, %v5366_v24  ;;  %v8736_v46 = vpop.f32.mrf.mxu1 }
 0x144   :  { %3661 = vmatpush.bf16.msrb.mxu2 %v4791_v45  ;;  %v5094_v43 = vld [vmem:[%s9854_s1 + $0x868] sm:$0xf]  ;;  %v6331_v16 = vld [vmem:[%s9854_s1 + $0x874] sm:$0xf0]  ;;  %v5495_v47 = vor.u32 %v6431_v32, %v5494_v27 }
 0x145   :  { %3674 = vmatpush.bf16.msrb.mxu3 %v4919_v48  ;;  %3636 = vmatmul.bf16.vlgmr.msrb.gmra.mxu0 %v7052_v41  ;;  %v5222_v45 = vld [vmem:[%s9854_s1 + $0x968] sm:$0xf]  ;;  %v6363_v48 = vld [vmem:[%s9854_s1 + $0x974] sm:$0xf0]  ;;  %v5095_v52 = vor.u32 %v6331_v16, %v5094_v43 }
 0x146   :  { %3680 = vmatpush.bf16.msra.mxu0 %v5159_v49  ;;  %3649 = vmatmul.bf16.vlgmr.msrb.gmra.mxu1 %v7056_v44  ;;  %v5350_v49 = vld [vmem:[%s9854_s1 + $0xa68] sm:$0xf]  ;;  %v6427_v62 = vld [vmem:[%s9854_s1 + $0xb74] sm:$0xf0]  ;;  %v5223_v53 = vor.u32 %v6363_v48, %v5222_v45 }
 0x147   :  { %3693 = vmatpush.bf16.msra.mxu1 %v5287_v50  ;;  %3662 = vmatmul.bf16.vlgmr.msrb.gmra.mxu2 %v7044_v38  ;;  %v6395_v50 = vld [vmem:[%s9854_s1 + $0xa74] sm:$0xf0]  ;;  %v5078_v56 = vld [vmem:[%s9854_s1 + $0x848] sm:$0xf] }
 0x148   :  { %3706 = vmatpush.bf16.msra.mxu2 %v5415_v51  ;;  %3675 = vmatmul.bf16.vlgmr.msrb.gmra.mxu3 %v7054_v42  ;;  %v5478_v51 = vld [vmem:[%s9854_s1 + $0xb68] sm:$0xf]  ;;  %v6327_v57 = vld [vmem:[%s9854_s1 + $0x854] sm:$0xf0] }
 0x149   :  { %3719 = vmatpush.bf16.msra.mxu3 %v5543_v54  ;;  %v5351_v54 = vor.u32 %v6395_v50, %v5350_v49  ;;  %v5206_v58 = vld [vmem:[%s9854_s1 + $0x948] sm:$0xf]  ;;  %v5479_v60 = vor.u32 %v6427_v62, %v5478_v51  ;;  %v6423_v2 = vld [vmem:[%s9854_s1 + $0xb54] sm:$0xf0] }
 0x14a   :  { %3681 = vmatpush.bf16.msra.mxu0 %v5143_v61  ;;  %v8762_v59 = vpop.f32.mrf.mxu2  ;;  %v6359_v61 = vld [vmem:[%s9854_s1 + $0x954] sm:$0xf0]  ;;  %v5462_v1 = vld [vmem:[%s9854_s1 + $0xb48] sm:$0xf]  ;;  %v3431_v4 = vpop.f32.mrf.mxu0 }
 0x14b   :  { %3694 = vmatpush.bf16.msra.mxu1 %v5271_v63  ;;  %v5334_v63 = vld [vmem:[%s9854_s1 + $0xa48] sm:$0xf]  ;;  %v8773_v13 = vpop.f32.mrf.mxu3  ;;  %v5207_v5 = vor.u32 %v6359_v61, %v5206_v58  ;;  %v6323_v8 = vld [vmem:[%s9854_s1 + $0x834] sm:$0xf0] }
 0x14c   :  { %3707 = vmatpush.bf16.msra.mxu2 %v5399_v0  ;;  %v6391_v0 = vld [vmem:[%s9854_s1 + $0xa54] sm:$0xf0]  ;;  %v5062_v7 = vld [vmem:[%s9854_s1 + $0x828] sm:$0xf] }
 0x14d   :  { %3720 = vmatpush.bf16.msra.mxu3 %v5527_v3  ;;  %v5079_v3 = vor.u32 %v6327_v57, %v5078_v56  ;;  %v5335_v6 = vor.u32 %v6391_v0, %v5334_v63  ;;  %v6355_v12 = vld [vmem:[%s9854_s1 + $0x934] sm:$0xf0]  ;;  %v5318_v14 = vld [vmem:[%s9854_s1 + $0xa28] sm:$0xf]  ;;  %v5063_v24 = vor.u32 %v6323_v8, %v5062_v7 }
 0x14e   :  { %3682 = vmatpush.bf16.msra.mxu0 %v5127_v9  ;;  %v5190_v9 = vld [vmem:[%s9854_s1 + $0x928] sm:$0xf]  ;;  %v6387_v15 = vld [vmem:[%s9854_s1 + $0xa34] sm:$0xf0] }
 0x14f   :  { %3695 = vmatpush.bf16.msra.mxu1 %v5255_v10  ;;  %v3444_v10 = vpop.f32.mrf.mxu1  ;;  %v6419_v21 = vld [vmem:[%s9854_s1 + $0xb34] sm:$0xf0]  ;;  %v5046_v26 = vld [vmem:[%s9854_s1 + $0x808] sm:$0xf]  ;;  %v5191_v32 = vor.u32 %v6355_v12, %v5190_v9 }
 0x150   :  { %3708 = vmatpush.bf16.msra.mxu2 %v5383_v11  ;;  %v5463_v11 = vor.u32 %v6423_v2, %v5462_v1  ;;  %v6319_v27 = vld [vmem:[%s9854_s1 + $0x814] sm:$0xf0]  ;;  %v5302_v43 = vld [vmem:[%s9854_s1 + $0xa08] sm:$0xf] }
 0x151   :  { %3721 = vmatpush.bf16.msra.mxu3 %v5511_v17  ;;  %v5446_v17 = vld [vmem:[%s9854_s1 + $0xb28] sm:$0xf]  ;;  %v6415_v49 = vld [vmem:[%s9854_s1 + $0xb14] sm:$0xf0] }
 0x152   :  { %3683 = vmatpush.bf16.msra.mxu0 %v5111_v34  ;;  %v5319_v34 = vor.u32 %v6387_v15, %v5318_v14  ;;  %v3457_v16 = vpop.f32.mrf.mxu2  ;;  %v5447_v45 = vor.u32 %v6419_v21, %v5446_v17  ;;  %v5430_v48 = vld [vmem:[%s9854_s1 + $0xb08] sm:$0xf]  ;;  %v6475_v62 = vld [vmem:[%s9854_s1 + $0xcf4] sm:$0xf0] }
 0x153   :  { %3696 = vmatpush.bf16.msra.mxu1 %v5239_v37  ;;  %v5174_v37 = vld [vmem:[%s9854_s1 + $0x908] sm:$0xf]  ;;  %v3470_v50 = vpop.f32.mrf.mxu3  ;;  %v6539_v57 = vld [vmem:[%s9854_s1 + $0xef4] sm:$0xf0]  ;;  %v5431_v0 = vor.u32 %v6415_v49, %v5430_v48 }
 0x154   :  { %3709 = vmatpush.bf16.msra.mxu2 %v5367_v39  ;;  %v6351_v39 = vld [vmem:[%s9854_s1 + $0x914] sm:$0xf0]  ;;  %v5670_v51 = vld [vmem:[%s9854_s1 + $0xce8] sm:$0xf] }
 0x155   :  { %3722 = vmatpush.bf16.msra.mxu3 %v5495_v47  ;;  %v6383_v47 = vld [vmem:[%s9854_s1 + $0xa14] sm:$0xf0]  ;;  %v5926_v56 = vld [vmem:[%s9854_s1 + $0xee8] sm:$0xf]  ;;  %v5175_v58 = vor.u32 %v6351_v39, %v5174_v37  ;;  %v5671_v1 = vor.u32 %v6475_v62, %v5670_v51 }
 0x156   :  { %3684 = vmatpush.bf16.msra.mxu0 %v5095_v52  ;;  %v5798_v52 = vld [vmem:[%s9854_s1 + $0xde8] sm:$0xf]  ;;  %v6571_v63 = vld [vmem:[%s9854_s1 + $0xff4] sm:$0xf0] }
 0x157   :  { %3697 = vmatpush.bf16.msra.mxu1 %v5223_v53  ;;  %v5047_v53 = vor.u32 %v6319_v27, %v5046_v26  ;;  %v6054_v61 = vld [vmem:[%s9854_s1 + $0xfe8] sm:$0xf]  ;;  %v6503_v8 = vld [vmem:[%s9854_s1 + $0xdd4] sm:$0xf0] }
 0x158   :  { %3710 = vmatpush.bf16.msra.mxu2 %v5351_v54  ;;  %v6507_v54 = vld [vmem:[%s9854_s1 + $0xdf4] sm:$0xf0]  ;;  %v5654_v4 = vld [vmem:[%s9854_s1 + $0xcc8] sm:$0xf]  ;;  %v6055_v7 = vor.u32 %v6571_v63, %v6054_v61 }
 0x159   :  { %3723 = vmatpush.bf16.msra.mxu3 %v5479_v60  ;;  %v5303_v60 = vor.u32 %v6383_v47, %v5302_v43  ;;  %v5799_v2 = vor.u32 %v6507_v54, %v5798_v52  ;;  %v5910_v9 = vld [vmem:[%s9854_s1 + $0xec8] sm:$0xf]  ;;  %v6535_v10 = vld [vmem:[%s9854_s1 + $0xed4] sm:$0xf0] }
 0x15a   :  { %3685 = vmatpush.bf16.msra.mxu0 %v5079_v3  ;;  %v5927_v3 = vor.u32 %v6539_v57, %v5926_v56  ;;  %v6567_v12 = vld [vmem:[%s9854_s1 + $0xfd4] sm:$0xf0]  ;;  %v5911_v17 = vor.u32 %v6535_v10, %v5910_v9  ;;  %v5638_v21 = vld [vmem:[%s9854_s1 + $0xca8] sm:$0xf]  ;;  %v3430_v10 = vadd.f32 %v8725_v36, %v8575_v55 }
 0x15b   :  { %3698 = vmatpush.bf16.msra.mxu1 %v5207_v5  ;;  %v6471_v5 = vld [vmem:[%s9854_s1 + $0xcd4] sm:$0xf0]  ;;  %v5766_v26 = vld [vmem:[%s9854_s1 + $0xda8] sm:$0xf] }
 0x15c   :  { %3711 = vmatpush.bf16.msra.mxu2 %v5335_v6  ;;  %v5782_v6 = vld [vmem:[%s9854_s1 + $0xdc8] sm:$0xf]  ;;  %v5655_v14 = vor.u32 %v6471_v5, %v5654_v4  ;;  %v6531_v37 = vld [vmem:[%s9854_s1 + $0xeb4] sm:$0xf0] }
 0x15d   :  { %3724 = vmatpush.bf16.msra.mxu3 %v5463_v11  ;;  %v6038_v11 = vld [vmem:[%s9854_s1 + $0xfc8] sm:$0xf]  ;;  %v5783_v15 = vor.u32 %v6503_v8, %v5782_v6  ;;  %v6563_v43 = vld [vmem:[%s9854_s1 + $0xfb4] sm:$0xf0] }
 0x15e   :  { %3686 = vmatpush.bf16.msra.mxu0 %v5063_v24  ;;  %v6467_v24 = vld [vmem:[%s9854_s1 + $0xcb4] sm:$0xf0]  ;;  %v6039_v27 = vor.u32 %v6567_v12, %v6038_v11  ;;  %v6022_v39 = vld [vmem:[%s9854_s1 + $0xfa8] sm:$0xf] }
 0x15f   :  { %3699 = vmatpush.bf16.msra.mxu1 %v5191_v32  ;;  %v6499_v32 = vld [vmem:[%s9854_s1 + $0xdb4] sm:$0xf0]  ;;  %v5639_v16 = vor.u32 %v6467_v24, %v5638_v21  ;;  %v5622_v48 = vld [vmem:[%s9854_s1 + $0xc88] sm:$0xf]  ;;  %v6023_v51 = vor.u32 %v6563_v43, %v6022_v39 }
 0x160   :  { %3712 = vmatpush.bf16.msra.mxu2 %v5319_v34  ;;  %v5894_v34 = vld [vmem:[%s9854_s1 + $0xea8] sm:$0xf]  ;;  %v6463_v49 = vld [vmem:[%s9854_s1 + $0xc94] sm:$0xf0] }
 0x161   :  { %3725 = vmatpush.bf16.msra.mxu3 %v5447_v45  ;;  %v5767_v45 = vor.u32 %v6499_v32, %v5766_v26  ;;  %v5895_v47 = vor.u32 %v6531_v37, %v5894_v34  ;;  %v5750_v50 = vld [vmem:[%s9854_s1 + $0xd88] sm:$0xf]  ;;  %v6495_v62 = vld [vmem:[%s9854_s1 + $0xd94] sm:$0xf0] }
 0x162   :  { %3687 = vmatpush.bf16.msra.mxu0 %v5047_v53  ;;  %v5878_v52 = vld [vmem:[%s9854_s1 + $0xe88] sm:$0xf]  ;;  %v6527_v53 = vld [vmem:[%s9854_s1 + $0xe94] sm:$0xf0]  ;;  %v8923_v54 = vpop.f32.mrf.mxu0  ;;  %v5751_v61 = vor.u32 %v6495_v62, %v5750_v50 }
 0x163   :  { %3700 = vmatpush.bf16.msra.mxu1 %v5175_v58  ;;  %v6006_v56 = vld [vmem:[%s9854_s1 + $0xf88] sm:$0xf]  ;;  %v6559_v57 = vld [vmem:[%s9854_s1 + $0xf94] sm:$0xf0]  ;;  %v5623_v58 = vor.u32 %v6463_v49, %v5622_v48  ;;  %v5879_v63 = vor.u32 %v6527_v53, %v5878_v52 }
 0x164   :  { %3713 = vmatpush.bf16.msra.mxu2 %v5303_v60  ;;  %v8931_v60 = vpop.f32.mrf.mxu1  ;;  %v6491_v4 = vld [vmem:[%s9854_s1 + $0xd74] sm:$0xf0]  ;;  %v5862_v5 = vld [vmem:[%s9854_s1 + $0xe68] sm:$0xf] }
 0x165   :  { %3726 = vmatpush.bf16.msra.mxu3 %v5431_v0  ;;  %3688 = vmatmul.bf16.vlgmr.msra.gmra.mxu0 %v7245_v25  ;;  %v5606_v0 = vld [vmem:[%s9854_s1 + $0xc68] sm:$0xf]  ;;  %v6523_v6 = vld [vmem:[%s9854_s1 + $0xe74] sm:$0xf0] }
 0x166   :  { %3732 = vmatpush.bf16.msrb.mxu0 %v5671_v1  ;;  %3701 = vmatmul.bf16.vlgmr.msra.gmra.mxu1 %v7258_v30  ;;  %v6459_v1 = vld [vmem:[%s9854_s1 + $0xc74] sm:$0xf0]  ;;  %v5863_v12 = vor.u32 %v6523_v6, %v5862_v5  ;;  %v5846_v36 = vld [vmem:[%s9854_s1 + $0xe48] sm:$0xf] }
 0x167   :  { %3745 = vmatpush.bf16.msrb.mxu1 %v5799_v2  ;;  %3714 = vmatmul.bf16.vlgmr.msra.gmra.mxu2 %v7256_v29  ;;  %v5734_v2 = vld [vmem:[%s9854_s1 + $0xd68] sm:$0xf]  ;;  %v6555_v8 = vld [vmem:[%s9854_s1 + $0xf74] sm:$0xf0]  ;;  %v5607_v9 = vor.u32 %v6459_v1, %v5606_v0 }
 0x168   :  { %3758 = vmatpush.bf16.msrb.mxu2 %v5927_v3  ;;  %3727 = vmatmul.bf16.vlgmr.msra.gmra.mxu3 %v7266_v33  ;;  %v6007_v3 = vor.u32 %v6559_v57, %v6006_v56  ;;  %v5735_v11 = vor.u32 %v6491_v4, %v5734_v2  ;;  %v6487_v55 = vld [vmem:[%s9854_s1 + $0xd54] sm:$0xf0]  ;;  %v5974_v32 = vld [vmem:[%s9854_s1 + $0xf48] sm:$0xf] }
 0x169   :  { %3771 = vmatpush.bf16.msrb.mxu3 %v6055_v7  ;;  %v5990_v7 = vld [vmem:[%s9854_s1 + $0xf68] sm:$0xf]  ;;  %v6519_v26 = vld [vmem:[%s9854_s1 + $0xe54] sm:$0xf0] }
 0x16a   :  { %3733 = vmatpush.bf16.msrb.mxu0 %v5655_v14  ;;  %v5590_v14 = vld [vmem:[%s9854_s1 + $0xc48] sm:$0xf]  ;;  %v5991_v21 = vor.u32 %v6555_v8, %v5990_v7  ;;  %v8968_v24 = vpop.f32.mrf.mxu2  ;;  %v6551_v34 = vld [vmem:[%s9854_s1 + $0xf54] sm:$0xf0]  ;;  %v3483_v37 = vpop.f32.mrf.mxu0 }
 0x16b   :  { %3746 = vmatpush.bf16.msrb.mxu1 %v5783_v15  ;;  %v6455_v15 = vld [vmem:[%s9854_s1 + $0xc54] sm:$0xf0]  ;;  %v5574_v48 = vld [vmem:[%s9854_s1 + $0xc28] sm:$0xf] }
 0x16c   :  { %3759 = vmatpush.bf16.msrb.mxu2 %v5911_v17  ;;  %v5718_v17 = vld [vmem:[%s9854_s1 + $0xd48] sm:$0xf]  ;;  %v5591_v39 = vor.u32 %v6455_v15, %v5590_v14  ;;  %v3496_v43 = vpop.f32.mrf.mxu1  ;;  %v6451_v49 = vld [vmem:[%s9854_s1 + $0xc34] sm:$0xf0]  ;;  %v4264_v15 = vld [vmem:[%s9854_s1 + $0x1f8] sm:$0xf0] }
 0x16d   :  { %3772 = vmatpush.bf16.msrb.mxu3 %v6039_v27  ;;  %v8979_v27 = vpop.f32.mrf.mxu3  ;;  %v5702_v50 = vld [vmem:[%s9854_s1 + $0xd28] sm:$0xf]  ;;  %v6515_v52 = vld [vmem:[%s9854_s1 + $0xe34] sm:$0xf0]  ;;  %v5575_v57 = vor.u32 %v6451_v49, %v5574_v48  ;;  %v6117_v48 = vld [vmem:[%s9854_s1 + $0x1cc] sm:$0xf] }
 0x16e   :  { %3734 = vmatpush.bf16.msrb.mxu0 %v5639_v16  ;;  %v3443_v16 = vadd.f32 %v8736_v46, %v3430_v10  ;;  %v6483_v46 = vld [vmem:[%s9854_s1 + $0xd34] sm:$0xf0]  ;;  %v5830_v62 = vld [vmem:[%s9854_s1 + $0xe28] sm:$0xf]  ;;  %v4136_v10 = vld [vmem:[%s9854_s1 + $0xf8] sm:$0xf0] }
 0x16f   :  { %3747 = vmatpush.bf16.msrb.mxu1 %v5767_v45  ;;  %v5719_v45 = vor.u32 %v6487_v55, %v5718_v17  ;;  %v5958_v53 = vld [vmem:[%s9854_s1 + $0xf28] sm:$0xf]  ;;  %v6547_v56 = vld [vmem:[%s9854_s1 + $0xf34] sm:$0xf0]  ;;  %v5703_v0 = vor.u32 %v6483_v46, %v5702_v50  ;;  %v5831_v1 = vor.u32 %v6515_v52, %v5830_v62  ;;  %v6153_v17 = vld [vmem:[%s9854_s1 + $0x2ec] sm:$0xf] }
 0x170   :  { %3760 = vmatpush.bf16.msrb.mxu2 %v5895_v47  ;;  %v5847_v47 = vor.u32 %v6519_v26, %v5846_v36  ;;  %v5686_v2 = vld [vmem:[%s9854_s1 + $0xd08] sm:$0xf]  ;;  %v5959_v5 = vor.u32 %v6547_v56, %v5958_v53  ;;  %v6543_v7 = vld [vmem:[%s9854_s1 + $0xf14] sm:$0xf0]  ;;  %v6149_v50 = vld [vmem:[%s9854_s1 + $0x2cc] sm:$0xf] }
 0x171   :  { %3773 = vmatpush.bf16.msrb.mxu3 %v6023_v51  ;;  %v5975_v51 = vor.u32 %v6551_v34, %v5974_v32  ;;  %v5814_v4 = vld [vmem:[%s9854_s1 + $0xe08] sm:$0xf]  ;;  %v6185_v32 = vld [vmem:[%s9854_s1 + $0x3ec] sm:$0xf]  ;;  %v4520_v34 = vld [vmem:[%s9854_s1 + $0x3f8] sm:$0xf0] }
 0x172   :  { %3735 = vmatpush.bf16.msrb.mxu0 %v5623_v58  ;;  %v5558_v58 = vld [vmem:[%s9854_s1 + $0xc08] sm:$0xf]  ;;  %v3509_v8 = vpop.f32.mrf.mxu2  ;;  %v4523_v49 = vor.u32 %v6185_v32, %v4520_v34  ;;  %v6181_v46 = vld [vmem:[%s9854_s1 + $0x3cc] sm:$0xf]  ;;  %v4504_v62 = vld [vmem:[%s9854_s1 + $0x3d8] sm:$0xf0] }
 0x173   :  { %3748 = vmatpush.bf16.msrb.mxu1 %v5751_v61  ;;  %v6447_v61 = vld [vmem:[%s9854_s1 + $0xc14] sm:$0xf0]  ;;  %v5942_v6 = vld [vmem:[%s9854_s1 + $0xf08] sm:$0xf]  ;;  %v4088_v8 = vld [vmem:[%s9854_s1 + $0x98] sm:$0xf0] }
 0x174   :  { %3761 = vmatpush.bf16.msrb.mxu2 %v5879_v63  ;;  %v3456_v63 = vadd.f32 %v8762_v59, %v3443_v16  ;;  %v6511_v59 = vld [vmem:[%s9854_s1 + $0xe14] sm:$0xf0]  ;;  %v5559_v14 = vor.u32 %v6447_v61, %v5558_v58  ;;  %v5943_v37 = vor.u32 %v6543_v7, %v5942_v6  ;;  %v6081_v58 = vld [vmem:[%s9854_s1 + $0xac] sm:$0xf]  ;;  %v4104_v61 = vld [vmem:[%s9854_s1 + $0xb8] sm:$0xf0] }
 0x175   :  { %3774 = vmatpush.bf16.msrb.mxu3 %v6007_v3  ;;  %v6479_v3 = vld [vmem:[%s9854_s1 + $0xd14] sm:$0xf0]  ;;  %v5815_v26 = vor.u32 %v6511_v59, %v5814_v4  ;;  %v6177_v4 = vld [vmem:[%s9854_s1 + $0x3ac] sm:$0xf]  ;;  %v4107_v59 = vor.u32 %v6081_v58, %v4104_v61  ;;  %v4184_v58 = vld [vmem:[%s9854_s1 + $0x158] sm:$0xf0] }
 0x176   :  { %3736 = vmatpush.bf16.msrb.mxu0 %v5607_v9  ;;  %v6089_v9 = vld [vmem:[%s9854_s1 + $0xec] sm:$0xf]  ;;  %v3469_v55 = vadd.f32 %v8773_v13, %v3456_v63  ;;  %v5687_v36 = vor.u32 %v6479_v3, %v5686_v2  ;;  %v4360_v2 = vld [vmem:[%s9854_s1 + $0x2b8] sm:$0xf0] }
 0x177   :  { %3749 = vmatpush.bf16.msrb.mxu1 %v5735_v11  ;;  %v6121_v11 = vld [vmem:[%s9854_s1 + $0x1ec] sm:$0xf] }
 0x178   :  { %3762 = vmatpush.bf16.msrb.mxu2 %v5863_v12  ;;  %v3522_v12 = vpop.f32.mrf.mxu3  ;;  %v3482_v43 = vadd.f32 %v8923_v54, %v3469_v55  ;;  %v4267_v16 = vor.u32 %v6121_v11, %v4264_v15  ;;  %v6085_v13 = vld [vmem:[%s9854_s1 + $0xcc] sm:$0xf]  ;;  %v4248_v54 = vld [vmem:[%s9854_s1 + $0x1d8] sm:$0xf0] }
 0x179   :  { %3775 = vmatpush.bf16.msrb.mxu3 %v5991_v21  ;;  %v4392_v21 = vld [vmem:[%s9854_s1 + $0x2f8] sm:$0xf0]  ;;  %v4251_v56 = vor.u32 %v6117_v48, %v4248_v54  ;;  %v6113_v63 = vld [vmem:[%s9854_s1 + $0x1ac] sm:$0xf] }
 0x17a   :  { %3737 = vmatpush.bf16.msrb.mxu0 %v5591_v39  ;;  %v4139_v39 = vor.u32 %v6089_v9, %v4136_v10  ;;  %v3495_v53 = vadd.f32 %v8931_v60, %v3482_v43  ;;  %v4507_v60 = vor.u32 %v6181_v46, %v4504_v62  ;;  %v6077_v7 = vld [vmem:[%s9854_s1 + $0x8c] sm:$0xf]  ;;  %v4216_v11 = vld [vmem:[%s9854_s1 + $0x198] sm:$0xf0] }
 0x17b   :  { %3750 = vmatpush.bf16.msrb.mxu1 %v5719_v45  ;;  %v4395_v45 = vor.u32 %v6153_v17, %v4392_v21  ;;  %v6109_v9 = vld [vmem:[%s9854_s1 + $0x18c] sm:$0xf]  ;;  %v4472_v55 = vld [vmem:[%s9854_s1 + $0x398] sm:$0xf0] }
 0x17c   :  { %3763 = vmatpush.bf16.msrb.mxu2 %v5847_v47  ;;  %v4120_v47 = vld [vmem:[%s9854_s1 + $0xd8] sm:$0xf0]  ;;  %v3508_v3 = vadd.f32 %v8968_v24, %v3495_v53  ;;  %v6141_v12 = vld [vmem:[%s9854_s1 + $0x28c] sm:$0xf]  ;;  %v4219_v34 = vor.u32 %v6109_v9, %v4216_v11 }
 0x17d   :  { %3776 = vmatpush.bf16.msrb.mxu3 %v5975_v51  ;;  %v4376_v51 = vld [vmem:[%s9854_s1 + $0x2d8] sm:$0xf0]  ;;  %v4123_v52 = vor.u32 %v6085_v13, %v4120_v47  ;;  %v6173_v21 = vld [vmem:[%s9854_s1 + $0x38c] sm:$0xf] }
 0x17e   :  { %3738 = vmatpush.bf16.msrb.mxu0 %v5575_v57  ;;  %v4379_v57 = vor.u32 %v6149_v50, %v4376_v51  ;;  %v3521_v15 = vadd.f32 %v8979_v27, %v3508_v3  ;;  %v6073_v27 = vld [vmem:[%s9854_s1 + $0x6c] sm:$0xf]  ;;  %v4328_v47 = vld [vmem:[%s9854_s1 + $0x278] sm:$0xf0] }
 0x17f   :  { %3751 = vmatpush.bf16.msrb.mxu1 %v5703_v0  ;;  %v4232_v0 = vld [vmem:[%s9854_s1 + $0x1b8] sm:$0xf0]  ;;  %v6105_v43 = vld [vmem:[%s9854_s1 + $0x16c] sm:$0xf] }
 0x180   :  { %3764 = vmatpush.bf16.msrb.mxu2 %v5831_v1  ;;  %v6145_v1 = vld [vmem:[%s9854_s1 + $0x2ac] sm:$0xf]  ;;  %v4235_v6 = vor.u32 %v6113_v63, %v4232_v0  ;;  %v4312_v63 = vld [vmem:[%s9854_s1 + $0x258] sm:$0xf0] }
 0x181   :  { %3777 = vmatpush.bf16.msrb.mxu3 %v5959_v5  ;;  %v4488_v5 = vld [vmem:[%s9854_s1 + $0x3b8] sm:$0xf0]  ;;  %v4363_v24 = vor.u32 %v6145_v1, %v4360_v2  ;;  %v6137_v13 = vld [vmem:[%s9854_s1 + $0x26c] sm:$0xf] }
 0x182   :  { %3739 = vmatpush.bf16.msrb.mxu0 %v5559_v14  ;;  %v4491_v10 = vor.u32 %v6177_v4, %v4488_v5  ;;  %v4344_v14 = vld [vmem:[%s9854_s1 + $0x298] sm:$0xf0]  ;;  %v3533_v17 = vpop.f32.mrf.mxu0  ;;  %v6169_v48 = vld [vmem:[%s9854_s1 + $0x36c] sm:$0xf]  ;;  %v4331_v46 = vor.u32 %v6137_v13, %v4328_v47  ;;  %v3996_v4 = vmul.f32 0.2, %v8374_v40 }
 0x183   :  { %3752 = vmatpush.bf16.msrb.mxu1 %v5687_v36  ;;  %v4091_v36 = vor.u32 %v6077_v7, %v4088_v8  ;;  %v3534_v32 = vadd.f32 %v3533_v17, %v3521_v15  ;;  %v6069_v62 = vld [vmem:[%s9854_s1 + $0x4c] sm:$0xf]  ;;  %v4440_v2 = vld [vmem:[%s9854_s1 + $0x358] sm:$0xf0] }
 0x184   :  { %3765 = vmatpush.bf16.msrb.mxu2 %v5815_v26  ;;  %v3546_v26 = vpop.f32.mrf.mxu1  ;;  %v6101_v53 = vld [vmem:[%s9854_s1 + $0x14c] sm:$0xf]  ;;  %v4040_v9 = vld [vmem:[%s9854_s1 + $0x38] sm:$0xf0] }
 0x185   :  { %3778 = vmatpush.bf16.msrb.mxu3 %v5943_v37  ;;  %3740 = vmatmul.bf16.vlgmr.msrb.gmra.mxu0 %v7455_v23  ;;  %v4347_v37 = vor.u32 %v6141_v12, %v4344_v14  ;;  %v3547_v50 = vadd.f32 %v3546_v26, %v3534_v32  ;;  %v6133_v61 = vld [vmem:[%s9854_s1 + $0x24c] sm:$0xf]  ;;  %v4187_v7 = vor.u32 %v6101_v53, %v4184_v58  ;;  %v4168_v11 = vld [vmem:[%s9854_s1 + $0x138] sm:$0xf0] }
 0x186   :  { %3784 = vmatpush.bf16.msra.mxu0 %v4139_v39  ;;  %3753 = vmatmul.bf16.vlgmr.msrb.gmra.mxu1 %v7468_v31  ;;  %v4072_v39 = vld [vmem:[%s9854_s1 + $0x78] sm:$0xf0]  ;;  %v6165_v1 = vld [vmem:[%s9854_s1 + $0x34c] sm:$0xf]  ;;  %v4315_v8 = vor.u32 %v6133_v61, %v4312_v63 }
 0x187   :  { %3797 = vmatpush.bf16.msra.mxu1 %v4267_v16  ;;  %3766 = vmatmul.bf16.vlgmr.msrb.gmra.mxu2 %v7466_v28  ;;  %v4475_v16 = vor.u32 %v6173_v21, %v4472_v55  ;;  %v4075_v54 = vor.u32 %v6073_v27, %v4072_v39  ;;  %v4443_v12 = vor.u32 %v6165_v1, %v4440_v2  ;;  %v6129_v14 = vld [vmem:[%s9854_s1 + $0x22c] sm:$0xf]  ;;  %v4296_v15 = vld [vmem:[%s9854_s1 + $0x238] sm:$0xf0] }
 0x188   :  { %3810 = vmatpush.bf16.msra.mxu2 %v4395_v45  ;;  %3779 = vmatmul.bf16.vlgmr.msrb.gmra.mxu3 %v7476_v35  ;;  %v4200_v45 = vld [vmem:[%s9854_s1 + $0x178] sm:$0xf0]  ;;  %v6161_v17 = vld [vmem:[%s9854_s1 + $0x32c] sm:$0xf]  ;;  %v4299_v39 = vor.u32 %v6129_v14, %v4296_v15 }
 0x189   :  { %3823 = vmatpush.bf16.msra.mxu3 %v4523_v49  ;;  %v4456_v49 = vld [vmem:[%s9854_s1 + $0x378] sm:$0xf0]  ;;  %v4203_v51 = vor.u32 %v6105_v43, %v4200_v45  ;;  %v6061_v32 = vld [vmem:[%s9854_s1 + $0xc] sm:$0xf] }
 0x18a   :  { %3785 = vmatpush.bf16.msra.mxu0 %v4123_v52  ;;  %v4056_v52 = vld [vmem:[%s9854_s1 + $0x58] sm:$0xf0]  ;;  %v3535_v3 = vpop.f32.mrf.mxu0  ;;  %v6093_v43 = vld [vmem:[%s9854_s1 + $0x10c] sm:$0xf] }
 0x18b   :  { %3798 = vmatpush.bf16.msra.mxu1 %v4251_v56  ;;  %v4459_v56 = vor.u32 %v6169_v48, %v4456_v49  ;;  %v3572_v0 = vpop.f32.mrf.mxu3  ;;  %v4059_v5 = vor.u32 %v6069_v62, %v4056_v52  ;;  %v4424_v55 = vld [vmem:[%s9854_s1 + $0x338] sm:$0xf0]  ;;  %v6157_v48 = vld [vmem:[%s9854_s1 + $0x30c] sm:$0xf] }
 0x18c   :  { %3811 = vmatpush.bf16.msra.mxu2 %v4379_v57  ;;  %v3559_v57 = vpop.f32.mrf.mxu2  ;;  %v4427_v13 = vor.u32 %v6161_v17, %v4424_v55  ;;  %v4280_v47 = vld [vmem:[%s9854_s1 + $0x218] sm:$0xf0]  ;;  %v6313_v63 = vld [vmem:[%s9854_s1 + $0x7ec] sm:$0xf] }
 0x18d   :  { %3824 = vmatpush.bf16.msra.mxu3 %v4507_v60  ;;  %v3560_v60 = vadd.f32 %v3559_v57, %v3547_v50  ;;  %v4408_v49 = vld [vmem:[%s9854_s1 + $0x318] sm:$0xf0]  ;;  %v6217_v50 = vld [vmem:[%s9854_s1 + $0x4ec] sm:$0xf] }
 0x18e   :  { %3786 = vmatpush.bf16.msra.mxu0 %v4107_v59  ;;  %v6065_v59 = vld [vmem:[%s9854_s1 + $0x2c] sm:$0xf]  ;;  %v4776_v53 = vld [vmem:[%s9854_s1 + $0x5f8] sm:$0xf0] }
 0x18f   :  { %3799 = vmatpush.bf16.msra.mxu1 %v4235_v6  ;;  %v3548_v6 = vpop.f32.mrf.mxu1  ;;  %v4043_v26 = vor.u32 %v6065_v59, %v4040_v9  ;;  %v4904_v57 = vld [vmem:[%s9854_s1 + $0x6f8] sm:$0xf0]  ;;  %v6245_v59 = vld [vmem:[%s9854_s1 + $0x5cc] sm:$0xf] }
 0x190   :  { %3812 = vmatpush.bf16.msra.mxu2 %v4363_v24  ;;  %v3573_v24 = vadd.f32 %v3572_v0, %v3560_v60  ;;  %v5032_v60 = vld [vmem:[%s9854_s1 + $0x7f8] sm:$0xf0]  ;;  %v4411_v0 = vor.u32 %v6157_v48, %v4408_v49  ;;  %v6309_v9 = vld [vmem:[%s9854_s1 + $0x7cc] sm:$0xf] }
 0x191   :  { %3825 = vmatpush.bf16.msra.mxu3 %v4491_v10  ;;  %v6097_v10 = vld [vmem:[%s9854_s1 + $0x12c] sm:$0xf]  ;;  %v5035_v6 = vor.u32 %v6313_v63, %v5032_v60  ;;  %v4616_v17 = vld [vmem:[%s9854_s1 + $0x4b8] sm:$0xf0] }
 0x192   :  { %3787 = vmatpush.bf16.msra.mxu0 %v4091_v36  ;;  %vm3993_vm1 = vcmp.gt.f32.partialorder %v3573_v24, 0.0  ;;  %v3997_v21 = vmul.f32 0.2, %v3573_v24  ;;  %v4000_v36 = vsel %vm3992_vm0, %v8374_v40, %v3996_v4  ;;  %v4171_v27 = vor.u32 %v6097_v10, %v4168_v11  ;;  %v4152_v40 = vld [vmem:[%s9854_s1 + $0x118] sm:$0xf0] }
 0x193   :  { %3800 = vmatpush.bf16.msra.mxu1 %v4219_v34  ;;  %v4024_v34 = vld [vmem:[%s9854_s1 + $0x18] sm:$0xf0]  ;;  %v3574_v62 = vpop.f32.mrf.mxu3  ;;  %v4155_v58 = vor.u32 %v6093_v43, %v4152_v40  ;;  %v6213_v4 = vld [vmem:[%s9854_s1 + $0x4cc] sm:$0xf] }
 0x194   :  { %3813 = vmatpush.bf16.msra.mxu2 %v4347_v37  ;;  %v4001_v37 = vsel %vm3993_vm1, %v3573_v24, %v3997_v21  ;;  %v4027_v52 = vor.u32 %v6061_v32, %v4024_v34  ;;  %v4760_v24 = vld [vmem:[%s9854_s1 + $0x5d8] sm:$0xf0]  ;;  %v6209_v15 = vld [vmem:[%s9854_s1 + $0x4ac] sm:$0xf] }
 0x195   :  { %3826 = vmatpush.bf16.msra.mxu3 %v4475_v16  ;;  %v6125_v16 = vld [vmem:[%s9854_s1 + $0x20c] sm:$0xf]  ;;  %v4004_v45 = vpack.c.bf16 %v4001_v37, %v4000_v36  ;;  %v5016_v10 = vld [vmem:[%s9854_s1 + $0x7d8] sm:$0xf0] }
 0x196   :  { %3788 = vmatpush.bf16.msra.mxu0 %v4075_v54  ;;  %v3561_v54 = vpop.f32.mrf.mxu2  ;;  %v4283_v61 = vor.u32 %v6125_v16, %v4280_v47  ;;  %v6241_v21 = vld [vmem:[%s9854_s1 + $0x5ac] sm:$0xf]  ;;  %v5019_v55 = vor.u32 %v6309_v9, %v5016_v10  ;;  %v4744_v36 = vld [vmem:[%s9854_s1 + $0x5b8] sm:$0xf0] }
 0x197   :  { %3801 = vmatpush.bf16.msra.mxu1 %v4203_v51  ;;  %v4648_v51 = vld [vmem:[%s9854_s1 + $0x4f8] sm:$0xf0]  ;;  %4006 = vst [vmem:[%s9857_s3] sm:$0xff] %v4004_v45  ;;  %v6305_v34 = vld [vmem:[%s9854_s1 + $0x7ac] sm:$0xf] }
 0x198   :  { %3814 = vmatpush.bf16.msra.mxu2 %v4331_v46  ;;  %v6249_v46 = vld [vmem:[%s9854_s1 + $0x5ec] sm:$0xf]  ;;  %v4651_v1 = vor.u32 %v6217_v50, %v4648_v51  ;;  %v4872_v32 = vld [vmem:[%s9854_s1 + $0x6b8] sm:$0xf0] }
 0x199   :  { %3827 = vmatpush.bf16.msra.mxu3 %v4459_v56  ;;  %v6281_v56 = vld [vmem:[%s9854_s1 + $0x6ec] sm:$0xf]  ;;  %v4779_v2 = vor.u32 %v6249_v46, %v4776_v53  ;;  %v5000_v37 = vld [vmem:[%s9854_s1 + $0x7b8] sm:$0xf0] }
 0x19a   :  { %3789 = vmatpush.bf16.msra.mxu0 %v4059_v5  ;;  %v4907_v3 = vor.u32 %v6281_v56, %v4904_v57  ;;  %v4632_v5 = vld [vmem:[%s9854_s1 + $0x4d8] sm:$0xf0]  ;;  %v6301_v48 = vld [vmem:[%s9854_s1 + $0x78c] sm:$0xf] }
 0x19b   :  { %3802 = vmatpush.bf16.msra.mxu1 %v4187_v7  ;;  %v6277_v7 = vld [vmem:[%s9854_s1 + $0x6cc] sm:$0xf]  ;;  %v4635_v11 = vor.u32 %v6213_v4, %v4632_v5  ;;  %v4600_v40 = vld [vmem:[%s9854_s1 + $0x498] sm:$0xf0] }
 0x19c   :  { %3815 = vmatpush.bf16.msra.mxu2 %v4315_v8  ;;  %v4888_v8 = vld [vmem:[%s9854_s1 + $0x6d8] sm:$0xf0]  ;;  %v6201_v62 = vld [vmem:[%s9854_s1 + $0x46c] sm:$0xf] }
 0x19d   :  { %3828 = vmatpush.bf16.msra.mxu3 %v4443_v12  ;;  %v4763_v12 = vor.u32 %v6245_v59, %v4760_v24  ;;  %v4891_v14 = vor.u32 %v6277_v7, %v4888_v8  ;;  %v4728_v45 = vld [vmem:[%s9854_s1 + $0x598] sm:$0xf0]  ;;  %v6233_v53 = vld [vmem:[%s9854_s1 + $0x56c] sm:$0xf] }
 0x19e   :  { %3790 = vmatpush.bf16.msra.mxu0 %v4043_v26  ;;  %v6273_v26 = vld [vmem:[%s9854_s1 + $0x6ac] sm:$0xf]  ;;  %v4856_v47 = vld [vmem:[%s9854_s1 + $0x698] sm:$0xf0] }
 0x19f   :  { %3803 = vmatpush.bf16.msra.mxu1 %v4171_v27  ;;  %v4619_v27 = vor.u32 %v6209_v15, %v4616_v17  ;;  %v4875_v43 = vor.u32 %v6273_v26, %v4872_v32  ;;  %v4984_v49 = vld [vmem:[%s9854_s1 + $0x798] sm:$0xf0]  ;;  %v6265_v63 = vld [vmem:[%s9854_s1 + $0x66c] sm:$0xf] }
 0x1a0   :  { %3816 = vmatpush.bf16.msra.mxu2 %v4299_v39  ;;  %v6205_v39 = vld [vmem:[%s9854_s1 + $0x48c] sm:$0xf]  ;;  %v4840_v60 = vld [vmem:[%s9854_s1 + $0x678] sm:$0xf0] }
 0x1a1   :  { %3829 = vmatpush.bf16.msra.mxu3 %v4427_v13  ;;  %v6269_v13 = vld [vmem:[%s9854_s1 + $0x68c] sm:$0xf]  ;;  %v4603_v54 = vor.u32 %v6205_v39, %v4600_v40  ;;  %v4843_v5 = vor.u32 %v6265_v63, %v4840_v60  ;;  %v4696_v9 = vld [vmem:[%s9854_s1 + $0x558] sm:$0xf0] }
 0x1a2   :  { %3791 = vmatpush.bf16.msra.mxu0 %v4027_v52  ;;  %v3585_v50 = vpop.f32.mrf.mxu0  ;;  %v4859_v46 = vor.u32 %v6269_v13, %v4856_v47  ;;  %v4584_v52 = vld [vmem:[%s9854_s1 + $0x478] sm:$0xf0]  ;;  %v6197_v59 = vld [vmem:[%s9854_s1 + $0x44c] sm:$0xf] }
 0x1a3   :  { %3804 = vmatpush.bf16.msra.mxu1 %v4155_v58  ;;  %v3598_v57 = vpop.f32.mrf.mxu1  ;;  %v4987_v58 = vor.u32 %v6301_v48, %v4984_v49  ;;  %v6229_v24 = vld [vmem:[%s9854_s1 + $0x54c] sm:$0xf]  ;;  %v4952_v17 = vld [vmem:[%s9854_s1 + $0x758] sm:$0xf0] }
 0x1a4   :  { %3817 = vmatpush.bf16.msra.mxu2 %v4283_v61  ;;  %v4712_v61 = vld [vmem:[%s9854_s1 + $0x578] sm:$0xf0]  ;;  %v6261_v10 = vld [vmem:[%s9854_s1 + $0x64c] sm:$0xf]  ;;  %v4699_v26 = vor.u32 %v6229_v24, %v4696_v9 }
 0x1a5   :  { %3830 = vmatpush.bf16.msra.mxu3 %v4411_v0  ;;  %3792 = vmatmul.bf16.vlgmr.msra.gmra.mxu0 %v6890_v19  ;;  %v6237_v19 = vld [vmem:[%s9854_s1 + $0x58c] sm:$0xf]  ;;  %v4715_v4 = vor.u32 %v6233_v53, %v4712_v61  ;;  %v4536_v47 = vld [vmem:[%s9854_s1 + $0x418] sm:$0xf0] }
 0x1a6   :  { %3836 = vmatpush.bf16.msrb.mxu0 %v4651_v1  ;;  %3805 = vmatmul.bf16.vlgmr.msra.gmra.mxu1 %v6894_v22  ;;  %v5003_v22 = vor.u32 %v6305_v34, %v5000_v37  ;;  %v4731_v51 = vor.u32 %v6237_v19, %v4728_v45  ;;  %v6297_v0 = vld [vmem:[%s9854_s1 + $0x76c] sm:$0xf]  ;;  %v4968_v1 = vld [vmem:[%s9854_s1 + $0x778] sm:$0xf0] }
 0x1a7   :  { %3849 = vmatpush.bf16.msrb.mxu1 %v4779_v2  ;;  %3818 = vmatmul.bf16.vlgmr.msra.gmra.mxu2 %v6888_v18  ;;  %v4747_v18 = vor.u32 %v6241_v21, %v4744_v36  ;;  %v4971_v8 = vor.u32 %v6297_v0, %v4968_v1  ;;  %v6293_v15 = vld [vmem:[%s9854_s1 + $0x74c] sm:$0xf]  ;;  %v4552_v37 = vld [vmem:[%s9854_s1 + $0x438] sm:$0xf0] }
 0x1a8   :  { %3862 = vmatpush.bf16.msrb.mxu2 %v4907_v3  ;;  %3831 = vmatmul.bf16.vlgmr.msra.gmra.mxu3 %v6892_v20  ;;  %v9334_v20 = vld [vmem:[%s9856_s2] sm:$0xf]  ;;  %v4587_v3 = vor.u32 %v6201_v62, %v4584_v52  ;;  %v6193_v34 = vld [vmem:[%s9854_s1 + $0x42c] sm:$0xf]  ;;  %v4808_v19 = vld [vmem:[%s9854_s1 + $0x638] sm:$0xf0] }
 0x1a9   :  { %3875 = vmatpush.bf16.msrb.mxu3 %v5035_v6  ;;  %v538_v16 = vperm.slane %v9334_v20, 2  ;;  %v4568_v6 = vld [vmem:[%s9854_s1 + $0x458] sm:$0xf0]  ;;  %v6257_v40 = vld [vmem:[%s9854_s1 + $0x62c] sm:$0xf]  ;;  %v4555_v45 = vor.u32 %v6193_v34, %v4552_v37 }
 0x1aa   :  { %3837 = vmatpush.bf16.msrb.mxu0 %v4635_v11  ;;  %v3611_v7 = vpop.f32.mrf.mxu2  ;;  %v4824_v11 = vld [vmem:[%s9854_s1 + $0x658] sm:$0xf0]  ;;  %v4571_v21 = vor.u32 %v6197_v59, %v4568_v6  ;;  %v3587_v36 = vpop.f32.mrf.mxu0  ;;  %v6189_v13 = vld [vmem:[%s9854_s1 + $0x40c] sm:$0xf]  ;;  %v4811_v49 = vor.u32 %v6257_v40, %v4808_v19 }
 0x1ab   :  { %3850 = vmatpush.bf16.msrb.mxu1 %v4763_v12  ;;  %v3586_v56 = vadd.f32 %v3585_v50, %v538_v16  ;;  %v4827_v32 = vor.u32 %v6261_v10, %v4824_v11  ;;  %v3600_v39 = vpop.f32.mrf.mxu1  ;;  %v6289_v16 = vld [vmem:[%s9854_s1 + $0x72c] sm:$0xf]  ;;  %v4664_v50 = vld [vmem:[%s9854_s1 + $0x518] sm:$0xf0]  ;;  %v4539_v60 = vor.u32 %v6189_v13, %v4536_v47 }
 0x1ac   :  { %3863 = vmatpush.bf16.msrb.mxu2 %v4891_v14  ;;  %v3624_v14 = vpop.f32.mrf.mxu3  ;;  %v4792_v52 = vld [vmem:[%s9854_s1 + $0x618] sm:$0xf0]  ;;  %v6285_v53 = vld [vmem:[%s9854_s1 + $0x70c] sm:$0xf] }
 0x1ad   :  { %3876 = vmatpush.bf16.msrb.mxu3 %v5019_v55  ;;  %v3599_v2 = vadd.f32 %v3598_v57, %v3586_v56  ;;  %v4920_v56 = vld [vmem:[%s9854_s1 + $0x718] sm:$0xf0]  ;;  %v6377_v63 = vld [vmem:[%s9854_s1 + $0x9ec] sm:$0xf] }
 0x1ae   :  { %3838 = vmatpush.bf16.msrb.mxu0 %v4619_v27  ;;  %v6225_v27 = vld [vmem:[%s9854_s1 + $0x52c] sm:$0xf]  ;;  %v5160_v61 = vld [vmem:[%s9854_s1 + $0x8f8] sm:$0xf0]  ;;  %v4923_v6 = vor.u32 %v6285_v53, %v4920_v56 }
 0x1af   :  { %3851 = vmatpush.bf16.msrb.mxu1 %v4747_v18  ;;  %v3612_v12 = vadd.f32 %v3611_v7, %v3599_v2  ;;  %v4955_v18 = vor.u32 %v6293_v15, %v4952_v17  ;;  %v5288_v0 = vld [vmem:[%s9854_s1 + $0x9f8] sm:$0xf0]  ;;  %v6409_v1 = vld [vmem:[%s9854_s1 + $0xaec] sm:$0xf] }
 0x1b0   :  { %3864 = vmatpush.bf16.msrb.mxu2 %v4875_v43  ;;  %v4680_v43 = vld [vmem:[%s9854_s1 + $0x538] sm:$0xf0]  ;;  %v5291_v7 = vor.u32 %v6377_v63, %v5288_v0  ;;  %v6341_v9 = vld [vmem:[%s9854_s1 + $0x8cc] sm:$0xf] }
 0x1b1   :  { %3877 = vmatpush.bf16.msrb.mxu3 %v5003_v22  ;;  %v9400_v55 = vadd.f32 %v3624_v14, %v3612_v12  ;;  %v4936_v22 = vld [vmem:[%s9854_s1 + $0x738] sm:$0xf0]  ;;  %v4683_v48 = vor.u32 %v6225_v27, %v4680_v43  ;;  %v6373_v11 = vld [vmem:[%s9854_s1 + $0x9cc] sm:$0xf] }
 0x1b2   :  { %3839 = vmatpush.bf16.msrb.mxu0 %v4603_v54  ;;  %v6221_v54 = vld [vmem:[%s9854_s1 + $0x50c] sm:$0xf]  ;;  %v4939_v62 = vor.u32 %v6289_v16, %v4936_v22  ;;  %v5416_v2 = vld [vmem:[%s9854_s1 + $0xaf8] sm:$0xf0] }
 0x1b3   :  { %3852 = vmatpush.bf16.msrb.mxu1 %v4731_v51  ;;  %v6253_v51 = vld [vmem:[%s9854_s1 + $0x60c] sm:$0xf]  ;;  %v5544_v59 = vld [vmem:[%s9854_s1 + $0xbf8] sm:$0xf0] }
 0x1b4   :  { %3865 = vmatpush.bf16.msrb.mxu2 %v4859_v46  ;;  %v3613_v46 = vpop.f32.mrf.mxu2  ;;  %v3626_v57 = vpop.f32.mrf.mxu3  ;;  %v5144_v10 = vld [vmem:[%s9854_s1 + $0x8d8] sm:$0xf0]  ;;  %v6405_v15 = vld [vmem:[%s9854_s1 + $0xacc] sm:$0xf] }
 0x1b5   :  { %3878 = vmatpush.bf16.msrb.mxu3 %v4987_v58  ;;  %v6345_v58 = vld [vmem:[%s9854_s1 + $0x8ec] sm:$0xf]  ;;  %v5272_v14 = vld [vmem:[%s9854_s1 + $0x9d8] sm:$0xf0] }
 0x1b6   :  { %3840 = vmatpush.bf16.msrb.mxu0 %v4587_v3  ;;  %v4667_v3 = vor.u32 %v6221_v54, %v4664_v50  ;;  %v5163_v24 = vor.u32 %v6345_v58, %v5160_v61  ;;  %v5400_v17 = vld [vmem:[%s9854_s1 + $0xad8] sm:$0xf0]  ;;  %v6337_v37 = vld [vmem:[%s9854_s1 + $0x8ac] sm:$0xf] }
 0x1b7   :  { %3853 = vmatpush.bf16.msrb.mxu1 %v4715_v4  ;;  %v4795_v4 = vor.u32 %v6253_v51, %v4792_v52  ;;  %v5528_v36 = vld [vmem:[%s9854_s1 + $0xbd8] sm:$0xf0]  ;;  %v5403_v34 = vor.u32 %v6405_v15, %v5400_v17  ;;  %v6369_v39 = vld [vmem:[%s9854_s1 + $0x9ac] sm:$0xf] }
 0x1b8   :  { %3866 = vmatpush.bf16.msrb.mxu2 %v4843_v5  ;;  %v6441_v5 = vld [vmem:[%s9854_s1 + $0xbec] sm:$0xf]  ;;  %v5128_v27 = vld [vmem:[%s9854_s1 + $0x8b8] sm:$0xf0] }
 0x1b9   :  { %3879 = vmatpush.bf16.msrb.mxu3 %v4971_v8  ;;  %v5419_v8 = vor.u32 %v6409_v1, %v5416_v2  ;;  %v5547_v12 = vor.u32 %v6441_v5, %v5544_v59  ;;  %v5256_v43 = vld [vmem:[%s9854_s1 + $0x9b8] sm:$0xf0]  ;;  %v6401_v40 = vld [vmem:[%s9854_s1 + $0xaac] sm:$0xf]  ;;  %v5131_v22 = vor.u32 %v6337_v37, %v5128_v27 }
 0x1ba   :  { %3841 = vmatpush.bf16.msrb.mxu0 %v4571_v21  ;;  %v6437_v21 = vld [vmem:[%s9854_s1 + $0xbcc] sm:$0xf]  ;;  %v5384_v19 = vld [vmem:[%s9854_s1 + $0xab8] sm:$0xf0] }
 0x1bb   :  { %3854 = vmatpush.bf16.msrb.mxu1 %v4699_v26  ;;  %v5147_v26 = vor.u32 %v6341_v9, %v5144_v10  ;;  %v6433_v16 = vld [vmem:[%s9854_s1 + $0xbac] sm:$0xf]  ;;  %v5387_v13 = vor.u32 %v6401_v40, %v5384_v19  ;;  %v5368_v54 = vld [vmem:[%s9854_s1 + $0xa98] sm:$0xf0] }
 0x1bc   :  { %3867 = vmatpush.bf16.msrb.mxu2 %v4827_v32  ;;  %v5275_v32 = vor.u32 %v6373_v11, %v5272_v14  ;;  %v6333_v47 = vld [vmem:[%s9854_s1 + $0x88c] sm:$0xf]  ;;  %v5496_v51 = vld [vmem:[%s9854_s1 + $0xb98] sm:$0xf0] }
 0x1bd   :  { %3880 = vmatpush.bf16.msrb.mxu3 %v4955_v18  ;;  %v5531_v18 = vor.u32 %v6437_v21, %v5528_v36  ;;  %v6429_v50 = vld [vmem:[%s9854_s1 + $0xb8c] sm:$0xf]  ;;  %v5096_v57 = vld [vmem:[%s9854_s1 + $0x878] sm:$0xf0] }
 0x1be   :  { %3842 = vmatpush.bf16.msrb.mxu0 %v4555_v45  ;;  %v5259_v45 = vor.u32 %v6369_v39, %v5256_v43  ;;  %v6329_v56 = vld [vmem:[%s9854_s1 + $0x86c] sm:$0xf]  ;;  %v5224_v0 = vld [vmem:[%s9854_s1 + $0x978] sm:$0xf0] }
 0x1bf   :  { %3855 = vmatpush.bf16.msrb.mxu1 %v4683_v48  ;;  %v5112_v48 = vld [vmem:[%s9854_s1 + $0x898] sm:$0xf0]  ;;  %v6361_v58 = vld [vmem:[%s9854_s1 + $0x96c] sm:$0xf]  ;;  %v5099_v5 = vor.u32 %v6329_v56, %v5096_v57 }
 0x1c0   :  { %3868 = vmatpush.bf16.msrb.mxu2 %v4811_v49  ;;  %v6397_v49 = vld [vmem:[%s9854_s1 + $0xa8c] sm:$0xf]  ;;  %v5115_v46 = vor.u32 %v6333_v47, %v5112_v48  ;;  %v5352_v2 = vld [vmem:[%s9854_s1 + $0xa78] sm:$0xf0]  ;;  %v5227_v59 = vor.u32 %v6361_v58, %v5224_v0 }
 0x1c1   :  { %3881 = vmatpush.bf16.msrb.mxu3 %v4939_v62  ;;  %v5371_v53 = vor.u32 %v6397_v49, %v5368_v54  ;;  %v6393_v1 = vld [vmem:[%s9854_s1 + $0xa6c] sm:$0xf]  ;;  %v5208_v11 = vld [vmem:[%s9854_s1 + $0x958] sm:$0xf0] }
 0x1c2   :  { %3843 = vmatpush.bf16.msrb.mxu0 %v4539_v60  ;;  %v3637_v62 = vpop.f32.mrf.mxu0  ;;  %v5499_v60 = vor.u32 %v6429_v50, %v5496_v51  ;;  %v5336_v14 = vld [vmem:[%s9854_s1 + $0xa58] sm:$0xf0]  ;;  %v6421_v21 = vld [vmem:[%s9854_s1 + $0xb4c] sm:$0xf] }
 0x1c3   :  { %3856 = vmatpush.bf16.msrb.mxu1 %v4667_v3  ;;  %v3638_v61 = vadd.f32 %v3637_v62, %v9400_v55  ;;  %v3650_v63 = vpop.f32.mrf.mxu1  ;;  %v6425_v3 = vld [vmem:[%s9854_s1 + $0xb6c] sm:$0xf]  ;;  %v5480_v55 = vld [vmem:[%s9854_s1 + $0xb78] sm:$0xf0] }
 0x1c4   :  { %3869 = vmatpush.bf16.msrb.mxu2 %v4795_v4  ;;  %v5483_v10 = vor.u32 %v6425_v3, %v5480_v55  ;;  %v5464_v36 = vld [vmem:[%s9854_s1 + $0xb58] sm:$0xf0]  ;;  %v6321_v39 = vld [vmem:[%s9854_s1 + $0x82c] sm:$0xf] }
 0x1c5   :  { %3882 = vmatpush.bf16.msrb.mxu3 %v4923_v6  ;;  %3844 = vmatmul.bf16.vlgmr.msrb.gmra.mxu0 %v7052_v41  ;;  %v6365_v41 = vld [vmem:[%s9854_s1 + $0x98c] sm:$0xf]  ;;  %v3651_v4 = vadd.f32 %v3650_v63, %v3638_v61  ;;  %v5355_v6 = vor.u32 %v6393_v1, %v5352_v2  ;;  %v5467_v19 = vor.u32 %v6421_v21, %v5464_v36  ;;  %v5176_v54 = vld [vmem:[%s9854_s1 + $0x918] sm:$0xf0] }
 0x1c6   :  { %3888 = vmatpush.bf16.msra.mxu0 %v5163_v24  ;;  %3857 = vmatmul.bf16.vlgmr.msrb.gmra.mxu1 %v7056_v44  ;;  %v5240_v44 = vld [vmem:[%s9854_s1 + $0x998] sm:$0xf0]  ;;  %v6325_v24 = vld [vmem:[%s9854_s1 + $0x84c] sm:$0xf] }
 0x1c7   :  { %3901 = vmatpush.bf16.msra.mxu1 %v5291_v7  ;;  %3870 = vmatmul.bf16.vlgmr.msrb.gmra.mxu2 %v7044_v38  ;;  %v5512_v38 = vld [vmem:[%s9854_s1 + $0xbb8] sm:$0xf0]  ;;  %v5243_v52 = vor.u32 %v6365_v41, %v5240_v44  ;;  %v6353_v43 = vld [vmem:[%s9854_s1 + $0x92c] sm:$0xf] }
 0x1c8   :  { %3914 = vmatpush.bf16.msra.mxu2 %v5419_v8  ;;  %3883 = vmatmul.bf16.vlgmr.msrb.gmra.mxu3 %v7054_v42  ;;  %v5515_v42 = vor.u32 %v6433_v16, %v5512_v38  ;;  %v5080_v7 = vld [vmem:[%s9854_s1 + $0x858] sm:$0xf0]  ;;  %v6357_v8 = vld [vmem:[%s9854_s1 + $0x94c] sm:$0xf] }
 0x1c9   :  { %3927 = vmatpush.bf16.msra.mxu3 %v5547_v12  ;;  %v6389_v12 = vld [vmem:[%s9854_s1 + $0xa4c] sm:$0xf]  ;;  %v5211_v37 = vor.u32 %v6357_v8, %v5208_v11  ;;  %v5192_v16 = vld [vmem:[%s9854_s1 + $0x938] sm:$0xf0] }
 0x1ca   :  { %3889 = vmatpush.bf16.msra.mxu0 %v5147_v26  ;;  %v3663_v9 = vpop.f32.mrf.mxu2  ;;  %v5083_v26 = vor.u32 %v6325_v24, %v5080_v7  ;;  %v5339_v27 = vor.u32 %v6389_v12, %v5336_v14  ;;  %v6385_v38 = vld [vmem:[%s9854_s1 + $0xa2c] sm:$0xf]  ;;  %v5048_v41 = vld [vmem:[%s9854_s1 + $0x818] sm:$0xf0] }
 0x1cb   :  { %3902 = vmatpush.bf16.msra.mxu1 %v5275_v32  ;;  %v3664_v15 = vadd.f32 %v3663_v9, %v3651_v4  ;;  %v3676_v17 = vpop.f32.mrf.mxu3  ;;  %v3652_v40 = vpop.f32.mrf.mxu1  ;;  %v6317_v48 = vld [vmem:[%s9854_s1 + $0x80c] sm:$0xf]  ;;  %v5304_v62 = vld [vmem:[%s9854_s1 + $0xa18] sm:$0xf0] }
 0x1cc   :  { %3915 = vmatpush.bf16.msra.mxu2 %v5403_v34  ;;  %v3639_v34 = vpop.f32.mrf.mxu0  ;;  %v6349_v49 = vld [vmem:[%s9854_s1 + $0x90c] sm:$0xf]  ;;  %v5672_v58 = vld [vmem:[%s9854_s1 + $0xcf8] sm:$0xf0]  ;;  %v5051_v63 = vor.u32 %v6317_v48, %v5048_v41 }
 0x1cd   :  { %3928 = vmatpush.bf16.msra.mxu3 %v5531_v18  ;;  %v9599_v32 = vadd.f32 %v3676_v17, %v3664_v15  ;;  %v5064_v18 = vld [vmem:[%s9854_s1 + $0x838] sm:$0xf0]  ;;  %v6381_v50 = vld [vmem:[%s9854_s1 + $0xa0c] sm:$0xf]  ;;  %v5179_v2 = vor.u32 %v6349_v49, %v5176_v54 }
 0x1ce   :  { %3890 = vmatpush.bf16.msra.mxu0 %v5131_v22  ;;  %v5320_v22 = vld [vmem:[%s9854_s1 + $0xa38] sm:$0xf0]  ;;  %v5067_v47 = vor.u32 %v6321_v39, %v5064_v18  ;;  %v6473_v57 = vld [vmem:[%s9854_s1 + $0xcec] sm:$0xf]  ;;  %v5307_v3 = vor.u32 %v6381_v50, %v5304_v62 }
 0x1cf   :  { %3903 = vmatpush.bf16.msra.mxu1 %v5259_v45  ;;  %v6417_v45 = vld [vmem:[%s9854_s1 + $0xb2c] sm:$0xf]  ;;  %v5323_v44 = vor.u32 %v6385_v38, %v5320_v22  ;;  %v5928_v1 = vld [vmem:[%s9854_s1 + $0xef8] sm:$0xf0] }
 0x1d0   :  { %3916 = vmatpush.bf16.msra.mxu2 %v5387_v13  ;;  %v5448_v13 = vld [vmem:[%s9854_s1 + $0xb38] sm:$0xf0]  ;;  %v6505_v61 = vld [vmem:[%s9854_s1 + $0xdec] sm:$0xf] }
 0x1d1   :  { %3929 = vmatpush.bf16.msra.mxu3 %v5515_v42  ;;  %v5195_v42 = vor.u32 %v6353_v43, %v5192_v16  ;;  %v6537_v0 = vld [vmem:[%s9854_s1 + $0xeec] sm:$0xf]  ;;  %v6056_v4 = vld [vmem:[%s9854_s1 + $0xff8] sm:$0xf0] }
 0x1d2   :  { %3891 = vmatpush.bf16.msra.mxu0 %v5115_v46  ;;  %v3665_v51 = vpop.f32.mrf.mxu2  ;;  %v5451_v46 = vor.u32 %v6417_v45, %v5448_v13  ;;  %v6569_v55 = vld [vmem:[%s9854_s1 + $0xfec] sm:$0xf]  ;;  %v5931_v24 = vor.u32 %v6537_v0, %v5928_v1  ;;  %v5656_v8 = vld [vmem:[%s9854_s1 + $0xcd8] sm:$0xf0] }
 0x1d3   :  { %3904 = vmatpush.bf16.msra.mxu1 %v5243_v52  ;;  %v6413_v52 = vld [vmem:[%s9854_s1 + $0xb0c] sm:$0xf]  ;;  %v3678_v56 = vpop.f32.mrf.mxu3  ;;  %v5784_v11 = vld [vmem:[%s9854_s1 + $0xdd8] sm:$0xf0] }
 0x1d4   :  { %3917 = vmatpush.bf16.msra.mxu2 %v5371_v53  ;;  %v5432_v53 = vld [vmem:[%s9854_s1 + $0xb18] sm:$0xf0]  ;;  %v6469_v7 = vld [vmem:[%s9854_s1 + $0xccc] sm:$0xf] }
 0x1d5   :  { %3930 = vmatpush.bf16.msra.mxu3 %v5499_v60  ;;  %v5800_v60 = vld [vmem:[%s9854_s1 + $0xdf8] sm:$0xf0]  ;;  %v6501_v9 = vld [vmem:[%s9854_s1 + $0xdcc] sm:$0xf]  ;;  %v5659_v21 = vor.u32 %v6469_v7, %v5656_v8 }
 0x1d6   :  { %3892 = vmatpush.bf16.msra.mxu0 %v5099_v5  ;;  %v5435_v5 = vor.u32 %v6413_v52, %v5432_v53  ;;  %v6533_v12 = vld [vmem:[%s9854_s1 + $0xecc] sm:$0xf]  ;;  %v5912_v14 = vld [vmem:[%s9854_s1 + $0xed8] sm:$0xf0]  ;;  %v5787_v36 = vor.u32 %v6501_v9, %v5784_v11 }
 0x1d7   :  { %3905 = vmatpush.bf16.msra.mxu1 %v5227_v59  ;;  %v5675_v59 = vor.u32 %v6473_v57, %v5672_v58  ;;  %v6565_v15 = vld [vmem:[%s9854_s1 + $0xfcc] sm:$0xf]  ;;  %v6040_v17 = vld [vmem:[%s9854_s1 + $0xfd8] sm:$0xf0] }
 0x1d8   :  { %3918 = vmatpush.bf16.msra.mxu2 %v5355_v6  ;;  %v5803_v6 = vor.u32 %v6505_v61, %v5800_v60  ;;  %v6465_v34 = vld [vmem:[%s9854_s1 + $0xcac] sm:$0xf]  ;;  %v6043_v39 = vor.u32 %v6565_v15, %v6040_v17  ;;  %v5768_v18 = vld [vmem:[%s9854_s1 + $0xdb8] sm:$0xf0] }
 0x1d9   :  { %3931 = vmatpush.bf16.msra.mxu3 %v5483_v10  ;;  %v6059_v10 = vor.u32 %v6569_v55, %v6056_v4  ;;  %v6529_v43 = vld [vmem:[%s9854_s1 + $0xeac] sm:$0xf]  ;;  %v5896_v40 = vld [vmem:[%s9854_s1 + $0xeb8] sm:$0xf0] }
 0x1da   :  { %3893 = vmatpush.bf16.msra.mxu0 %v5083_v26  ;;  %v5915_v26 = vor.u32 %v6533_v12, %v5912_v14  ;;  %v5899_v22 = vor.u32 %v6529_v43, %v5896_v40  ;;  %v6493_v45 = vld [vmem:[%s9854_s1 + $0xd8c] sm:$0xf]  ;;  %v5752_v13 = vld [vmem:[%s9854_s1 + $0xd98] sm:$0xf0] }
 0x1db   :  { %3906 = vmatpush.bf16.msra.mxu1 %v5211_v37  ;;  %v5640_v37 = vld [vmem:[%s9854_s1 + $0xcb8] sm:$0xf0]  ;;  %v5755_v51 = vor.u32 %v6493_v45, %v5752_v13  ;;  %v6457_v62 = vld [vmem:[%s9854_s1 + $0xc6c] sm:$0xf] }
 0x1dc   :  { %3919 = vmatpush.bf16.msra.mxu2 %v5339_v27  ;;  %v6497_v27 = vld [vmem:[%s9854_s1 + $0xdac] sm:$0xf]  ;;  %v5643_v16 = vor.u32 %v6465_v34, %v5640_v37  ;;  %v5880_v48 = vld [vmem:[%s9854_s1 + $0xe98] sm:$0xf0] }
 0x1dd   :  { %3932 = vmatpush.bf16.msra.mxu3 %v5467_v19  ;;  %v6024_v19 = vld [vmem:[%s9854_s1 + $0xfb8] sm:$0xf0]  ;;  %v5771_v38 = vor.u32 %v6497_v27, %v5768_v18  ;;  %v6489_v53 = vld [vmem:[%s9854_s1 + $0xd6c] sm:$0xf] }
 0x1de   :  { %3894 = vmatpush.bf16.msra.mxu0 %v5067_v47  ;;  %v6525_v47 = vld [vmem:[%s9854_s1 + $0xe8c] sm:$0xf]  ;;  %v5608_v52 = vld [vmem:[%s9854_s1 + $0xc78] sm:$0xf0] }
 0x1df   :  { %3907 = vmatpush.bf16.msra.mxu1 %v5195_v42  ;;  %v6557_v42 = vld [vmem:[%s9854_s1 + $0xf8c] sm:$0xf]  ;;  %v5736_v57 = vld [vmem:[%s9854_s1 + $0xd78] sm:$0xf0]  ;;  %v5611_v0 = vor.u32 %v6457_v62, %v5608_v52 }
 0x1e0   :  { %3920 = vmatpush.bf16.msra.mxu2 %v5323_v44  ;;  %v6008_v44 = vld [vmem:[%s9854_s1 + $0xf98] sm:$0xf0]  ;;  %v6521_v58 = vld [vmem:[%s9854_s1 + $0xe6c] sm:$0xf]  ;;  %v5739_v1 = vor.u32 %v6489_v53, %v5736_v57 }
 0x1e1   :  { %3933 = vmatpush.bf16.msra.mxu3 %v5451_v46  ;;  %v5883_v46 = vor.u32 %v6525_v47, %v5880_v48  ;;  %v5864_v61 = vld [vmem:[%s9854_s1 + $0xe78] sm:$0xf0]  ;;  %v6485_v4 = vld [vmem:[%s9854_s1 + $0xd4c] sm:$0xf] }
 0x1e2   :  { %3895 = vmatpush.bf16.msra.mxu0 %v5051_v63  ;;  %v3689_v41 = vpop.f32.mrf.mxu0  ;;  %v6553_v63 = vld [vmem:[%s9854_s1 + $0xf6c] sm:$0xf]  ;;  %v5992_v60 = vld [vmem:[%s9854_s1 + $0xf78] sm:$0xf0] }
 0x1e3   :  { %3908 = vmatpush.bf16.msra.mxu1 %v5179_v2  ;;  %v3690_v49 = vadd.f32 %v3689_v41, %v9599_v32  ;;  %v3702_v50 = vpop.f32.mrf.mxu1  ;;  %v6011_v32 = vor.u32 %v6557_v42, %v6008_v44  ;;  %v5867_v2 = vor.u32 %v6521_v58, %v5864_v61  ;;  %v5592_v55 = vld [vmem:[%s9854_s1 + $0xc58] sm:$0xf0]  ;;  %v6481_v37 = vld [vmem:[%s9854_s1 + $0xd2c] sm:$0xf] }
 0x1e4   :  { %3921 = vmatpush.bf16.msra.mxu2 %v5307_v3  ;;  %v6453_v3 = vld [vmem:[%s9854_s1 + $0xc4c] sm:$0xf]  ;;  %v5848_v7 = vld [vmem:[%s9854_s1 + $0xe58] sm:$0xf0] }
 0x1e5   :  { %3934 = vmatpush.bf16.msra.mxu3 %v5435_v5  ;;  %3896 = vmatmul.bf16.vlgmr.msra.gmra.mxu0 %v7245_v25  ;;  %v6561_v25 = vld [vmem:[%s9854_s1 + $0xfac] sm:$0xf]  ;;  %v3703_v56 = vadd.f32 %v3702_v50, %v3690_v49  ;;  %v5995_v5 = vor.u32 %v6553_v63, %v5992_v60  ;;  %v5976_v11 = vld [vmem:[%s9854_s1 + $0xf58] sm:$0xf0]  ;;  %v5595_v14 = vor.u32 %v6453_v3, %v5592_v55 }
 0x1e6   :  { %3940 = vmatpush.bf16.msrb.mxu0 %v5675_v59  ;;  %3909 = vmatmul.bf16.vlgmr.msra.gmra.mxu1 %v7258_v30  ;;  %v5624_v30 = vld [vmem:[%s9854_s1 + $0xc98] sm:$0xf0]  ;;  %v6513_v18 = vld [vmem:[%s9854_s1 + $0xe2c] sm:$0xf] }
 0x1e7   :  { %3953 = vmatpush.bf16.msrb.mxu1 %v5803_v6  ;;  %3922 = vmatmul.bf16.vlgmr.msra.gmra.mxu2 %v7256_v29  ;;  %v6461_v29 = vld [vmem:[%s9854_s1 + $0xc8c] sm:$0xf]  ;;  %v5720_v6 = vld [vmem:[%s9854_s1 + $0xd58] sm:$0xf0] }
 0x1e8   :  { %3966 = vmatpush.bf16.msrb.mxu2 %v5931_v24  ;;  %3935 = vmatmul.bf16.vlgmr.msra.gmra.mxu3 %v7266_v33  ;;  %v6027_v33 = vor.u32 %v6561_v25, %v6024_v19  ;;  %v5627_v54 = vor.u32 %v6461_v29, %v5624_v30  ;;  %v6517_v24 = vld [vmem:[%s9854_s1 + $0xe4c] sm:$0xf]  ;;  %v5576_v34 = vld [vmem:[%s9854_s1 + $0xc38] sm:$0xf0] }
 0x1e9   :  { %3979 = vmatpush.bf16.msrb.mxu3 %v6059_v10  ;;  %v6549_v10 = vld [vmem:[%s9854_s1 + $0xf4c] sm:$0xf]  ;;  %v5832_v43 = vld [vmem:[%s9854_s1 + $0xe38] sm:$0xf0] }
 0x1ea   :  { %3941 = vmatpush.bf16.msrb.mxu0 %v5659_v21  ;;  %v3715_v59 = vpop.f32.mrf.mxu2  ;;  %v3691_v12 = vpop.f32.mrf.mxu0  ;;  %v5723_v21 = vor.u32 %v6485_v4, %v5720_v6  ;;  %v5979_v27 = vor.u32 %v6549_v10, %v5976_v11  ;;  %v6545_v40 = vld [vmem:[%s9854_s1 + $0xf2c] sm:$0xf]  ;;  %v5960_v25 = vld [vmem:[%s9854_s1 + $0xf38] sm:$0xf0] }
 0x1eb   :  { %3954 = vmatpush.bf16.msrb.mxu1 %v5787_v36  ;;  %v3716_v8 = vadd.f32 %v3715_v59, %v3703_v56  ;;  %v3728_v9 = vpop.f32.mrf.mxu3  ;;  %v3704_v15 = vpop.f32.mrf.mxu1  ;;  %v5851_v36 = vor.u32 %v6517_v24, %v5848_v7  ;;  %v5560_v29 = vld [vmem:[%s9854_s1 + $0xc18] sm:$0xf0]  ;;  %v6477_v30 = vld [vmem:[%s9854_s1 + $0xd0c] sm:$0xf]  ;;  %v5963_v45 = vor.u32 %v6545_v40, %v5960_v25 }
 0x1ec   :  { %3967 = vmatpush.bf16.msrb.mxu2 %v5915_v26  ;;  %v6449_v26 = vld [vmem:[%s9854_s1 + $0xc2c] sm:$0xf]  ;;  %v5816_v47 = vld [vmem:[%s9854_s1 + $0xe18] sm:$0xf0] }
 0x1ed   :  { %3980 = vmatpush.bf16.msrb.mxu3 %v6043_v39  ;;  %v3729_v17 = vadd.f32 %v3728_v9, %v3716_v8  ;;  %v5704_v39 = vld [vmem:[%s9854_s1 + $0xd38] sm:$0xf0]  ;;  %v5579_v19 = vor.u32 %v6449_v26, %v5576_v34  ;;  %v6509_v13 = vld [vmem:[%s9854_s1 + $0xe0c] sm:$0xf] }
 0x1ee   :  { %3942 = vmatpush.bf16.msrb.mxu0 %v5643_v16  ;;  %v5707_v16 = vor.u32 %v6481_v37, %v5704_v39  ;;  %v6541_v41 = vld [vmem:[%s9854_s1 + $0xf0c] sm:$0xf]  ;;  %v5944_v42 = vld [vmem:[%s9854_s1 + $0xf18] sm:$0xf0]  ;;  %v5819_v50 = vor.u32 %v6509_v13, %v5816_v47 }
 0x1ef   :  { %3955 = vmatpush.bf16.msrb.mxu1 %v5771_v38  ;;  %v5835_v38 = vor.u32 %v6513_v18, %v5832_v43 }
 0x1f0   :  { %3968 = vmatpush.bf16.msrb.mxu2 %v5899_v22  ;;  %v6445_v22 = vld [vmem:[%s9854_s1 + $0xc0c] sm:$0xf] }
 0x1f1   :  { %3981 = vmatpush.bf16.msrb.mxu3 %v6027_v33  ;;  %v5688_v33 = vld [vmem:[%s9854_s1 + $0xd18] sm:$0xf0]  ;;  %v5563_v49 = vor.u32 %v6445_v22, %v5560_v29 }
 0x1f2   :  { %3943 = vmatpush.bf16.msrb.mxu0 %v5627_v54  ;;  %v3717_v48 = vpop.f32.mrf.mxu2  ;;  %v5691_v54 = vor.u32 %v6477_v30, %v5688_v33 }
 0x1f3   :  { %3956 = vmatpush.bf16.msrb.mxu1 %v5755_v51  ;;  %v3730_v44 = vpop.f32.mrf.mxu3  ;;  %v5947_v51 = vor.u32 %v6541_v41, %v5944_v42 }
 0x1f4   :  { %3969 = vmatpush.bf16.msrb.mxu2 %v5883_v46 }
 0x1f5   :  { %3982 = vmatpush.bf16.msrb.mxu3 %v6011_v32 }
 0x1f6   :  { %3944 = vmatpush.bf16.msrb.mxu0 %v5611_v0 }
 0x1f7   :  { %3957 = vmatpush.bf16.msrb.mxu1 %v5739_v1 }
 0x1f8   :  { %3970 = vmatpush.bf16.msrb.mxu2 %v5867_v2 }
 0x1f9   :  { %3983 = vmatpush.bf16.msrb.mxu3 %v5995_v5 }
 0x1fa   :  { %3945 = vmatpush.bf16.msrb.mxu0 %v5595_v14 }
 0x1fb   :  { %3958 = vmatpush.bf16.msrb.mxu1 %v5723_v21 }
 0x1fc   :  { %3971 = vmatpush.bf16.msrb.mxu2 %v5851_v36 }
 0x1fd   :  { %3984 = vmatpush.bf16.msrb.mxu3 %v5979_v27 }
 0x1fe   :  { %3946 = vmatpush.bf16.msrb.mxu0 %v5579_v19 }
 0x1ff   :  { %3959 = vmatpush.bf16.msrb.mxu1 %v5707_v16 }
 0x200   :  { %3972 = vmatpush.bf16.msrb.mxu2 %v5835_v38 }
 0x201   :  { %3985 = vmatpush.bf16.msrb.mxu3 %v5963_v45 }
 0x202   :  { %3947 = vmatpush.bf16.msrb.mxu0 %v5563_v49  ;;  %v3741_v46 = vpop.f32.mrf.mxu0 }
 0x203   :  { %3960 = vmatpush.bf16.msrb.mxu1 %v5691_v54  ;;  %v3742_v62 = vadd.f32 %v3741_v46, %v3729_v17  ;;  %v3754_v52 = vpop.f32.mrf.mxu1 }
 0x204   :  { %3973 = vmatpush.bf16.msrb.mxu2 %v5819_v50 }
 0x205   :  { %3986 = vmatpush.bf16.msrb.mxu3 %v5947_v51  ;;  %3948 = vmatmul.bf16.vlgmr.msrb.gmra.mxu0 %v7455_v23  ;;  %v3755_v53 = vadd.f32 %v3754_v52, %v3742_v62  ;;  %v539_v23 = vperm.slane %v9334_v20, 3 }
 0x206   :  { %3961 = vmatmul.bf16.vlgmr.msrb.gmra.mxu1 %v7468_v31 }
 0x207   :  { %3974 = vmatmul.bf16.vlgmr.msrb.gmra.mxu2 %v7466_v28 }
 0x208   :  { %3987 = vmatmul.bf16.vlgmr.msrb.gmra.mxu3 %v7476_v35 }
 0x20a   :  { %v3767_v32 = vpop.f32.mrf.mxu2  ;;  %v3743_v58 = vpop.f32.mrf.mxu0 }
 0x20b   :  { %v3768_v56 = vadd.f32 %v3767_v32, %v3755_v53  ;;  %v3780_v57 = vpop.f32.mrf.mxu3  ;;  %v3756_v61 = vpop.f32.mrf.mxu1 }
 0x20d   :  { %v3781_v63 = vadd.f32 %v3780_v57, %v3768_v56 }
 0x20f   :  { %v3998_v42 = vmul.f32 0.2, %v3781_v63  ;;  %vm3994_vm2 = vcmp.gt.f32.partialorder %v3781_v63, 0.0 }
 0x211   :  { %v4002_v54 = vsel %vm3994_vm2, %v3781_v63, %v3998_v42 }
 0x212   :  { %v3769_v60 = vpop.f32.mrf.mxu2 }
 0x213   :  { %v3782_v0 = vpop.f32.mrf.mxu3 }
 0x222   :  { %v3793_v1 = vpop.f32.mrf.mxu0 }
 0x223   :  { %v3794_v31 = vadd.f32 %v3793_v1, %v539_v23  ;;  %v3806_v2 = vpop.f32.mrf.mxu1 }
 0x225   :  { %v3807_v28 = vadd.f32 %v3806_v2, %v3794_v31 }
 0x22a   :  { %v3819_v3 = vpop.f32.mrf.mxu2  ;;  %v3795_v5 = vpop.f32.mrf.mxu0 }
 0x22b   :  { %v3820_v35 = vadd.f32 %v3819_v3, %v3807_v28  ;;  %v3832_v55 = vpop.f32.mrf.mxu3  ;;  %v3808_v59 = vpop.f32.mrf.mxu1 }
 0x22d   :  { %v3833_v4 = vadd.f32 %v3832_v55, %v3820_v35 }
 0x232   :  { %v3821_v6 = vpop.f32.mrf.mxu2 }
 0x233   :  { %v3834_v24 = vpop.f32.mrf.mxu3 }
 0x242   :  { %v3845_v7 = vpop.f32.mrf.mxu0 }
 0x243   :  { %v3858_v8 = vpop.f32.mrf.mxu1  ;;  %v3846_v21 = vadd.f32 %v3845_v7, %v3833_v4 }
 0x245   :  { %v3859_v37 = vadd.f32 %v3858_v8, %v3846_v21 }
 0x24a   :  { %v3871_v9 = vpop.f32.mrf.mxu2  ;;  %v3847_v11 = vpop.f32.mrf.mxu0 }
 0x24b   :  { %v3884_v10 = vpop.f32.mrf.mxu3  ;;  %v3860_v12 = vpop.f32.mrf.mxu1  ;;  %v3872_v39 = vadd.f32 %v3871_v9, %v3859_v37 }
 0x24d   :  { %v3885_v40 = vadd.f32 %v3884_v10, %v3872_v39 }
 0x252   :  { %v3873_v14 = vpop.f32.mrf.mxu2 }
 0x253   :  { %v3886_v20 = vpop.f32.mrf.mxu3 }
 0x262   :  { %v3897_v15 = vpop.f32.mrf.mxu0 }
 0x263   :  { %v3910_v17 = vpop.f32.mrf.mxu1  ;;  %v3898_v25 = vadd.f32 %v3897_v15, %v3885_v40 }
 0x265   :  { %v3911_v19 = vadd.f32 %v3910_v17, %v3898_v25 }
 0x26a   :  { %v3923_v36 = vpop.f32.mrf.mxu2  ;;  %v3899_v34 = vpop.f32.mrf.mxu0 }
 0x26b   :  { %v3936_v26 = vpop.f32.mrf.mxu3  ;;  %v3912_v27 = vpop.f32.mrf.mxu1  ;;  %v3924_v16 = vadd.f32 %v3923_v36, %v3911_v19 }
 0x26d   :  { %v3937_v38 = vadd.f32 %v3936_v26, %v3924_v16 }
 0x272   :  { %v3925_v18 = vpop.f32.mrf.mxu2 }
 0x273   :  { %v3938_v43 = vpop.f32.mrf.mxu3 }
 0x282   :  { %v3949_v22 = vpop.f32.mrf.mxu0 }
 0x283   :  { %v3962_v29 = vpop.f32.mrf.mxu1  ;;  %v3950_v30 = vadd.f32 %v3949_v22, %v3937_v38 }
 0x285   :  { %v3963_v45 = vadd.f32 %v3962_v29, %v3950_v30 }
 0x28a   :  { %v3975_v33 = vpop.f32.mrf.mxu2  ;;  %v3951_v48 = vpop.f32.mrf.mxu0 }
 0x28b   :  { %v3976_v13 = vadd.f32 %v3975_v33, %v3963_v45  ;;  %v3988_v47 = vpop.f32.mrf.mxu3  ;;  %v3964_v41 = vpop.f32.mrf.mxu1 }
 0x28d   :  { %v3989_v44 = vadd.f32 %v3988_v47, %v3976_v13 }
 0x28f   :  { %vm3995_vm3 = vcmp.gt.f32.partialorder %v3989_v44, 0.0  ;;  %v3999_v49 = vmul.f32 0.2, %v3989_v44 }
 0x291   :  { %v4003_v50 = vsel %vm3995_vm3, %v3989_v44, %v3999_v49 }
 0x292   :  { %v4005_v51 = vpack.c.bf16 %v4003_v50, %v4002_v54  ;;  %v3977_v46 = vpop.f32.mrf.mxu2 }
 0x293   :  { %v3990_v62 = vpop.f32.mrf.mxu3 }
 0x294   :  { %4007 = vst [vmem:[%s9857_s3 + $0x8] sm:$0xff] %v4005_v51 }

// kernel: forward.9
= control target key start
LH: loop header
LB: loop body
LE: loop exit
PB: predicated region body
PF: predicated region fallthrough
CT: control target
= control target key end

     0   :  { %vm2898_vm0 = vcmask 261120   ;;  %vm2941_vm4 = vcmask 1041408   ;;  %s5399_s1 = inlined_call_operand.vmem [shape: bf16[4608,32], index: 1, kind: input, shape index: {}]   ;;  %s5400_s0 = inlined_call_operand.vmem [shape: bf16[2,4608], index: 0, kind: input, shape index: {}]   ;;  %s5401_s3 = inlined_call_operand.vmem [shape: f32[1,128], index: 3, kind: input, shape index: {}]   ;;  %s5402_s2 = inlined_call_operand.vmem [shape: bf16[32,128], index: 2, kind: input, shape index: {}]   ;;  %s5403_s4 = inlined_call_operand.vmem [shape: f32[2,128], index: 4, kind: output, shape index: {}]  }
   0x1   :  { %v4142_v0 = vld [vmem:[%s5399_s1 + $0x38] sm:$0xff]  ;;  %v4141_v4 = vld [vmem:[%s5399_s1 + $0x30] sm:$0xff]  ;;  %v4140_v8 = vld [vmem:[%s5399_s1 + $0x28] sm:$0xff] }
   0x2   :  { %v4150_v1 = vld [vmem:[%s5399_s1 + $0x78] sm:$0xff]  ;;  %2409 = vmatpush.bf16.msra.mxu0 %v4142_v0  ;;  %v4149_v5 = vld [vmem:[%s5399_s1 + $0x70] sm:$0xff]  ;;  %v4148_v9 = vld [vmem:[%s5399_s1 + $0x68] sm:$0xff] }
   0x3   :  { %v4158_v2 = vld [vmem:[%s5399_s1 + $0xb8] sm:$0xff]  ;;  %2422 = vmatpush.bf16.msra.mxu1 %v4150_v1  ;;  %v4157_v6 = vld [vmem:[%s5399_s1 + $0xb0] sm:$0xff]  ;;  %v4156_v10 = vld [vmem:[%s5399_s1 + $0xa8] sm:$0xff] }
   0x4   :  { %v4166_v3 = vld [vmem:[%s5399_s1 + $0xf8] sm:$0xff]  ;;  %2435 = vmatpush.bf16.msra.mxu2 %v4158_v2  ;;  %v4165_v7 = vld [vmem:[%s5399_s1 + $0xf0] sm:$0xff]  ;;  %v4164_v11 = vld [vmem:[%s5399_s1 + $0xe8] sm:$0xff] }
   0x5   :  { %2448 = vmatpush.bf16.msra.mxu3 %v4166_v3  ;;  %v4139_v12 = vld [vmem:[%s5399_s1 + $0x20] sm:$0xff]  ;;  %v4138_v16 = vld [vmem:[%s5399_s1 + $0x18] sm:$0xff]  ;;  %v4137_v21 = vld [vmem:[%s5399_s1 + $0x10] sm:$0xff] }
   0x6   :  { %2410 = vmatpush.bf16.msra.mxu0 %v4141_v4  ;;  %v4147_v13 = vld [vmem:[%s5399_s1 + $0x60] sm:$0xff]  ;;  %v4146_v17 = vld [vmem:[%s5399_s1 + $0x58] sm:$0xff]  ;;  %v4145_v22 = vld [vmem:[%s5399_s1 + $0x50] sm:$0xff] }
   0x7   :  { %2423 = vmatpush.bf16.msra.mxu1 %v4149_v5  ;;  %v4155_v14 = vld [vmem:[%s5399_s1 + $0xa0] sm:$0xff]  ;;  %v4154_v18 = vld [vmem:[%s5399_s1 + $0x98] sm:$0xff]  ;;  %v4153_v23 = vld [vmem:[%s5399_s1 + $0x90] sm:$0xff] }
   0x8   :  { %2436 = vmatpush.bf16.msra.mxu2 %v4157_v6  ;;  %v4163_v15 = vld [vmem:[%s5399_s1 + $0xe0] sm:$0xff]  ;;  %v4162_v19 = vld [vmem:[%s5399_s1 + $0xd8] sm:$0xff]  ;;  %v4161_v24 = vld [vmem:[%s5399_s1 + $0xd0] sm:$0xff] }
   0x9   :  { %2449 = vmatpush.bf16.msra.mxu3 %v4165_v7  ;;  %v18_v20 = vld [vmem:[%s5400_s0] sm:$0xff]  ;;  %v4136_v25 = vld [vmem:[%s5399_s1 + $0x8] sm:$0xff]  ;;  %v4174_v33 = vld [vmem:[%s5399_s1 + $0x138] sm:$0xff] }
   0xa   :  { %2411 = vmatpush.bf16.msra.mxu0 %v4140_v8  ;;  %600 = vst [vmem:[#allocation1] ss:$9 sm:$0xff] %v18_v20  ;;  %v4144_v26 = vld [vmem:[%s5399_s1 + $0x48] sm:$0xff]  ;;  %v4135_v29 = vld [vmem:[%s5399_s1] sm:$0xff]  ;;  %v4182_v34 = vld [vmem:[%s5399_s1 + $0x178] sm:$0xff] }
   0xb   :  { %2424 = vmatpush.bf16.msra.mxu1 %v4148_v9  ;;  %v4152_v27 = vld [vmem:[%s5399_s1 + $0x88] sm:$0xff]  ;;  %v4143_v30 = vld [vmem:[%s5399_s1 + $0x40] sm:$0xff]  ;;  %v4190_v35 = vld [vmem:[%s5399_s1 + $0x1b8] sm:$0xff] }
   0xc   :  { %2437 = vmatpush.bf16.msra.mxu2 %v4156_v10  ;;  %v4160_v28 = vld [vmem:[%s5399_s1 + $0xc8] sm:$0xff]  ;;  %v4151_v31 = vld [vmem:[%s5399_s1 + $0x80] sm:$0xff]  ;;  %v4198_v36 = vld [vmem:[%s5399_s1 + $0x1f8] sm:$0xff] }
   0xd   :  { %2450 = vmatpush.bf16.msra.mxu3 %v4164_v11  ;;  %v4159_v32 = vld [vmem:[%s5399_s1 + $0xc0] sm:$0xff]  ;;  %v4173_v37 = vld [vmem:[%s5399_s1 + $0x130] sm:$0xff]  ;;  %v4172_v45 = vld [vmem:[%s5399_s1 + $0x128] sm:$0xff] }
   0xe   :  { %2412 = vmatpush.bf16.msra.mxu0 %v4139_v12  ;;  %v4181_v40 = vld [vmem:[%s5399_s1 + $0x170] sm:$0xff]  ;;  %v4180_v46 = vld [vmem:[%s5399_s1 + $0x168] sm:$0xff]  ;;  %v4171_v54 = vld [vmem:[%s5399_s1 + $0x120] sm:$0xff] }
   0xf   :  { %2425 = vmatpush.bf16.msra.mxu1 %v4147_v13  ;;  %v4189_v43 = vld [vmem:[%s5399_s1 + $0x1b0] sm:$0xff]  ;;  %v4188_v47 = vld [vmem:[%s5399_s1 + $0x1a8] sm:$0xff]  ;;  %v4179_v55 = vld [vmem:[%s5399_s1 + $0x160] sm:$0xff] }
  0x10   :  { %2438 = vmatpush.bf16.msra.mxu2 %v4155_v14  ;;  %v4197_v44 = vld [vmem:[%s5399_s1 + $0x1f0] sm:$0xff]  ;;  %v4196_v48 = vld [vmem:[%s5399_s1 + $0x1e8] sm:$0xff]  ;;  %v4187_v56 = vld [vmem:[%s5399_s1 + $0x1a0] sm:$0xff] }
  0x11   :  { %2451 = vmatpush.bf16.msra.mxu3 %v4163_v15  ;;  %v603_v38 = vld [vmem:[#allocation1 + $0x12] sm:$0xff]  ;;  %v601_v39 = vld [vmem:[#allocation1] sm:$0xff]  ;;  %v602_v42 = vld [vmem:[#allocation1 + $0x9] sm:$0xff] }
  0x12   :  { %2413 = vmatpush.bf16.msra.mxu0 %v4138_v16  ;;  %v604_v41 = vld [vmem:[#allocation1 + $0x1b] sm:$0xff]  ;;  %v19_v49 = vld [vmem:[%s5400_s0 + $0x8] sm:$0xff]  ;;  %v4169_v62 = vld [vmem:[%s5399_s1 + $0x110] sm:$0xff] }
  0x13   :  { %2426 = vmatpush.bf16.msra.mxu1 %v4146_v17  ;;  %v607_v50 = vld [vmem:[#allocation1 + $0x36] sm:$0xff]  ;;  %v605_v51 = vld [vmem:[#allocation1 + $0x24] sm:$0xff]  ;;  %v606_v53 = vld [vmem:[#allocation1 + $0x2d] sm:$0xff] }
  0x14   :  { %2439 = vmatpush.bf16.msra.mxu2 %v4154_v18  ;;  %v608_v52 = vld [vmem:[#allocation1 + $0x3f] sm:$0xff]  ;;  %v4177_v63 = vld [vmem:[%s5399_s1 + $0x150] sm:$0xff]  ;;  %v4168_v2 = vld [vmem:[%s5399_s1 + $0x108] sm:$0xff] }
  0x15   :  { %2452 = vmatpush.bf16.msra.mxu3 %v4162_v19  ;;  %610 = vst [vmem:[#allocation1] ss:$9 sm:$0xff] %v19_v49  ;;  %v4195_v57 = vld [vmem:[%s5399_s1 + $0x1e0] sm:$0xff]  ;;  %v4170_v58 = vld [vmem:[%s5399_s1 + $0x118] sm:$0xff]  ;;  %v4185_v0 = vld [vmem:[%s5399_s1 + $0x190] sm:$0xff] }
  0x16   :  { %2414 = vmatpush.bf16.msra.mxu0 %v4137_v21  ;;  %v4178_v59 = vld [vmem:[%s5399_s1 + $0x158] sm:$0xff]  ;;  %v4193_v1 = vld [vmem:[%s5399_s1 + $0x1d0] sm:$0xff]  ;;  %v4176_v3 = vld [vmem:[%s5399_s1 + $0x148] sm:$0xff] }
  0x17   :  { %2427 = vmatpush.bf16.msra.mxu1 %v4145_v22  ;;  %v4186_v60 = vld [vmem:[%s5399_s1 + $0x198] sm:$0xff]  ;;  %v4184_v4 = vld [vmem:[%s5399_s1 + $0x188] sm:$0xff]  ;;  %v4167_v6 = vld [vmem:[%s5399_s1 + $0x100] sm:$0xff] }
  0x18   :  { %2440 = vmatpush.bf16.msra.mxu2 %v4153_v23  ;;  %v4194_v61 = vld [vmem:[%s5399_s1 + $0x1d8] sm:$0xff]  ;;  %v4192_v5 = vld [vmem:[%s5399_s1 + $0x1c8] sm:$0xff]  ;;  %v4175_v7 = vld [vmem:[%s5399_s1 + $0x140] sm:$0xff] }
  0x19   :  { %2453 = vmatpush.bf16.msra.mxu3 %v4161_v24  ;;  %v4183_v8 = vld [vmem:[%s5399_s1 + $0x180] sm:$0xff]  ;;  %v4206_v10 = vld [vmem:[%s5399_s1 + $0x238] sm:$0xff]  ;;  %v4205_v14 = vld [vmem:[%s5399_s1 + $0x230] sm:$0xff] }
  0x1a   :  { %2415 = vmatpush.bf16.msra.mxu0 %v4136_v25  ;;  %v4191_v9 = vld [vmem:[%s5399_s1 + $0x1c0] sm:$0xff]  ;;  %v4214_v11 = vld [vmem:[%s5399_s1 + $0x278] sm:$0xff]  ;;  %v4213_v15 = vld [vmem:[%s5399_s1 + $0x270] sm:$0xff] }
  0x1b   :  { %2428 = vmatpush.bf16.msra.mxu1 %v4144_v26  ;;  %v4222_v12 = vld [vmem:[%s5399_s1 + $0x2b8] sm:$0xff]  ;;  %v4221_v16 = vld [vmem:[%s5399_s1 + $0x2b0] sm:$0xff]  ;;  %v4204_v18 = vld [vmem:[%s5399_s1 + $0x228] sm:$0xff] }
  0x1c   :  { %2441 = vmatpush.bf16.msra.mxu2 %v4152_v27  ;;  %v4230_v13 = vld [vmem:[%s5399_s1 + $0x2f8] sm:$0xff]  ;;  %v4229_v17 = vld [vmem:[%s5399_s1 + $0x2f0] sm:$0xff]  ;;  %v4212_v19 = vld [vmem:[%s5399_s1 + $0x268] sm:$0xff] }
  0x1d   :  { %2454 = vmatpush.bf16.msra.mxu3 %v4160_v28  ;;  %v4220_v20 = vld [vmem:[%s5399_s1 + $0x2a8] sm:$0xff]  ;;  %v4203_v22 = vld [vmem:[%s5399_s1 + $0x220] sm:$0xff]  ;;  %v4202_v26 = vld [vmem:[%s5399_s1 + $0x218] sm:$0xff] }
  0x1e   :  { %2416 = vmatpush.bf16.msra.mxu0 %v4135_v29  ;;  %v4228_v21 = vld [vmem:[%s5399_s1 + $0x2e8] sm:$0xff]  ;;  %v4211_v23 = vld [vmem:[%s5399_s1 + $0x260] sm:$0xff]  ;;  %v4210_v27 = vld [vmem:[%s5399_s1 + $0x258] sm:$0xff] }
  0x1f   :  { %2429 = vmatpush.bf16.msra.mxu1 %v4143_v30  ;;  %v4219_v24 = vld [vmem:[%s5399_s1 + $0x2a0] sm:$0xff]  ;;  %v4218_v28 = vld [vmem:[%s5399_s1 + $0x298] sm:$0xff]  ;;  %v4201_v30 = vld [vmem:[%s5399_s1 + $0x210] sm:$0xff] }
  0x20   :  { %2442 = vmatpush.bf16.msra.mxu2 %v4151_v31  ;;  %v4227_v25 = vld [vmem:[%s5399_s1 + $0x2e0] sm:$0xff]  ;;  %v4226_v29 = vld [vmem:[%s5399_s1 + $0x2d8] sm:$0xff]  ;;  %v4209_v31 = vld [vmem:[%s5399_s1 + $0x250] sm:$0xff] }
  0x21   :  { %2455 = vmatpush.bf16.msra.mxu3 %v4159_v32  ;;  %2417 = vmatmul.bf16.vlgmr.msra.gmra.mxu0 %v601_v39  ;;  %v4217_v32 = vld [vmem:[%s5399_s1 + $0x290] sm:$0xff]  ;;  %v4207_v39 = vld [vmem:[%s5399_s1 + $0x240] sm:$0xff] }
  0x22   :  { %2461 = vmatpush.bf16.msrb.mxu0 %v4174_v33  ;;  %2430 = vmatmul.bf16.vlgmr.msra.gmra.mxu1 %v602_v42  ;;  %v4225_v33 = vld [vmem:[%s5399_s1 + $0x2d0] sm:$0xff]  ;;  %v4238_v42 = vld [vmem:[%s5399_s1 + $0x338] sm:$0xff] }
  0x23   :  { %2474 = vmatpush.bf16.msrb.mxu1 %v4182_v34  ;;  %2443 = vmatmul.bf16.vlgmr.msra.gmra.mxu2 %v603_v38  ;;  %v4200_v34 = vld [vmem:[%s5399_s1 + $0x208] sm:$0xff]  ;;  %v4199_v38 = vld [vmem:[%s5399_s1 + $0x200] sm:$0xff] }
  0x24   :  { %2487 = vmatpush.bf16.msrb.mxu2 %v4190_v35  ;;  %2456 = vmatmul.bf16.vlgmr.msra.gmra.mxu3 %v604_v41  ;;  %v4208_v35 = vld [vmem:[%s5399_s1 + $0x248] sm:$0xff]  ;;  %v4223_v41 = vld [vmem:[%s5399_s1 + $0x2c0] sm:$0xff] }
  0x25   :  { %2500 = vmatpush.bf16.msrb.mxu3 %v4198_v36  ;;  %v4216_v36 = vld [vmem:[%s5399_s1 + $0x288] sm:$0xff] }
  0x26   :  { %2462 = vmatpush.bf16.msrb.mxu0 %v4173_v37  ;;  %v4224_v37 = vld [vmem:[%s5399_s1 + $0x2c8] sm:$0xff] }
  0x27   :  { %2475 = vmatpush.bf16.msrb.mxu1 %v4181_v40  ;;  %v4215_v40 = vld [vmem:[%s5399_s1 + $0x280] sm:$0xff]  ;;  %v612_v49 = vld [vmem:[#allocation1 + $0x9] sm:$0xff] }
  0x28   :  { %2488 = vmatpush.bf16.msrb.mxu2 %v4189_v43  ;;  %v4246_v43 = vld [vmem:[%s5399_s1 + $0x378] sm:$0xff] }
  0x29   :  { %2501 = vmatpush.bf16.msrb.mxu3 %v4197_v44  ;;  %v20_v44 = vld [vmem:[%s5400_s0 + $0x10] sm:$0xff] }
  0x2a   :  { %2463 = vmatpush.bf16.msrb.mxu0 %v4172_v45  ;;  %v4254_v45 = vld [vmem:[%s5399_s1 + $0x3b8] sm:$0xff] }
  0x2b   :  { %2476 = vmatpush.bf16.msrb.mxu1 %v4180_v46  ;;  %v4262_v46 = vld [vmem:[%s5399_s1 + $0x3f8] sm:$0xff] }
  0x2c   :  { %2489 = vmatpush.bf16.msrb.mxu2 %v4188_v47  ;;  %v611_v47 = vld [vmem:[#allocation1] sm:$0xff] }
  0x2d   :  { %2502 = vmatpush.bf16.msrb.mxu3 %v4196_v48  ;;  %v613_v48 = vld [vmem:[#allocation1 + $0x12] sm:$0xff] }
  0x2e   :  { %2464 = vmatpush.bf16.msrb.mxu0 %v4171_v54  ;;  %v4261_v54 = vld [vmem:[%s5399_s1 + $0x3f0] sm:$0xff] }
  0x2f   :  { %2477 = vmatpush.bf16.msrb.mxu1 %v4179_v55  ;;  %v4780_v55 = vld [vmem:[#allocation1 + $0x24] sm:$0xff] }
  0x30   :  { %2490 = vmatpush.bf16.msrb.mxu2 %v4187_v56  ;;  %v4782_v56 = vld [vmem:[#allocation1 + $0x36] sm:$0xff] }
  0x31   :  { %2503 = vmatpush.bf16.msrb.mxu3 %v4195_v57  ;;  %v4784_v57 = vld [vmem:[#allocation1 + $0x2d] sm:$0xff] }
  0x32   :  { %2465 = vmatpush.bf16.msrb.mxu0 %v4170_v58  ;;  %v4786_v58 = vld [vmem:[#allocation1 + $0x3f] sm:$0xff] }
  0x33   :  { %2478 = vmatpush.bf16.msrb.mxu1 %v4178_v59  ;;  %v4236_v59 = vld [vmem:[%s5399_s1 + $0x328] sm:$0xff] }
  0x34   :  { %2491 = vmatpush.bf16.msrb.mxu2 %v4186_v60  ;;  %v4244_v60 = vld [vmem:[%s5399_s1 + $0x368] sm:$0xff] }
  0x35   :  { %2504 = vmatpush.bf16.msrb.mxu3 %v4194_v61  ;;  %v4252_v61 = vld [vmem:[%s5399_s1 + $0x3a8] sm:$0xff] }
  0x36   :  { %2466 = vmatpush.bf16.msrb.mxu0 %v4169_v62  ;;  %v4260_v62 = vld [vmem:[%s5399_s1 + $0x3e8] sm:$0xff] }
  0x37   :  { %2479 = vmatpush.bf16.msrb.mxu1 %v4177_v63  ;;  %v4235_v63 = vld [vmem:[%s5399_s1 + $0x320] sm:$0xff] }
  0x38   :  { %2492 = vmatpush.bf16.msrb.mxu2 %v4185_v0  ;;  %v4243_v0 = vld [vmem:[%s5399_s1 + $0x360] sm:$0xff] }
  0x39   :  { %2505 = vmatpush.bf16.msrb.mxu3 %v4193_v1  ;;  %v4251_v1 = vld [vmem:[%s5399_s1 + $0x3a0] sm:$0xff] }
  0x3a   :  { %2467 = vmatpush.bf16.msrb.mxu0 %v4168_v2  ;;  %v4259_v2 = vld [vmem:[%s5399_s1 + $0x3e0] sm:$0xff] }
  0x3b   :  { %2480 = vmatpush.bf16.msrb.mxu1 %v4176_v3  ;;  %v4234_v3 = vld [vmem:[%s5399_s1 + $0x318] sm:$0xff] }
  0x3c   :  { %2493 = vmatpush.bf16.msrb.mxu2 %v4184_v4  ;;  %v4242_v4 = vld [vmem:[%s5399_s1 + $0x358] sm:$0xff] }
  0x3d   :  { %2506 = vmatpush.bf16.msrb.mxu3 %v4192_v5  ;;  %v4250_v5 = vld [vmem:[%s5399_s1 + $0x398] sm:$0xff] }
  0x3e   :  { %2468 = vmatpush.bf16.msrb.mxu0 %v4167_v6  ;;  %v4258_v6 = vld [vmem:[%s5399_s1 + $0x3d8] sm:$0xff] }
  0x3f   :  { %2481 = vmatpush.bf16.msrb.mxu1 %v4175_v7  ;;  %v4233_v7 = vld [vmem:[%s5399_s1 + $0x310] sm:$0xff] }
  0x40   :  { %2494 = vmatpush.bf16.msrb.mxu2 %v4183_v8  ;;  %v4241_v8 = vld [vmem:[%s5399_s1 + $0x350] sm:$0xff] }
  0x41   :  { %2507 = vmatpush.bf16.msrb.mxu3 %v4191_v9  ;;  %2469 = vmatmul.bf16.vlgmr.msrb.gmra.mxu0 %v605_v51  ;;  %v4237_v51 = vld [vmem:[%s5399_s1 + $0x330] sm:$0xff] }
  0x42   :  { %2513 = vmatpush.bf16.msra.mxu0 %v4206_v10  ;;  %2482 = vmatmul.bf16.vlgmr.msrb.gmra.mxu1 %v606_v53  ;;  %v4253_v53 = vld [vmem:[%s5399_s1 + $0x3b0] sm:$0xff] }
  0x43   :  { %2526 = vmatpush.bf16.msra.mxu1 %v4214_v11  ;;  %2495 = vmatmul.bf16.vlgmr.msrb.gmra.mxu2 %v607_v50  ;;  %v614_v50 = vld [vmem:[#allocation1 + $0x1b] sm:$0xff]  ;;  %v4249_v9 = vld [vmem:[%s5399_s1 + $0x390] sm:$0xff]  ;;  %v4232_v11 = vld [vmem:[%s5399_s1 + $0x308] sm:$0xff] }
  0x44   :  { %2539 = vmatpush.bf16.msra.mxu2 %v4222_v12  ;;  %2508 = vmatmul.bf16.vlgmr.msrb.gmra.mxu3 %v608_v52  ;;  %v4245_v52 = vld [vmem:[%s5399_s1 + $0x370] sm:$0xff]  ;;  %620 = vst [vmem:[#allocation1] ss:$9 sm:$0xff] %v20_v44  ;;  %v4240_v12 = vld [vmem:[%s5399_s1 + $0x348] sm:$0xff] }
  0x45   :  { %2552 = vmatpush.bf16.msra.mxu3 %v4230_v13  ;;  %v4257_v10 = vld [vmem:[%s5399_s1 + $0x3d0] sm:$0xff]  ;;  %v4248_v13 = vld [vmem:[%s5399_s1 + $0x388] sm:$0xff] }
  0x46   :  { %2514 = vmatpush.bf16.msra.mxu0 %v4205_v14  ;;  %v4256_v14 = vld [vmem:[%s5399_s1 + $0x3c8] sm:$0xff] }
  0x47   :  { %2527 = vmatpush.bf16.msra.mxu1 %v4213_v15  ;;  %v4231_v15 = vld [vmem:[%s5399_s1 + $0x300] sm:$0xff]  ;;  %v4272_v44 = vld [vmem:[%s5399_s1 + $0x448] sm:$0xff] }
  0x48   :  { %2540 = vmatpush.bf16.msra.mxu2 %v4221_v16  ;;  %v4239_v16 = vld [vmem:[%s5399_s1 + $0x340] sm:$0xff] }
  0x49   :  { %2553 = vmatpush.bf16.msra.mxu3 %v4229_v17  ;;  %v4247_v17 = vld [vmem:[%s5399_s1 + $0x380] sm:$0xff] }
  0x4a   :  { %2515 = vmatpush.bf16.msra.mxu0 %v4204_v18  ;;  %v4255_v18 = vld [vmem:[%s5399_s1 + $0x3c0] sm:$0xff] }
  0x4b   :  { %2528 = vmatpush.bf16.msra.mxu1 %v4212_v19  ;;  %v4270_v19 = vld [vmem:[%s5399_s1 + $0x438] sm:$0xff] }
  0x4c   :  { %2541 = vmatpush.bf16.msra.mxu2 %v4220_v20  ;;  %v4278_v20 = vld [vmem:[%s5399_s1 + $0x478] sm:$0xff] }
  0x4d   :  { %2554 = vmatpush.bf16.msra.mxu3 %v4228_v21  ;;  %v4286_v21 = vld [vmem:[%s5399_s1 + $0x4b8] sm:$0xff] }
  0x4e   :  { %2516 = vmatpush.bf16.msra.mxu0 %v4203_v22  ;;  %v4294_v22 = vld [vmem:[%s5399_s1 + $0x4f8] sm:$0xff] }
  0x4f   :  { %2529 = vmatpush.bf16.msra.mxu1 %v4211_v23  ;;  %v4269_v23 = vld [vmem:[%s5399_s1 + $0x430] sm:$0xff] }
  0x50   :  { %2542 = vmatpush.bf16.msra.mxu2 %v4219_v24  ;;  %v4277_v24 = vld [vmem:[%s5399_s1 + $0x470] sm:$0xff] }
  0x51   :  { %2555 = vmatpush.bf16.msra.mxu3 %v4227_v25  ;;  %v4285_v25 = vld [vmem:[%s5399_s1 + $0x4b0] sm:$0xff] }
  0x52   :  { %2517 = vmatpush.bf16.msra.mxu0 %v4202_v26  ;;  %v4293_v26 = vld [vmem:[%s5399_s1 + $0x4f0] sm:$0xff] }
  0x53   :  { %2530 = vmatpush.bf16.msra.mxu1 %v4210_v27  ;;  %v4268_v27 = vld [vmem:[%s5399_s1 + $0x428] sm:$0xff] }
  0x54   :  { %2543 = vmatpush.bf16.msra.mxu2 %v4218_v28  ;;  %v4276_v28 = vld [vmem:[%s5399_s1 + $0x468] sm:$0xff] }
  0x55   :  { %2556 = vmatpush.bf16.msra.mxu3 %v4226_v29  ;;  %v4284_v29 = vld [vmem:[%s5399_s1 + $0x4a8] sm:$0xff] }
  0x56   :  { %2518 = vmatpush.bf16.msra.mxu0 %v4201_v30  ;;  %v4292_v30 = vld [vmem:[%s5399_s1 + $0x4e8] sm:$0xff] }
  0x57   :  { %2531 = vmatpush.bf16.msra.mxu1 %v4209_v31  ;;  %v4267_v31 = vld [vmem:[%s5399_s1 + $0x420] sm:$0xff] }
  0x58   :  { %2544 = vmatpush.bf16.msra.mxu2 %v4217_v32  ;;  %v4275_v32 = vld [vmem:[%s5399_s1 + $0x460] sm:$0xff] }
  0x59   :  { %2557 = vmatpush.bf16.msra.mxu3 %v4225_v33  ;;  %v4283_v33 = vld [vmem:[%s5399_s1 + $0x4a0] sm:$0xff] }
  0x5a   :  { %2519 = vmatpush.bf16.msra.mxu0 %v4200_v34  ;;  %v4291_v34 = vld [vmem:[%s5399_s1 + $0x4e0] sm:$0xff] }
  0x5b   :  { %2532 = vmatpush.bf16.msra.mxu1 %v4208_v35  ;;  %v4266_v35 = vld [vmem:[%s5399_s1 + $0x418] sm:$0xff] }
  0x5c   :  { %2545 = vmatpush.bf16.msra.mxu2 %v4216_v36  ;;  %v4274_v36 = vld [vmem:[%s5399_s1 + $0x458] sm:$0xff] }
  0x5d   :  { %2558 = vmatpush.bf16.msra.mxu3 %v4224_v37  ;;  %v4282_v37 = vld [vmem:[%s5399_s1 + $0x498] sm:$0xff] }
  0x5e   :  { %2520 = vmatpush.bf16.msra.mxu0 %v4199_v38  ;;  %v4290_v38 = vld [vmem:[%s5399_s1 + $0x4d8] sm:$0xff] }
  0x5f   :  { %2533 = vmatpush.bf16.msra.mxu1 %v4207_v39  ;;  %v4265_v39 = vld [vmem:[%s5399_s1 + $0x410] sm:$0xff] }
  0x60   :  { %2546 = vmatpush.bf16.msra.mxu2 %v4215_v40  ;;  %v4273_v40 = vld [vmem:[%s5399_s1 + $0x450] sm:$0xff] }
  0x61   :  { %2559 = vmatpush.bf16.msra.mxu3 %v4223_v41  ;;  %2521 = vmatmul.bf16.vlgmr.msra.gmra.mxu0 %v611_v47  ;;  %v4281_v41 = vld [vmem:[%s5399_s1 + $0x490] sm:$0xff]  ;;  %v4263_v47 = vld [vmem:[%s5399_s1 + $0x400] sm:$0xff] }
  0x62   :  { %2565 = vmatpush.bf16.msrb.mxu0 %v4238_v42  ;;  %2534 = vmatmul.bf16.vlgmr.msra.gmra.mxu1 %v612_v49  ;;  %v4289_v42 = vld [vmem:[%s5399_s1 + $0x4d0] sm:$0xff]  ;;  %v4279_v49 = vld [vmem:[%s5399_s1 + $0x480] sm:$0xff] }
  0x63   :  { %2578 = vmatpush.bf16.msrb.mxu1 %v4246_v43  ;;  %2547 = vmatmul.bf16.vlgmr.msra.gmra.mxu2 %v613_v48  ;;  %v4264_v43 = vld [vmem:[%s5399_s1 + $0x408] sm:$0xff]  ;;  %v4271_v48 = vld [vmem:[%s5399_s1 + $0x440] sm:$0xff] }
  0x64   :  { %2591 = vmatpush.bf16.msrb.mxu2 %v4254_v45  ;;  %2560 = vmatmul.bf16.vlgmr.msra.gmra.mxu3 %v614_v50  ;;  %v4280_v45 = vld [vmem:[%s5399_s1 + $0x488] sm:$0xff]  ;;  %v4287_v50 = vld [vmem:[%s5399_s1 + $0x4c0] sm:$0xff] }
  0x65   :  { %2604 = vmatpush.bf16.msrb.mxu3 %v4262_v46  ;;  %v4288_v46 = vld [vmem:[%s5399_s1 + $0x4c8] sm:$0xff] }
  0x66   :  { %2566 = vmatpush.bf16.msrb.mxu0 %v4237_v51  ;;  %v4302_v51 = vld [vmem:[%s5399_s1 + $0x538] sm:$0xff] }
  0x67   :  { %2579 = vmatpush.bf16.msrb.mxu1 %v4245_v52  ;;  %v4310_v52 = vld [vmem:[%s5399_s1 + $0x578] sm:$0xff] }
  0x68   :  { %2592 = vmatpush.bf16.msrb.mxu2 %v4253_v53  ;;  %v21_v53 = vld [vmem:[%s5400_s0 + $0x18] sm:$0xff] }
  0x69   :  { %2605 = vmatpush.bf16.msrb.mxu3 %v4261_v54  ;;  %v4318_v54 = vld [vmem:[%s5399_s1 + $0x5b8] sm:$0xff] }
  0x6a   :  { %2567 = vmatpush.bf16.msrb.mxu0 %v4236_v59  ;;  %v624_v59 = vld [vmem:[#allocation1 + $0x1b] sm:$0xff] }
  0x6b   :  { %2580 = vmatpush.bf16.msrb.mxu1 %v4244_v60  ;;  %v4301_v60 = vld [vmem:[%s5399_s1 + $0x530] sm:$0xff] }
  0x6c   :  { %2593 = vmatpush.bf16.msrb.mxu2 %v4252_v61  ;;  %v4309_v61 = vld [vmem:[%s5399_s1 + $0x570] sm:$0xff] }
  0x6d   :  { %2606 = vmatpush.bf16.msrb.mxu3 %v4260_v62  ;;  %v4317_v62 = vld [vmem:[%s5399_s1 + $0x5b0] sm:$0xff] }
  0x6e   :  { %2568 = vmatpush.bf16.msrb.mxu0 %v4235_v63  ;;  %v4325_v63 = vld [vmem:[%s5399_s1 + $0x5f0] sm:$0xff] }
  0x6f   :  { %2581 = vmatpush.bf16.msrb.mxu1 %v4243_v0  ;;  %v4987_v0 = vld [vmem:[#allocation1 + $0x24] sm:$0xff] }
  0x70   :  { %2594 = vmatpush.bf16.msrb.mxu2 %v4251_v1  ;;  %v4989_v1 = vld [vmem:[#allocation1 + $0x36] sm:$0xff] }
  0x71   :  { %2607 = vmatpush.bf16.msrb.mxu3 %v4259_v2  ;;  %v4991_v2 = vld [vmem:[#allocation1 + $0x2d] sm:$0xff] }
  0x72   :  { %2569 = vmatpush.bf16.msrb.mxu0 %v4234_v3  ;;  %v4993_v3 = vld [vmem:[#allocation1 + $0x3f] sm:$0xff] }
  0x73   :  { %2582 = vmatpush.bf16.msrb.mxu1 %v4242_v4  ;;  %v4300_v4 = vld [vmem:[%s5399_s1 + $0x528] sm:$0xff] }
  0x74   :  { %2595 = vmatpush.bf16.msrb.mxu2 %v4250_v5  ;;  %v4308_v5 = vld [vmem:[%s5399_s1 + $0x568] sm:$0xff] }
  0x75   :  { %2608 = vmatpush.bf16.msrb.mxu3 %v4258_v6  ;;  %v4316_v6 = vld [vmem:[%s5399_s1 + $0x5a8] sm:$0xff] }
  0x76   :  { %2570 = vmatpush.bf16.msrb.mxu0 %v4233_v7  ;;  %v4324_v7 = vld [vmem:[%s5399_s1 + $0x5e8] sm:$0xff] }
  0x77   :  { %2583 = vmatpush.bf16.msrb.mxu1 %v4241_v8 }
  0x78   :  { %2596 = vmatpush.bf16.msrb.mxu2 %v4249_v9  ;;  %v4299_v9 = vld [vmem:[%s5399_s1 + $0x520] sm:$0xff] }
  0x79   :  { %2609 = vmatpush.bf16.msrb.mxu3 %v4257_v10  ;;  %v4307_v10 = vld [vmem:[%s5399_s1 + $0x560] sm:$0xff] }
  0x7a   :  { %2571 = vmatpush.bf16.msrb.mxu0 %v4232_v11 }
  0x7b   :  { %2584 = vmatpush.bf16.msrb.mxu1 %v4240_v12  ;;  %v4315_v12 = vld [vmem:[%s5399_s1 + $0x5a0] sm:$0xff] }
  0x7c   :  { %2597 = vmatpush.bf16.msrb.mxu2 %v4248_v13  ;;  %v4323_v13 = vld [vmem:[%s5399_s1 + $0x5e0] sm:$0xff] }
  0x7d   :  { %2610 = vmatpush.bf16.msrb.mxu3 %v4256_v14 }
  0x7e   :  { %2572 = vmatpush.bf16.msrb.mxu0 %v4231_v15  ;;  %v4298_v15 = vld [vmem:[%s5399_s1 + $0x518] sm:$0xff] }
  0x7f   :  { %2585 = vmatpush.bf16.msrb.mxu1 %v4239_v16  ;;  %v4306_v16 = vld [vmem:[%s5399_s1 + $0x558] sm:$0xff] }
  0x80   :  { %2598 = vmatpush.bf16.msrb.mxu2 %v4247_v17  ;;  %v4314_v17 = vld [vmem:[%s5399_s1 + $0x598] sm:$0xff] }
  0x81   :  { %2611 = vmatpush.bf16.msrb.mxu3 %v4255_v18  ;;  %2573 = vmatmul.bf16.vlgmr.msrb.gmra.mxu0 %v4780_v55  ;;  %v4326_v55 = vld [vmem:[%s5399_s1 + $0x5f8] sm:$0xff] }
  0x82   :  { %2617 = vmatpush.bf16.msra.mxu0 %v4270_v19  ;;  %2586 = vmatmul.bf16.vlgmr.msrb.gmra.mxu1 %v4784_v57  ;;  %v623_v57 = vld [vmem:[#allocation1 + $0x12] sm:$0xff] }
  0x83   :  { %2630 = vmatpush.bf16.msra.mxu1 %v4278_v20  ;;  %2599 = vmatmul.bf16.vlgmr.msrb.gmra.mxu2 %v4782_v56  ;;  %v621_v56 = vld [vmem:[#allocation1] sm:$0xff]  ;;  %v4322_v18 = vld [vmem:[%s5399_s1 + $0x5d8] sm:$0xff] }
  0x84   :  { %2643 = vmatpush.bf16.msra.mxu2 %v4286_v21  ;;  %2612 = vmatmul.bf16.vlgmr.msrb.gmra.mxu3 %v4786_v58  ;;  %v622_v58 = vld [vmem:[#allocation1 + $0x9] sm:$0xff] }
  0x85   :  { %2656 = vmatpush.bf16.msra.mxu3 %v4294_v22  ;;  %630 = vst [vmem:[#allocation1] ss:$9 sm:$0xff] %v21_v53  ;;  %v4339_v53 = vld [vmem:[%s5399_s1 + $0x660] sm:$0xff] }
  0x86   :  { %2618 = vmatpush.bf16.msra.mxu0 %v4269_v23  ;;  %v4297_v23 = vld [vmem:[%s5399_s1 + $0x510] sm:$0xff] }
  0x87   :  { %2631 = vmatpush.bf16.msra.mxu1 %v4277_v24  ;;  %v4305_v24 = vld [vmem:[%s5399_s1 + $0x550] sm:$0xff] }
  0x88   :  { %2644 = vmatpush.bf16.msra.mxu2 %v4285_v25 }
  0x89   :  { %2657 = vmatpush.bf16.msra.mxu3 %v4293_v26 }
  0x8a   :  { %2619 = vmatpush.bf16.msra.mxu0 %v4268_v27  ;;  %v4313_v27 = vld [vmem:[%s5399_s1 + $0x590] sm:$0xff] }
  0x8b   :  { %2632 = vmatpush.bf16.msra.mxu1 %v4276_v28  ;;  %v4321_v28 = vld [vmem:[%s5399_s1 + $0x5d0] sm:$0xff] }
  0x8c   :  { %2645 = vmatpush.bf16.msra.mxu2 %v4284_v29  ;;  %v4296_v29 = vld [vmem:[%s5399_s1 + $0x508] sm:$0xff] }
  0x8d   :  { %2658 = vmatpush.bf16.msra.mxu3 %v4292_v30  ;;  %v4304_v30 = vld [vmem:[%s5399_s1 + $0x548] sm:$0xff] }
  0x8e   :  { %2620 = vmatpush.bf16.msra.mxu0 %v4267_v31  ;;  %v4312_v31 = vld [vmem:[%s5399_s1 + $0x588] sm:$0xff] }
  0x8f   :  { %2633 = vmatpush.bf16.msra.mxu1 %v4275_v32  ;;  %v4320_v32 = vld [vmem:[%s5399_s1 + $0x5c8] sm:$0xff] }
  0x90   :  { %2646 = vmatpush.bf16.msra.mxu2 %v4283_v33 }
  0x91   :  { %2659 = vmatpush.bf16.msra.mxu3 %v4291_v34 }
  0x92   :  { %2621 = vmatpush.bf16.msra.mxu0 %v4266_v35  ;;  %v4295_v35 = vld [vmem:[%s5399_s1 + $0x500] sm:$0xff] }
  0x93   :  { %2634 = vmatpush.bf16.msra.mxu1 %v4274_v36  ;;  %v4303_v36 = vld [vmem:[%s5399_s1 + $0x540] sm:$0xff] }
  0x94   :  { %2647 = vmatpush.bf16.msra.mxu2 %v4282_v37  ;;  %v4311_v37 = vld [vmem:[%s5399_s1 + $0x580] sm:$0xff] }
  0x95   :  { %2660 = vmatpush.bf16.msra.mxu3 %v4290_v38  ;;  %v4319_v38 = vld [vmem:[%s5399_s1 + $0x5c0] sm:$0xff] }
  0x96   :  { %2622 = vmatpush.bf16.msra.mxu0 %v4265_v39  ;;  %v4334_v39 = vld [vmem:[%s5399_s1 + $0x638] sm:$0xff] }
  0x97   :  { %2635 = vmatpush.bf16.msra.mxu1 %v4273_v40  ;;  %v4342_v40 = vld [vmem:[%s5399_s1 + $0x678] sm:$0xff] }
  0x98   :  { %2648 = vmatpush.bf16.msra.mxu2 %v4281_v41  ;;  %v4350_v41 = vld [vmem:[%s5399_s1 + $0x6b8] sm:$0xff] }
  0x99   :  { %2661 = vmatpush.bf16.msra.mxu3 %v4289_v42  ;;  %v4358_v42 = vld [vmem:[%s5399_s1 + $0x6f8] sm:$0xff] }
  0x9a   :  { %2623 = vmatpush.bf16.msra.mxu0 %v4264_v43  ;;  %v4333_v43 = vld [vmem:[%s5399_s1 + $0x630] sm:$0xff] }
  0x9b   :  { %2636 = vmatpush.bf16.msra.mxu1 %v4272_v44  ;;  %v4341_v44 = vld [vmem:[%s5399_s1 + $0x670] sm:$0xff] }
  0x9c   :  { %2649 = vmatpush.bf16.msra.mxu2 %v4280_v45  ;;  %v4349_v45 = vld [vmem:[%s5399_s1 + $0x6b0] sm:$0xff] }
  0x9d   :  { %2662 = vmatpush.bf16.msra.mxu3 %v4288_v46  ;;  %v4357_v46 = vld [vmem:[%s5399_s1 + $0x6f0] sm:$0xff] }
  0x9e   :  { %2624 = vmatpush.bf16.msra.mxu0 %v4263_v47  ;;  %v2418_v8 = vpop.f32.mrf.mxu0  ;;  %v4332_v47 = vld [vmem:[%s5399_s1 + $0x628] sm:$0xff] }
  0x9f   :  { %2637 = vmatpush.bf16.msra.mxu1 %v4271_v48  ;;  %v2431_v11 = vpop.f32.mrf.mxu1  ;;  %v4340_v48 = vld [vmem:[%s5399_s1 + $0x668] sm:$0xff] }
  0xa0   :  { %2650 = vmatpush.bf16.msra.mxu2 %v4279_v49  ;;  %v2432_v14 = vadd.f32 %v2431_v11, %v2418_v8  ;;  %v4348_v49 = vld [vmem:[%s5399_s1 + $0x6a8] sm:$0xff]  ;;  %v4353_v8 = vld [vmem:[%s5399_s1 + $0x6d0] sm:$0xff] }
  0xa1   :  { %2663 = vmatpush.bf16.msra.mxu3 %v4287_v50  ;;  %2625 = vmatmul.bf16.vlgmr.msra.gmra.mxu0 %v621_v56  ;;  %v4356_v50 = vld [vmem:[%s5399_s1 + $0x6e8] sm:$0xff]  ;;  %v4347_v56 = vld [vmem:[%s5399_s1 + $0x6a0] sm:$0xff] }
  0xa2   :  { %2669 = vmatpush.bf16.msrb.mxu0 %v4302_v51  ;;  %2638 = vmatmul.bf16.vlgmr.msra.gmra.mxu1 %v622_v58  ;;  %v4344_v11 = vld [vmem:[%s5399_s1 + $0x688] sm:$0xff] }
  0xa3   :  { %2682 = vmatpush.bf16.msrb.mxu1 %v4310_v52  ;;  %2651 = vmatmul.bf16.vlgmr.msra.gmra.mxu2 %v623_v57  ;;  %v4331_v52 = vld [vmem:[%s5399_s1 + $0x620] sm:$0xff] }
  0xa4   :  { %2695 = vmatpush.bf16.msrb.mxu2 %v4318_v54  ;;  %2664 = vmatmul.bf16.vlgmr.msra.gmra.mxu3 %v624_v59  ;;  %v4355_v57 = vld [vmem:[%s5399_s1 + $0x6e0] sm:$0xff]  ;;  %v4330_v59 = vld [vmem:[%s5399_s1 + $0x618] sm:$0xff] }
  0xa5   :  { %2708 = vmatpush.bf16.msrb.mxu3 %v4326_v55 }
  0xa6   :  { %2670 = vmatpush.bf16.msrb.mxu0 %v4301_v60  ;;  %v2444_v19 = vpop.f32.mrf.mxu2  ;;  %v2420_v22 = vpop.f32.mrf.mxu0  ;;  %v4338_v60 = vld [vmem:[%s5399_s1 + $0x658] sm:$0xff] }
  0xa7   :  { %2683 = vmatpush.bf16.msrb.mxu1 %v4309_v61  ;;  %v2445_v20 = vadd.f32 %v2444_v19, %v2432_v14  ;;  %v2457_v21 = vpop.f32.mrf.mxu3  ;;  %v2433_v26 = vpop.f32.mrf.mxu1  ;;  %v4346_v61 = vld [vmem:[%s5399_s1 + $0x698] sm:$0xff] }
  0xa8   :  { %2696 = vmatpush.bf16.msrb.mxu2 %v4317_v62  ;;  %v4354_v62 = vld [vmem:[%s5399_s1 + $0x6d8] sm:$0xff]  ;;  %v632_v26 = vld [vmem:[#allocation1 + $0x9] sm:$0xff] }
  0xa9   :  { %2709 = vmatpush.bf16.msrb.mxu3 %v4325_v63  ;;  %v2458_v25 = vadd.f32 %v2457_v21, %v2445_v20  ;;  %v4366_v19 = vld [vmem:[%s5399_s1 + $0x738] sm:$0xff]  ;;  %v22_v21 = vld [vmem:[%s5400_s0 + $0x20] sm:$0xf] }
  0xaa   :  { %2671 = vmatpush.bf16.msrb.mxu0 %v4300_v4  ;;  %v4337_v4 = vld [vmem:[%s5399_s1 + $0x650] sm:$0xff]  ;;  %v4374_v20 = vld [vmem:[%s5399_s1 + $0x778] sm:$0xff] }
  0xab   :  { %2684 = vmatpush.bf16.msrb.mxu1 %v4308_v5  ;;  %v4382_v22 = vld [vmem:[%s5399_s1 + $0x7b8] sm:$0xff] }
  0xac   :  { %2697 = vmatpush.bf16.msrb.mxu2 %v4316_v6 }
  0xad   :  { %2710 = vmatpush.bf16.msrb.mxu3 %v4324_v7  ;;  %v4345_v7 = vld [vmem:[%s5399_s1 + $0x690] sm:$0xff] }
  0xae   :  { %2672 = vmatpush.bf16.msrb.mxu0 %v4299_v9  ;;  %v2446_v33 = vpop.f32.mrf.mxu2  ;;  %v4328_v9 = vld [vmem:[%s5399_s1 + $0x608] sm:$0xff] }
  0xaf   :  { %2685 = vmatpush.bf16.msrb.mxu1 %v4307_v10  ;;  %v2459_v34 = vpop.f32.mrf.mxu3  ;;  %v4336_v10 = vld [vmem:[%s5399_s1 + $0x648] sm:$0xff]  ;;  %v5198_v33 = vld [vmem:[#allocation1 + $0x36] sm:$0xff] }
  0xb0   :  { %2698 = vmatpush.bf16.msrb.mxu2 %v4315_v12  ;;  %v4352_v12 = vld [vmem:[%s5399_s1 + $0x6c8] sm:$0xff] }
  0xb1   :  { %2711 = vmatpush.bf16.msrb.mxu3 %v4323_v13  ;;  %v5200_v34 = vld [vmem:[#allocation1 + $0x2d] sm:$0xff] }
  0xb2   :  { %2673 = vmatpush.bf16.msrb.mxu0 %v4298_v15  ;;  %v4327_v15 = vld [vmem:[%s5399_s1 + $0x600] sm:$0xff] }
  0xb3   :  { %2686 = vmatpush.bf16.msrb.mxu1 %v4306_v16  ;;  %v4335_v16 = vld [vmem:[%s5399_s1 + $0x640] sm:$0xff] }
  0xb4   :  { %2699 = vmatpush.bf16.msrb.mxu2 %v4314_v17  ;;  %v4343_v17 = vld [vmem:[%s5399_s1 + $0x680] sm:$0xff] }
  0xb5   :  { %2712 = vmatpush.bf16.msrb.mxu3 %v4322_v18  ;;  %v4351_v18 = vld [vmem:[%s5399_s1 + $0x6c0] sm:$0xff] }
  0xb6   :  { %2674 = vmatpush.bf16.msrb.mxu0 %v4297_v23  ;;  %v4390_v23 = vld [vmem:[%s5399_s1 + $0x7f8] sm:$0xff] }
  0xb7   :  { %2687 = vmatpush.bf16.msrb.mxu1 %v4305_v24  ;;  %v631_v24 = vld [vmem:[#allocation1] sm:$0xff] }
  0xb8   :  { %2700 = vmatpush.bf16.msrb.mxu2 %v4313_v27  ;;  %v634_v27 = vld [vmem:[#allocation1 + $0x1b] sm:$0xff] }
  0xb9   :  { %2713 = vmatpush.bf16.msrb.mxu3 %v4321_v28  ;;  %v4365_v28 = vld [vmem:[%s5399_s1 + $0x730] sm:$0xff] }
  0xba   :  { %2675 = vmatpush.bf16.msrb.mxu0 %v4296_v29  ;;  %v4373_v29 = vld [vmem:[%s5399_s1 + $0x770] sm:$0xff] }
  0xbb   :  { %2688 = vmatpush.bf16.msrb.mxu1 %v4304_v30  ;;  %v4381_v30 = vld [vmem:[%s5399_s1 + $0x7b0] sm:$0xff] }
  0xbc   :  { %2701 = vmatpush.bf16.msrb.mxu2 %v4312_v31  ;;  %v4389_v31 = vld [vmem:[%s5399_s1 + $0x7f0] sm:$0xff] }
  0xbd   :  { %2714 = vmatpush.bf16.msrb.mxu3 %v4320_v32  ;;  %v5196_v32 = vld [vmem:[#allocation1 + $0x24] sm:$0xff] }
  0xbe   :  { %2676 = vmatpush.bf16.msrb.mxu0 %v4295_v35  ;;  %v2470_v51 = vpop.f32.mrf.mxu0  ;;  %v5202_v35 = vld [vmem:[#allocation1 + $0x3f] sm:$0xff] }
  0xbf   :  { %2689 = vmatpush.bf16.msrb.mxu1 %v4303_v36  ;;  %v2471_v54 = vadd.f32 %v2470_v51, %v2458_v25  ;;  %v2483_v55 = vpop.f32.mrf.mxu1  ;;  %v633_v25 = vld [vmem:[#allocation1 + $0x12] sm:$0xff]  ;;  %v4364_v36 = vld [vmem:[%s5399_s1 + $0x728] sm:$0xff] }
  0xc0   :  { %2702 = vmatpush.bf16.msrb.mxu2 %v4311_v37  ;;  %640 = vst [vmem:[#allocation1] ss:$9 sm:$0xff] %v22_v21  ;;  %v4372_v37 = vld [vmem:[%s5399_s1 + $0x768] sm:$0xff]  ;;  %v4386_v51 = vld [vmem:[%s5399_s1 + $0x7d8] sm:$0xff] }
  0xc1   :  { %2715 = vmatpush.bf16.msrb.mxu3 %v4319_v38  ;;  %2677 = vmatmul.bf16.vlgmr.msrb.gmra.mxu0 %v4987_v0  ;;  %v2484_v58 = vadd.f32 %v2483_v55, %v2471_v54  ;;  %v4380_v38 = vld [vmem:[%s5399_s1 + $0x7a8] sm:$0xff] }
  0xc2   :  { %2721 = vmatpush.bf16.msra.mxu0 %v4334_v39  ;;  %2690 = vmatmul.bf16.vlgmr.msrb.gmra.mxu1 %v4991_v2  ;;  %v4388_v39 = vld [vmem:[%s5399_s1 + $0x7e8] sm:$0xff] }
  0xc3   :  { %2734 = vmatpush.bf16.msra.mxu1 %v4342_v40  ;;  %2703 = vmatmul.bf16.vlgmr.msrb.gmra.mxu2 %v4989_v1 }
  0xc4   :  { %2747 = vmatpush.bf16.msra.mxu2 %v4350_v41  ;;  %2716 = vmatmul.bf16.vlgmr.msrb.gmra.mxu3 %v4993_v3  ;;  %v4329_v3 = vld [vmem:[%s5399_s1 + $0x610] sm:$0xff] }
  0xc5   :  { %2760 = vmatpush.bf16.msra.mxu3 %v4358_v42  ;;  %v4363_v42 = vld [vmem:[%s5399_s1 + $0x720] sm:$0xff] }
  0xc6   :  { %2722 = vmatpush.bf16.msra.mxu0 %v4333_v43  ;;  %v2496_v63 = vpop.f32.mrf.mxu2  ;;  %v2472_v2 = vpop.f32.mrf.mxu0  ;;  %v4371_v43 = vld [vmem:[%s5399_s1 + $0x760] sm:$0xff] }
  0xc7   :  { %2735 = vmatpush.bf16.msra.mxu1 %v4341_v44  ;;  %v2497_v0 = vadd.f32 %v2496_v63, %v2484_v58  ;;  %v2509_v1 = vpop.f32.mrf.mxu3  ;;  %v2485_v6 = vpop.f32.mrf.mxu1  ;;  %v4369_v58 = vld [vmem:[%s5399_s1 + $0x750] sm:$0xff]  ;;  %v4368_v63 = vld [vmem:[%s5399_s1 + $0x748] sm:$0xff] }
  0xc8   :  { %2748 = vmatpush.bf16.msra.mxu2 %v4349_v45  ;;  %v4379_v45 = vld [vmem:[%s5399_s1 + $0x7a0] sm:$0xff] }
  0xc9   :  { %2761 = vmatpush.bf16.msra.mxu3 %v4357_v46  ;;  %v5137_v5 = vadd.f32 %v2509_v1, %v2497_v0  ;;  %v4387_v46 = vld [vmem:[%s5399_s1 + $0x7e0] sm:$0xff]  ;;  %v4376_v0 = vld [vmem:[%s5399_s1 + $0x788] sm:$0xff] }
  0xca   :  { %2723 = vmatpush.bf16.msra.mxu0 %v4332_v47  ;;  %v4384_v1 = vld [vmem:[%s5399_s1 + $0x7c8] sm:$0xff]  ;;  %v4375_v6 = vld [vmem:[%s5399_s1 + $0x780] sm:$0xff] }
  0xcb   :  { %2736 = vmatpush.bf16.msra.mxu1 %v4340_v48  ;;  %v4362_v48 = vld [vmem:[%s5399_s1 + $0x718] sm:$0xff] }
  0xcc   :  { %2749 = vmatpush.bf16.msra.mxu2 %v4348_v49  ;;  %v4370_v49 = vld [vmem:[%s5399_s1 + $0x758] sm:$0xff] }
  0xcd   :  { %2762 = vmatpush.bf16.msra.mxu3 %v4356_v50  ;;  %v4378_v50 = vld [vmem:[%s5399_s1 + $0x798] sm:$0xff] }
  0xce   :  { %2724 = vmatpush.bf16.msra.mxu0 %v4331_v52  ;;  %v2498_v13 = vpop.f32.mrf.mxu2 }
  0xcf   :  { %2737 = vmatpush.bf16.msra.mxu1 %v4339_v53  ;;  %v2511_v14 = vpop.f32.mrf.mxu3  ;;  %v4405_v13 = vld [vmem:[%s5399_s1 + $0x870] sm:$0xff] }
  0xd0   :  { %2750 = vmatpush.bf16.msra.mxu2 %v4347_v56  ;;  %v4413_v14 = vld [vmem:[%s5399_s1 + $0x8b0] sm:$0xff] }
  0xd1   :  { %2763 = vmatpush.bf16.msra.mxu3 %v4355_v57  ;;  %v4361_v57 = vld [vmem:[%s5399_s1 + $0x710] sm:$0xff] }
  0xd2   :  { %2725 = vmatpush.bf16.msra.mxu0 %v4330_v59 }
  0xd3   :  { %2738 = vmatpush.bf16.msra.mxu1 %v4338_v60  ;;  %v4377_v60 = vld [vmem:[%s5399_s1 + $0x790] sm:$0xff] }
  0xd4   :  { %2751 = vmatpush.bf16.msra.mxu2 %v4346_v61  ;;  %v4385_v61 = vld [vmem:[%s5399_s1 + $0x7d0] sm:$0xff] }
  0xd5   :  { %2764 = vmatpush.bf16.msra.mxu3 %v4354_v62  ;;  %v4360_v62 = vld [vmem:[%s5399_s1 + $0x708] sm:$0xff] }
  0xd6   :  { %2726 = vmatpush.bf16.msra.mxu0 %v4329_v3 }
  0xd7   :  { %2739 = vmatpush.bf16.msra.mxu1 %v4337_v4  ;;  %v4359_v4 = vld [vmem:[%s5399_s1 + $0x700] sm:$0xff] }
  0xd8   :  { %2752 = vmatpush.bf16.msra.mxu2 %v4345_v7  ;;  %v4383_v7 = vld [vmem:[%s5399_s1 + $0x7c0] sm:$0xff] }
  0xd9   :  { %2765 = vmatpush.bf16.msra.mxu3 %v4353_v8  ;;  %v4398_v8 = vld [vmem:[%s5399_s1 + $0x838] sm:$0xff] }
  0xda   :  { %2727 = vmatpush.bf16.msra.mxu0 %v4328_v9  ;;  %v4406_v9 = vld [vmem:[%s5399_s1 + $0x878] sm:$0xff] }
  0xdb   :  { %2740 = vmatpush.bf16.msra.mxu1 %v4336_v10  ;;  %v4414_v10 = vld [vmem:[%s5399_s1 + $0x8b8] sm:$0xff] }
  0xdc   :  { %2753 = vmatpush.bf16.msra.mxu2 %v4344_v11  ;;  %v4422_v11 = vld [vmem:[%s5399_s1 + $0x8f8] sm:$0xff] }
  0xdd   :  { %2766 = vmatpush.bf16.msra.mxu3 %v4352_v12  ;;  %v4397_v12 = vld [vmem:[%s5399_s1 + $0x830] sm:$0xff] }
  0xde   :  { %2728 = vmatpush.bf16.msra.mxu0 %v4327_v15  ;;  %v2522_v40 = vpop.f32.mrf.mxu0  ;;  %v4421_v15 = vld [vmem:[%s5399_s1 + $0x8f0] sm:$0xff] }
  0xdf   :  { %2741 = vmatpush.bf16.msra.mxu1 %v4335_v16  ;;  %v2523_v41 = vadd.f32 %v2522_v40, %v5137_v5  ;;  %v2535_v44 = vpop.f32.mrf.mxu1  ;;  %v4367_v5 = vld [vmem:[%s5399_s1 + $0x740] sm:$0xff]  ;;  %v4396_v16 = vld [vmem:[%s5399_s1 + $0x828] sm:$0xff]  ;;  %v4409_v40 = vld [vmem:[%s5399_s1 + $0x890] sm:$0xff] }
  0xe0   :  { %2754 = vmatpush.bf16.msra.mxu2 %v4343_v17  ;;  %v4404_v17 = vld [vmem:[%s5399_s1 + $0x868] sm:$0xff] }
  0xe1   :  { %2767 = vmatpush.bf16.msra.mxu3 %v4351_v18  ;;  %2729 = vmatmul.bf16.vlgmr.msra.gmra.mxu0 %v631_v24  ;;  %v2536_v47 = vadd.f32 %v2535_v44, %v2523_v41  ;;  %v4412_v18 = vld [vmem:[%s5399_s1 + $0x8a8] sm:$0xff]  ;;  %v4417_v41 = vld [vmem:[%s5399_s1 + $0x8d0] sm:$0xff] }
  0xe2   :  { %2773 = vmatpush.bf16.msrb.mxu0 %v4366_v19  ;;  %2742 = vmatmul.bf16.vlgmr.msra.gmra.mxu1 %v632_v26  ;;  %v4420_v19 = vld [vmem:[%s5399_s1 + $0x8e8] sm:$0xff]  ;;  %v4419_v26 = vld [vmem:[%s5399_s1 + $0x8e0] sm:$0xff] }
  0xe3   :  { %2786 = vmatpush.bf16.msrb.mxu1 %v4374_v20  ;;  %2755 = vmatmul.bf16.vlgmr.msra.gmra.mxu2 %v633_v25  ;;  %v4411_v25 = vld [vmem:[%s5399_s1 + $0x8a0] sm:$0xff]  ;;  %v4408_v44 = vld [vmem:[%s5399_s1 + $0x888] sm:$0xff] }
  0xe4   :  { %2799 = vmatpush.bf16.msrb.mxu2 %v4382_v22  ;;  %2768 = vmatmul.bf16.vlgmr.msra.gmra.mxu3 %v634_v27  ;;  %v4395_v22 = vld [vmem:[%s5399_s1 + $0x820] sm:$0xff] }
  0xe5   :  { %2812 = vmatpush.bf16.msrb.mxu3 %v4390_v23  ;;  %v4403_v23 = vld [vmem:[%s5399_s1 + $0x860] sm:$0xff] }
  0xe6   :  { %2774 = vmatpush.bf16.msrb.mxu0 %v4365_v28  ;;  %v2548_v52 = vpop.f32.mrf.mxu2  ;;  %v2524_v55 = vpop.f32.mrf.mxu0  ;;  %v4394_v28 = vld [vmem:[%s5399_s1 + $0x818] sm:$0xff] }
  0xe7   :  { %2787 = vmatpush.bf16.msrb.mxu1 %v4373_v29  ;;  %v2549_v53 = vadd.f32 %v2548_v52, %v2536_v47  ;;  %v2561_v54 = vpop.f32.mrf.mxu3  ;;  %v2537_v59 = vpop.f32.mrf.mxu1  ;;  %v4402_v29 = vld [vmem:[%s5399_s1 + $0x858] sm:$0xff]  ;;  %v641_v52 = vld [vmem:[#allocation1] sm:$0xff] }
  0xe8   :  { %2800 = vmatpush.bf16.msrb.mxu2 %v4381_v30  ;;  %v4410_v30 = vld [vmem:[%s5399_s1 + $0x898] sm:$0xff] }
  0xe9   :  { %2813 = vmatpush.bf16.msrb.mxu3 %v4389_v31  ;;  %v2562_v56 = vadd.f32 %v2561_v54, %v2549_v53  ;;  %v4418_v31 = vld [vmem:[%s5399_s1 + $0x8d8] sm:$0xff]  ;;  %v642_v53 = vld [vmem:[#allocation1 + $0x9] sm:$0xff] }
  0xea   :  { %2775 = vmatpush.bf16.msrb.mxu0 %v4364_v36  ;;  %v643_v54 = vld [vmem:[#allocation1 + $0x12] sm:$0xff]  ;;  %v644_v55 = vld [vmem:[#allocation1 + $0x1b] sm:$0xff] }
  0xeb   :  { %2788 = vmatpush.bf16.msrb.mxu1 %v4372_v37  ;;  %v4393_v37 = vld [vmem:[%s5399_s1 + $0x810] sm:$0xff] }
  0xec   :  { %2801 = vmatpush.bf16.msrb.mxu2 %v4380_v38  ;;  %v4401_v38 = vld [vmem:[%s5399_s1 + $0x850] sm:$0xff] }
  0xed   :  { %2814 = vmatpush.bf16.msrb.mxu3 %v4388_v39 }
  0xee   :  { %2776 = vmatpush.bf16.msrb.mxu0 %v4363_v42  ;;  %v2550_v2 = vpop.f32.mrf.mxu2  ;;  %v4392_v42 = vld [vmem:[%s5399_s1 + $0x808] sm:$0xff] }
  0xef   :  { %2789 = vmatpush.bf16.msrb.mxu1 %v4371_v43  ;;  %v2563_v3 = vpop.f32.mrf.mxu3  ;;  %v4400_v43 = vld [vmem:[%s5399_s1 + $0x848] sm:$0xff] }
  0xf0   :  { %2802 = vmatpush.bf16.msrb.mxu2 %v4379_v45  ;;  %v4416_v45 = vld [vmem:[%s5399_s1 + $0x8c8] sm:$0xff] }
  0xf1   :  { %2815 = vmatpush.bf16.msrb.mxu3 %v4387_v46 }
  0xf2   :  { %2777 = vmatpush.bf16.msrb.mxu0 %v4362_v48  ;;  %v4391_v48 = vld [vmem:[%s5399_s1 + $0x800] sm:$0xff] }
  0xf3   :  { %2790 = vmatpush.bf16.msrb.mxu1 %v4370_v49  ;;  %v4399_v49 = vld [vmem:[%s5399_s1 + $0x840] sm:$0xff] }
  0xf4   :  { %2803 = vmatpush.bf16.msrb.mxu2 %v4378_v50  ;;  %v4407_v50 = vld [vmem:[%s5399_s1 + $0x880] sm:$0xff] }
  0xf5   :  { %2816 = vmatpush.bf16.msrb.mxu3 %v4386_v51  ;;  %v4415_v51 = vld [vmem:[%s5399_s1 + $0x8c0] sm:$0xff] }
  0xf6   :  { %2778 = vmatpush.bf16.msrb.mxu0 %v4361_v57 }
  0xf7   :  { %2791 = vmatpush.bf16.msrb.mxu1 %v4369_v58 }
  0xf8   :  { %2804 = vmatpush.bf16.msrb.mxu2 %v4377_v60 }
  0xf9   :  { %2817 = vmatpush.bf16.msrb.mxu3 %v4385_v61 }
  0xfa   :  { %2779 = vmatpush.bf16.msrb.mxu0 %v4360_v62 }
  0xfb   :  { %2792 = vmatpush.bf16.msrb.mxu1 %v4368_v63 }
  0xfc   :  { %2805 = vmatpush.bf16.msrb.mxu2 %v4376_v0 }
  0xfd   :  { %2818 = vmatpush.bf16.msrb.mxu3 %v4384_v1 }
  0xfe   :  { %2780 = vmatpush.bf16.msrb.mxu0 %v4359_v4  ;;  %v2574_v20 = vpop.f32.mrf.mxu0 }
  0xff   :  { %2793 = vmatpush.bf16.msrb.mxu1 %v4367_v5  ;;  %v2575_v21 = vadd.f32 %v2574_v20, %v2562_v56  ;;  %v2587_v24 = vpop.f32.mrf.mxu1 }
 0x100   :  { %2806 = vmatpush.bf16.msrb.mxu2 %v4375_v6 }
 0x101   :  { %2819 = vmatpush.bf16.msrb.mxu3 %v4383_v7  ;;  %2781 = vmatmul.bf16.vlgmr.msrb.gmra.mxu0 %v5196_v32  ;;  %v2588_v27 = vadd.f32 %v2587_v24, %v2575_v21 }
 0x102   :  { %2825 = vmatpush.bf16.msra.mxu0 %v4398_v8  ;;  %2794 = vmatmul.bf16.vlgmr.msrb.gmra.mxu1 %v5200_v34 }
 0x103   :  { %2838 = vmatpush.bf16.msra.mxu1 %v4406_v9  ;;  %2807 = vmatmul.bf16.vlgmr.msrb.gmra.mxu2 %v5198_v33 }
 0x104   :  { %2851 = vmatpush.bf16.msra.mxu2 %v4414_v10  ;;  %2820 = vmatmul.bf16.vlgmr.msrb.gmra.mxu3 %v5202_v35 }
 0x105   :  { %2864 = vmatpush.bf16.msra.mxu3 %v4422_v11 }
 0x106   :  { %2826 = vmatpush.bf16.msra.mxu0 %v4397_v12  ;;  %v2600_v32 = vpop.f32.mrf.mxu2  ;;  %v2576_v35 = vpop.f32.mrf.mxu0 }
 0x107   :  { %2839 = vmatpush.bf16.msra.mxu1 %v4405_v13  ;;  %v2601_v33 = vadd.f32 %v2600_v32, %v2588_v27  ;;  %v2613_v34 = vpop.f32.mrf.mxu3  ;;  %v2589_v39 = vpop.f32.mrf.mxu1 }
 0x108   :  { %2852 = vmatpush.bf16.msra.mxu2 %v4413_v14 }
 0x109   :  { %2865 = vmatpush.bf16.msra.mxu3 %v4421_v15  ;;  %v2614_v36 = vadd.f32 %v2613_v34, %v2601_v33 }
 0x10a   :  { %2827 = vmatpush.bf16.msra.mxu0 %v4396_v16 }
 0x10b   :  { %2840 = vmatpush.bf16.msra.mxu1 %v4404_v17 }
 0x10c   :  { %2853 = vmatpush.bf16.msra.mxu2 %v4412_v18 }
 0x10d   :  { %2866 = vmatpush.bf16.msra.mxu3 %v4420_v19 }
 0x10e   :  { %2828 = vmatpush.bf16.msra.mxu0 %v4395_v22  ;;  %v2602_v46 = vpop.f32.mrf.mxu2  ;;  %v4424_v22 = vld [vmem:[%s5402_s2 + $0x8] sm:$0xff] }
 0x10f   :  { %2841 = vmatpush.bf16.msra.mxu1 %v4403_v23  ;;  %v2615_v47 = vpop.f32.mrf.mxu3 }
 0x110   :  { %2854 = vmatpush.bf16.msra.mxu2 %v4411_v25 }
 0x111   :  { %2867 = vmatpush.bf16.msra.mxu3 %v4419_v26  ;;  %v4423_v26 = vld [vmem:[%s5402_s2] sm:$0xff] }
 0x112   :  { %2829 = vmatpush.bf16.msra.mxu0 %v4394_v28 }
 0x113   :  { %2842 = vmatpush.bf16.msra.mxu1 %v4402_v29 }
 0x114   :  { %2855 = vmatpush.bf16.msra.mxu2 %v4410_v30 }
 0x115   :  { %2868 = vmatpush.bf16.msra.mxu3 %v4418_v31 }
 0x116   :  { %2830 = vmatpush.bf16.msra.mxu0 %v4393_v37 }
 0x117   :  { %2843 = vmatpush.bf16.msra.mxu1 %v4401_v38 }
 0x118   :  { %2856 = vmatpush.bf16.msra.mxu2 %v4409_v40 }
 0x119   :  { %2869 = vmatpush.bf16.msra.mxu3 %v4417_v41 }
 0x11a   :  { %2831 = vmatpush.bf16.msra.mxu0 %v4392_v42 }
 0x11b   :  { %2844 = vmatpush.bf16.msra.mxu1 %v4400_v43 }
 0x11c   :  { %2857 = vmatpush.bf16.msra.mxu2 %v4408_v44 }
 0x11d   :  { %2870 = vmatpush.bf16.msra.mxu3 %v4416_v45 }
 0x11e   :  { %2832 = vmatpush.bf16.msra.mxu0 %v4391_v48  ;;  %v2626_v56 = vpop.f32.mrf.mxu0 }
 0x11f   :  { %2845 = vmatpush.bf16.msra.mxu1 %v4399_v49  ;;  %v2627_v57 = vadd.f32 %v2626_v56, %v2614_v36  ;;  %v2639_v58 = vpop.f32.mrf.mxu1 }
 0x120   :  { %2858 = vmatpush.bf16.msra.mxu2 %v4407_v50 }
 0x121   :  { %2871 = vmatpush.bf16.msra.mxu3 %v4415_v51  ;;  %2833 = vmatmul.bf16.vlgmr.msra.gmra.mxu0 %v641_v52  ;;  %v2640_v59 = vadd.f32 %v2639_v58, %v2627_v57  ;;  %v4425_v57 = vld [vmem:[%s5401_s3] ss:$0 sm:$0xff] }
 0x122   :  { %2846 = vmatmul.bf16.vlgmr.msra.gmra.mxu1 %v642_v53  ;;  %2908 = vmatpush.bf16.msrb.mxu0 %v4424_v22 }
 0x123   :  { %2859 = vmatmul.bf16.vlgmr.msra.gmra.mxu2 %v643_v54 }
 0x124   :  { %2872 = vmatmul.bf16.vlgmr.msra.gmra.mxu3 %v644_v55  ;;  %v2915_v55 = vlaneseq }
 0x126   :  { %v2652_v60 = vpop.f32.mrf.mxu2  ;;  %v2628_v63 = vpop.f32.mrf.mxu0  ;;  %2909 = vmatpush.bf16.msrb.mxu0 %v4423_v26  ;;  %v2916_v56 = vand.u32 127, %v2915_v55 }
 0x127   :  { %v2653_v61 = vadd.f32 %v2652_v60, %v2640_v59  ;;  %v2665_v62 = vpop.f32.mrf.mxu3  ;;  %v2641_v1 = vpop.f32.mrf.mxu1 }
 0x128   :  { %vm2918_vm1 = vcmp.ge.s32.totalorder %v2916_v56, 1  ;;  %vm2919_vm2 = vcmp.lt.s32.totalorder %v2916_v56, 11  ;;  %vm2917_vm12 = vcmp.eq.s32.totalorder %v2916_v56, 0 }
 0x129   :  { %v2666_v0 = vadd.f32 %v2665_v62, %v2653_v61  ;;  %vm5386_vm3 = vmand %vm2918_vm1, %vm2919_vm2 }
 0x12e   :  { %v2654_v2 = vpop.f32.mrf.mxu2 }
 0x12f   :  { %v2667_v3 = vpop.f32.mrf.mxu3 }
 0x13e   :  { %v2678_v4 = vpop.f32.mrf.mxu0 }
 0x13f   :  { %v2679_v5 = vadd.f32 %v2678_v4, %v2666_v0  ;;  %v2691_v6 = vpop.f32.mrf.mxu1 }
 0x141   :  { %v2692_v7 = vadd.f32 %v2691_v6, %v2679_v5 }
 0x146   :  { %v2704_v8 = vpop.f32.mrf.mxu2  ;;  %v2680_v11 = vpop.f32.mrf.mxu0 }
 0x147   :  { %v2705_v9 = vadd.f32 %v2704_v8, %v2692_v7  ;;  %v2717_v10 = vpop.f32.mrf.mxu3  ;;  %v2693_v13 = vpop.f32.mrf.mxu1 }
 0x149   :  { %v2718_v12 = vadd.f32 %v2717_v10, %v2705_v9 }
 0x14e   :  { %v2706_v14 = vpop.f32.mrf.mxu2 }
 0x14f   :  { %v2719_v15 = vpop.f32.mrf.mxu3 }
 0x15e   :  { %v2730_v16 = vpop.f32.mrf.mxu0 }
 0x15f   :  { %v2743_v17 = vpop.f32.mrf.mxu1  ;;  %v2731_v29 = vadd.f32 %v2730_v16, %v2718_v12 }
 0x161   :  { %v2744_v33 = vadd.f32 %v2743_v17, %v2731_v29 }
 0x166   :  { %v2756_v18 = vpop.f32.mrf.mxu2  ;;  %v2732_v20 = vpop.f32.mrf.mxu0 }
 0x167   :  { %v2769_v19 = vpop.f32.mrf.mxu3  ;;  %v2745_v21 = vpop.f32.mrf.mxu1  ;;  %v2757_v34 = vadd.f32 %v2756_v18, %v2744_v33 }
 0x169   :  { %v2770_v37 = vadd.f32 %v2769_v19, %v2757_v34 }
 0x16e   :  { %v2758_v23 = vpop.f32.mrf.mxu2 }
 0x16f   :  { %v2771_v24 = vpop.f32.mrf.mxu3 }
 0x17e   :  { %v2782_v25 = vpop.f32.mrf.mxu0 }
 0x17f   :  { %v2795_v27 = vpop.f32.mrf.mxu1  ;;  %v2783_v38 = vadd.f32 %v2782_v25, %v2770_v37 }
 0x181   :  { %v2796_v39 = vadd.f32 %v2795_v27, %v2783_v38 }
 0x186   :  { %v2808_v28 = vpop.f32.mrf.mxu2  ;;  %v2784_v31 = vpop.f32.mrf.mxu0 }
 0x187   :  { %v2821_v30 = vpop.f32.mrf.mxu3  ;;  %v2797_v32 = vpop.f32.mrf.mxu1  ;;  %v2809_v40 = vadd.f32 %v2808_v28, %v2796_v39 }
 0x189   :  { %v2822_v41 = vadd.f32 %v2821_v30, %v2809_v40 }
 0x18e   :  { %v2810_v35 = vpop.f32.mrf.mxu2 }
 0x18f   :  { %v2823_v36 = vpop.f32.mrf.mxu3 }
 0x19e   :  { %v2834_v42 = vpop.f32.mrf.mxu0 }
 0x19f   :  { %v2847_v43 = vpop.f32.mrf.mxu1  ;;  %v2835_v44 = vadd.f32 %v2834_v42, %v2822_v41 }
 0x1a1   :  { %v2848_v45 = vadd.f32 %v2847_v43, %v2835_v44 }
 0x1a6   :  { %v2860_v46 = vpop.f32.mrf.mxu2  ;;  %v2836_v49 = vpop.f32.mrf.mxu0 }
 0x1a7   :  { %v2873_v47 = vpop.f32.mrf.mxu3  ;;  %v2861_v48 = vadd.f32 %v2860_v46, %v2848_v45  ;;  %v2849_v50 = vpop.f32.mrf.mxu1 }
 0x1a9   :  { %v2874_v51 = vadd.f32 %v2873_v47, %v2861_v48 }
 0x1ab   :  { %v2877_v52 = vpack.c.bf16 %v2874_v51, %v2874_v51 }
 0x1ad   :  { %4134 = vmatmul.msk.bf16.vlgmr.msrb.gmra.mxu0 %vm2898_vm0, %v2877_v52 }
 0x1ae   :  { %v2862_v53 = vpop.f32.mrf.mxu2 }
 0x1af   :  { %v2875_v54 = vpop.f32.mrf.mxu3 }
 0x22a   :  { %v2911_v58 = vpop.f32.mrf.mxu0 }
 0x22b   :  { %v2912_v60 = vadd.f32 %v4425_v57, %v2911_v58 }
 0x22d   :  { %v2940_v61 = vsel %vm5386_vm3, %v2912_v60, -1e+30  ;;  %v2921_v6 = vsub.f32 0.0, %v2912_v60 }
 0x22e   :  { %v2942_v62 = vsel %vm2941_vm4, %v2940_v61, -inf }
 0x22f   :  { %2943 = vmax.xlane.f32.xlu0 %v2942_v62  ;;  %v2922_v7 = vmul.f32 1.442695, %v2921_v6 }
 0x232   :  { %v2913_v63 = vpop.f32.mrf.mxu0 }
 0x2a2   :  { %v2944_v0 = vpop.xlane.xlu0 %2943 }
 0x2a3   :  { %v2945_v1 = vsub.f32 %v2940_v61, %v2944_v0 }
 0x2a5   :  { %v2946_v2 = vmul.f32 1.442695, %v2945_v1 }
 0x2a7   :  { %4426 = vpow2.f32 %v2946_v2 }
 0x2a8   :  { %4428 = vpow2.f32 %v2922_v7 }
 0x2ad   :  { %v4427_v3 = vpop.eup %4426 }
 0x2ae   :  { %v2948_v4 = vsel %vm5386_vm3, %v4427_v3, 0.0  ;;  %v4429_v8 = vpop.eup %4428 }
 0x2af   :  { %v2949_v5 = vsel %vm2941_vm4, %v2948_v4, 0.0  ;;  %v2924_v9 = vadd.f32 1.0, %v4429_v8 }
 0x2b0   :  { %2950 = vadd.xlane.f32.xlu0 %v2949_v5 }
 0x2b1   :  { %4430 = vrcp.f32 %v2924_v9  ;;  %v2936_v22 = vand.u32 2147483648, %v2924_v9  ;;  %vm2930_vm8 = vweird.f32 %v2924_v9  ;;  %v2934_v24 = vand.u32 2147483647, %v2924_v9 }
 0x2b3   :  { %v2937_v29 = vor.u32 1.1754944e-38, %v2936_v22  ;;  %vm2935_vm13 = vcmp.eq.f32.partialorder %v2934_v24, 8.507059e+37 }
 0x2b7   :  { %v4431_v10 = vpop.eup %4430 }
 0x2b8   :  { %v2926_v12 = vmul.f32 %v4431_v10, %v2924_v9  ;;  %vm2931_vm6 = vweird.f32 %v4431_v10 }
 0x2b9   :  { %vm2932_vm10 = vmor %vm2930_vm8, %vm2931_vm6 }
 0x2ba   :  { %v2927_v13 = vsub.f32 1.0, %v2926_v12 }
 0x2bc   :  { %v2928_v16 = vmul.f32 %v4431_v10, %v2927_v13 }
 0x2be   :  { %v2929_v21 = vadd.f32 %v4431_v10, %v2928_v16 }
 0x2c0   :  { %v2933_v27 = vsel %vm2932_vm10, %v4431_v10, %v2929_v21 }
 0x2c1   :  { %v2938_v31 = vsel %vm2935_vm13, %v2937_v29, %v2933_v27 }
 0x323   :  { %v2951_v11 = vpop.xlane.xlu0 %2950 }
 0x324   :  { %4432 = vrcp.f32 %v2951_v11  ;;  %v2963_v18 = vand.u32 2147483648, %v2951_v11  ;;  %v2961_v20 = vand.u32 2147483647, %v2951_v11  ;;  %vm2957_vm7 = vweird.f32 %v2951_v11 }
 0x326   :  { %v2964_v25 = vor.u32 1.1754944e-38, %v2963_v18  ;;  %vm2962_vm11 = vcmp.eq.f32.partialorder %v2961_v20, 8.507059e+37 }
 0x32a   :  { %v4433_v14 = vpop.eup %4432 }
 0x32b   :  { %v2953_v15 = vmul.f32 %v4433_v14, %v2951_v11  ;;  %vm2958_vm5 = vweird.f32 %v4433_v14 }
 0x32c   :  { %vm2959_vm9 = vmor %vm2957_vm7, %vm2958_vm5 }
 0x32d   :  { %v2954_v17 = vsub.f32 1.0, %v2953_v15 }
 0x32f   :  { %v2955_v19 = vmul.f32 %v4433_v14, %v2954_v17 }
 0x331   :  { %v2956_v23 = vadd.f32 %v4433_v14, %v2955_v19 }
 0x333   :  { %v2960_v26 = vsel %vm2959_vm9, %v4433_v14, %v2956_v23 }
 0x334   :  { %v2965_v28 = vsel %vm2962_vm11, %v2964_v25, %v2960_v26 }
 0x335   :  { %v2966_v30 = vmul.f32 %v2965_v28, %v2948_v4 }
 0x337   :  { %v2967_v32 = vsel %vm5386_vm3, %v2966_v30, 0.0 }
 0x338   :  { %v2968_v33 = vsel %vm2917_vm12, %v2938_v31, %v2967_v32 }
 0x339   :  { %2969 = vst [vmem:[%s5403_s4] sm:$0x3] %v2968_v33 }

</bundles_post_ra>
